<compile_context>
chip_gen: v7x
topology: tpu7x:2x2x1
jax: 0.10.0
libtpu: 0.0.40
codegen_flags: <defaults>
</compile_context>

<pallas_src>
import functools

import jax
import jax.numpy as jnp
from jax.experimental import pallas as pl
from jax.experimental.pallas import tpu as pltpu


# ----------------------------------------------------------------------------
# model dimensions (toy sizes consistent with the module)
# ----------------------------------------------------------------------------
B, C, H, W = 2, 3, 16, 16
PATCH = 8
N_PATCH = (H // PATCH) * (W // PATCH)      # 4
SEQ_V = N_PATCH + 1                        # 5 (CLS + patches)
D_V = 32                                   # vision width
D_T = 32                                   # text width
EMBED = 32                                 # shared embed dim
HEADS = 4
DH = D_V // HEADS
N_CLS = 4
T_SEQ = 8
N_VLAYERS = 2
LN_EPS = 1e-5

# fixed ordering of the per-block kernel parameters (stacked over layers)
_BLOCK_KEYS = ("ln1_g", "ln1_b", "wq", "wk", "wv", "bq", "bk", "bv", "wo", "bo",
               "ln2_g", "ln2_b", "fc1_w", "fc1_b", "fc2_w", "fc2_b")

_COMPILER_PARAMS = pltpu.CompilerParams(vmem_limit_bytes=32 * 1024 * 1024)


# ----------------------------------------------------------------------------
# in-kernel math helpers (f32 elementwise, bf16 only at the MXU)
# ----------------------------------------------------------------------------

def _ln(x, g, b, eps=LN_EPS):
    mu = jnp.mean(x, axis=-1, keepdims=True)
    var = jnp.mean(jnp.square(x - mu), axis=-1, keepdims=True)
    return (x - mu) * jax.lax.rsqrt(var + eps) * g + b


def _quick_gelu(x):
    return x * jax.nn.sigmoid(1.702 * x)


def _mha_block(x, l, blk, mask):
    """One CLIP ResidualAttentionBlock on a [S, D] token slab (weights at layer l).

    blk is the tuple of stacked refs in _BLOCK_KEYS order.  Attention is computed
    with head-major weights ([H, D, dh]) via batched einsums, so no in-kernel
    reshapes / transposes / lane slicing are needed.  Elementwise math stays f32;
    MXU operands are cast to bf16 with f32 accumulation.
    """
    (ln1_g, ln1_b, wq, wk, wv, bq, bk, bv, wo, bo,
     ln2_g, ln2_b, fc1_w, fc1_b, fc2_w, fc2_b) = blk
    s_len, d = x.shape
    n_heads, d_head = wq.shape[1], wq.shape[3]
    scale = d_head ** -0.5

    # ---------- attention sublayer ----------
    h = _ln(x, ln1_g[l], ln1_b[l])
    hb = jnp.broadcast_to(h.astype(jnp.bfloat16)[None, :, :], (n_heads, s_len, d))
    q = jnp.einsum('hsd,hde->hse', hb, wq[l],
                   preferred_element_type=jnp.float32) + bq[l]           # [H,S,dh]
    k = jnp.einsum('hsd,hde->hse', hb, wk[l],
                   preferred_element_type=jnp.float32) + bk[l]
    v = jnp.einsum('hsd,hde->hse', hb, wv[l],
                   preferred_element_type=jnp.float32) + bv[l]

    s = jnp.einsum('hse,hte->hst', q.astype(jnp.bfloat16), k.astype(jnp.bfloat16),
                   preferred_element_type=jnp.float32) * scale           # [H,S,S] f32
    if mask is not None:
        s = s + mask[None, :, :]      # additive mask stays in f32 scores (safe)
    s = s - jnp.max(s, axis=-1, keepdims=True)
    p = jnp.exp(s)
    # EUP reciprocal (approx); switch approx=False for strict parity tests.
    p = p * pl.reciprocal(jnp.sum(p, axis=-1, keepdims=True), approx=True)

    ctx = jnp.einsum('hst,htd->hsd', p.astype(jnp.bfloat16), v.astype(jnp.bfloat16),
                     preferred_element_type=jnp.float32)                 # [H,S,dh]
    per_head = jnp.einsum('hsd,hdo->hso', ctx.astype(jnp.bfloat16), wo[l],
                          preferred_element_type=jnp.float32)            # [H,S,D]
    x = x + jnp.sum(per_head, axis=0) + bo[l]

    # ---------- MLP sublayer (QuickGELU, as in CLIP) ----------
    h = _ln(x, ln2_g[l], ln2_b[l])
    h = jnp.dot(h.astype(jnp.bfloat16), fc1_w[l],
                preferred_element_type=jnp.float32) + fc1_b[l]
    h = _quick_gelu(h)
    h = jnp.dot(h.astype(jnp.bfloat16), fc2_w[l],
                preferred_element_type=jnp.float32) + fc2_b[l]
    return x + h


# ----------------------------------------------------------------------------
# Kernel 1: whole image encoder (grid-less, fully VMEM-resident)
# ----------------------------------------------------------------------------

def _image_encoder_kernel(patches_ref, patch_w_ref, cls_ref, pos_ref,
                          ln_pre_g_ref, ln_pre_b_ref, *rest):
    blk = rest[:16]
    ln_post_g_ref, ln_post_b_ref, vproj_ref, out_ref = rest[16:]

    batch = out_ref.shape[0]
    n_patch = patches_ref.shape[0] // batch
    n_layers = blk[0].shape[0]

    # patch-embed conv (stride == kernel) as one matmul for all batches
    pe = jnp.dot(patches_ref[...].astype(jnp.bfloat16), patch_w_ref[...],
                 preferred_element_type=jnp.float32)                     # [B*NP, D_V]
    cls_tok = cls_ref[...]
    pos = pos_ref[...]

    rows = []
    for b in range(batch):                       # static loop; model is tiny & resident
        xb = jnp.concatenate([cls_tok, pe[b * n_patch:(b + 1) * n_patch]], axis=0) + pos
        xb = _ln(xb, ln_pre_g_ref[...], ln_pre_b_ref[...])
        last_cls = xb[0:1, :]
        for l in range(n_layers):
            xb = _mha_block(xb, l, blk, None)
            if l == n_layers - 2:                # tokens after the penultimate block
                last_cls = xb[0:1, :]
        non_proj_cls = _ln(xb[0:1, :], ln_post_g_ref[...], ln_post_b_ref[...])
        proj_cls = jnp.dot(non_proj_cls.astype(jnp.bfloat16), vproj_ref[...],
                           preferred_element_type=jnp.float32)
        # pack (last | non_proj | proj) side by side -> one lane-dense-ish slab
        rows.append(jnp.concatenate([last_cls, non_proj_cls, proj_cls], axis=1))
    out_ref[...] = jnp.concatenate(rows, axis=0)


def image_encoder_cls_features(image, pp):
    """Single launch; returns packed [B, 2*D_V + EMBED] CLS features."""
    b = image.shape[0]
    # im2col for the stride==kernel patch conv (wrapper-side layout plumbing only)
    x = image.reshape(b, C, H // PATCH, PATCH, W // PATCH, PATCH)
    x = x.transpose(0, 2, 4, 1, 3, 5).reshape(b * N_PATCH, C * PATCH * PATCH)
    inputs = [x, pp["patch_w"], pp["cls"], pp["pos_v"],
              pp["ln_pre_g"], pp["ln_pre_b"],
              *pp["vblocks"],
              pp["ln_post_g"], pp["ln_post_b"], pp["vproj"]]
    return pl.pallas_call(
        _image_encoder_kernel,
        out_shape=jax.ShapeDtypeStruct((b, 2 * D_V + EMBED), jnp.float32),
        compiler_params=_COMPILER_PARAMS,
    )(*inputs)


# ----------------------------------------------------------------------------
# Kernel 2: whole text encoder (+ fused logits for the training branch)
# ----------------------------------------------------------------------------

def _text_encoder_kernel(prompts_ref, pos_ref, gather_ref, *rest, with_logits):
    blk = rest[:16]
    if with_logits:
        (lnf_g_ref, lnf_b_ref, tproj_ref, img_ref,
         text_out_ref, logits_ref) = rest[16:]
    else:
        (lnf_g_ref, lnf_b_ref, tproj_ref, text_out_ref) = rest[16:]

    n_cls, t, _ = prompts_ref.shape
    n_layers = blk[0].shape[0]
    pos = pos_ref[...]

    # causal mask: built once per kernel invocation (hoisted out of the class loop)
    row = jax.lax.broadcasted_iota(jnp.int32, (t, t), 0)
    col = jax.lax.broadcasted_iota(jnp.int32, (t, t), 1)
    mask = jnp.where(col > row, jnp.float32(-1e30), jnp.float32(0.0))

    xs = []
    for c in range(n_cls):                       # static loop; fully VMEM-resident
        xc = prompts_ref[c] + pos
        for l in range(n_layers):
            xc = _mha_block(xc, l, blk, mask)
        xs.append(xc)
    x_all = jnp.concatenate(xs, axis=0)          # [n_cls*t, D]

    # EOT gather as one exact one-hot contraction (no dynamic slices / HBM gather)
    xe = jnp.dot(gather_ref[...], x_all, preferred_element_type=jnp.float32)
    tf = jnp.dot(_ln(xe, lnf_g_ref[...], lnf_b_ref[...]).astype(jnp.bfloat16),
                 tproj_ref[...], preferred_element_type=jnp.float32)     # [n_cls, E]
    text_out_ref[...] = tf

    if with_logits:
        # logits = image_features @ text_features.T (raw — matches the module: no
        # L2 norm, no logit_scale), contraction done in-kernel.
        logits_ref[...] = jax.lax.dot_general(
            img_ref[...].astype(jnp.bfloat16), tf.astype(jnp.bfloat16),
            dimension_numbers=(((1,), (1,)), ((), ())),
            preferred_element_type=jnp.float32)


def text_encoder_features(prompts, tokenized_prompts, pp, image_features=None):
    n, t, _ = prompts.shape
    eot = jnp.argmax(tokenized_prompts, axis=-1).astype(jnp.int32)
    gather = jax.nn.one_hot(jnp.arange(n, dtype=jnp.int32) * t + eot, n * t,
                            dtype=jnp.float32)                            # [n, n*t]
    with_logits = image_features is not None
    kern = functools.partial(_text_encoder_kernel, with_logits=with_logits)
    inputs = [prompts, pp["pos_t"], gather, *pp["tblocks"],
              pp["ln_final_g"], pp["ln_final_b"], pp["text_projection"]]
    if with_logits:
        inputs.append(image_features)
        out_shape = (jax.ShapeDtypeStruct((n, EMBED), jnp.float32),
                     jax.ShapeDtypeStruct((image_features.shape[0], n), jnp.float32))
    else:
        out_shape = jax.ShapeDtypeStruct((n, EMBED), jnp.float32)
    return pl.pallas_call(kern, out_shape=out_shape,
                          compiler_params=_COMPILER_PARAMS)(*inputs)


# ----------------------------------------------------------------------------
# parameter init (torch-like layout) + wrapper-side kernel-ready preparation
# ----------------------------------------------------------------------------

def _init_block(it, d, scale=0.02):
    def nrm(shape):
        return (jax.random.normal(next(it), shape) * scale).astype(jnp.float32)
    return dict(
        ln1_g=jnp.ones((1, d), jnp.float32), ln1_b=jnp.zeros((1, d), jnp.float32),
        qkv_w=nrm((d, 3 * d)), qkv_b=jnp.zeros((1, 3 * d), jnp.float32),
        proj_w=nrm((d, d)), proj_b=jnp.zeros((1, d), jnp.float32),
        ln2_g=jnp.ones((1, d), jnp.float32), ln2_b=jnp.zeros((1, d), jnp.float32),
        fc1_w=nrm((d, 4 * d)), fc1_b=jnp.zeros((1, 4 * d), jnp.float32),
        fc2_w=nrm((4 * d, d)), fc2_b=jnp.zeros((1, d), jnp.float32),
    )


def init_params(key):
    keys = jax.random.split(key, 64)
    it = iter(keys)

    def nrm(shape, scale=0.02):
        return (jax.random.normal(next(it), shape) * scale).astype(jnp.float32)

    return dict(
        # ----- image encoder (CLIP visual) -----
        patch_w=nrm((C * PATCH * PATCH, D_V)),
        cls=nrm((1, 1, D_V)),
        pos_v=nrm((SEQ_V, D_V)),
        ln_pre_g=jnp.ones((1, D_V), jnp.float32), ln_pre_b=jnp.zeros((1, D_V), jnp.float32),
        vblock1=_init_block(it, D_V),
        vblock2=_init_block(it, D_V),
        ln_post_g=jnp.ones((1, D_V), jnp.float32), ln_post_b=jnp.zeros((1, D_V), jnp.float32),
        vproj=nrm((D_V, EMBED)),
        # ----- text encoder -----
        pos_t=nrm((T_SEQ, D_T)),
        tblock=_init_block(it, D_T),
        ln_final_g=jnp.ones((1, D_T), jnp.float32), ln_final_b=jnp.zeros((1, D_T), jnp.float32),
        text_projection=nrm((D_T, EMBED)),
        # stored but unused in forward (matches the PyTorch module)
        logit_scale=jnp.asarray(jnp.log(1.0 / 0.07), jnp.float32),
    )


def _prep_block(p):
    """torch-like block params -> head-major, bf16 MXU weights (wrapper-side)."""
    d = p["qkv_w"].shape[0]
    dh = d // HEADS

    def heads_w(w):                              # [D, D] slab -> [H, D, dh]
        return w.reshape(d, HEADS, dh).transpose(1, 0, 2)

    qkv_w, qkv_b = p["qkv_w"], p["qkv_b"].reshape(-1)
    return dict(
        ln1_g=p["ln1_g"], ln1_b=p["ln1_b"],
        wq=heads_w(qkv_w[:, 0:d]).astype(jnp.bfloat16),
        wk=heads_w(qkv_w[:, d:2 * d]).astype(jnp.bfloat16),
        wv=heads_w(qkv_w[:, 2 * d:3 * d]).astype(jnp.bfloat16),
        bq=qkv_b[0:d].reshape(HEADS, 1, dh),
        bk=qkv_b[d:2 * d].reshape(HEADS, 1, dh),
        bv=qkv_b[2 * d:3 * d].reshape(HEADS, 1, dh),
        wo=p["proj_w"].reshape(HEADS, dh, d).astype(jnp.bfloat16),
        bo=p["proj_b"],
        ln2_g=p["ln2_g"], ln2_b=p["ln2_b"],
        fc1_w=p["fc1_w"].astype(jnp.bfloat16), fc1_b=p["fc1_b"],
        fc2_w=p["fc2_w"].astype(jnp.bfloat16), fc2_b=p["fc2_b"],
    )


def _stack_blocks(blocks):
    return [jnp.stack([blk[k] for blk in blocks], axis=0) for k in _BLOCK_KEYS]


def prepare_params(params):
    return dict(
        patch_w=params["patch_w"].astype(jnp.bfloat16),
        cls=params["cls"].reshape(1, D_V),
        pos_v=params["pos_v"],
        ln_pre_g=params["ln_pre_g"], ln_pre_b=params["ln_pre_b"],
        vblocks=_stack_blocks([_prep_block(params["vblock1"]),
                               _prep_block(params["vblock2"])]),
        ln_post_g=params["ln_post_g"], ln_post_b=params["ln_post_b"],
        vproj=params["vproj"].astype(jnp.bfloat16),
        pos_t=params["pos_t"],
        tblocks=_stack_blocks([_prep_block(params["tblock"])]),
        ln_final_g=params["ln_final_g"], ln_final_b=params["ln_final_b"],
        text_projection=params["text_projection"].astype(jnp.bfloat16),
        logit_scale=params["logit_scale"],
    )


# ----------------------------------------------------------------------------
# CustomCLIPIVLP.forward
# ----------------------------------------------------------------------------

def custom_clip_ivlp_forward(pp, image=None, label=None, get_image=False,
                             get_texts=False, prompts=None, tokenized_prompts=None,
                             training=True):
    # amp / .type(self.dtype) are handled by f32 activations + bf16 MXU operands.
    if get_texts:
        return text_encoder_features(prompts, tokenized_prompts, pp)

    packed = image_encoder_cls_features(image, pp)        # [B, 96] = (last|non_proj|proj)
    last_cls = packed[:, :D_V]
    non_proj_cls = packed[:, D_V:2 * D_V]
    proj_cls = packed[:, 2 * D_V:]

    if get_image:
        return proj_cls
    if training:
        text_features, logits = text_encoder_features(
            prompts, tokenized_prompts, pp, image_features=proj_cls)
        return (text_features, proj_cls, logits,
                [last_cls, non_proj_cls, proj_cls], proj_cls)
    # eval: cat(non_proj_cls, proj_cls) — contiguous in the packed slab
    return packed[:, D_V:]


# ----------------------------------------------------------------------------

if __name__ == "__main__":
    key = jax.random.PRNGKey(0)
    k_img, k_prm, k_tok, k_par = jax.random.split(key, 4)

    image = jax.random.normal(k_img, (B, C, H, W), dtype=jnp.float32)
    prompts = jax.random.normal(k_prm, (N_CLS, T_SEQ, D_T), dtype=jnp.float32) * 0.02
    tokenized_prompts = jax.random.randint(k_tok, (N_CLS, T_SEQ), 1, 100)
    tokenized_prompts = tokenized_prompts.at[:, T_SEQ - 2].set(49407)  # EOT token

    params = init_params(k_par)
    prepped = prepare_params(params)

    @functools.partial(jax.jit, static_argnames=("get_image", "get_texts", "training"))
    def fwd(pp, image, prompts, tokenized_prompts, get_image=False, get_texts=False,
            training=True):
        return custom_clip_ivlp_forward(pp, image=image, prompts=prompts,
                                        tokenized_prompts=tokenized_prompts,
                                        get_image=get_image, get_texts=get_texts,
                                        training=training)

    out_train = fwd(prepped, image, prompts, tokenized_prompts, training=True)
    out_eval = fwd(prepped, image, prompts, tokenized_prompts, training=False)
    txt_only = fwd(prepped, image, prompts, tokenized_prompts, get_texts=True)
    img_only = fwd(prepped, image, prompts, tokenized_prompts, get_image=True)
    jax.block_until_ready((out_train, out_eval, txt_only, img_only))

    text_features, image_features, logits, feat_list, _ = out_train
    assert text_features.shape == (N_CLS, EMBED)
    assert image_features.shape == (B, EMBED)
    assert logits.shape == (B, N_CLS)
    assert feat_list[0].shape == (B, D_V)
    assert feat_list[1].shape == (B, D_V)
    assert feat_list[2].shape == (B, EMBED)
    assert out_eval.shape == (B, D_V + EMBED)
    assert txt_only.shape == (N_CLS, EMBED)
    assert img_only.shape == (B, EMBED)

    # internal consistency between branches (same kernels, different fusion paths)
    assert bool(jnp.allclose(out_eval,
                             jnp.concatenate([feat_list[1], feat_list[2]], axis=1),
                             atol=1e-5))
    assert bool(jnp.allclose(txt_only, text_features, atol=1e-5))
    assert all(bool(jnp.all(jnp.isfinite(a)))
               for a in (text_features, image_features, logits, out_eval))
    print("KERNEL_OK")
</pallas_src>

<mosaic_0001>
module attributes {stable_mosaic.version = 11 : i64} {
  func.func @_text_encoder_kernel(%arg0: memref<4x8x32xf32, #tpu.memory_space<vmem>>, %arg1: memref<8x32xf32, #tpu.memory_space<vmem>>, %arg2: memref<4x32xf32, #tpu.memory_space<vmem>>, %arg3: memref<1x1x32xf32, #tpu.memory_space<vmem>>, %arg4: memref<1x1x32xf32, #tpu.memory_space<vmem>>, %arg5: memref<1x4x32x8xbf16, #tpu.memory_space<vmem>>, %arg6: memref<1x4x32x8xbf16, #tpu.memory_space<vmem>>, %arg7: memref<1x4x32x8xbf16, #tpu.memory_space<vmem>>, %arg8: memref<1x4x1x8xf32, #tpu.memory_space<vmem>>, %arg9: memref<1x4x1x8xf32, #tpu.memory_space<vmem>>, %arg10: memref<1x4x1x8xf32, #tpu.memory_space<vmem>>, %arg11: memref<1x4x8x32xbf16, #tpu.memory_space<vmem>>, %arg12: memref<1x1x32xf32, #tpu.memory_space<vmem>>, %arg13: memref<1x1x32xf32, #tpu.memory_space<vmem>>, %arg14: memref<1x1x32xf32, #tpu.memory_space<vmem>>, %arg15: memref<1x32x128xbf16, #tpu.memory_space<vmem>>, %arg16: memref<1x1x128xf32, #tpu.memory_space<vmem>>, %arg17: memref<1x128x32xbf16, #tpu.memory_space<vmem>>, %arg18: memref<1x1x32xf32, #tpu.memory_space<vmem>>, %arg19: memref<1x32xf32, #tpu.memory_space<vmem>>, %arg20: memref<1x32xf32, #tpu.memory_space<vmem>>, %arg21: memref<32x32xbf16, #tpu.memory_space<vmem>>, %arg22: memref<2x32xf32, #tpu.memory_space<vmem>>, %arg23: memref<4x32xf32, #tpu.memory_space<vmem>>, %arg24: memref<2x4xf32, #tpu.memory_space<vmem>>) attributes {dimension_semantics = [], scalar_prefetch = 0 : i64, scratch_operands = 0 : i64, tpu.core_type = #tpu.core_type<tc>} {
    %c0 = arith.constant 0 : index
    %c0_0 = arith.constant 0 : index
    %0 = vector.load %arg1[%c0, %c0_0] : memref<8x32xf32, #tpu.memory_space<vmem>>, vector<8x32xf32>
    %1 = tpu.iota {dimensions = array<i32: 0>} : vector<8x8xi32>
    %2 = tpu.iota {dimensions = array<i32: 1>} : vector<8x8xi32>
    %3 = arith.cmpi sgt, %2, %1 : vector<8x8xi32>
    %cst = arith.constant -1.000000e+30 : f32
    %cst_1 = arith.constant 0.000000e+00 : f32
    %4 = vector.broadcast %cst : f32 to vector<8x8xf32>
    %5 = vector.broadcast %cst_1 : f32 to vector<8x8xf32>
    %6 = arith.select %3, %4, %5 : vector<8x8xi1>, vector<8x8xf32>
    %c0_2 = arith.constant 0 : index
    %c0_3 = arith.constant 0 : index
    %c0_4 = arith.constant 0 : index
    %7 = vector.load %arg0[%c0_2, %c0_3, %c0_4] : memref<4x8x32xf32, #tpu.memory_space<vmem>>, vector<1x8x32xf32>
    %8 = vector.shape_cast %7 : vector<1x8x32xf32> to vector<8x32xf32>
    %9 = arith.addf %8, %0 : vector<8x32xf32>
    %c0_5 = arith.constant 0 : index
    %c0_6 = arith.constant 0 : index
    %c0_7 = arith.constant 0 : index
    %10 = vector.load %arg3[%c0_5, %c0_6, %c0_7] : memref<1x1x32xf32, #tpu.memory_space<vmem>>, vector<1x1x32xf32>
    %11 = vector.shape_cast %10 : vector<1x1x32xf32> to vector<1x32xf32>
    %c0_8 = arith.constant 0 : index
    %c0_9 = arith.constant 0 : index
    %c0_10 = arith.constant 0 : index
    %12 = vector.load %arg4[%c0_8, %c0_9, %c0_10] : memref<1x1x32xf32, #tpu.memory_space<vmem>>, vector<1x1x32xf32>
    %13 = vector.shape_cast %12 : vector<1x1x32xf32> to vector<1x32xf32>
    %cst_11 = arith.constant dense<0.000000e+00> : vector<8xf32>
    %14 = vector.multi_reduction <add>, %9, %cst_11 [1] : vector<8x32xf32> to vector<8xf32>
    %15 = vector.shape_cast %14 : vector<8xf32> to vector<8x1xf32>
    %cst_12 = arith.constant 3.200000e+01 : f32
    %16 = vector.broadcast %cst_12 : f32 to vector<8x1xf32>
    %17 = arith.divf %15, %16 : vector<8x1xf32>
    %18 = vector.broadcast %17 : vector<8x1xf32> to vector<8x32xf32>
    %19 = arith.subf %9, %18 : vector<8x32xf32>
    %20 = arith.mulf %19, %19 : vector<8x32xf32>
    %cst_13 = arith.constant dense<0.000000e+00> : vector<8xf32>
    %21 = vector.multi_reduction <add>, %20, %cst_13 [1] : vector<8x32xf32> to vector<8xf32>
    %22 = vector.shape_cast %21 : vector<8xf32> to vector<8x1xf32>
    %cst_14 = arith.constant 3.200000e+01 : f32
    %23 = vector.broadcast %cst_14 : f32 to vector<8x1xf32>
    %24 = arith.divf %22, %23 : vector<8x1xf32>
    %25 = vector.broadcast %17 : vector<8x1xf32> to vector<8x32xf32>
    %26 = arith.subf %9, %25 : vector<8x32xf32>
    %cst_15 = arith.constant 9.99999974E-6 : f32
    %27 = vector.broadcast %cst_15 : f32 to vector<8x1xf32>
    %28 = arith.addf %24, %27 : vector<8x1xf32>
    %29 = math.rsqrt %28 : vector<8x1xf32>
    %30 = vector.broadcast %29 : vector<8x1xf32> to vector<8x32xf32>
    %31 = arith.mulf %26, %30 : vector<8x32xf32>
    %32 = vector.broadcast %11 : vector<1x32xf32> to vector<8x32xf32>
    %33 = arith.mulf %31, %32 : vector<8x32xf32>
    %34 = vector.broadcast %13 : vector<1x32xf32> to vector<8x32xf32>
    %35 = arith.addf %33, %34 : vector<8x32xf32>
    %36 = arith.truncf %35 : vector<8x32xf32> to vector<8x32xbf16>
    %37 = vector.shape_cast %36 : vector<8x32xbf16> to vector<1x8x32xbf16>
    %38 = vector.shape_cast %37 : vector<1x8x32xbf16> to vector<1x8x32xbf16>
    %39 = vector.broadcast %38 : vector<1x8x32xbf16> to vector<4x8x32xbf16>
    %c0_16 = arith.constant 0 : index
    %c0_17 = arith.constant 0 : index
    %c0_18 = arith.constant 0 : index
    %c0_19 = arith.constant 0 : index
    %40 = vector.load %arg5[%c0_16, %c0_17, %c0_18, %c0_19] : memref<1x4x32x8xbf16, #tpu.memory_space<vmem>>, vector<1x4x32x8xbf16>
    %41 = vector.shape_cast %40 : vector<1x4x32x8xbf16> to vector<4x32x8xbf16>
    "tpu.trace_start"() <{level = 10 : i32, message = "hsd,hde->hse"}> : () -> ()
    %cst_20 = arith.constant dense<0.000000e+00> : vector<4x8x8xf32>
    %42 = tpu.matmul %39, %41, %cst_20 {dimension_numbers = #tpu.dot_dimension_numbers<[2], [1], [1], [2], [0, 0, 0, 1, 1, 2], [0], [0]>} : vector<4x8x32xbf16>, vector<4x32x8xbf16>, vector<4x8x8xf32> -> vector<4x8x8xf32>
    "tpu.trace_stop"() : () -> ()
    %c0_21 = arith.constant 0 : index
    %c0_22 = arith.constant 0 : index
    %c0_23 = arith.constant 0 : index
    %c0_24 = arith.constant 0 : index
    %43 = vector.load %arg8[%c0_21, %c0_22, %c0_23, %c0_24] : memref<1x4x1x8xf32, #tpu.memory_space<vmem>>, vector<1x4x1x8xf32>
    %44 = vector.shape_cast %43 : vector<1x4x1x8xf32> to vector<4x1x8xf32>
    %45 = vector.broadcast %44 : vector<4x1x8xf32> to vector<4x8x8xf32>
    %46 = arith.addf %42, %45 : vector<4x8x8xf32>
    %c0_25 = arith.constant 0 : index
    %c0_26 = arith.constant 0 : index
    %c0_27 = arith.constant 0 : index
    %c0_28 = arith.constant 0 : index
    %47 = vector.load %arg6[%c0_25, %c0_26, %c0_27, %c0_28] : memref<1x4x32x8xbf16, #tpu.memory_space<vmem>>, vector<1x4x32x8xbf16>
    %48 = vector.shape_cast %47 : vector<1x4x32x8xbf16> to vector<4x32x8xbf16>
    "tpu.trace_start"() <{level = 10 : i32, message = "hsd,hde->hse"}> : () -> ()
    %cst_29 = arith.constant dense<0.000000e+00> : vector<4x8x8xf32>
    %49 = tpu.matmul %39, %48, %cst_29 {dimension_numbers = #tpu.dot_dimension_numbers<[2], [1], [1], [2], [0, 0, 0, 1, 1, 2], [0], [0]>} : vector<4x8x32xbf16>, vector<4x32x8xbf16>, vector<4x8x8xf32> -> vector<4x8x8xf32>
    "tpu.trace_stop"() : () -> ()
    %c0_30 = arith.constant 0 : index
    %c0_31 = arith.constant 0 : index
    %c0_32 = arith.constant 0 : index
    %c0_33 = arith.constant 0 : index
    %50 = vector.load %arg9[%c0_30, %c0_31, %c0_32, %c0_33] : memref<1x4x1x8xf32, #tpu.memory_space<vmem>>, vector<1x4x1x8xf32>
    %51 = vector.shape_cast %50 : vector<1x4x1x8xf32> to vector<4x1x8xf32>
    %52 = vector.broadcast %51 : vector<4x1x8xf32> to vector<4x8x8xf32>
    %53 = arith.addf %49, %52 : vector<4x8x8xf32>
    %c0_34 = arith.constant 0 : index
    %c0_35 = arith.constant 0 : index
    %c0_36 = arith.constant 0 : index
    %c0_37 = arith.constant 0 : index
    %54 = vector.load %arg7[%c0_34, %c0_35, %c0_36, %c0_37] : memref<1x4x32x8xbf16, #tpu.memory_space<vmem>>, vector<1x4x32x8xbf16>
    %55 = vector.shape_cast %54 : vector<1x4x32x8xbf16> to vector<4x32x8xbf16>
    "tpu.trace_start"() <{level = 10 : i32, message = "hsd,hde->hse"}> : () -> ()
    %cst_38 = arith.constant dense<0.000000e+00> : vector<4x8x8xf32>
    %56 = tpu.matmul %39, %55, %cst_38 {dimension_numbers = #tpu.dot_dimension_numbers<[2], [1], [1], [2], [0, 0, 0, 1, 1, 2], [0], [0]>} : vector<4x8x32xbf16>, vector<4x32x8xbf16>, vector<4x8x8xf32> -> vector<4x8x8xf32>
    "tpu.trace_stop"() : () -> ()
    %c0_39 = arith.constant 0 : index
    %c0_40 = arith.constant 0 : index
    %c0_41 = arith.constant 0 : index
    %c0_42 = arith.constant 0 : index
    %57 = vector.load %arg10[%c0_39, %c0_40, %c0_41, %c0_42] : memref<1x4x1x8xf32, #tpu.memory_space<vmem>>, vector<1x4x1x8xf32>
    %58 = vector.shape_cast %57 : vector<1x4x1x8xf32> to vector<4x1x8xf32>
    %59 = vector.broadcast %58 : vector<4x1x8xf32> to vector<4x8x8xf32>
    %60 = arith.addf %56, %59 : vector<4x8x8xf32>
    %61 = arith.truncf %46 : vector<4x8x8xf32> to vector<4x8x8xbf16>
    %62 = arith.truncf %53 : vector<4x8x8xf32> to vector<4x8x8xbf16>
    "tpu.trace_start"() <{level = 10 : i32, message = "hse,hte->hst"}> : () -> ()
    %cst_43 = arith.constant dense<0.000000e+00> : vector<4x8x8xf32>
    %63 = tpu.matmul %61, %62, %cst_43 {dimension_numbers = #tpu.dot_dimension_numbers<[2], [2], [1], [1], [0, 0, 0, 1, 1, 1], [0], [0]>} : vector<4x8x8xbf16>, vector<4x8x8xbf16>, vector<4x8x8xf32> -> vector<4x8x8xf32>
    "tpu.trace_stop"() : () -> ()
    %cst_44 = arith.constant 0.353553385 : f32
    %64 = vector.broadcast %cst_44 : f32 to vector<4x8x8xf32>
    %65 = arith.mulf %63, %64 : vector<4x8x8xf32>
    %66 = vector.shape_cast %6 : vector<8x8xf32> to vector<1x8x8xf32>
    %67 = vector.broadcast %66 : vector<1x8x8xf32> to vector<4x8x8xf32>
    %68 = arith.addf %65, %67 : vector<4x8x8xf32>
    %cst_45 = arith.constant dense<0xFF800000> : vector<4x8xf32>
    %69 = vector.multi_reduction <maximumf>, %68, %cst_45 [2] : vector<4x8x8xf32> to vector<4x8xf32>
    %70 = vector.shape_cast %69 : vector<4x8xf32> to vector<4x8x1xf32>
    %71 = vector.broadcast %70 : vector<4x8x1xf32> to vector<4x8x8xf32>
    %72 = arith.subf %68, %71 : vector<4x8x8xf32>
    %73 = math.exp %72 : vector<4x8x8xf32>
    %cst_46 = arith.constant dense<0.000000e+00> : vector<4x8xf32>
    %74 = vector.multi_reduction <add>, %73, %cst_46 [2] : vector<4x8x8xf32> to vector<4x8xf32>
    %75 = vector.shape_cast %74 : vector<4x8xf32> to vector<4x8x1xf32>
    %76 = tpu.reciprocal %75 {approx = true} : vector<4x8x1xf32> -> vector<4x8x1xf32>
    %77 = vector.broadcast %76 : vector<4x8x1xf32> to vector<4x8x8xf32>
    %78 = arith.mulf %73, %77 : vector<4x8x8xf32>
    %79 = arith.truncf %78 : vector<4x8x8xf32> to vector<4x8x8xbf16>
    %80 = arith.truncf %60 : vector<4x8x8xf32> to vector<4x8x8xbf16>
    "tpu.trace_start"() <{level = 10 : i32, message = "hst,htd->hsd"}> : () -> ()
    %cst_47 = arith.constant dense<0.000000e+00> : vector<4x8x8xf32>
    %81 = tpu.matmul %79, %80, %cst_47 {dimension_numbers = #tpu.dot_dimension_numbers<[2], [1], [1], [2], [0, 0, 0, 1, 1, 2], [0], [0]>} : vector<4x8x8xbf16>, vector<4x8x8xbf16>, vector<4x8x8xf32> -> vector<4x8x8xf32>
    "tpu.trace_stop"() : () -> ()
    %82 = arith.truncf %81 : vector<4x8x8xf32> to vector<4x8x8xbf16>
    %c0_48 = arith.constant 0 : index
    %c0_49 = arith.constant 0 : index
    %c0_50 = arith.constant 0 : index
    %c0_51 = arith.constant 0 : index
    %83 = vector.load %arg11[%c0_48, %c0_49, %c0_50, %c0_51] : memref<1x4x8x32xbf16, #tpu.memory_space<vmem>>, vector<1x4x8x32xbf16>
    %84 = vector.shape_cast %83 : vector<1x4x8x32xbf16> to vector<4x8x32xbf16>
    "tpu.trace_start"() <{level = 10 : i32, message = "hsd,hdo->hso"}> : () -> ()
    %cst_52 = arith.constant dense<0.000000e+00> : vector<4x8x32xf32>
    %85 = tpu.matmul %82, %84, %cst_52 {dimension_numbers = #tpu.dot_dimension_numbers<[2], [1], [1], [2], [0, 0, 0, 1, 1, 2], [0], [0]>} : vector<4x8x8xbf16>, vector<4x8x32xbf16>, vector<4x8x32xf32> -> vector<4x8x32xf32>
    "tpu.trace_stop"() : () -> ()
    %cst_53 = arith.constant dense<0.000000e+00> : vector<8x32xf32>
    %86 = vector.multi_reduction <add>, %85, %cst_53 [0] : vector<4x8x32xf32> to vector<8x32xf32>
    %87 = arith.addf %9, %86 : vector<8x32xf32>
    %c0_54 = arith.constant 0 : index
    %c0_55 = arith.constant 0 : index
    %c0_56 = arith.constant 0 : index
    %88 = vector.load %arg12[%c0_54, %c0_55, %c0_56] : memref<1x1x32xf32, #tpu.memory_space<vmem>>, vector<1x1x32xf32>
    %89 = vector.shape_cast %88 : vector<1x1x32xf32> to vector<1x32xf32>
    %90 = vector.broadcast %89 : vector<1x32xf32> to vector<8x32xf32>
    %91 = arith.addf %87, %90 : vector<8x32xf32>
    %c0_57 = arith.constant 0 : index
    %c0_58 = arith.constant 0 : index
    %c0_59 = arith.constant 0 : index
    %92 = vector.load %arg13[%c0_57, %c0_58, %c0_59] : memref<1x1x32xf32, #tpu.memory_space<vmem>>, vector<1x1x32xf32>
    %93 = vector.shape_cast %92 : vector<1x1x32xf32> to vector<1x32xf32>
    %c0_60 = arith.constant 0 : index
    %c0_61 = arith.constant 0 : index
    %c0_62 = arith.constant 0 : index
    %94 = vector.load %arg14[%c0_60, %c0_61, %c0_62] : memref<1x1x32xf32, #tpu.memory_space<vmem>>, vector<1x1x32xf32>
    %95 = vector.shape_cast %94 : vector<1x1x32xf32> to vector<1x32xf32>
    %cst_63 = arith.constant dense<0.000000e+00> : vector<8xf32>
    %96 = vector.multi_reduction <add>, %91, %cst_63 [1] : vector<8x32xf32> to vector<8xf32>
    %97 = vector.shape_cast %96 : vector<8xf32> to vector<8x1xf32>
    %cst_64 = arith.constant 3.200000e+01 : f32
    %98 = vector.broadcast %cst_64 : f32 to vector<8x1xf32>
    %99 = arith.divf %97, %98 : vector<8x1xf32>
    %100 = vector.broadcast %99 : vector<8x1xf32> to vector<8x32xf32>
    %101 = arith.subf %91, %100 : vector<8x32xf32>
    %102 = arith.mulf %101, %101 : vector<8x32xf32>
    %cst_65 = arith.constant dense<0.000000e+00> : vector<8xf32>
    %103 = vector.multi_reduction <add>, %102, %cst_65 [1] : vector<8x32xf32> to vector<8xf32>
    %104 = vector.shape_cast %103 : vector<8xf32> to vector<8x1xf32>
    %cst_66 = arith.constant 3.200000e+01 : f32
    %105 = vector.broadcast %cst_66 : f32 to vector<8x1xf32>
    %106 = arith.divf %104, %105 : vector<8x1xf32>
    %107 = vector.broadcast %99 : vector<8x1xf32> to vector<8x32xf32>
    %108 = arith.subf %91, %107 : vector<8x32xf32>
    %cst_67 = arith.constant 9.99999974E-6 : f32
    %109 = vector.broadcast %cst_67 : f32 to vector<8x1xf32>
    %110 = arith.addf %106, %109 : vector<8x1xf32>
    %111 = math.rsqrt %110 : vector<8x1xf32>
    %112 = vector.broadcast %111 : vector<8x1xf32> to vector<8x32xf32>
    %113 = arith.mulf %108, %112 : vector<8x32xf32>
    %114 = vector.broadcast %93 : vector<1x32xf32> to vector<8x32xf32>
    %115 = arith.mulf %113, %114 : vector<8x32xf32>
    %116 = vector.broadcast %95 : vector<1x32xf32> to vector<8x32xf32>
    %117 = arith.addf %115, %116 : vector<8x32xf32>
    %118 = arith.truncf %117 : vector<8x32xf32> to vector<8x32xbf16>
    %c0_68 = arith.constant 0 : index
    %c0_69 = arith.constant 0 : index
    %c0_70 = arith.constant 0 : index
    %119 = vector.load %arg15[%c0_68, %c0_69, %c0_70] : memref<1x32x128xbf16, #tpu.memory_space<vmem>>, vector<1x32x128xbf16>
    %120 = vector.shape_cast %119 : vector<1x32x128xbf16> to vector<32x128xbf16>
    %cst_71 = arith.constant dense<0.000000e+00> : vector<8x128xf32>
    %121 = tpu.matmul %118, %120, %cst_71 {dimension_numbers = #tpu.dot_dimension_numbers<[1], [0], [0], [1], [0, 0, 1, 1], [], []>} : vector<8x32xbf16>, vector<32x128xbf16>, vector<8x128xf32> -> vector<8x128xf32>
    %c0_72 = arith.constant 0 : index
    %c0_73 = arith.constant 0 : index
    %c0_74 = arith.constant 0 : index
    %122 = vector.load %arg16[%c0_72, %c0_73, %c0_74] : memref<1x1x128xf32, #tpu.memory_space<vmem>>, vector<1x1x128xf32>
    %123 = vector.shape_cast %122 : vector<1x1x128xf32> to vector<1x128xf32>
    %124 = vector.broadcast %123 : vector<1x128xf32> to vector<8x128xf32>
    %125 = arith.addf %121, %124 : vector<8x128xf32>
    %cst_75 = arith.constant 1.702000e+00 : f32
    %126 = vector.broadcast %cst_75 : f32 to vector<8x128xf32>
    %127 = arith.mulf %126, %125 : vector<8x128xf32>
    %128 = arith.negf %127 : vector<8x128xf32>
    %129 = math.exp %128 : vector<8x128xf32>
    %cst_76 = arith.constant 1.000000e+00 : f32
    %130 = vector.broadcast %cst_76 : f32 to vector<8x128xf32>
    %131 = arith.addf %130, %129 : vector<8x128xf32>
    %132 = arith.divf %130, %131 : vector<8x128xf32>
    %133 = arith.mulf %125, %132 : vector<8x128xf32>
    %134 = arith.truncf %133 : vector<8x128xf32> to vector<8x128xbf16>
    %c0_77 = arith.constant 0 : index
    %c0_78 = arith.constant 0 : index
    %c0_79 = arith.constant 0 : index
    %135 = vector.load %arg17[%c0_77, %c0_78, %c0_79] : memref<1x128x32xbf16, #tpu.memory_space<vmem>>, vector<1x128x32xbf16>
    %136 = vector.shape_cast %135 : vector<1x128x32xbf16> to vector<128x32xbf16>
    %cst_80 = arith.constant dense<0.000000e+00> : vector<8x32xf32>
    %137 = tpu.matmul %134, %136, %cst_80 {dimension_numbers = #tpu.dot_dimension_numbers<[1], [0], [0], [1], [0, 0, 1, 1], [], []>} : vector<8x128xbf16>, vector<128x32xbf16>, vector<8x32xf32> -> vector<8x32xf32>
    %c0_81 = arith.constant 0 : index
    %c0_82 = arith.constant 0 : index
    %c0_83 = arith.constant 0 : index
    %138 = vector.load %arg18[%c0_81, %c0_82, %c0_83] : memref<1x1x32xf32, #tpu.memory_space<vmem>>, vector<1x1x32xf32>
    %139 = vector.shape_cast %138 : vector<1x1x32xf32> to vector<1x32xf32>
    %140 = vector.broadcast %139 : vector<1x32xf32> to vector<8x32xf32>
    %141 = arith.addf %137, %140 : vector<8x32xf32>
    %142 = arith.addf %91, %141 : vector<8x32xf32>
    %c1 = arith.constant 1 : index
    %c0_84 = arith.constant 0 : index
    %c0_85 = arith.constant 0 : index
    %143 = vector.load %arg0[%c1, %c0_84, %c0_85] : memref<4x8x32xf32, #tpu.memory_space<vmem>>, vector<1x8x32xf32>
    %144 = vector.shape_cast %143 : vector<1x8x32xf32> to vector<8x32xf32>
    %145 = arith.addf %144, %0 : vector<8x32xf32>
    %c0_86 = arith.constant 0 : index
    %c0_87 = arith.constant 0 : index
    %c0_88 = arith.constant 0 : index
    %146 = vector.load %arg3[%c0_86, %c0_87, %c0_88] : memref<1x1x32xf32, #tpu.memory_space<vmem>>, vector<1x1x32xf32>
    %147 = vector.shape_cast %146 : vector<1x1x32xf32> to vector<1x32xf32>
    %c0_89 = arith.constant 0 : index
    %c0_90 = arith.constant 0 : index
    %c0_91 = arith.constant 0 : index
    %148 = vector.load %arg4[%c0_89, %c0_90, %c0_91] : memref<1x1x32xf32, #tpu.memory_space<vmem>>, vector<1x1x32xf32>
    %149 = vector.shape_cast %148 : vector<1x1x32xf32> to vector<1x32xf32>
    %cst_92 = arith.constant dense<0.000000e+00> : vector<8xf32>
    %150 = vector.multi_reduction <add>, %145, %cst_92 [1] : vector<8x32xf32> to vector<8xf32>
    %151 = vector.shape_cast %150 : vector<8xf32> to vector<8x1xf32>
    %cst_93 = arith.constant 3.200000e+01 : f32
    %152 = vector.broadcast %cst_93 : f32 to vector<8x1xf32>
    %153 = arith.divf %151, %152 : vector<8x1xf32>
    %154 = vector.broadcast %153 : vector<8x1xf32> to vector<8x32xf32>
    %155 = arith.subf %145, %154 : vector<8x32xf32>
    %156 = arith.mulf %155, %155 : vector<8x32xf32>
    %cst_94 = arith.constant dense<0.000000e+00> : vector<8xf32>
    %157 = vector.multi_reduction <add>, %156, %cst_94 [1] : vector<8x32xf32> to vector<8xf32>
    %158 = vector.shape_cast %157 : vector<8xf32> to vector<8x1xf32>
    %cst_95 = arith.constant 3.200000e+01 : f32
    %159 = vector.broadcast %cst_95 : f32 to vector<8x1xf32>
    %160 = arith.divf %158, %159 : vector<8x1xf32>
    %161 = vector.broadcast %153 : vector<8x1xf32> to vector<8x32xf32>
    %162 = arith.subf %145, %161 : vector<8x32xf32>
    %cst_96 = arith.constant 9.99999974E-6 : f32
    %163 = vector.broadcast %cst_96 : f32 to vector<8x1xf32>
    %164 = arith.addf %160, %163 : vector<8x1xf32>
    %165 = math.rsqrt %164 : vector<8x1xf32>
    %166 = vector.broadcast %165 : vector<8x1xf32> to vector<8x32xf32>
    %167 = arith.mulf %162, %166 : vector<8x32xf32>
    %168 = vector.broadcast %147 : vector<1x32xf32> to vector<8x32xf32>
    %169 = arith.mulf %167, %168 : vector<8x32xf32>
    %170 = vector.broadcast %149 : vector<1x32xf32> to vector<8x32xf32>
    %171 = arith.addf %169, %170 : vector<8x32xf32>
    %172 = arith.truncf %171 : vector<8x32xf32> to vector<8x32xbf16>
    %173 = vector.shape_cast %172 : vector<8x32xbf16> to vector<1x8x32xbf16>
    %174 = vector.shape_cast %173 : vector<1x8x32xbf16> to vector<1x8x32xbf16>
    %175 = vector.broadcast %174 : vector<1x8x32xbf16> to vector<4x8x32xbf16>
    %c0_97 = arith.constant 0 : index
    %c0_98 = arith.constant 0 : index
    %c0_99 = arith.constant 0 : index
    %c0_100 = arith.constant 0 : index
    %176 = vector.load %arg5[%c0_97, %c0_98, %c0_99, %c0_100] : memref<1x4x32x8xbf16, #tpu.memory_space<vmem>>, vector<1x4x32x8xbf16>
    %177 = vector.shape_cast %176 : vector<1x4x32x8xbf16> to vector<4x32x8xbf16>
    "tpu.trace_start"() <{level = 10 : i32, message = "hsd,hde->hse"}> : () -> ()
    %cst_101 = arith.constant dense<0.000000e+00> : vector<4x8x8xf32>
    %178 = tpu.matmul %175, %177, %cst_101 {dimension_numbers = #tpu.dot_dimension_numbers<[2], [1], [1], [2], [0, 0, 0, 1, 1, 2], [0], [0]>} : vector<4x8x32xbf16>, vector<4x32x8xbf16>, vector<4x8x8xf32> -> vector<4x8x8xf32>
    "tpu.trace_stop"() : () -> ()
    %c0_102 = arith.constant 0 : index
    %c0_103 = arith.constant 0 : index
    %c0_104 = arith.constant 0 : index
    %c0_105 = arith.constant 0 : index
    %179 = vector.load %arg8[%c0_102, %c0_103, %c0_104, %c0_105] : memref<1x4x1x8xf32, #tpu.memory_space<vmem>>, vector<1x4x1x8xf32>
    %180 = vector.shape_cast %179 : vector<1x4x1x8xf32> to vector<4x1x8xf32>
    %181 = vector.broadcast %180 : vector<4x1x8xf32> to vector<4x8x8xf32>
    %182 = arith.addf %178, %181 : vector<4x8x8xf32>
    %c0_106 = arith.constant 0 : index
    %c0_107 = arith.constant 0 : index
    %c0_108 = arith.constant 0 : index
    %c0_109 = arith.constant 0 : index
    %183 = vector.load %arg6[%c0_106, %c0_107, %c0_108, %c0_109] : memref<1x4x32x8xbf16, #tpu.memory_space<vmem>>, vector<1x4x32x8xbf16>
    %184 = vector.shape_cast %183 : vector<1x4x32x8xbf16> to vector<4x32x8xbf16>
    "tpu.trace_start"() <{level = 10 : i32, message = "hsd,hde->hse"}> : () -> ()
    %cst_110 = arith.constant dense<0.000000e+00> : vector<4x8x8xf32>
    %185 = tpu.matmul %175, %184, %cst_110 {dimension_numbers = #tpu.dot_dimension_numbers<[2], [1], [1], [2], [0, 0, 0, 1, 1, 2], [0], [0]>} : vector<4x8x32xbf16>, vector<4x32x8xbf16>, vector<4x8x8xf32> -> vector<4x8x8xf32>
    "tpu.trace_stop"() : () -> ()
    %c0_111 = arith.constant 0 : index
    %c0_112 = arith.constant 0 : index
    %c0_113 = arith.constant 0 : index
    %c0_114 = arith.constant 0 : index
    %186 = vector.load %arg9[%c0_111, %c0_112, %c0_113, %c0_114] : memref<1x4x1x8xf32, #tpu.memory_space<vmem>>, vector<1x4x1x8xf32>
    %187 = vector.shape_cast %186 : vector<1x4x1x8xf32> to vector<4x1x8xf32>
    %188 = vector.broadcast %187 : vector<4x1x8xf32> to vector<4x8x8xf32>
    %189 = arith.addf %185, %188 : vector<4x8x8xf32>
    %c0_115 = arith.constant 0 : index
    %c0_116 = arith.constant 0 : index
    %c0_117 = arith.constant 0 : index
    %c0_118 = arith.constant 0 : index
    %190 = vector.load %arg7[%c0_115, %c0_116, %c0_117, %c0_118] : memref<1x4x32x8xbf16, #tpu.memory_space<vmem>>, vector<1x4x32x8xbf16>
    %191 = vector.shape_cast %190 : vector<1x4x32x8xbf16> to vector<4x32x8xbf16>
    "tpu.trace_start"() <{level = 10 : i32, message = "hsd,hde->hse"}> : () -> ()
    %cst_119 = arith.constant dense<0.000000e+00> : vector<4x8x8xf32>
    %192 = tpu.matmul %175, %191, %cst_119 {dimension_numbers = #tpu.dot_dimension_numbers<[2], [1], [1], [2], [0, 0, 0, 1, 1, 2], [0], [0]>} : vector<4x8x32xbf16>, vector<4x32x8xbf16>, vector<4x8x8xf32> -> vector<4x8x8xf32>
    "tpu.trace_stop"() : () -> ()
    %c0_120 = arith.constant 0 : index
    %c0_121 = arith.constant 0 : index
    %c0_122 = arith.constant 0 : index
    %c0_123 = arith.constant 0 : index
    %193 = vector.load %arg10[%c0_120, %c0_121, %c0_122, %c0_123] : memref<1x4x1x8xf32, #tpu.memory_space<vmem>>, vector<1x4x1x8xf32>
    %194 = vector.shape_cast %193 : vector<1x4x1x8xf32> to vector<4x1x8xf32>
    %195 = vector.broadcast %194 : vector<4x1x8xf32> to vector<4x8x8xf32>
    %196 = arith.addf %192, %195 : vector<4x8x8xf32>
    %197 = arith.truncf %182 : vector<4x8x8xf32> to vector<4x8x8xbf16>
    %198 = arith.truncf %189 : vector<4x8x8xf32> to vector<4x8x8xbf16>
    "tpu.trace_start"() <{level = 10 : i32, message = "hse,hte->hst"}> : () -> ()
    %cst_124 = arith.constant dense<0.000000e+00> : vector<4x8x8xf32>
    %199 = tpu.matmul %197, %198, %cst_124 {dimension_numbers = #tpu.dot_dimension_numbers<[2], [2], [1], [1], [0, 0, 0, 1, 1, 1], [0], [0]>} : vector<4x8x8xbf16>, vector<4x8x8xbf16>, vector<4x8x8xf32> -> vector<4x8x8xf32>
    "tpu.trace_stop"() : () -> ()
    %cst_125 = arith.constant 0.353553385 : f32
    %200 = vector.broadcast %cst_125 : f32 to vector<4x8x8xf32>
    %201 = arith.mulf %199, %200 : vector<4x8x8xf32>
    %202 = vector.shape_cast %6 : vector<8x8xf32> to vector<1x8x8xf32>
    %203 = vector.broadcast %202 : vector<1x8x8xf32> to vector<4x8x8xf32>
    %204 = arith.addf %201, %203 : vector<4x8x8xf32>
    %cst_126 = arith.constant dense<0xFF800000> : vector<4x8xf32>
    %205 = vector.multi_reduction <maximumf>, %204, %cst_126 [2] : vector<4x8x8xf32> to vector<4x8xf32>
    %206 = vector.shape_cast %205 : vector<4x8xf32> to vector<4x8x1xf32>
    %207 = vector.broadcast %206 : vector<4x8x1xf32> to vector<4x8x8xf32>
    %208 = arith.subf %204, %207 : vector<4x8x8xf32>
    %209 = math.exp %208 : vector<4x8x8xf32>
    %cst_127 = arith.constant dense<0.000000e+00> : vector<4x8xf32>
    %210 = vector.multi_reduction <add>, %209, %cst_127 [2] : vector<4x8x8xf32> to vector<4x8xf32>
    %211 = vector.shape_cast %210 : vector<4x8xf32> to vector<4x8x1xf32>
    %212 = tpu.reciprocal %211 {approx = true} : vector<4x8x1xf32> -> vector<4x8x1xf32>
    %213 = vector.broadcast %212 : vector<4x8x1xf32> to vector<4x8x8xf32>
    %214 = arith.mulf %209, %213 : vector<4x8x8xf32>
    %215 = arith.truncf %214 : vector<4x8x8xf32> to vector<4x8x8xbf16>
    %216 = arith.truncf %196 : vector<4x8x8xf32> to vector<4x8x8xbf16>
    "tpu.trace_start"() <{level = 10 : i32, message = "hst,htd->hsd"}> : () -> ()
    %cst_128 = arith.constant dense<0.000000e+00> : vector<4x8x8xf32>
    %217 = tpu.matmul %215, %216, %cst_128 {dimension_numbers = #tpu.dot_dimension_numbers<[2], [1], [1], [2], [0, 0, 0, 1, 1, 2], [0], [0]>} : vector<4x8x8xbf16>, vector<4x8x8xbf16>, vector<4x8x8xf32> -> vector<4x8x8xf32>
    "tpu.trace_stop"() : () -> ()
    %218 = arith.truncf %217 : vector<4x8x8xf32> to vector<4x8x8xbf16>
    %c0_129 = arith.constant 0 : index
    %c0_130 = arith.constant 0 : index
    %c0_131 = arith.constant 0 : index
    %c0_132 = arith.constant 0 : index
    %219 = vector.load %arg11[%c0_129, %c0_130, %c0_131, %c0_132] : memref<1x4x8x32xbf16, #tpu.memory_space<vmem>>, vector<1x4x8x32xbf16>
    %220 = vector.shape_cast %219 : vector<1x4x8x32xbf16> to vector<4x8x32xbf16>
    "tpu.trace_start"() <{level = 10 : i32, message = "hsd,hdo->hso"}> : () -> ()
    %cst_133 = arith.constant dense<0.000000e+00> : vector<4x8x32xf32>
    %221 = tpu.matmul %218, %220, %cst_133 {dimension_numbers = #tpu.dot_dimension_numbers<[2], [1], [1], [2], [0, 0, 0, 1, 1, 2], [0], [0]>} : vector<4x8x8xbf16>, vector<4x8x32xbf16>, vector<4x8x32xf32> -> vector<4x8x32xf32>
    "tpu.trace_stop"() : () -> ()
    %cst_134 = arith.constant dense<0.000000e+00> : vector<8x32xf32>
    %222 = vector.multi_reduction <add>, %221, %cst_134 [0] : vector<4x8x32xf32> to vector<8x32xf32>
    %223 = arith.addf %145, %222 : vector<8x32xf32>
    %c0_135 = arith.constant 0 : index
    %c0_136 = arith.constant 0 : index
    %c0_137 = arith.constant 0 : index
    %224 = vector.load %arg12[%c0_135, %c0_136, %c0_137] : memref<1x1x32xf32, #tpu.memory_space<vmem>>, vector<1x1x32xf32>
    %225 = vector.shape_cast %224 : vector<1x1x32xf32> to vector<1x32xf32>
    %226 = vector.broadcast %225 : vector<1x32xf32> to vector<8x32xf32>
    %227 = arith.addf %223, %226 : vector<8x32xf32>
    %c0_138 = arith.constant 0 : index
    %c0_139 = arith.constant 0 : index
    %c0_140 = arith.constant 0 : index
    %228 = vector.load %arg13[%c0_138, %c0_139, %c0_140] : memref<1x1x32xf32, #tpu.memory_space<vmem>>, vector<1x1x32xf32>
    %229 = vector.shape_cast %228 : vector<1x1x32xf32> to vector<1x32xf32>
    %c0_141 = arith.constant 0 : index
    %c0_142 = arith.constant 0 : index
    %c0_143 = arith.constant 0 : index
    %230 = vector.load %arg14[%c0_141, %c0_142, %c0_143] : memref<1x1x32xf32, #tpu.memory_space<vmem>>, vector<1x1x32xf32>
    %231 = vector.shape_cast %230 : vector<1x1x32xf32> to vector<1x32xf32>
    %cst_144 = arith.constant dense<0.000000e+00> : vector<8xf32>
    %232 = vector.multi_reduction <add>, %227, %cst_144 [1] : vector<8x32xf32> to vector<8xf32>
    %233 = vector.shape_cast %232 : vector<8xf32> to vector<8x1xf32>
    %cst_145 = arith.constant 3.200000e+01 : f32
    %234 = vector.broadcast %cst_145 : f32 to vector<8x1xf32>
    %235 = arith.divf %233, %234 : vector<8x1xf32>
    %236 = vector.broadcast %235 : vector<8x1xf32> to vector<8x32xf32>
    %237 = arith.subf %227, %236 : vector<8x32xf32>
    %238 = arith.mulf %237, %237 : vector<8x32xf32>
    %cst_146 = arith.constant dense<0.000000e+00> : vector<8xf32>
    %239 = vector.multi_reduction <add>, %238, %cst_146 [1] : vector<8x32xf32> to vector<8xf32>
    %240 = vector.shape_cast %239 : vector<8xf32> to vector<8x1xf32>
    %cst_147 = arith.constant 3.200000e+01 : f32
    %241 = vector.broadcast %cst_147 : f32 to vector<8x1xf32>
    %242 = arith.divf %240, %241 : vector<8x1xf32>
    %243 = vector.broadcast %235 : vector<8x1xf32> to vector<8x32xf32>
    %244 = arith.subf %227, %243 : vector<8x32xf32>
    %cst_148 = arith.constant 9.99999974E-6 : f32
    %245 = vector.broadcast %cst_148 : f32 to vector<8x1xf32>
    %246 = arith.addf %242, %245 : vector<8x1xf32>
    %247 = math.rsqrt %246 : vector<8x1xf32>
    %248 = vector.broadcast %247 : vector<8x1xf32> to vector<8x32xf32>
    %249 = arith.mulf %244, %248 : vector<8x32xf32>
    %250 = vector.broadcast %229 : vector<1x32xf32> to vector<8x32xf32>
    %251 = arith.mulf %249, %250 : vector<8x32xf32>
    %252 = vector.broadcast %231 : vector<1x32xf32> to vector<8x32xf32>
    %253 = arith.addf %251, %252 : vector<8x32xf32>
    %254 = arith.truncf %253 : vector<8x32xf32> to vector<8x32xbf16>
    %c0_149 = arith.constant 0 : index
    %c0_150 = arith.constant 0 : index
    %c0_151 = arith.constant 0 : index
    %255 = vector.load %arg15[%c0_149, %c0_150, %c0_151] : memref<1x32x128xbf16, #tpu.memory_space<vmem>>, vector<1x32x128xbf16>
    %256 = vector.shape_cast %255 : vector<1x32x128xbf16> to vector<32x128xbf16>
    %cst_152 = arith.constant dense<0.000000e+00> : vector<8x128xf32>
    %257 = tpu.matmul %254, %256, %cst_152 {dimension_numbers = #tpu.dot_dimension_numbers<[1], [0], [0], [1], [0, 0, 1, 1], [], []>} : vector<8x32xbf16>, vector<32x128xbf16>, vector<8x128xf32> -> vector<8x128xf32>
    %c0_153 = arith.constant 0 : index
    %c0_154 = arith.constant 0 : index
    %c0_155 = arith.constant 0 : index
    %258 = vector.load %arg16[%c0_153, %c0_154, %c0_155] : memref<1x1x128xf32, #tpu.memory_space<vmem>>, vector<1x1x128xf32>
    %259 = vector.shape_cast %258 : vector<1x1x128xf32> to vector<1x128xf32>
    %260 = vector.broadcast %259 : vector<1x128xf32> to vector<8x128xf32>
    %261 = arith.addf %257, %260 : vector<8x128xf32>
    %cst_156 = arith.constant 1.702000e+00 : f32
    %262 = vector.broadcast %cst_156 : f32 to vector<8x128xf32>
    %263 = arith.mulf %262, %261 : vector<8x128xf32>
    %264 = arith.negf %263 : vector<8x128xf32>
    %265 = math.exp %264 : vector<8x128xf32>
    %cst_157 = arith.constant 1.000000e+00 : f32
    %266 = vector.broadcast %cst_157 : f32 to vector<8x128xf32>
    %267 = arith.addf %266, %265 : vector<8x128xf32>
    %268 = arith.divf %266, %267 : vector<8x128xf32>
    %269 = arith.mulf %261, %268 : vector<8x128xf32>
    %270 = arith.truncf %269 : vector<8x128xf32> to vector<8x128xbf16>
    %c0_158 = arith.constant 0 : index
    %c0_159 = arith.constant 0 : index
    %c0_160 = arith.constant 0 : index
    %271 = vector.load %arg17[%c0_158, %c0_159, %c0_160] : memref<1x128x32xbf16, #tpu.memory_space<vmem>>, vector<1x128x32xbf16>
    %272 = vector.shape_cast %271 : vector<1x128x32xbf16> to vector<128x32xbf16>
    %cst_161 = arith.constant dense<0.000000e+00> : vector<8x32xf32>
    %273 = tpu.matmul %270, %272, %cst_161 {dimension_numbers = #tpu.dot_dimension_numbers<[1], [0], [0], [1], [0, 0, 1, 1], [], []>} : vector<8x128xbf16>, vector<128x32xbf16>, vector<8x32xf32> -> vector<8x32xf32>
    %c0_162 = arith.constant 0 : index
    %c0_163 = arith.constant 0 : index
    %c0_164 = arith.constant 0 : index
    %274 = vector.load %arg18[%c0_162, %c0_163, %c0_164] : memref<1x1x32xf32, #tpu.memory_space<vmem>>, vector<1x1x32xf32>
    %275 = vector.shape_cast %274 : vector<1x1x32xf32> to vector<1x32xf32>
    %276 = vector.broadcast %275 : vector<1x32xf32> to vector<8x32xf32>
    %277 = arith.addf %273, %276 : vector<8x32xf32>
    %278 = arith.addf %227, %277 : vector<8x32xf32>
    %c2 = arith.constant 2 : index
    %c0_165 = arith.constant 0 : index
    %c0_166 = arith.constant 0 : index
    %279 = vector.load %arg0[%c2, %c0_165, %c0_166] : memref<4x8x32xf32, #tpu.memory_space<vmem>>, vector<1x8x32xf32>
    %280 = vector.shape_cast %279 : vector<1x8x32xf32> to vector<8x32xf32>
    %281 = arith.addf %280, %0 : vector<8x32xf32>
    %c0_167 = arith.constant 0 : index
    %c0_168 = arith.constant 0 : index
    %c0_169 = arith.constant 0 : index
    %282 = vector.load %arg3[%c0_167, %c0_168, %c0_169] : memref<1x1x32xf32, #tpu.memory_space<vmem>>, vector<1x1x32xf32>
    %283 = vector.shape_cast %282 : vector<1x1x32xf32> to vector<1x32xf32>
    %c0_170 = arith.constant 0 : index
    %c0_171 = arith.constant 0 : index
    %c0_172 = arith.constant 0 : index
    %284 = vector.load %arg4[%c0_170, %c0_171, %c0_172] : memref<1x1x32xf32, #tpu.memory_space<vmem>>, vector<1x1x32xf32>
    %285 = vector.shape_cast %284 : vector<1x1x32xf32> to vector<1x32xf32>
    %cst_173 = arith.constant dense<0.000000e+00> : vector<8xf32>
    %286 = vector.multi_reduction <add>, %281, %cst_173 [1] : vector<8x32xf32> to vector<8xf32>
    %287 = vector.shape_cast %286 : vector<8xf32> to vector<8x1xf32>
    %cst_174 = arith.constant 3.200000e+01 : f32
    %288 = vector.broadcast %cst_174 : f32 to vector<8x1xf32>
    %289 = arith.divf %287, %288 : vector<8x1xf32>
    %290 = vector.broadcast %289 : vector<8x1xf32> to vector<8x32xf32>
    %291 = arith.subf %281, %290 : vector<8x32xf32>
    %292 = arith.mulf %291, %291 : vector<8x32xf32>
    %cst_175 = arith.constant dense<0.000000e+00> : vector<8xf32>
    %293 = vector.multi_reduction <add>, %292, %cst_175 [1] : vector<8x32xf32> to vector<8xf32>
    %294 = vector.shape_cast %293 : vector<8xf32> to vector<8x1xf32>
    %cst_176 = arith.constant 3.200000e+01 : f32
    %295 = vector.broadcast %cst_176 : f32 to vector<8x1xf32>
    %296 = arith.divf %294, %295 : vector<8x1xf32>
    %297 = vector.broadcast %289 : vector<8x1xf32> to vector<8x32xf32>
    %298 = arith.subf %281, %297 : vector<8x32xf32>
    %cst_177 = arith.constant 9.99999974E-6 : f32
    %299 = vector.broadcast %cst_177 : f32 to vector<8x1xf32>
    %300 = arith.addf %296, %299 : vector<8x1xf32>
    %301 = math.rsqrt %300 : vector<8x1xf32>
    %302 = vector.broadcast %301 : vector<8x1xf32> to vector<8x32xf32>
    %303 = arith.mulf %298, %302 : vector<8x32xf32>
    %304 = vector.broadcast %283 : vector<1x32xf32> to vector<8x32xf32>
    %305 = arith.mulf %303, %304 : vector<8x32xf32>
    %306 = vector.broadcast %285 : vector<1x32xf32> to vector<8x32xf32>
    %307 = arith.addf %305, %306 : vector<8x32xf32>
    %308 = arith.truncf %307 : vector<8x32xf32> to vector<8x32xbf16>
    %309 = vector.shape_cast %308 : vector<8x32xbf16> to vector<1x8x32xbf16>
    %310 = vector.shape_cast %309 : vector<1x8x32xbf16> to vector<1x8x32xbf16>
    %311 = vector.broadcast %310 : vector<1x8x32xbf16> to vector<4x8x32xbf16>
    %c0_178 = arith.constant 0 : index
    %c0_179 = arith.constant 0 : index
    %c0_180 = arith.constant 0 : index
    %c0_181 = arith.constant 0 : index
    %312 = vector.load %arg5[%c0_178, %c0_179, %c0_180, %c0_181] : memref<1x4x32x8xbf16, #tpu.memory_space<vmem>>, vector<1x4x32x8xbf16>
    %313 = vector.shape_cast %312 : vector<1x4x32x8xbf16> to vector<4x32x8xbf16>
    "tpu.trace_start"() <{level = 10 : i32, message = "hsd,hde->hse"}> : () -> ()
    %cst_182 = arith.constant dense<0.000000e+00> : vector<4x8x8xf32>
    %314 = tpu.matmul %311, %313, %cst_182 {dimension_numbers = #tpu.dot_dimension_numbers<[2], [1], [1], [2], [0, 0, 0, 1, 1, 2], [0], [0]>} : vector<4x8x32xbf16>, vector<4x32x8xbf16>, vector<4x8x8xf32> -> vector<4x8x8xf32>
    "tpu.trace_stop"() : () -> ()
    %c0_183 = arith.constant 0 : index
    %c0_184 = arith.constant 0 : index
    %c0_185 = arith.constant 0 : index
    %c0_186 = arith.constant 0 : index
    %315 = vector.load %arg8[%c0_183, %c0_184, %c0_185, %c0_186] : memref<1x4x1x8xf32, #tpu.memory_space<vmem>>, vector<1x4x1x8xf32>
    %316 = vector.shape_cast %315 : vector<1x4x1x8xf32> to vector<4x1x8xf32>
    %317 = vector.broadcast %316 : vector<4x1x8xf32> to vector<4x8x8xf32>
    %318 = arith.addf %314, %317 : vector<4x8x8xf32>
    %c0_187 = arith.constant 0 : index
    %c0_188 = arith.constant 0 : index
    %c0_189 = arith.constant 0 : index
    %c0_190 = arith.constant 0 : index
    %319 = vector.load %arg6[%c0_187, %c0_188, %c0_189, %c0_190] : memref<1x4x32x8xbf16, #tpu.memory_space<vmem>>, vector<1x4x32x8xbf16>
    %320 = vector.shape_cast %319 : vector<1x4x32x8xbf16> to vector<4x32x8xbf16>
    "tpu.trace_start"() <{level = 10 : i32, message = "hsd,hde->hse"}> : () -> ()
    %cst_191 = arith.constant dense<0.000000e+00> : vector<4x8x8xf32>
    %321 = tpu.matmul %311, %320, %cst_191 {dimension_numbers = #tpu.dot_dimension_numbers<[2], [1], [1], [2], [0, 0, 0, 1, 1, 2], [0], [0]>} : vector<4x8x32xbf16>, vector<4x32x8xbf16>, vector<4x8x8xf32> -> vector<4x8x8xf32>
    "tpu.trace_stop"() : () -> ()
    %c0_192 = arith.constant 0 : index
    %c0_193 = arith.constant 0 : index
    %c0_194 = arith.constant 0 : index
    %c0_195 = arith.constant 0 : index
    %322 = vector.load %arg9[%c0_192, %c0_193, %c0_194, %c0_195] : memref<1x4x1x8xf32, #tpu.memory_space<vmem>>, vector<1x4x1x8xf32>
    %323 = vector.shape_cast %322 : vector<1x4x1x8xf32> to vector<4x1x8xf32>
    %324 = vector.broadcast %323 : vector<4x1x8xf32> to vector<4x8x8xf32>
    %325 = arith.addf %321, %324 : vector<4x8x8xf32>
    %c0_196 = arith.constant 0 : index
    %c0_197 = arith.constant 0 : index
    %c0_198 = arith.constant 0 : index
    %c0_199 = arith.constant 0 : index
    %326 = vector.load %arg7[%c0_196, %c0_197, %c0_198, %c0_199] : memref<1x4x32x8xbf16, #tpu.memory_space<vmem>>, vector<1x4x32x8xbf16>
    %327 = vector.shape_cast %326 : vector<1x4x32x8xbf16> to vector<4x32x8xbf16>
    "tpu.trace_start"() <{level = 10 : i32, message = "hsd,hde->hse"}> : () -> ()
    %cst_200 = arith.constant dense<0.000000e+00> : vector<4x8x8xf32>
    %328 = tpu.matmul %311, %327, %cst_200 {dimension_numbers = #tpu.dot_dimension_numbers<[2], [1], [1], [2], [0, 0, 0, 1, 1, 2], [0], [0]>} : vector<4x8x32xbf16>, vector<4x32x8xbf16>, vector<4x8x8xf32> -> vector<4x8x8xf32>
    "tpu.trace_stop"() : () -> ()
    %c0_201 = arith.constant 0 : index
    %c0_202 = arith.constant 0 : index
    %c0_203 = arith.constant 0 : index
    %c0_204 = arith.constant 0 : index
    %329 = vector.load %arg10[%c0_201, %c0_202, %c0_203, %c0_204] : memref<1x4x1x8xf32, #tpu.memory_space<vmem>>, vector<1x4x1x8xf32>
    %330 = vector.shape_cast %329 : vector<1x4x1x8xf32> to vector<4x1x8xf32>
    %331 = vector.broadcast %330 : vector<4x1x8xf32> to vector<4x8x8xf32>
    %332 = arith.addf %328, %331 : vector<4x8x8xf32>
    %333 = arith.truncf %318 : vector<4x8x8xf32> to vector<4x8x8xbf16>
    %334 = arith.truncf %325 : vector<4x8x8xf32> to vector<4x8x8xbf16>
    "tpu.trace_start"() <{level = 10 : i32, message = "hse,hte->hst"}> : () -> ()
    %cst_205 = arith.constant dense<0.000000e+00> : vector<4x8x8xf32>
    %335 = tpu.matmul %333, %334, %cst_205 {dimension_numbers = #tpu.dot_dimension_numbers<[2], [2], [1], [1], [0, 0, 0, 1, 1, 1], [0], [0]>} : vector<4x8x8xbf16>, vector<4x8x8xbf16>, vector<4x8x8xf32> -> vector<4x8x8xf32>
    "tpu.trace_stop"() : () -> ()
    %cst_206 = arith.constant 0.353553385 : f32
    %336 = vector.broadcast %cst_206 : f32 to vector<4x8x8xf32>
    %337 = arith.mulf %335, %336 : vector<4x8x8xf32>
    %338 = vector.shape_cast %6 : vector<8x8xf32> to vector<1x8x8xf32>
    %339 = vector.broadcast %338 : vector<1x8x8xf32> to vector<4x8x8xf32>
    %340 = arith.addf %337, %339 : vector<4x8x8xf32>
    %cst_207 = arith.constant dense<0xFF800000> : vector<4x8xf32>
    %341 = vector.multi_reduction <maximumf>, %340, %cst_207 [2] : vector<4x8x8xf32> to vector<4x8xf32>
    %342 = vector.shape_cast %341 : vector<4x8xf32> to vector<4x8x1xf32>
    %343 = vector.broadcast %342 : vector<4x8x1xf32> to vector<4x8x8xf32>
    %344 = arith.subf %340, %343 : vector<4x8x8xf32>
    %345 = math.exp %344 : vector<4x8x8xf32>
    %cst_208 = arith.constant dense<0.000000e+00> : vector<4x8xf32>
    %346 = vector.multi_reduction <add>, %345, %cst_208 [2] : vector<4x8x8xf32> to vector<4x8xf32>
    %347 = vector.shape_cast %346 : vector<4x8xf32> to vector<4x8x1xf32>
    %348 = tpu.reciprocal %347 {approx = true} : vector<4x8x1xf32> -> vector<4x8x1xf32>
    %349 = vector.broadcast %348 : vector<4x8x1xf32> to vector<4x8x8xf32>
    %350 = arith.mulf %345, %349 : vector<4x8x8xf32>
    %351 = arith.truncf %350 : vector<4x8x8xf32> to vector<4x8x8xbf16>
    %352 = arith.truncf %332 : vector<4x8x8xf32> to vector<4x8x8xbf16>
    "tpu.trace_start"() <{level = 10 : i32, message = "hst,htd->hsd"}> : () -> ()
    %cst_209 = arith.constant dense<0.000000e+00> : vector<4x8x8xf32>
    %353 = tpu.matmul %351, %352, %cst_209 {dimension_numbers = #tpu.dot_dimension_numbers<[2], [1], [1], [2], [0, 0, 0, 1, 1, 2], [0], [0]>} : vector<4x8x8xbf16>, vector<4x8x8xbf16>, vector<4x8x8xf32> -> vector<4x8x8xf32>
    "tpu.trace_stop"() : () -> ()
    %354 = arith.truncf %353 : vector<4x8x8xf32> to vector<4x8x8xbf16>
    %c0_210 = arith.constant 0 : index
    %c0_211 = arith.constant 0 : index
    %c0_212 = arith.constant 0 : index
    %c0_213 = arith.constant 0 : index
    %355 = vector.load %arg11[%c0_210, %c0_211, %c0_212, %c0_213] : memref<1x4x8x32xbf16, #tpu.memory_space<vmem>>, vector<1x4x8x32xbf16>
    %356 = vector.shape_cast %355 : vector<1x4x8x32xbf16> to vector<4x8x32xbf16>
    "tpu.trace_start"() <{level = 10 : i32, message = "hsd,hdo->hso"}> : () -> ()
    %cst_214 = arith.constant dense<0.000000e+00> : vector<4x8x32xf32>
    %357 = tpu.matmul %354, %356, %cst_214 {dimension_numbers = #tpu.dot_dimension_numbers<[2], [1], [1], [2], [0, 0, 0, 1, 1, 2], [0], [0]>} : vector<4x8x8xbf16>, vector<4x8x32xbf16>, vector<4x8x32xf32> -> vector<4x8x32xf32>
    "tpu.trace_stop"() : () -> ()
    %cst_215 = arith.constant dense<0.000000e+00> : vector<8x32xf32>
    %358 = vector.multi_reduction <add>, %357, %cst_215 [0] : vector<4x8x32xf32> to vector<8x32xf32>
    %359 = arith.addf %281, %358 : vector<8x32xf32>
    %c0_216 = arith.constant 0 : index
    %c0_217 = arith.constant 0 : index
    %c0_218 = arith.constant 0 : index
    %360 = vector.load %arg12[%c0_216, %c0_217, %c0_218] : memref<1x1x32xf32, #tpu.memory_space<vmem>>, vector<1x1x32xf32>
    %361 = vector.shape_cast %360 : vector<1x1x32xf32> to vector<1x32xf32>
    %362 = vector.broadcast %361 : vector<1x32xf32> to vector<8x32xf32>
    %363 = arith.addf %359, %362 : vector<8x32xf32>
    %c0_219 = arith.constant 0 : index
    %c0_220 = arith.constant 0 : index
    %c0_221 = arith.constant 0 : index
    %364 = vector.load %arg13[%c0_219, %c0_220, %c0_221] : memref<1x1x32xf32, #tpu.memory_space<vmem>>, vector<1x1x32xf32>
    %365 = vector.shape_cast %364 : vector<1x1x32xf32> to vector<1x32xf32>
    %c0_222 = arith.constant 0 : index
    %c0_223 = arith.constant 0 : index
    %c0_224 = arith.constant 0 : index
    %366 = vector.load %arg14[%c0_222, %c0_223, %c0_224] : memref<1x1x32xf32, #tpu.memory_space<vmem>>, vector<1x1x32xf32>
    %367 = vector.shape_cast %366 : vector<1x1x32xf32> to vector<1x32xf32>
    %cst_225 = arith.constant dense<0.000000e+00> : vector<8xf32>
    %368 = vector.multi_reduction <add>, %363, %cst_225 [1] : vector<8x32xf32> to vector<8xf32>
    %369 = vector.shape_cast %368 : vector<8xf32> to vector<8x1xf32>
    %cst_226 = arith.constant 3.200000e+01 : f32
    %370 = vector.broadcast %cst_226 : f32 to vector<8x1xf32>
    %371 = arith.divf %369, %370 : vector<8x1xf32>
    %372 = vector.broadcast %371 : vector<8x1xf32> to vector<8x32xf32>
    %373 = arith.subf %363, %372 : vector<8x32xf32>
    %374 = arith.mulf %373, %373 : vector<8x32xf32>
    %cst_227 = arith.constant dense<0.000000e+00> : vector<8xf32>
    %375 = vector.multi_reduction <add>, %374, %cst_227 [1] : vector<8x32xf32> to vector<8xf32>
    %376 = vector.shape_cast %375 : vector<8xf32> to vector<8x1xf32>
    %cst_228 = arith.constant 3.200000e+01 : f32
    %377 = vector.broadcast %cst_228 : f32 to vector<8x1xf32>
    %378 = arith.divf %376, %377 : vector<8x1xf32>
    %379 = vector.broadcast %371 : vector<8x1xf32> to vector<8x32xf32>
    %380 = arith.subf %363, %379 : vector<8x32xf32>
    %cst_229 = arith.constant 9.99999974E-6 : f32
    %381 = vector.broadcast %cst_229 : f32 to vector<8x1xf32>
    %382 = arith.addf %378, %381 : vector<8x1xf32>
    %383 = math.rsqrt %382 : vector<8x1xf32>
    %384 = vector.broadcast %383 : vector<8x1xf32> to vector<8x32xf32>
    %385 = arith.mulf %380, %384 : vector<8x32xf32>
    %386 = vector.broadcast %365 : vector<1x32xf32> to vector<8x32xf32>
    %387 = arith.mulf %385, %386 : vector<8x32xf32>
    %388 = vector.broadcast %367 : vector<1x32xf32> to vector<8x32xf32>
    %389 = arith.addf %387, %388 : vector<8x32xf32>
    %390 = arith.truncf %389 : vector<8x32xf32> to vector<8x32xbf16>
    %c0_230 = arith.constant 0 : index
    %c0_231 = arith.constant 0 : index
    %c0_232 = arith.constant 0 : index
    %391 = vector.load %arg15[%c0_230, %c0_231, %c0_232] : memref<1x32x128xbf16, #tpu.memory_space<vmem>>, vector<1x32x128xbf16>
    %392 = vector.shape_cast %391 : vector<1x32x128xbf16> to vector<32x128xbf16>
    %cst_233 = arith.constant dense<0.000000e+00> : vector<8x128xf32>
    %393 = tpu.matmul %390, %392, %cst_233 {dimension_numbers = #tpu.dot_dimension_numbers<[1], [0], [0], [1], [0, 0, 1, 1], [], []>} : vector<8x32xbf16>, vector<32x128xbf16>, vector<8x128xf32> -> vector<8x128xf32>
    %c0_234 = arith.constant 0 : index
    %c0_235 = arith.constant 0 : index
    %c0_236 = arith.constant 0 : index
    %394 = vector.load %arg16[%c0_234, %c0_235, %c0_236] : memref<1x1x128xf32, #tpu.memory_space<vmem>>, vector<1x1x128xf32>
    %395 = vector.shape_cast %394 : vector<1x1x128xf32> to vector<1x128xf32>
    %396 = vector.broadcast %395 : vector<1x128xf32> to vector<8x128xf32>
    %397 = arith.addf %393, %396 : vector<8x128xf32>
    %cst_237 = arith.constant 1.702000e+00 : f32
    %398 = vector.broadcast %cst_237 : f32 to vector<8x128xf32>
    %399 = arith.mulf %398, %397 : vector<8x128xf32>
    %400 = arith.negf %399 : vector<8x128xf32>
    %401 = math.exp %400 : vector<8x128xf32>
    %cst_238 = arith.constant 1.000000e+00 : f32
    %402 = vector.broadcast %cst_238 : f32 to vector<8x128xf32>
    %403 = arith.addf %402, %401 : vector<8x128xf32>
    %404 = arith.divf %402, %403 : vector<8x128xf32>
    %405 = arith.mulf %397, %404 : vector<8x128xf32>
    %406 = arith.truncf %405 : vector<8x128xf32> to vector<8x128xbf16>
    %c0_239 = arith.constant 0 : index
    %c0_240 = arith.constant 0 : index
    %c0_241 = arith.constant 0 : index
    %407 = vector.load %arg17[%c0_239, %c0_240, %c0_241] : memref<1x128x32xbf16, #tpu.memory_space<vmem>>, vector<1x128x32xbf16>
    %408 = vector.shape_cast %407 : vector<1x128x32xbf16> to vector<128x32xbf16>
    %cst_242 = arith.constant dense<0.000000e+00> : vector<8x32xf32>
    %409 = tpu.matmul %406, %408, %cst_242 {dimension_numbers = #tpu.dot_dimension_numbers<[1], [0], [0], [1], [0, 0, 1, 1], [], []>} : vector<8x128xbf16>, vector<128x32xbf16>, vector<8x32xf32> -> vector<8x32xf32>
    %c0_243 = arith.constant 0 : index
    %c0_244 = arith.constant 0 : index
    %c0_245 = arith.constant 0 : index
    %410 = vector.load %arg18[%c0_243, %c0_244, %c0_245] : memref<1x1x32xf32, #tpu.memory_space<vmem>>, vector<1x1x32xf32>
    %411 = vector.shape_cast %410 : vector<1x1x32xf32> to vector<1x32xf32>
    %412 = vector.broadcast %411 : vector<1x32xf32> to vector<8x32xf32>
    %413 = arith.addf %409, %412 : vector<8x32xf32>
    %414 = arith.addf %363, %413 : vector<8x32xf32>
    %c3 = arith.constant 3 : index
    %c0_246 = arith.constant 0 : index
    %c0_247 = arith.constant 0 : index
    %415 = vector.load %arg0[%c3, %c0_246, %c0_247] : memref<4x8x32xf32, #tpu.memory_space<vmem>>, vector<1x8x32xf32>
    %416 = vector.shape_cast %415 : vector<1x8x32xf32> to vector<8x32xf32>
    %417 = arith.addf %416, %0 : vector<8x32xf32>
    %c0_248 = arith.constant 0 : index
    %c0_249 = arith.constant 0 : index
    %c0_250 = arith.constant 0 : index
    %418 = vector.load %arg3[%c0_248, %c0_249, %c0_250] : memref<1x1x32xf32, #tpu.memory_space<vmem>>, vector<1x1x32xf32>
    %419 = vector.shape_cast %418 : vector<1x1x32xf32> to vector<1x32xf32>
    %c0_251 = arith.constant 0 : index
    %c0_252 = arith.constant 0 : index
    %c0_253 = arith.constant 0 : index
    %420 = vector.load %arg4[%c0_251, %c0_252, %c0_253] : memref<1x1x32xf32, #tpu.memory_space<vmem>>, vector<1x1x32xf32>
    %421 = vector.shape_cast %420 : vector<1x1x32xf32> to vector<1x32xf32>
    %cst_254 = arith.constant dense<0.000000e+00> : vector<8xf32>
    %422 = vector.multi_reduction <add>, %417, %cst_254 [1] : vector<8x32xf32> to vector<8xf32>
    %423 = vector.shape_cast %422 : vector<8xf32> to vector<8x1xf32>
    %cst_255 = arith.constant 3.200000e+01 : f32
    %424 = vector.broadcast %cst_255 : f32 to vector<8x1xf32>
    %425 = arith.divf %423, %424 : vector<8x1xf32>
    %426 = vector.broadcast %425 : vector<8x1xf32> to vector<8x32xf32>
    %427 = arith.subf %417, %426 : vector<8x32xf32>
    %428 = arith.mulf %427, %427 : vector<8x32xf32>
    %cst_256 = arith.constant dense<0.000000e+00> : vector<8xf32>
    %429 = vector.multi_reduction <add>, %428, %cst_256 [1] : vector<8x32xf32> to vector<8xf32>
    %430 = vector.shape_cast %429 : vector<8xf32> to vector<8x1xf32>
    %cst_257 = arith.constant 3.200000e+01 : f32
    %431 = vector.broadcast %cst_257 : f32 to vector<8x1xf32>
    %432 = arith.divf %430, %431 : vector<8x1xf32>
    %433 = vector.broadcast %425 : vector<8x1xf32> to vector<8x32xf32>
    %434 = arith.subf %417, %433 : vector<8x32xf32>
    %cst_258 = arith.constant 9.99999974E-6 : f32
    %435 = vector.broadcast %cst_258 : f32 to vector<8x1xf32>
    %436 = arith.addf %432, %435 : vector<8x1xf32>
    %437 = math.rsqrt %436 : vector<8x1xf32>
    %438 = vector.broadcast %437 : vector<8x1xf32> to vector<8x32xf32>
    %439 = arith.mulf %434, %438 : vector<8x32xf32>
    %440 = vector.broadcast %419 : vector<1x32xf32> to vector<8x32xf32>
    %441 = arith.mulf %439, %440 : vector<8x32xf32>
    %442 = vector.broadcast %421 : vector<1x32xf32> to vector<8x32xf32>
    %443 = arith.addf %441, %442 : vector<8x32xf32>
    %444 = arith.truncf %443 : vector<8x32xf32> to vector<8x32xbf16>
    %445 = vector.shape_cast %444 : vector<8x32xbf16> to vector<1x8x32xbf16>
    %446 = vector.shape_cast %445 : vector<1x8x32xbf16> to vector<1x8x32xbf16>
    %447 = vector.broadcast %446 : vector<1x8x32xbf16> to vector<4x8x32xbf16>
    %c0_259 = arith.constant 0 : index
    %c0_260 = arith.constant 0 : index
    %c0_261 = arith.constant 0 : index
    %c0_262 = arith.constant 0 : index
    %448 = vector.load %arg5[%c0_259, %c0_260, %c0_261, %c0_262] : memref<1x4x32x8xbf16, #tpu.memory_space<vmem>>, vector<1x4x32x8xbf16>
    %449 = vector.shape_cast %448 : vector<1x4x32x8xbf16> to vector<4x32x8xbf16>
    "tpu.trace_start"() <{level = 10 : i32, message = "hsd,hde->hse"}> : () -> ()
    %cst_263 = arith.constant dense<0.000000e+00> : vector<4x8x8xf32>
    %450 = tpu.matmul %447, %449, %cst_263 {dimension_numbers = #tpu.dot_dimension_numbers<[2], [1], [1], [2], [0, 0, 0, 1, 1, 2], [0], [0]>} : vector<4x8x32xbf16>, vector<4x32x8xbf16>, vector<4x8x8xf32> -> vector<4x8x8xf32>
    "tpu.trace_stop"() : () -> ()
    %c0_264 = arith.constant 0 : index
    %c0_265 = arith.constant 0 : index
    %c0_266 = arith.constant 0 : index
    %c0_267 = arith.constant 0 : index
    %451 = vector.load %arg8[%c0_264, %c0_265, %c0_266, %c0_267] : memref<1x4x1x8xf32, #tpu.memory_space<vmem>>, vector<1x4x1x8xf32>
    %452 = vector.shape_cast %451 : vector<1x4x1x8xf32> to vector<4x1x8xf32>
    %453 = vector.broadcast %452 : vector<4x1x8xf32> to vector<4x8x8xf32>
    %454 = arith.addf %450, %453 : vector<4x8x8xf32>
    %c0_268 = arith.constant 0 : index
    %c0_269 = arith.constant 0 : index
    %c0_270 = arith.constant 0 : index
    %c0_271 = arith.constant 0 : index
    %455 = vector.load %arg6[%c0_268, %c0_269, %c0_270, %c0_271] : memref<1x4x32x8xbf16, #tpu.memory_space<vmem>>, vector<1x4x32x8xbf16>
    %456 = vector.shape_cast %455 : vector<1x4x32x8xbf16> to vector<4x32x8xbf16>
    "tpu.trace_start"() <{level = 10 : i32, message = "hsd,hde->hse"}> : () -> ()
    %cst_272 = arith.constant dense<0.000000e+00> : vector<4x8x8xf32>
    %457 = tpu.matmul %447, %456, %cst_272 {dimension_numbers = #tpu.dot_dimension_numbers<[2], [1], [1], [2], [0, 0, 0, 1, 1, 2], [0], [0]>} : vector<4x8x32xbf16>, vector<4x32x8xbf16>, vector<4x8x8xf32> -> vector<4x8x8xf32>
    "tpu.trace_stop"() : () -> ()
    %c0_273 = arith.constant 0 : index
    %c0_274 = arith.constant 0 : index
    %c0_275 = arith.constant 0 : index
    %c0_276 = arith.constant 0 : index
    %458 = vector.load %arg9[%c0_273, %c0_274, %c0_275, %c0_276] : memref<1x4x1x8xf32, #tpu.memory_space<vmem>>, vector<1x4x1x8xf32>
    %459 = vector.shape_cast %458 : vector<1x4x1x8xf32> to vector<4x1x8xf32>
    %460 = vector.broadcast %459 : vector<4x1x8xf32> to vector<4x8x8xf32>
    %461 = arith.addf %457, %460 : vector<4x8x8xf32>
    %c0_277 = arith.constant 0 : index
    %c0_278 = arith.constant 0 : index
    %c0_279 = arith.constant 0 : index
    %c0_280 = arith.constant 0 : index
    %462 = vector.load %arg7[%c0_277, %c0_278, %c0_279, %c0_280] : memref<1x4x32x8xbf16, #tpu.memory_space<vmem>>, vector<1x4x32x8xbf16>
    %463 = vector.shape_cast %462 : vector<1x4x32x8xbf16> to vector<4x32x8xbf16>
    "tpu.trace_start"() <{level = 10 : i32, message = "hsd,hde->hse"}> : () -> ()
    %cst_281 = arith.constant dense<0.000000e+00> : vector<4x8x8xf32>
    %464 = tpu.matmul %447, %463, %cst_281 {dimension_numbers = #tpu.dot_dimension_numbers<[2], [1], [1], [2], [0, 0, 0, 1, 1, 2], [0], [0]>} : vector<4x8x32xbf16>, vector<4x32x8xbf16>, vector<4x8x8xf32> -> vector<4x8x8xf32>
    "tpu.trace_stop"() : () -> ()
    %c0_282 = arith.constant 0 : index
    %c0_283 = arith.constant 0 : index
    %c0_284 = arith.constant 0 : index
    %c0_285 = arith.constant 0 : index
    %465 = vector.load %arg10[%c0_282, %c0_283, %c0_284, %c0_285] : memref<1x4x1x8xf32, #tpu.memory_space<vmem>>, vector<1x4x1x8xf32>
    %466 = vector.shape_cast %465 : vector<1x4x1x8xf32> to vector<4x1x8xf32>
    %467 = vector.broadcast %466 : vector<4x1x8xf32> to vector<4x8x8xf32>
    %468 = arith.addf %464, %467 : vector<4x8x8xf32>
    %469 = arith.truncf %454 : vector<4x8x8xf32> to vector<4x8x8xbf16>
    %470 = arith.truncf %461 : vector<4x8x8xf32> to vector<4x8x8xbf16>
    "tpu.trace_start"() <{level = 10 : i32, message = "hse,hte->hst"}> : () -> ()
    %cst_286 = arith.constant dense<0.000000e+00> : vector<4x8x8xf32>
    %471 = tpu.matmul %469, %470, %cst_286 {dimension_numbers = #tpu.dot_dimension_numbers<[2], [2], [1], [1], [0, 0, 0, 1, 1, 1], [0], [0]>} : vector<4x8x8xbf16>, vector<4x8x8xbf16>, vector<4x8x8xf32> -> vector<4x8x8xf32>
    "tpu.trace_stop"() : () -> ()
    %cst_287 = arith.constant 0.353553385 : f32
    %472 = vector.broadcast %cst_287 : f32 to vector<4x8x8xf32>
    %473 = arith.mulf %471, %472 : vector<4x8x8xf32>
    %474 = vector.shape_cast %6 : vector<8x8xf32> to vector<1x8x8xf32>
    %475 = vector.broadcast %474 : vector<1x8x8xf32> to vector<4x8x8xf32>
    %476 = arith.addf %473, %475 : vector<4x8x8xf32>
    %cst_288 = arith.constant dense<0xFF800000> : vector<4x8xf32>
    %477 = vector.multi_reduction <maximumf>, %476, %cst_288 [2] : vector<4x8x8xf32> to vector<4x8xf32>
    %478 = vector.shape_cast %477 : vector<4x8xf32> to vector<4x8x1xf32>
    %479 = vector.broadcast %478 : vector<4x8x1xf32> to vector<4x8x8xf32>
    %480 = arith.subf %476, %479 : vector<4x8x8xf32>
    %481 = math.exp %480 : vector<4x8x8xf32>
    %cst_289 = arith.constant dense<0.000000e+00> : vector<4x8xf32>
    %482 = vector.multi_reduction <add>, %481, %cst_289 [2] : vector<4x8x8xf32> to vector<4x8xf32>
    %483 = vector.shape_cast %482 : vector<4x8xf32> to vector<4x8x1xf32>
    %484 = tpu.reciprocal %483 {approx = true} : vector<4x8x1xf32> -> vector<4x8x1xf32>
    %485 = vector.broadcast %484 : vector<4x8x1xf32> to vector<4x8x8xf32>
    %486 = arith.mulf %481, %485 : vector<4x8x8xf32>
    %487 = arith.truncf %486 : vector<4x8x8xf32> to vector<4x8x8xbf16>
    %488 = arith.truncf %468 : vector<4x8x8xf32> to vector<4x8x8xbf16>
    "tpu.trace_start"() <{level = 10 : i32, message = "hst,htd->hsd"}> : () -> ()
    %cst_290 = arith.constant dense<0.000000e+00> : vector<4x8x8xf32>
    %489 = tpu.matmul %487, %488, %cst_290 {dimension_numbers = #tpu.dot_dimension_numbers<[2], [1], [1], [2], [0, 0, 0, 1, 1, 2], [0], [0]>} : vector<4x8x8xbf16>, vector<4x8x8xbf16>, vector<4x8x8xf32> -> vector<4x8x8xf32>
    "tpu.trace_stop"() : () -> ()
    %490 = arith.truncf %489 : vector<4x8x8xf32> to vector<4x8x8xbf16>
    %c0_291 = arith.constant 0 : index
    %c0_292 = arith.constant 0 : index
    %c0_293 = arith.constant 0 : index
    %c0_294 = arith.constant 0 : index
    %491 = vector.load %arg11[%c0_291, %c0_292, %c0_293, %c0_294] : memref<1x4x8x32xbf16, #tpu.memory_space<vmem>>, vector<1x4x8x32xbf16>
    %492 = vector.shape_cast %491 : vector<1x4x8x32xbf16> to vector<4x8x32xbf16>
    "tpu.trace_start"() <{level = 10 : i32, message = "hsd,hdo->hso"}> : () -> ()
    %cst_295 = arith.constant dense<0.000000e+00> : vector<4x8x32xf32>
    %493 = tpu.matmul %490, %492, %cst_295 {dimension_numbers = #tpu.dot_dimension_numbers<[2], [1], [1], [2], [0, 0, 0, 1, 1, 2], [0], [0]>} : vector<4x8x8xbf16>, vector<4x8x32xbf16>, vector<4x8x32xf32> -> vector<4x8x32xf32>
    "tpu.trace_stop"() : () -> ()
    %cst_296 = arith.constant dense<0.000000e+00> : vector<8x32xf32>
    %494 = vector.multi_reduction <add>, %493, %cst_296 [0] : vector<4x8x32xf32> to vector<8x32xf32>
    %495 = arith.addf %417, %494 : vector<8x32xf32>
    %c0_297 = arith.constant 0 : index
    %c0_298 = arith.constant 0 : index
    %c0_299 = arith.constant 0 : index
    %496 = vector.load %arg12[%c0_297, %c0_298, %c0_299] : memref<1x1x32xf32, #tpu.memory_space<vmem>>, vector<1x1x32xf32>
    %497 = vector.shape_cast %496 : vector<1x1x32xf32> to vector<1x32xf32>
    %498 = vector.broadcast %497 : vector<1x32xf32> to vector<8x32xf32>
    %499 = arith.addf %495, %498 : vector<8x32xf32>
    %c0_300 = arith.constant 0 : index
    %c0_301 = arith.constant 0 : index
    %c0_302 = arith.constant 0 : index
    %500 = vector.load %arg13[%c0_300, %c0_301, %c0_302] : memref<1x1x32xf32, #tpu.memory_space<vmem>>, vector<1x1x32xf32>
    %501 = vector.shape_cast %500 : vector<1x1x32xf32> to vector<1x32xf32>
    %c0_303 = arith.constant 0 : index
    %c0_304 = arith.constant 0 : index
    %c0_305 = arith.constant 0 : index
    %502 = vector.load %arg14[%c0_303, %c0_304, %c0_305] : memref<1x1x32xf32, #tpu.memory_space<vmem>>, vector<1x1x32xf32>
    %503 = vector.shape_cast %502 : vector<1x1x32xf32> to vector<1x32xf32>
    %cst_306 = arith.constant dense<0.000000e+00> : vector<8xf32>
    %504 = vector.multi_reduction <add>, %499, %cst_306 [1] : vector<8x32xf32> to vector<8xf32>
    %505 = vector.shape_cast %504 : vector<8xf32> to vector<8x1xf32>
    %cst_307 = arith.constant 3.200000e+01 : f32
    %506 = vector.broadcast %cst_307 : f32 to vector<8x1xf32>
    %507 = arith.divf %505, %506 : vector<8x1xf32>
    %508 = vector.broadcast %507 : vector<8x1xf32> to vector<8x32xf32>
    %509 = arith.subf %499, %508 : vector<8x32xf32>
    %510 = arith.mulf %509, %509 : vector<8x32xf32>
    %cst_308 = arith.constant dense<0.000000e+00> : vector<8xf32>
    %511 = vector.multi_reduction <add>, %510, %cst_308 [1] : vector<8x32xf32> to vector<8xf32>
    %512 = vector.shape_cast %511 : vector<8xf32> to vector<8x1xf32>
    %cst_309 = arith.constant 3.200000e+01 : f32
    %513 = vector.broadcast %cst_309 : f32 to vector<8x1xf32>
    %514 = arith.divf %512, %513 : vector<8x1xf32>
    %515 = vector.broadcast %507 : vector<8x1xf32> to vector<8x32xf32>
    %516 = arith.subf %499, %515 : vector<8x32xf32>
    %cst_310 = arith.constant 9.99999974E-6 : f32
    %517 = vector.broadcast %cst_310 : f32 to vector<8x1xf32>
    %518 = arith.addf %514, %517 : vector<8x1xf32>
    %519 = math.rsqrt %518 : vector<8x1xf32>
    %520 = vector.broadcast %519 : vector<8x1xf32> to vector<8x32xf32>
    %521 = arith.mulf %516, %520 : vector<8x32xf32>
    %522 = vector.broadcast %501 : vector<1x32xf32> to vector<8x32xf32>
    %523 = arith.mulf %521, %522 : vector<8x32xf32>
    %524 = vector.broadcast %503 : vector<1x32xf32> to vector<8x32xf32>
    %525 = arith.addf %523, %524 : vector<8x32xf32>
    %526 = arith.truncf %525 : vector<8x32xf32> to vector<8x32xbf16>
    %c0_311 = arith.constant 0 : index
    %c0_312 = arith.constant 0 : index
    %c0_313 = arith.constant 0 : index
    %527 = vector.load %arg15[%c0_311, %c0_312, %c0_313] : memref<1x32x128xbf16, #tpu.memory_space<vmem>>, vector<1x32x128xbf16>
    %528 = vector.shape_cast %527 : vector<1x32x128xbf16> to vector<32x128xbf16>
    %cst_314 = arith.constant dense<0.000000e+00> : vector<8x128xf32>
    %529 = tpu.matmul %526, %528, %cst_314 {dimension_numbers = #tpu.dot_dimension_numbers<[1], [0], [0], [1], [0, 0, 1, 1], [], []>} : vector<8x32xbf16>, vector<32x128xbf16>, vector<8x128xf32> -> vector<8x128xf32>
    %c0_315 = arith.constant 0 : index
    %c0_316 = arith.constant 0 : index
    %c0_317 = arith.constant 0 : index
    %530 = vector.load %arg16[%c0_315, %c0_316, %c0_317] : memref<1x1x128xf32, #tpu.memory_space<vmem>>, vector<1x1x128xf32>
    %531 = vector.shape_cast %530 : vector<1x1x128xf32> to vector<1x128xf32>
    %532 = vector.broadcast %531 : vector<1x128xf32> to vector<8x128xf32>
    %533 = arith.addf %529, %532 : vector<8x128xf32>
    %cst_318 = arith.constant 1.702000e+00 : f32
    %534 = vector.broadcast %cst_318 : f32 to vector<8x128xf32>
    %535 = arith.mulf %534, %533 : vector<8x128xf32>
    %536 = arith.negf %535 : vector<8x128xf32>
    %537 = math.exp %536 : vector<8x128xf32>
    %cst_319 = arith.constant 1.000000e+00 : f32
    %538 = vector.broadcast %cst_319 : f32 to vector<8x128xf32>
    %539 = arith.addf %538, %537 : vector<8x128xf32>
    %540 = arith.divf %538, %539 : vector<8x128xf32>
    %541 = arith.mulf %533, %540 : vector<8x128xf32>
    %542 = arith.truncf %541 : vector<8x128xf32> to vector<8x128xbf16>
    %c0_320 = arith.constant 0 : index
    %c0_321 = arith.constant 0 : index
    %c0_322 = arith.constant 0 : index
    %543 = vector.load %arg17[%c0_320, %c0_321, %c0_322] : memref<1x128x32xbf16, #tpu.memory_space<vmem>>, vector<1x128x32xbf16>
    %544 = vector.shape_cast %543 : vector<1x128x32xbf16> to vector<128x32xbf16>
    %cst_323 = arith.constant dense<0.000000e+00> : vector<8x32xf32>
    %545 = tpu.matmul %542, %544, %cst_323 {dimension_numbers = #tpu.dot_dimension_numbers<[1], [0], [0], [1], [0, 0, 1, 1], [], []>} : vector<8x128xbf16>, vector<128x32xbf16>, vector<8x32xf32> -> vector<8x32xf32>
    %c0_324 = arith.constant 0 : index
    %c0_325 = arith.constant 0 : index
    %c0_326 = arith.constant 0 : index
    %546 = vector.load %arg18[%c0_324, %c0_325, %c0_326] : memref<1x1x32xf32, #tpu.memory_space<vmem>>, vector<1x1x32xf32>
    %547 = vector.shape_cast %546 : vector<1x1x32xf32> to vector<1x32xf32>
    %548 = vector.broadcast %547 : vector<1x32xf32> to vector<8x32xf32>
    %549 = arith.addf %545, %548 : vector<8x32xf32>
    %550 = arith.addf %499, %549 : vector<8x32xf32>
    %551 = tpu.concatenate %142, %278, %414, %550 in 0 : vector<8x32xf32>, vector<8x32xf32>, vector<8x32xf32>, vector<8x32xf32> -> vector<32x32xf32>
    %c0_327 = arith.constant 0 : index
    %c0_328 = arith.constant 0 : index
    %552 = vector.load %arg2[%c0_327, %c0_328] : memref<4x32xf32, #tpu.memory_space<vmem>>, vector<4x32xf32>
    %cst_329 = arith.constant dense<0.000000e+00> : vector<4x32xf32>
    %553 = tpu.matmul %552, %551, %cst_329 {dimension_numbers = #tpu.dot_dimension_numbers<[1], [0], [0], [1], [0, 0, 1, 1], [], []>} : vector<4x32xf32>, vector<32x32xf32>, vector<4x32xf32> -> vector<4x32xf32>
    %c0_330 = arith.constant 0 : index
    %c0_331 = arith.constant 0 : index
    %554 = vector.load %arg19[%c0_330, %c0_331] : memref<1x32xf32, #tpu.memory_space<vmem>>, vector<1x32xf32>
    %c0_332 = arith.constant 0 : index
    %c0_333 = arith.constant 0 : index
    %555 = vector.load %arg20[%c0_332, %c0_333] : memref<1x32xf32, #tpu.memory_space<vmem>>, vector<1x32xf32>
    %cst_334 = arith.constant dense<0.000000e+00> : vector<4xf32>
    %556 = vector.multi_reduction <add>, %553, %cst_334 [1] : vector<4x32xf32> to vector<4xf32>
    %557 = vector.shape_cast %556 : vector<4xf32> to vector<4x1xf32>
    %cst_335 = arith.constant 3.200000e+01 : f32
    %558 = vector.broadcast %cst_335 : f32 to vector<4x1xf32>
    %559 = arith.divf %557, %558 : vector<4x1xf32>
    %560 = vector.broadcast %559 : vector<4x1xf32> to vector<4x32xf32>
    %561 = arith.subf %553, %560 : vector<4x32xf32>
    %562 = arith.mulf %561, %561 : vector<4x32xf32>
    %cst_336 = arith.constant dense<0.000000e+00> : vector<4xf32>
    %563 = vector.multi_reduction <add>, %562, %cst_336 [1] : vector<4x32xf32> to vector<4xf32>
    %564 = vector.shape_cast %563 : vector<4xf32> to vector<4x1xf32>
    %cst_337 = arith.constant 3.200000e+01 : f32
    %565 = vector.broadcast %cst_337 : f32 to vector<4x1xf32>
    %566 = arith.divf %564, %565 : vector<4x1xf32>
    %567 = vector.broadcast %559 : vector<4x1xf32> to vector<4x32xf32>
    %568 = arith.subf %553, %567 : vector<4x32xf32>
    %cst_338 = arith.constant 9.99999974E-6 : f32
    %569 = vector.broadcast %cst_338 : f32 to vector<4x1xf32>
    %570 = arith.addf %566, %569 : vector<4x1xf32>
    %571 = math.rsqrt %570 : vector<4x1xf32>
    %572 = vector.broadcast %571 : vector<4x1xf32> to vector<4x32xf32>
    %573 = arith.mulf %568, %572 : vector<4x32xf32>
    %574 = vector.broadcast %554 : vector<1x32xf32> to vector<4x32xf32>
    %575 = arith.mulf %573, %574 : vector<4x32xf32>
    %576 = vector.broadcast %555 : vector<1x32xf32> to vector<4x32xf32>
    %577 = arith.addf %575, %576 : vector<4x32xf32>
    %578 = arith.truncf %577 : vector<4x32xf32> to vector<4x32xbf16>
    %c0_339 = arith.constant 0 : index
    %c0_340 = arith.constant 0 : index
    %579 = vector.load %arg21[%c0_339, %c0_340] : memref<32x32xbf16, #tpu.memory_space<vmem>>, vector<32x32xbf16>
    %cst_341 = arith.constant dense<0.000000e+00> : vector<4x32xf32>
    %580 = tpu.matmul %578, %579, %cst_341 {dimension_numbers = #tpu.dot_dimension_numbers<[1], [0], [0], [1], [0, 0, 1, 1], [], []>} : vector<4x32xbf16>, vector<32x32xbf16>, vector<4x32xf32> -> vector<4x32xf32>
    %c0_342 = arith.constant 0 : index
    %c0_343 = arith.constant 0 : index
    %581 = vector.load %arg23[%c0_342, %c0_343] : memref<4x32xf32, #tpu.memory_space<vmem>>, vector<4x32xf32>
    tpu.vector_store %arg23[%c0_342, %c0_343], %580 {strides = array<i32>} : memref<4x32xf32, #tpu.memory_space<vmem>>, vector<4x32xf32>,
    %c0_344 = arith.constant 0 : index
    %c0_345 = arith.constant 0 : index
    %582 = vector.load %arg22[%c0_344, %c0_345] : memref<2x32xf32, #tpu.memory_space<vmem>>, vector<2x32xf32>
    %583 = arith.truncf %582 : vector<2x32xf32> to vector<2x32xbf16>
    %584 = arith.truncf %580 : vector<4x32xf32> to vector<4x32xbf16>
    %cst_346 = arith.constant dense<0.000000e+00> : vector<2x4xf32>
    %585 = tpu.matmul %583, %584, %cst_346 {dimension_numbers = #tpu.dot_dimension_numbers<[1], [1], [0], [0], [0, 0, 1, 0], [], []>} : vector<2x32xbf16>, vector<4x32xbf16>, vector<2x4xf32> -> vector<2x4xf32>
    %c0_347 = arith.constant 0 : index
    %c0_348 = arith.constant 0 : index
    %586 = vector.load %arg24[%c0_347, %c0_348] : memref<2x4xf32, #tpu.memory_space<vmem>>, vector<2x4xf32>
    tpu.vector_store %arg24[%c0_347, %c0_348], %585 {strides = array<i32>} : memref<2x4xf32, #tpu.memory_space<vmem>>, vector<2x4xf32>,
    return
  }
}

module attributes {stable_mosaic.version = 11 : i64} {
  func.func @_image_encoder_kernel(%arg0: memref<8x192xf32, #tpu.memory_space<vmem>>, %arg1: memref<192x32xbf16, #tpu.memory_space<vmem>>, %arg2: memref<1x32xf32, #tpu.memory_space<vmem>>, %arg3: memref<5x32xf32, #tpu.memory_space<vmem>>, %arg4: memref<1x32xf32, #tpu.memory_space<vmem>>, %arg5: memref<1x32xf32, #tpu.memory_space<vmem>>, %arg6: memref<2x1x32xf32, #tpu.memory_space<vmem>>, %arg7: memref<2x1x32xf32, #tpu.memory_space<vmem>>, %arg8: memref<2x4x32x8xbf16, #tpu.memory_space<vmem>>, %arg9: memref<2x4x32x8xbf16, #tpu.memory_space<vmem>>, %arg10: memref<2x4x32x8xbf16, #tpu.memory_space<vmem>>, %arg11: memref<2x4x1x8xf32, #tpu.memory_space<vmem>>, %arg12: memref<2x4x1x8xf32, #tpu.memory_space<vmem>>, %arg13: memref<2x4x1x8xf32, #tpu.memory_space<vmem>>, %arg14: memref<2x4x8x32xbf16, #tpu.memory_space<vmem>>, %arg15: memref<2x1x32xf32, #tpu.memory_space<vmem>>, %arg16: memref<2x1x32xf32, #tpu.memory_space<vmem>>, %arg17: memref<2x1x32xf32, #tpu.memory_space<vmem>>, %arg18: memref<2x32x128xbf16, #tpu.memory_space<vmem>>, %arg19: memref<2x1x128xf32, #tpu.memory_space<vmem>>, %arg20: memref<2x128x32xbf16, #tpu.memory_space<vmem>>, %arg21: memref<2x1x32xf32, #tpu.memory_space<vmem>>, %arg22: memref<1x32xf32, #tpu.memory_space<vmem>>, %arg23: memref<1x32xf32, #tpu.memory_space<vmem>>, %arg24: memref<32x32xbf16, #tpu.memory_space<vmem>>, %arg25: memref<2x96xf32, #tpu.memory_space<vmem>>) attributes {dimension_semantics = [], scalar_prefetch = 0 : i64, scratch_operands = 0 : i64, tpu.core_type = #tpu.core_type<tc>} {
    %c0 = arith.constant 0 : index
    %c0_0 = arith.constant 0 : index
    %0 = vector.load %arg0[%c0, %c0_0] : memref<8x192xf32, #tpu.memory_space<vmem>>, vector<8x192xf32>
    %1 = arith.truncf %0 : vector<8x192xf32> to vector<8x192xbf16>
    %c0_1 = arith.constant 0 : index
    %c0_2 = arith.constant 0 : index
    %2 = vector.load %arg1[%c0_1, %c0_2] : memref<192x32xbf16, #tpu.memory_space<vmem>>, vector<192x32xbf16>
    %cst = arith.constant dense<0.000000e+00> : vector<8x32xf32>
    %3 = tpu.matmul %1, %2, %cst {dimension_numbers = #tpu.dot_dimension_numbers<[1], [0], [0], [1], [0, 0, 1, 1], [], []>} : vector<8x192xbf16>, vector<192x32xbf16>, vector<8x32xf32> -> vector<8x32xf32>
    %c0_3 = arith.constant 0 : index
    %c0_4 = arith.constant 0 : index
    %4 = vector.load %arg2[%c0_3, %c0_4] : memref<1x32xf32, #tpu.memory_space<vmem>>, vector<1x32xf32>
    %c0_5 = arith.constant 0 : index
    %c0_6 = arith.constant 0 : index
    %5 = vector.load %arg3[%c0_5, %c0_6] : memref<5x32xf32, #tpu.memory_space<vmem>>, vector<5x32xf32>
    %6 = vector.extract_strided_slice %3 {offsets = [0, 0], sizes = [4, 32], strides = [1, 1]} : vector<8x32xf32> to vector<4x32xf32>
    %7 = tpu.concatenate %4, %6 in 0 : vector<1x32xf32>, vector<4x32xf32> -> vector<5x32xf32>
    %8 = arith.addf %7, %5 : vector<5x32xf32>
    %c0_7 = arith.constant 0 : index
    %c0_8 = arith.constant 0 : index
    %9 = vector.load %arg4[%c0_7, %c0_8] : memref<1x32xf32, #tpu.memory_space<vmem>>, vector<1x32xf32>
    %c0_9 = arith.constant 0 : index
    %c0_10 = arith.constant 0 : index
    %10 = vector.load %arg5[%c0_9, %c0_10] : memref<1x32xf32, #tpu.memory_space<vmem>>, vector<1x32xf32>
    %cst_11 = arith.constant dense<0.000000e+00> : vector<5xf32>
    %11 = vector.multi_reduction <add>, %8, %cst_11 [1] : vector<5x32xf32> to vector<5xf32>
    %12 = vector.shape_cast %11 : vector<5xf32> to vector<5x1xf32>
    %cst_12 = arith.constant 3.200000e+01 : f32
    %13 = vector.broadcast %cst_12 : f32 to vector<5x1xf32>
    %14 = arith.divf %12, %13 : vector<5x1xf32>
    %15 = vector.broadcast %14 : vector<5x1xf32> to vector<5x32xf32>
    %16 = arith.subf %8, %15 : vector<5x32xf32>
    %17 = arith.mulf %16, %16 : vector<5x32xf32>
    %cst_13 = arith.constant dense<0.000000e+00> : vector<5xf32>
    %18 = vector.multi_reduction <add>, %17, %cst_13 [1] : vector<5x32xf32> to vector<5xf32>
    %19 = vector.shape_cast %18 : vector<5xf32> to vector<5x1xf32>
    %cst_14 = arith.constant 3.200000e+01 : f32
    %20 = vector.broadcast %cst_14 : f32 to vector<5x1xf32>
    %21 = arith.divf %19, %20 : vector<5x1xf32>
    %22 = vector.broadcast %14 : vector<5x1xf32> to vector<5x32xf32>
    %23 = arith.subf %8, %22 : vector<5x32xf32>
    %cst_15 = arith.constant 9.99999974E-6 : f32
    %24 = vector.broadcast %cst_15 : f32 to vector<5x1xf32>
    %25 = arith.addf %21, %24 : vector<5x1xf32>
    %26 = math.rsqrt %25 : vector<5x1xf32>
    %27 = vector.broadcast %26 : vector<5x1xf32> to vector<5x32xf32>
    %28 = arith.mulf %23, %27 : vector<5x32xf32>
    %29 = vector.broadcast %9 : vector<1x32xf32> to vector<5x32xf32>
    %30 = arith.mulf %28, %29 : vector<5x32xf32>
    %31 = vector.broadcast %10 : vector<1x32xf32> to vector<5x32xf32>
    %32 = arith.addf %30, %31 : vector<5x32xf32>
    %c0_16 = arith.constant 0 : index
    %c0_17 = arith.constant 0 : index
    %c0_18 = arith.constant 0 : index
    %33 = vector.load %arg6[%c0_16, %c0_17, %c0_18] : memref<2x1x32xf32, #tpu.memory_space<vmem>>, vector<1x1x32xf32>
    %34 = vector.shape_cast %33 : vector<1x1x32xf32> to vector<1x32xf32>
    %c0_19 = arith.constant 0 : index
    %c0_20 = arith.constant 0 : index
    %c0_21 = arith.constant 0 : index
    %35 = vector.load %arg7[%c0_19, %c0_20, %c0_21] : memref<2x1x32xf32, #tpu.memory_space<vmem>>, vector<1x1x32xf32>
    %36 = vector.shape_cast %35 : vector<1x1x32xf32> to vector<1x32xf32>
    %cst_22 = arith.constant dense<0.000000e+00> : vector<5xf32>
    %37 = vector.multi_reduction <add>, %32, %cst_22 [1] : vector<5x32xf32> to vector<5xf32>
    %38 = vector.shape_cast %37 : vector<5xf32> to vector<5x1xf32>
    %cst_23 = arith.constant 3.200000e+01 : f32
    %39 = vector.broadcast %cst_23 : f32 to vector<5x1xf32>
    %40 = arith.divf %38, %39 : vector<5x1xf32>
    %41 = vector.broadcast %40 : vector<5x1xf32> to vector<5x32xf32>
    %42 = arith.subf %32, %41 : vector<5x32xf32>
    %43 = arith.mulf %42, %42 : vector<5x32xf32>
    %cst_24 = arith.constant dense<0.000000e+00> : vector<5xf32>
    %44 = vector.multi_reduction <add>, %43, %cst_24 [1] : vector<5x32xf32> to vector<5xf32>
    %45 = vector.shape_cast %44 : vector<5xf32> to vector<5x1xf32>
    %cst_25 = arith.constant 3.200000e+01 : f32
    %46 = vector.broadcast %cst_25 : f32 to vector<5x1xf32>
    %47 = arith.divf %45, %46 : vector<5x1xf32>
    %48 = vector.broadcast %40 : vector<5x1xf32> to vector<5x32xf32>
    %49 = arith.subf %32, %48 : vector<5x32xf32>
    %cst_26 = arith.constant 9.99999974E-6 : f32
    %50 = vector.broadcast %cst_26 : f32 to vector<5x1xf32>
    %51 = arith.addf %47, %50 : vector<5x1xf32>
    %52 = math.rsqrt %51 : vector<5x1xf32>
    %53 = vector.broadcast %52 : vector<5x1xf32> to vector<5x32xf32>
    %54 = arith.mulf %49, %53 : vector<5x32xf32>
    %55 = vector.broadcast %34 : vector<1x32xf32> to vector<5x32xf32>
    %56 = arith.mulf %54, %55 : vector<5x32xf32>
    %57 = vector.broadcast %36 : vector<1x32xf32> to vector<5x32xf32>
    %58 = arith.addf %56, %57 : vector<5x32xf32>
    %59 = arith.truncf %58 : vector<5x32xf32> to vector<5x32xbf16>
    %60 = vector.shape_cast %59 : vector<5x32xbf16> to vector<1x5x32xbf16>
    %61 = vector.shape_cast %60 : vector<1x5x32xbf16> to vector<1x5x32xbf16>
    %62 = vector.broadcast %61 : vector<1x5x32xbf16> to vector<4x5x32xbf16>
    %c0_27 = arith.constant 0 : index
    %c0_28 = arith.constant 0 : index
    %c0_29 = arith.constant 0 : index
    %c0_30 = arith.constant 0 : index
    %63 = vector.load %arg8[%c0_27, %c0_28, %c0_29, %c0_30] : memref<2x4x32x8xbf16, #tpu.memory_space<vmem>>, vector<1x4x32x8xbf16>
    %64 = vector.shape_cast %63 : vector<1x4x32x8xbf16> to vector<4x32x8xbf16>
    "tpu.trace_start"() <{level = 10 : i32, message = "hsd,hde->hse"}> : () -> ()
    %cst_31 = arith.constant dense<0.000000e+00> : vector<4x5x8xf32>
    %65 = tpu.matmul %62, %64, %cst_31 {dimension_numbers = #tpu.dot_dimension_numbers<[2], [1], [1], [2], [0, 0, 0, 1, 1, 2], [0], [0]>} : vector<4x5x32xbf16>, vector<4x32x8xbf16>, vector<4x5x8xf32> -> vector<4x5x8xf32>
    "tpu.trace_stop"() : () -> ()
    %c0_32 = arith.constant 0 : index
    %c0_33 = arith.constant 0 : index
    %c0_34 = arith.constant 0 : index
    %c0_35 = arith.constant 0 : index
    %66 = vector.load %arg11[%c0_32, %c0_33, %c0_34, %c0_35] : memref<2x4x1x8xf32, #tpu.memory_space<vmem>>, vector<1x4x1x8xf32>
    %67 = vector.shape_cast %66 : vector<1x4x1x8xf32> to vector<4x1x8xf32>
    %68 = vector.broadcast %67 : vector<4x1x8xf32> to vector<4x5x8xf32>
    %69 = arith.addf %65, %68 : vector<4x5x8xf32>
    %c0_36 = arith.constant 0 : index
    %c0_37 = arith.constant 0 : index
    %c0_38 = arith.constant 0 : index
    %c0_39 = arith.constant 0 : index
    %70 = vector.load %arg9[%c0_36, %c0_37, %c0_38, %c0_39] : memref<2x4x32x8xbf16, #tpu.memory_space<vmem>>, vector<1x4x32x8xbf16>
    %71 = vector.shape_cast %70 : vector<1x4x32x8xbf16> to vector<4x32x8xbf16>
    "tpu.trace_start"() <{level = 10 : i32, message = "hsd,hde->hse"}> : () -> ()
    %cst_40 = arith.constant dense<0.000000e+00> : vector<4x5x8xf32>
    %72 = tpu.matmul %62, %71, %cst_40 {dimension_numbers = #tpu.dot_dimension_numbers<[2], [1], [1], [2], [0, 0, 0, 1, 1, 2], [0], [0]>} : vector<4x5x32xbf16>, vector<4x32x8xbf16>, vector<4x5x8xf32> -> vector<4x5x8xf32>
    "tpu.trace_stop"() : () -> ()
    %c0_41 = arith.constant 0 : index
    %c0_42 = arith.constant 0 : index
    %c0_43 = arith.constant 0 : index
    %c0_44 = arith.constant 0 : index
    %73 = vector.load %arg12[%c0_41, %c0_42, %c0_43, %c0_44] : memref<2x4x1x8xf32, #tpu.memory_space<vmem>>, vector<1x4x1x8xf32>
    %74 = vector.shape_cast %73 : vector<1x4x1x8xf32> to vector<4x1x8xf32>
    %75 = vector.broadcast %74 : vector<4x1x8xf32> to vector<4x5x8xf32>
    %76 = arith.addf %72, %75 : vector<4x5x8xf32>
    %c0_45 = arith.constant 0 : index
    %c0_46 = arith.constant 0 : index
    %c0_47 = arith.constant 0 : index
    %c0_48 = arith.constant 0 : index
    %77 = vector.load %arg10[%c0_45, %c0_46, %c0_47, %c0_48] : memref<2x4x32x8xbf16, #tpu.memory_space<vmem>>, vector<1x4x32x8xbf16>
    %78 = vector.shape_cast %77 : vector<1x4x32x8xbf16> to vector<4x32x8xbf16>
    "tpu.trace_start"() <{level = 10 : i32, message = "hsd,hde->hse"}> : () -> ()
    %cst_49 = arith.constant dense<0.000000e+00> : vector<4x5x8xf32>
    %79 = tpu.matmul %62, %78, %cst_49 {dimension_numbers = #tpu.dot_dimension_numbers<[2], [1], [1], [2], [0, 0, 0, 1, 1, 2], [0], [0]>} : vector<4x5x32xbf16>, vector<4x32x8xbf16>, vector<4x5x8xf32> -> vector<4x5x8xf32>
    "tpu.trace_stop"() : () -> ()
    %c0_50 = arith.constant 0 : index
    %c0_51 = arith.constant 0 : index
    %c0_52 = arith.constant 0 : index
    %c0_53 = arith.constant 0 : index
    %80 = vector.load %arg13[%c0_50, %c0_51, %c0_52, %c0_53] : memref<2x4x1x8xf32, #tpu.memory_space<vmem>>, vector<1x4x1x8xf32>
    %81 = vector.shape_cast %80 : vector<1x4x1x8xf32> to vector<4x1x8xf32>
    %82 = vector.broadcast %81 : vector<4x1x8xf32> to vector<4x5x8xf32>
    %83 = arith.addf %79, %82 : vector<4x5x8xf32>
    %84 = arith.truncf %69 : vector<4x5x8xf32> to vector<4x5x8xbf16>
    %85 = arith.truncf %76 : vector<4x5x8xf32> to vector<4x5x8xbf16>
    "tpu.trace_start"() <{level = 10 : i32, message = "hse,hte->hst"}> : () -> ()
    %cst_54 = arith.constant dense<0.000000e+00> : vector<4x5x5xf32>
    %86 = tpu.matmul %84, %85, %cst_54 {dimension_numbers = #tpu.dot_dimension_numbers<[2], [2], [1], [1], [0, 0, 0, 1, 1, 1], [0], [0]>} : vector<4x5x8xbf16>, vector<4x5x8xbf16>, vector<4x5x5xf32> -> vector<4x5x5xf32>
    "tpu.trace_stop"() : () -> ()
    %cst_55 = arith.constant 0.353553385 : f32
    %87 = vector.broadcast %cst_55 : f32 to vector<4x5x5xf32>
    %88 = arith.mulf %86, %87 : vector<4x5x5xf32>
    %cst_56 = arith.constant dense<0xFF800000> : vector<4x5xf32>
    %89 = vector.multi_reduction <maximumf>, %88, %cst_56 [2] : vector<4x5x5xf32> to vector<4x5xf32>
    %90 = vector.shape_cast %89 : vector<4x5xf32> to vector<4x5x1xf32>
    %91 = vector.broadcast %90 : vector<4x5x1xf32> to vector<4x5x5xf32>
    %92 = arith.subf %88, %91 : vector<4x5x5xf32>
    %93 = math.exp %92 : vector<4x5x5xf32>
    %cst_57 = arith.constant dense<0.000000e+00> : vector<4x5xf32>
    %94 = vector.multi_reduction <add>, %93, %cst_57 [2] : vector<4x5x5xf32> to vector<4x5xf32>
    %95 = vector.shape_cast %94 : vector<4x5xf32> to vector<4x5x1xf32>
    %96 = tpu.reciprocal %95 {approx = true} : vector<4x5x1xf32> -> vector<4x5x1xf32>
    %97 = vector.broadcast %96 : vector<4x5x1xf32> to vector<4x5x5xf32>
    %98 = arith.mulf %93, %97 : vector<4x5x5xf32>
    %99 = arith.truncf %98 : vector<4x5x5xf32> to vector<4x5x5xbf16>
    %100 = arith.truncf %83 : vector<4x5x8xf32> to vector<4x5x8xbf16>
    "tpu.trace_start"() <{level = 10 : i32, message = "hst,htd->hsd"}> : () -> ()
    %cst_58 = arith.constant dense<0.000000e+00> : vector<4x5x8xf32>
    %101 = tpu.matmul %99, %100, %cst_58 {dimension_numbers = #tpu.dot_dimension_numbers<[2], [1], [1], [2], [0, 0, 0, 1, 1, 2], [0], [0]>} : vector<4x5x5xbf16>, vector<4x5x8xbf16>, vector<4x5x8xf32> -> vector<4x5x8xf32>
    "tpu.trace_stop"() : () -> ()
    %102 = arith.truncf %101 : vector<4x5x8xf32> to vector<4x5x8xbf16>
    %c0_59 = arith.constant 0 : index
    %c0_60 = arith.constant 0 : index
    %c0_61 = arith.constant 0 : index
    %c0_62 = arith.constant 0 : index
    %103 = vector.load %arg14[%c0_59, %c0_60, %c0_61, %c0_62] : memref<2x4x8x32xbf16, #tpu.memory_space<vmem>>, vector<1x4x8x32xbf16>
    %104 = vector.shape_cast %103 : vector<1x4x8x32xbf16> to vector<4x8x32xbf16>
    "tpu.trace_start"() <{level = 10 : i32, message = "hsd,hdo->hso"}> : () -> ()
    %cst_63 = arith.constant dense<0.000000e+00> : vector<4x5x32xf32>
    %105 = tpu.matmul %102, %104, %cst_63 {dimension_numbers = #tpu.dot_dimension_numbers<[2], [1], [1], [2], [0, 0, 0, 1, 1, 2], [0], [0]>} : vector<4x5x8xbf16>, vector<4x8x32xbf16>, vector<4x5x32xf32> -> vector<4x5x32xf32>
    "tpu.trace_stop"() : () -> ()
    %cst_64 = arith.constant dense<0.000000e+00> : vector<5x32xf32>
    %106 = vector.multi_reduction <add>, %105, %cst_64 [0] : vector<4x5x32xf32> to vector<5x32xf32>
    %107 = arith.addf %32, %106 : vector<5x32xf32>
    %c0_65 = arith.constant 0 : index
    %c0_66 = arith.constant 0 : index
    %c0_67 = arith.constant 0 : index
    %108 = vector.load %arg15[%c0_65, %c0_66, %c0_67] : memref<2x1x32xf32, #tpu.memory_space<vmem>>, vector<1x1x32xf32>
    %109 = vector.shape_cast %108 : vector<1x1x32xf32> to vector<1x32xf32>
    %110 = vector.broadcast %109 : vector<1x32xf32> to vector<5x32xf32>
    %111 = arith.addf %107, %110 : vector<5x32xf32>
    %c0_68 = arith.constant 0 : index
    %c0_69 = arith.constant 0 : index
    %c0_70 = arith.constant 0 : index
    %112 = vector.load %arg16[%c0_68, %c0_69, %c0_70] : memref<2x1x32xf32, #tpu.memory_space<vmem>>, vector<1x1x32xf32>
    %113 = vector.shape_cast %112 : vector<1x1x32xf32> to vector<1x32xf32>
    %c0_71 = arith.constant 0 : index
    %c0_72 = arith.constant 0 : index
    %c0_73 = arith.constant 0 : index
    %114 = vector.load %arg17[%c0_71, %c0_72, %c0_73] : memref<2x1x32xf32, #tpu.memory_space<vmem>>, vector<1x1x32xf32>
    %115 = vector.shape_cast %114 : vector<1x1x32xf32> to vector<1x32xf32>
    %cst_74 = arith.constant dense<0.000000e+00> : vector<5xf32>
    %116 = vector.multi_reduction <add>, %111, %cst_74 [1] : vector<5x32xf32> to vector<5xf32>
    %117 = vector.shape_cast %116 : vector<5xf32> to vector<5x1xf32>
    %cst_75 = arith.constant 3.200000e+01 : f32
    %118 = vector.broadcast %cst_75 : f32 to vector<5x1xf32>
    %119 = arith.divf %117, %118 : vector<5x1xf32>
    %120 = vector.broadcast %119 : vector<5x1xf32> to vector<5x32xf32>
    %121 = arith.subf %111, %120 : vector<5x32xf32>
    %122 = arith.mulf %121, %121 : vector<5x32xf32>
    %cst_76 = arith.constant dense<0.000000e+00> : vector<5xf32>
    %123 = vector.multi_reduction <add>, %122, %cst_76 [1] : vector<5x32xf32> to vector<5xf32>
    %124 = vector.shape_cast %123 : vector<5xf32> to vector<5x1xf32>
    %cst_77 = arith.constant 3.200000e+01 : f32
    %125 = vector.broadcast %cst_77 : f32 to vector<5x1xf32>
    %126 = arith.divf %124, %125 : vector<5x1xf32>
    %127 = vector.broadcast %119 : vector<5x1xf32> to vector<5x32xf32>
    %128 = arith.subf %111, %127 : vector<5x32xf32>
    %cst_78 = arith.constant 9.99999974E-6 : f32
    %129 = vector.broadcast %cst_78 : f32 to vector<5x1xf32>
    %130 = arith.addf %126, %129 : vector<5x1xf32>
    %131 = math.rsqrt %130 : vector<5x1xf32>
    %132 = vector.broadcast %131 : vector<5x1xf32> to vector<5x32xf32>
    %133 = arith.mulf %128, %132 : vector<5x32xf32>
    %134 = vector.broadcast %113 : vector<1x32xf32> to vector<5x32xf32>
    %135 = arith.mulf %133, %134 : vector<5x32xf32>
    %136 = vector.broadcast %115 : vector<1x32xf32> to vector<5x32xf32>
    %137 = arith.addf %135, %136 : vector<5x32xf32>
    %138 = arith.truncf %137 : vector<5x32xf32> to vector<5x32xbf16>
    %c0_79 = arith.constant 0 : index
    %c0_80 = arith.constant 0 : index
    %c0_81 = arith.constant 0 : index
    %139 = vector.load %arg18[%c0_79, %c0_80, %c0_81] : memref<2x32x128xbf16, #tpu.memory_space<vmem>>, vector<1x32x128xbf16>
    %140 = vector.shape_cast %139 : vector<1x32x128xbf16> to vector<32x128xbf16>
    %cst_82 = arith.constant dense<0.000000e+00> : vector<5x128xf32>
    %141 = tpu.matmul %138, %140, %cst_82 {dimension_numbers = #tpu.dot_dimension_numbers<[1], [0], [0], [1], [0, 0, 1, 1], [], []>} : vector<5x32xbf16>, vector<32x128xbf16>, vector<5x128xf32> -> vector<5x128xf32>
    %c0_83 = arith.constant 0 : index
    %c0_84 = arith.constant 0 : index
    %c0_85 = arith.constant 0 : index
    %142 = vector.load %arg19[%c0_83, %c0_84, %c0_85] : memref<2x1x128xf32, #tpu.memory_space<vmem>>, vector<1x1x128xf32>
    %143 = vector.shape_cast %142 : vector<1x1x128xf32> to vector<1x128xf32>
    %144 = vector.broadcast %143 : vector<1x128xf32> to vector<5x128xf32>
    %145 = arith.addf %141, %144 : vector<5x128xf32>
    %cst_86 = arith.constant 1.702000e+00 : f32
    %146 = vector.broadcast %cst_86 : f32 to vector<5x128xf32>
    %147 = arith.mulf %146, %145 : vector<5x128xf32>
    %148 = arith.negf %147 : vector<5x128xf32>
    %149 = math.exp %148 : vector<5x128xf32>
    %cst_87 = arith.constant 1.000000e+00 : f32
    %150 = vector.broadcast %cst_87 : f32 to vector<5x128xf32>
    %151 = arith.addf %150, %149 : vector<5x128xf32>
    %152 = arith.divf %150, %151 : vector<5x128xf32>
    %153 = arith.mulf %145, %152 : vector<5x128xf32>
    %154 = arith.truncf %153 : vector<5x128xf32> to vector<5x128xbf16>
    %c0_88 = arith.constant 0 : index
    %c0_89 = arith.constant 0 : index
    %c0_90 = arith.constant 0 : index
    %155 = vector.load %arg20[%c0_88, %c0_89, %c0_90] : memref<2x128x32xbf16, #tpu.memory_space<vmem>>, vector<1x128x32xbf16>
    %156 = vector.shape_cast %155 : vector<1x128x32xbf16> to vector<128x32xbf16>
    %cst_91 = arith.constant dense<0.000000e+00> : vector<5x32xf32>
    %157 = tpu.matmul %154, %156, %cst_91 {dimension_numbers = #tpu.dot_dimension_numbers<[1], [0], [0], [1], [0, 0, 1, 1], [], []>} : vector<5x128xbf16>, vector<128x32xbf16>, vector<5x32xf32> -> vector<5x32xf32>
    %c0_92 = arith.constant 0 : index
    %c0_93 = arith.constant 0 : index
    %c0_94 = arith.constant 0 : index
    %158 = vector.load %arg21[%c0_92, %c0_93, %c0_94] : memref<2x1x32xf32, #tpu.memory_space<vmem>>, vector<1x1x32xf32>
    %159 = vector.shape_cast %158 : vector<1x1x32xf32> to vector<1x32xf32>
    %160 = vector.broadcast %159 : vector<1x32xf32> to vector<5x32xf32>
    %161 = arith.addf %157, %160 : vector<5x32xf32>
    %162 = arith.addf %111, %161 : vector<5x32xf32>
    %163 = vector.extract_strided_slice %162 {offsets = [0, 0], sizes = [1, 32], strides = [1, 1]} : vector<5x32xf32> to vector<1x32xf32>
    %c1 = arith.constant 1 : index
    %c0_95 = arith.constant 0 : index
    %c0_96 = arith.constant 0 : index
    %164 = vector.load %arg6[%c1, %c0_95, %c0_96] : memref<2x1x32xf32, #tpu.memory_space<vmem>>, vector<1x1x32xf32>
    %165 = vector.shape_cast %164 : vector<1x1x32xf32> to vector<1x32xf32>
    %c1_97 = arith.constant 1 : index
    %c0_98 = arith.constant 0 : index
    %c0_99 = arith.constant 0 : index
    %166 = vector.load %arg7[%c1_97, %c0_98, %c0_99] : memref<2x1x32xf32, #tpu.memory_space<vmem>>, vector<1x1x32xf32>
    %167 = vector.shape_cast %166 : vector<1x1x32xf32> to vector<1x32xf32>
    %cst_100 = arith.constant dense<0.000000e+00> : vector<5xf32>
    %168 = vector.multi_reduction <add>, %162, %cst_100 [1] : vector<5x32xf32> to vector<5xf32>
    %169 = vector.shape_cast %168 : vector<5xf32> to vector<5x1xf32>
    %cst_101 = arith.constant 3.200000e+01 : f32
    %170 = vector.broadcast %cst_101 : f32 to vector<5x1xf32>
    %171 = arith.divf %169, %170 : vector<5x1xf32>
    %172 = vector.broadcast %171 : vector<5x1xf32> to vector<5x32xf32>
    %173 = arith.subf %162, %172 : vector<5x32xf32>
    %174 = arith.mulf %173, %173 : vector<5x32xf32>
    %cst_102 = arith.constant dense<0.000000e+00> : vector<5xf32>
    %175 = vector.multi_reduction <add>, %174, %cst_102 [1] : vector<5x32xf32> to vector<5xf32>
    %176 = vector.shape_cast %175 : vector<5xf32> to vector<5x1xf32>
    %cst_103 = arith.constant 3.200000e+01 : f32
    %177 = vector.broadcast %cst_103 : f32 to vector<5x1xf32>
    %178 = arith.divf %176, %177 : vector<5x1xf32>
    %179 = vector.broadcast %171 : vector<5x1xf32> to vector<5x32xf32>
    %180 = arith.subf %162, %179 : vector<5x32xf32>
    %cst_104 = arith.constant 9.99999974E-6 : f32
    %181 = vector.broadcast %cst_104 : f32 to vector<5x1xf32>
    %182 = arith.addf %178, %181 : vector<5x1xf32>
    %183 = math.rsqrt %182 : vector<5x1xf32>
    %184 = vector.broadcast %183 : vector<5x1xf32> to vector<5x32xf32>
    %185 = arith.mulf %180, %184 : vector<5x32xf32>
    %186 = vector.broadcast %165 : vector<1x32xf32> to vector<5x32xf32>
    %187 = arith.mulf %185, %186 : vector<5x32xf32>
    %188 = vector.broadcast %167 : vector<1x32xf32> to vector<5x32xf32>
    %189 = arith.addf %187, %188 : vector<5x32xf32>
    %190 = arith.truncf %189 : vector<5x32xf32> to vector<5x32xbf16>
    %191 = vector.shape_cast %190 : vector<5x32xbf16> to vector<1x5x32xbf16>
    %192 = vector.shape_cast %191 : vector<1x5x32xbf16> to vector<1x5x32xbf16>
    %193 = vector.broadcast %192 : vector<1x5x32xbf16> to vector<4x5x32xbf16>
    %c1_105 = arith.constant 1 : index
    %c0_106 = arith.constant 0 : index
    %c0_107 = arith.constant 0 : index
    %c0_108 = arith.constant 0 : index
    %194 = vector.load %arg8[%c1_105, %c0_106, %c0_107, %c0_108] : memref<2x4x32x8xbf16, #tpu.memory_space<vmem>>, vector<1x4x32x8xbf16>
    %195 = vector.shape_cast %194 : vector<1x4x32x8xbf16> to vector<4x32x8xbf16>
    "tpu.trace_start"() <{level = 10 : i32, message = "hsd,hde->hse"}> : () -> ()
    %cst_109 = arith.constant dense<0.000000e+00> : vector<4x5x8xf32>
    %196 = tpu.matmul %193, %195, %cst_109 {dimension_numbers = #tpu.dot_dimension_numbers<[2], [1], [1], [2], [0, 0, 0, 1, 1, 2], [0], [0]>} : vector<4x5x32xbf16>, vector<4x32x8xbf16>, vector<4x5x8xf32> -> vector<4x5x8xf32>
    "tpu.trace_stop"() : () -> ()
    %c1_110 = arith.constant 1 : index
    %c0_111 = arith.constant 0 : index
    %c0_112 = arith.constant 0 : index
    %c0_113 = arith.constant 0 : index
    %197 = vector.load %arg11[%c1_110, %c0_111, %c0_112, %c0_113] : memref<2x4x1x8xf32, #tpu.memory_space<vmem>>, vector<1x4x1x8xf32>
    %198 = vector.shape_cast %197 : vector<1x4x1x8xf32> to vector<4x1x8xf32>
    %199 = vector.broadcast %198 : vector<4x1x8xf32> to vector<4x5x8xf32>
    %200 = arith.addf %196, %199 : vector<4x5x8xf32>
    %c1_114 = arith.constant 1 : index
    %c0_115 = arith.constant 0 : index
    %c0_116 = arith.constant 0 : index
    %c0_117 = arith.constant 0 : index
    %201 = vector.load %arg9[%c1_114, %c0_115, %c0_116, %c0_117] : memref<2x4x32x8xbf16, #tpu.memory_space<vmem>>, vector<1x4x32x8xbf16>
    %202 = vector.shape_cast %201 : vector<1x4x32x8xbf16> to vector<4x32x8xbf16>
    "tpu.trace_start"() <{level = 10 : i32, message = "hsd,hde->hse"}> : () -> ()
    %cst_118 = arith.constant dense<0.000000e+00> : vector<4x5x8xf32>
    %203 = tpu.matmul %193, %202, %cst_118 {dimension_numbers = #tpu.dot_dimension_numbers<[2], [1], [1], [2], [0, 0, 0, 1, 1, 2], [0], [0]>} : vector<4x5x32xbf16>, vector<4x32x8xbf16>, vector<4x5x8xf32> -> vector<4x5x8xf32>
    "tpu.trace_stop"() : () -> ()
    %c1_119 = arith.constant 1 : index
    %c0_120 = arith.constant 0 : index
    %c0_121 = arith.constant 0 : index
    %c0_122 = arith.constant 0 : index
    %204 = vector.load %arg12[%c1_119, %c0_120, %c0_121, %c0_122] : memref<2x4x1x8xf32, #tpu.memory_space<vmem>>, vector<1x4x1x8xf32>
    %205 = vector.shape_cast %204 : vector<1x4x1x8xf32> to vector<4x1x8xf32>
    %206 = vector.broadcast %205 : vector<4x1x8xf32> to vector<4x5x8xf32>
    %207 = arith.addf %203, %206 : vector<4x5x8xf32>
    %c1_123 = arith.constant 1 : index
    %c0_124 = arith.constant 0 : index
    %c0_125 = arith.constant 0 : index
    %c0_126 = arith.constant 0 : index
    %208 = vector.load %arg10[%c1_123, %c0_124, %c0_125, %c0_126] : memref<2x4x32x8xbf16, #tpu.memory_space<vmem>>, vector<1x4x32x8xbf16>
    %209 = vector.shape_cast %208 : vector<1x4x32x8xbf16> to vector<4x32x8xbf16>
    "tpu.trace_start"() <{level = 10 : i32, message = "hsd,hde->hse"}> : () -> ()
    %cst_127 = arith.constant dense<0.000000e+00> : vector<4x5x8xf32>
    %210 = tpu.matmul %193, %209, %cst_127 {dimension_numbers = #tpu.dot_dimension_numbers<[2], [1], [1], [2], [0, 0, 0, 1, 1, 2], [0], [0]>} : vector<4x5x32xbf16>, vector<4x32x8xbf16>, vector<4x5x8xf32> -> vector<4x5x8xf32>
    "tpu.trace_stop"() : () -> ()
    %c1_128 = arith.constant 1 : index
    %c0_129 = arith.constant 0 : index
    %c0_130 = arith.constant 0 : index
    %c0_131 = arith.constant 0 : index
    %211 = vector.load %arg13[%c1_128, %c0_129, %c0_130, %c0_131] : memref<2x4x1x8xf32, #tpu.memory_space<vmem>>, vector<1x4x1x8xf32>
    %212 = vector.shape_cast %211 : vector<1x4x1x8xf32> to vector<4x1x8xf32>
    %213 = vector.broadcast %212 : vector<4x1x8xf32> to vector<4x5x8xf32>
    %214 = arith.addf %210, %213 : vector<4x5x8xf32>
    %215 = arith.truncf %200 : vector<4x5x8xf32> to vector<4x5x8xbf16>
    %216 = arith.truncf %207 : vector<4x5x8xf32> to vector<4x5x8xbf16>
    "tpu.trace_start"() <{level = 10 : i32, message = "hse,hte->hst"}> : () -> ()
    %cst_132 = arith.constant dense<0.000000e+00> : vector<4x5x5xf32>
    %217 = tpu.matmul %215, %216, %cst_132 {dimension_numbers = #tpu.dot_dimension_numbers<[2], [2], [1], [1], [0, 0, 0, 1, 1, 1], [0], [0]>} : vector<4x5x8xbf16>, vector<4x5x8xbf16>, vector<4x5x5xf32> -> vector<4x5x5xf32>
    "tpu.trace_stop"() : () -> ()
    %cst_133 = arith.constant 0.353553385 : f32
    %218 = vector.broadcast %cst_133 : f32 to vector<4x5x5xf32>
    %219 = arith.mulf %217, %218 : vector<4x5x5xf32>
    %cst_134 = arith.constant dense<0xFF800000> : vector<4x5xf32>
    %220 = vector.multi_reduction <maximumf>, %219, %cst_134 [2] : vector<4x5x5xf32> to vector<4x5xf32>
    %221 = vector.shape_cast %220 : vector<4x5xf32> to vector<4x5x1xf32>
    %222 = vector.broadcast %221 : vector<4x5x1xf32> to vector<4x5x5xf32>
    %223 = arith.subf %219, %222 : vector<4x5x5xf32>
    %224 = math.exp %223 : vector<4x5x5xf32>
    %cst_135 = arith.constant dense<0.000000e+00> : vector<4x5xf32>
    %225 = vector.multi_reduction <add>, %224, %cst_135 [2] : vector<4x5x5xf32> to vector<4x5xf32>
    %226 = vector.shape_cast %225 : vector<4x5xf32> to vector<4x5x1xf32>
    %227 = tpu.reciprocal %226 {approx = true} : vector<4x5x1xf32> -> vector<4x5x1xf32>
    %228 = vector.broadcast %227 : vector<4x5x1xf32> to vector<4x5x5xf32>
    %229 = arith.mulf %224, %228 : vector<4x5x5xf32>
    %230 = arith.truncf %229 : vector<4x5x5xf32> to vector<4x5x5xbf16>
    %231 = arith.truncf %214 : vector<4x5x8xf32> to vector<4x5x8xbf16>
    "tpu.trace_start"() <{level = 10 : i32, message = "hst,htd->hsd"}> : () -> ()
    %cst_136 = arith.constant dense<0.000000e+00> : vector<4x5x8xf32>
    %232 = tpu.matmul %230, %231, %cst_136 {dimension_numbers = #tpu.dot_dimension_numbers<[2], [1], [1], [2], [0, 0, 0, 1, 1, 2], [0], [0]>} : vector<4x5x5xbf16>, vector<4x5x8xbf16>, vector<4x5x8xf32> -> vector<4x5x8xf32>
    "tpu.trace_stop"() : () -> ()
    %233 = arith.truncf %232 : vector<4x5x8xf32> to vector<4x5x8xbf16>
    %c1_137 = arith.constant 1 : index
    %c0_138 = arith.constant 0 : index
    %c0_139 = arith.constant 0 : index
    %c0_140 = arith.constant 0 : index
    %234 = vector.load %arg14[%c1_137, %c0_138, %c0_139, %c0_140] : memref<2x4x8x32xbf16, #tpu.memory_space<vmem>>, vector<1x4x8x32xbf16>
    %235 = vector.shape_cast %234 : vector<1x4x8x32xbf16> to vector<4x8x32xbf16>
    "tpu.trace_start"() <{level = 10 : i32, message = "hsd,hdo->hso"}> : () -> ()
    %cst_141 = arith.constant dense<0.000000e+00> : vector<4x5x32xf32>
    %236 = tpu.matmul %233, %235, %cst_141 {dimension_numbers = #tpu.dot_dimension_numbers<[2], [1], [1], [2], [0, 0, 0, 1, 1, 2], [0], [0]>} : vector<4x5x8xbf16>, vector<4x8x32xbf16>, vector<4x5x32xf32> -> vector<4x5x32xf32>
    "tpu.trace_stop"() : () -> ()
    %cst_142 = arith.constant dense<0.000000e+00> : vector<5x32xf32>
    %237 = vector.multi_reduction <add>, %236, %cst_142 [0] : vector<4x5x32xf32> to vector<5x32xf32>
    %238 = arith.addf %162, %237 : vector<5x32xf32>
    %c1_143 = arith.constant 1 : index
    %c0_144 = arith.constant 0 : index
    %c0_145 = arith.constant 0 : index
    %239 = vector.load %arg15[%c1_143, %c0_144, %c0_145] : memref<2x1x32xf32, #tpu.memory_space<vmem>>, vector<1x1x32xf32>
    %240 = vector.shape_cast %239 : vector<1x1x32xf32> to vector<1x32xf32>
    %241 = vector.broadcast %240 : vector<1x32xf32> to vector<5x32xf32>
    %242 = arith.addf %238, %241 : vector<5x32xf32>
    %c1_146 = arith.constant 1 : index
    %c0_147 = arith.constant 0 : index
    %c0_148 = arith.constant 0 : index
    %243 = vector.load %arg16[%c1_146, %c0_147, %c0_148] : memref<2x1x32xf32, #tpu.memory_space<vmem>>, vector<1x1x32xf32>
    %244 = vector.shape_cast %243 : vector<1x1x32xf32> to vector<1x32xf32>
    %c1_149 = arith.constant 1 : index
    %c0_150 = arith.constant 0 : index
    %c0_151 = arith.constant 0 : index
    %245 = vector.load %arg17[%c1_149, %c0_150, %c0_151] : memref<2x1x32xf32, #tpu.memory_space<vmem>>, vector<1x1x32xf32>
    %246 = vector.shape_cast %245 : vector<1x1x32xf32> to vector<1x32xf32>
    %cst_152 = arith.constant dense<0.000000e+00> : vector<5xf32>
    %247 = vector.multi_reduction <add>, %242, %cst_152 [1] : vector<5x32xf32> to vector<5xf32>
    %248 = vector.shape_cast %247 : vector<5xf32> to vector<5x1xf32>
    %cst_153 = arith.constant 3.200000e+01 : f32
    %249 = vector.broadcast %cst_153 : f32 to vector<5x1xf32>
    %250 = arith.divf %248, %249 : vector<5x1xf32>
    %251 = vector.broadcast %250 : vector<5x1xf32> to vector<5x32xf32>
    %252 = arith.subf %242, %251 : vector<5x32xf32>
    %253 = arith.mulf %252, %252 : vector<5x32xf32>
    %cst_154 = arith.constant dense<0.000000e+00> : vector<5xf32>
    %254 = vector.multi_reduction <add>, %253, %cst_154 [1] : vector<5x32xf32> to vector<5xf32>
    %255 = vector.shape_cast %254 : vector<5xf32> to vector<5x1xf32>
    %cst_155 = arith.constant 3.200000e+01 : f32
    %256 = vector.broadcast %cst_155 : f32 to vector<5x1xf32>
    %257 = arith.divf %255, %256 : vector<5x1xf32>
    %258 = vector.broadcast %250 : vector<5x1xf32> to vector<5x32xf32>
    %259 = arith.subf %242, %258 : vector<5x32xf32>
    %cst_156 = arith.constant 9.99999974E-6 : f32
    %260 = vector.broadcast %cst_156 : f32 to vector<5x1xf32>
    %261 = arith.addf %257, %260 : vector<5x1xf32>
    %262 = math.rsqrt %261 : vector<5x1xf32>
    %263 = vector.broadcast %262 : vector<5x1xf32> to vector<5x32xf32>
    %264 = arith.mulf %259, %263 : vector<5x32xf32>
    %265 = vector.broadcast %244 : vector<1x32xf32> to vector<5x32xf32>
    %266 = arith.mulf %264, %265 : vector<5x32xf32>
    %267 = vector.broadcast %246 : vector<1x32xf32> to vector<5x32xf32>
    %268 = arith.addf %266, %267 : vector<5x32xf32>
    %269 = arith.truncf %268 : vector<5x32xf32> to vector<5x32xbf16>
    %c1_157 = arith.constant 1 : index
    %c0_158 = arith.constant 0 : index
    %c0_159 = arith.constant 0 : index
    %270 = vector.load %arg18[%c1_157, %c0_158, %c0_159] : memref<2x32x128xbf16, #tpu.memory_space<vmem>>, vector<1x32x128xbf16>
    %271 = vector.shape_cast %270 : vector<1x32x128xbf16> to vector<32x128xbf16>
    %cst_160 = arith.constant dense<0.000000e+00> : vector<5x128xf32>
    %272 = tpu.matmul %269, %271, %cst_160 {dimension_numbers = #tpu.dot_dimension_numbers<[1], [0], [0], [1], [0, 0, 1, 1], [], []>} : vector<5x32xbf16>, vector<32x128xbf16>, vector<5x128xf32> -> vector<5x128xf32>
    %c1_161 = arith.constant 1 : index
    %c0_162 = arith.constant 0 : index
    %c0_163 = arith.constant 0 : index
    %273 = vector.load %arg19[%c1_161, %c0_162, %c0_163] : memref<2x1x128xf32, #tpu.memory_space<vmem>>, vector<1x1x128xf32>
    %274 = vector.shape_cast %273 : vector<1x1x128xf32> to vector<1x128xf32>
    %275 = vector.broadcast %274 : vector<1x128xf32> to vector<5x128xf32>
    %276 = arith.addf %272, %275 : vector<5x128xf32>
    %cst_164 = arith.constant 1.702000e+00 : f32
    %277 = vector.broadcast %cst_164 : f32 to vector<5x128xf32>
    %278 = arith.mulf %277, %276 : vector<5x128xf32>
    %279 = arith.negf %278 : vector<5x128xf32>
    %280 = math.exp %279 : vector<5x128xf32>
    %cst_165 = arith.constant 1.000000e+00 : f32
    %281 = vector.broadcast %cst_165 : f32 to vector<5x128xf32>
    %282 = arith.addf %281, %280 : vector<5x128xf32>
    %283 = arith.divf %281, %282 : vector<5x128xf32>
    %284 = arith.mulf %276, %283 : vector<5x128xf32>
    %285 = arith.truncf %284 : vector<5x128xf32> to vector<5x128xbf16>
    %c1_166 = arith.constant 1 : index
    %c0_167 = arith.constant 0 : index
    %c0_168 = arith.constant 0 : index
    %286 = vector.load %arg20[%c1_166, %c0_167, %c0_168] : memref<2x128x32xbf16, #tpu.memory_space<vmem>>, vector<1x128x32xbf16>
    %287 = vector.shape_cast %286 : vector<1x128x32xbf16> to vector<128x32xbf16>
    %cst_169 = arith.constant dense<0.000000e+00> : vector<5x32xf32>
    %288 = tpu.matmul %285, %287, %cst_169 {dimension_numbers = #tpu.dot_dimension_numbers<[1], [0], [0], [1], [0, 0, 1, 1], [], []>} : vector<5x128xbf16>, vector<128x32xbf16>, vector<5x32xf32> -> vector<5x32xf32>
    %c1_170 = arith.constant 1 : index
    %c0_171 = arith.constant 0 : index
    %c0_172 = arith.constant 0 : index
    %289 = vector.load %arg21[%c1_170, %c0_171, %c0_172] : memref<2x1x32xf32, #tpu.memory_space<vmem>>, vector<1x1x32xf32>
    %290 = vector.shape_cast %289 : vector<1x1x32xf32> to vector<1x32xf32>
    %291 = vector.broadcast %290 : vector<1x32xf32> to vector<5x32xf32>
    %292 = arith.addf %288, %291 : vector<5x32xf32>
    %293 = arith.addf %242, %292 : vector<5x32xf32>
    %294 = vector.extract_strided_slice %293 {offsets = [0, 0], sizes = [1, 32], strides = [1, 1]} : vector<5x32xf32> to vector<1x32xf32>
    %c0_173 = arith.constant 0 : index
    %c0_174 = arith.constant 0 : index
    %295 = vector.load %arg22[%c0_173, %c0_174] : memref<1x32xf32, #tpu.memory_space<vmem>>, vector<1x32xf32>
    %c0_175 = arith.constant 0 : index
    %c0_176 = arith.constant 0 : index
    %296 = vector.load %arg23[%c0_175, %c0_176] : memref<1x32xf32, #tpu.memory_space<vmem>>, vector<1x32xf32>
    %cst_177 = arith.constant dense<0.000000e+00> : vector<1xf32>
    %297 = vector.multi_reduction <add>, %294, %cst_177 [1] : vector<1x32xf32> to vector<1xf32>
    %298 = vector.shape_cast %297 : vector<1xf32> to vector<1x1xf32>
    %cst_178 = arith.constant 3.200000e+01 : f32
    %299 = vector.broadcast %cst_178 : f32 to vector<1x1xf32>
    %300 = arith.divf %298, %299 : vector<1x1xf32>
    %301 = vector.broadcast %300 : vector<1x1xf32> to vector<1x32xf32>
    %302 = arith.subf %294, %301 : vector<1x32xf32>
    %303 = arith.mulf %302, %302 : vector<1x32xf32>
    %cst_179 = arith.constant dense<0.000000e+00> : vector<1xf32>
    %304 = vector.multi_reduction <add>, %303, %cst_179 [1] : vector<1x32xf32> to vector<1xf32>
    %305 = vector.shape_cast %304 : vector<1xf32> to vector<1x1xf32>
    %cst_180 = arith.constant 3.200000e+01 : f32
    %306 = vector.broadcast %cst_180 : f32 to vector<1x1xf32>
    %307 = arith.divf %305, %306 : vector<1x1xf32>
    %308 = vector.broadcast %300 : vector<1x1xf32> to vector<1x32xf32>
    %309 = arith.subf %294, %308 : vector<1x32xf32>
    %cst_181 = arith.constant 9.99999974E-6 : f32
    %310 = vector.broadcast %cst_181 : f32 to vector<1x1xf32>
    %311 = arith.addf %307, %310 : vector<1x1xf32>
    %312 = math.rsqrt %311 : vector<1x1xf32>
    %313 = vector.broadcast %312 : vector<1x1xf32> to vector<1x32xf32>
    %314 = arith.mulf %309, %313 : vector<1x32xf32>
    %315 = arith.mulf %314, %295 : vector<1x32xf32>
    %316 = arith.addf %315, %296 : vector<1x32xf32>
    %317 = arith.truncf %316 : vector<1x32xf32> to vector<1x32xbf16>
    %c0_182 = arith.constant 0 : index
    %c0_183 = arith.constant 0 : index
    %318 = vector.load %arg24[%c0_182, %c0_183] : memref<32x32xbf16, #tpu.memory_space<vmem>>, vector<32x32xbf16>
    %cst_184 = arith.constant dense<0.000000e+00> : vector<1x32xf32>
    %319 = tpu.matmul %317, %318, %cst_184 {dimension_numbers = #tpu.dot_dimension_numbers<[1], [0], [0], [1], [0, 0, 1, 1], [], []>} : vector<1x32xbf16>, vector<32x32xbf16>, vector<1x32xf32> -> vector<1x32xf32>
    %320 = tpu.concatenate %163, %316, %319 in 1 : vector<1x32xf32>, vector<1x32xf32>, vector<1x32xf32> -> vector<1x96xf32>
    %321 = vector.extract_strided_slice %3 {offsets = [4, 0], sizes = [4, 32], strides = [1, 1]} : vector<8x32xf32> to vector<4x32xf32>
    %322 = tpu.concatenate %4, %321 in 0 : vector<1x32xf32>, vector<4x32xf32> -> vector<5x32xf32>
    %323 = arith.addf %322, %5 : vector<5x32xf32>
    %c0_185 = arith.constant 0 : index
    %c0_186 = arith.constant 0 : index
    %324 = vector.load %arg4[%c0_185, %c0_186] : memref<1x32xf32, #tpu.memory_space<vmem>>, vector<1x32xf32>
    %c0_187 = arith.constant 0 : index
    %c0_188 = arith.constant 0 : index
    %325 = vector.load %arg5[%c0_187, %c0_188] : memref<1x32xf32, #tpu.memory_space<vmem>>, vector<1x32xf32>
    %cst_189 = arith.constant dense<0.000000e+00> : vector<5xf32>
    %326 = vector.multi_reduction <add>, %323, %cst_189 [1] : vector<5x32xf32> to vector<5xf32>
    %327 = vector.shape_cast %326 : vector<5xf32> to vector<5x1xf32>
    %cst_190 = arith.constant 3.200000e+01 : f32
    %328 = vector.broadcast %cst_190 : f32 to vector<5x1xf32>
    %329 = arith.divf %327, %328 : vector<5x1xf32>
    %330 = vector.broadcast %329 : vector<5x1xf32> to vector<5x32xf32>
    %331 = arith.subf %323, %330 : vector<5x32xf32>
    %332 = arith.mulf %331, %331 : vector<5x32xf32>
    %cst_191 = arith.constant dense<0.000000e+00> : vector<5xf32>
    %333 = vector.multi_reduction <add>, %332, %cst_191 [1] : vector<5x32xf32> to vector<5xf32>
    %334 = vector.shape_cast %333 : vector<5xf32> to vector<5x1xf32>
    %cst_192 = arith.constant 3.200000e+01 : f32
    %335 = vector.broadcast %cst_192 : f32 to vector<5x1xf32>
    %336 = arith.divf %334, %335 : vector<5x1xf32>
    %337 = vector.broadcast %329 : vector<5x1xf32> to vector<5x32xf32>
    %338 = arith.subf %323, %337 : vector<5x32xf32>
    %cst_193 = arith.constant 9.99999974E-6 : f32
    %339 = vector.broadcast %cst_193 : f32 to vector<5x1xf32>
    %340 = arith.addf %336, %339 : vector<5x1xf32>
    %341 = math.rsqrt %340 : vector<5x1xf32>
    %342 = vector.broadcast %341 : vector<5x1xf32> to vector<5x32xf32>
    %343 = arith.mulf %338, %342 : vector<5x32xf32>
    %344 = vector.broadcast %324 : vector<1x32xf32> to vector<5x32xf32>
    %345 = arith.mulf %343, %344 : vector<5x32xf32>
    %346 = vector.broadcast %325 : vector<1x32xf32> to vector<5x32xf32>
    %347 = arith.addf %345, %346 : vector<5x32xf32>
    %c0_194 = arith.constant 0 : index
    %c0_195 = arith.constant 0 : index
    %c0_196 = arith.constant 0 : index
    %348 = vector.load %arg6[%c0_194, %c0_195, %c0_196] : memref<2x1x32xf32, #tpu.memory_space<vmem>>, vector<1x1x32xf32>
    %349 = vector.shape_cast %348 : vector<1x1x32xf32> to vector<1x32xf32>
    %c0_197 = arith.constant 0 : index
    %c0_198 = arith.constant 0 : index
    %c0_199 = arith.constant 0 : index
    %350 = vector.load %arg7[%c0_197, %c0_198, %c0_199] : memref<2x1x32xf32, #tpu.memory_space<vmem>>, vector<1x1x32xf32>
    %351 = vector.shape_cast %350 : vector<1x1x32xf32> to vector<1x32xf32>
    %cst_200 = arith.constant dense<0.000000e+00> : vector<5xf32>
    %352 = vector.multi_reduction <add>, %347, %cst_200 [1] : vector<5x32xf32> to vector<5xf32>
    %353 = vector.shape_cast %352 : vector<5xf32> to vector<5x1xf32>
    %cst_201 = arith.constant 3.200000e+01 : f32
    %354 = vector.broadcast %cst_201 : f32 to vector<5x1xf32>
    %355 = arith.divf %353, %354 : vector<5x1xf32>
    %356 = vector.broadcast %355 : vector<5x1xf32> to vector<5x32xf32>
    %357 = arith.subf %347, %356 : vector<5x32xf32>
    %358 = arith.mulf %357, %357 : vector<5x32xf32>
    %cst_202 = arith.constant dense<0.000000e+00> : vector<5xf32>
    %359 = vector.multi_reduction <add>, %358, %cst_202 [1] : vector<5x32xf32> to vector<5xf32>
    %360 = vector.shape_cast %359 : vector<5xf32> to vector<5x1xf32>
    %cst_203 = arith.constant 3.200000e+01 : f32
    %361 = vector.broadcast %cst_203 : f32 to vector<5x1xf32>
    %362 = arith.divf %360, %361 : vector<5x1xf32>
    %363 = vector.broadcast %355 : vector<5x1xf32> to vector<5x32xf32>
    %364 = arith.subf %347, %363 : vector<5x32xf32>
    %cst_204 = arith.constant 9.99999974E-6 : f32
    %365 = vector.broadcast %cst_204 : f32 to vector<5x1xf32>
    %366 = arith.addf %362, %365 : vector<5x1xf32>
    %367 = math.rsqrt %366 : vector<5x1xf32>
    %368 = vector.broadcast %367 : vector<5x1xf32> to vector<5x32xf32>
    %369 = arith.mulf %364, %368 : vector<5x32xf32>
    %370 = vector.broadcast %349 : vector<1x32xf32> to vector<5x32xf32>
    %371 = arith.mulf %369, %370 : vector<5x32xf32>
    %372 = vector.broadcast %351 : vector<1x32xf32> to vector<5x32xf32>
    %373 = arith.addf %371, %372 : vector<5x32xf32>
    %374 = arith.truncf %373 : vector<5x32xf32> to vector<5x32xbf16>
    %375 = vector.shape_cast %374 : vector<5x32xbf16> to vector<1x5x32xbf16>
    %376 = vector.shape_cast %375 : vector<1x5x32xbf16> to vector<1x5x32xbf16>
    %377 = vector.broadcast %376 : vector<1x5x32xbf16> to vector<4x5x32xbf16>
    %c0_205 = arith.constant 0 : index
    %c0_206 = arith.constant 0 : index
    %c0_207 = arith.constant 0 : index
    %c0_208 = arith.constant 0 : index
    %378 = vector.load %arg8[%c0_205, %c0_206, %c0_207, %c0_208] : memref<2x4x32x8xbf16, #tpu.memory_space<vmem>>, vector<1x4x32x8xbf16>
    %379 = vector.shape_cast %378 : vector<1x4x32x8xbf16> to vector<4x32x8xbf16>
    "tpu.trace_start"() <{level = 10 : i32, message = "hsd,hde->hse"}> : () -> ()
    %cst_209 = arith.constant dense<0.000000e+00> : vector<4x5x8xf32>
    %380 = tpu.matmul %377, %379, %cst_209 {dimension_numbers = #tpu.dot_dimension_numbers<[2], [1], [1], [2], [0, 0, 0, 1, 1, 2], [0], [0]>} : vector<4x5x32xbf16>, vector<4x32x8xbf16>, vector<4x5x8xf32> -> vector<4x5x8xf32>
    "tpu.trace_stop"() : () -> ()
    %c0_210 = arith.constant 0 : index
    %c0_211 = arith.constant 0 : index
    %c0_212 = arith.constant 0 : index
    %c0_213 = arith.constant 0 : index
    %381 = vector.load %arg11[%c0_210, %c0_211, %c0_212, %c0_213] : memref<2x4x1x8xf32, #tpu.memory_space<vmem>>, vector<1x4x1x8xf32>
    %382 = vector.shape_cast %381 : vector<1x4x1x8xf32> to vector<4x1x8xf32>
    %383 = vector.broadcast %382 : vector<4x1x8xf32> to vector<4x5x8xf32>
    %384 = arith.addf %380, %383 : vector<4x5x8xf32>
    %c0_214 = arith.constant 0 : index
    %c0_215 = arith.constant 0 : index
    %c0_216 = arith.constant 0 : index
    %c0_217 = arith.constant 0 : index
    %385 = vector.load %arg9[%c0_214, %c0_215, %c0_216, %c0_217] : memref<2x4x32x8xbf16, #tpu.memory_space<vmem>>, vector<1x4x32x8xbf16>
    %386 = vector.shape_cast %385 : vector<1x4x32x8xbf16> to vector<4x32x8xbf16>
    "tpu.trace_start"() <{level = 10 : i32, message = "hsd,hde->hse"}> : () -> ()
    %cst_218 = arith.constant dense<0.000000e+00> : vector<4x5x8xf32>
    %387 = tpu.matmul %377, %386, %cst_218 {dimension_numbers = #tpu.dot_dimension_numbers<[2], [1], [1], [2], [0, 0, 0, 1, 1, 2], [0], [0]>} : vector<4x5x32xbf16>, vector<4x32x8xbf16>, vector<4x5x8xf32> -> vector<4x5x8xf32>
    "tpu.trace_stop"() : () -> ()
    %c0_219 = arith.constant 0 : index
    %c0_220 = arith.constant 0 : index
    %c0_221 = arith.constant 0 : index
    %c0_222 = arith.constant 0 : index
    %388 = vector.load %arg12[%c0_219, %c0_220, %c0_221, %c0_222] : memref<2x4x1x8xf32, #tpu.memory_space<vmem>>, vector<1x4x1x8xf32>
    %389 = vector.shape_cast %388 : vector<1x4x1x8xf32> to vector<4x1x8xf32>
    %390 = vector.broadcast %389 : vector<4x1x8xf32> to vector<4x5x8xf32>
    %391 = arith.addf %387, %390 : vector<4x5x8xf32>
    %c0_223 = arith.constant 0 : index
    %c0_224 = arith.constant 0 : index
    %c0_225 = arith.constant 0 : index
    %c0_226 = arith.constant 0 : index
    %392 = vector.load %arg10[%c0_223, %c0_224, %c0_225, %c0_226] : memref<2x4x32x8xbf16, #tpu.memory_space<vmem>>, vector<1x4x32x8xbf16>
    %393 = vector.shape_cast %392 : vector<1x4x32x8xbf16> to vector<4x32x8xbf16>
    "tpu.trace_start"() <{level = 10 : i32, message = "hsd,hde->hse"}> : () -> ()
    %cst_227 = arith.constant dense<0.000000e+00> : vector<4x5x8xf32>
    %394 = tpu.matmul %377, %393, %cst_227 {dimension_numbers = #tpu.dot_dimension_numbers<[2], [1], [1], [2], [0, 0, 0, 1, 1, 2], [0], [0]>} : vector<4x5x32xbf16>, vector<4x32x8xbf16>, vector<4x5x8xf32> -> vector<4x5x8xf32>
    "tpu.trace_stop"() : () -> ()
    %c0_228 = arith.constant 0 : index
    %c0_229 = arith.constant 0 : index
    %c0_230 = arith.constant 0 : index
    %c0_231 = arith.constant 0 : index
    %395 = vector.load %arg13[%c0_228, %c0_229, %c0_230, %c0_231] : memref<2x4x1x8xf32, #tpu.memory_space<vmem>>, vector<1x4x1x8xf32>
    %396 = vector.shape_cast %395 : vector<1x4x1x8xf32> to vector<4x1x8xf32>
    %397 = vector.broadcast %396 : vector<4x1x8xf32> to vector<4x5x8xf32>
    %398 = arith.addf %394, %397 : vector<4x5x8xf32>
    %399 = arith.truncf %384 : vector<4x5x8xf32> to vector<4x5x8xbf16>
    %400 = arith.truncf %391 : vector<4x5x8xf32> to vector<4x5x8xbf16>
    "tpu.trace_start"() <{level = 10 : i32, message = "hse,hte->hst"}> : () -> ()
    %cst_232 = arith.constant dense<0.000000e+00> : vector<4x5x5xf32>
    %401 = tpu.matmul %399, %400, %cst_232 {dimension_numbers = #tpu.dot_dimension_numbers<[2], [2], [1], [1], [0, 0, 0, 1, 1, 1], [0], [0]>} : vector<4x5x8xbf16>, vector<4x5x8xbf16>, vector<4x5x5xf32> -> vector<4x5x5xf32>
    "tpu.trace_stop"() : () -> ()
    %cst_233 = arith.constant 0.353553385 : f32
    %402 = vector.broadcast %cst_233 : f32 to vector<4x5x5xf32>
    %403 = arith.mulf %401, %402 : vector<4x5x5xf32>
    %cst_234 = arith.constant dense<0xFF800000> : vector<4x5xf32>
    %404 = vector.multi_reduction <maximumf>, %403, %cst_234 [2] : vector<4x5x5xf32> to vector<4x5xf32>
    %405 = vector.shape_cast %404 : vector<4x5xf32> to vector<4x5x1xf32>
    %406 = vector.broadcast %405 : vector<4x5x1xf32> to vector<4x5x5xf32>
    %407 = arith.subf %403, %406 : vector<4x5x5xf32>
    %408 = math.exp %407 : vector<4x5x5xf32>
    %cst_235 = arith.constant dense<0.000000e+00> : vector<4x5xf32>
    %409 = vector.multi_reduction <add>, %408, %cst_235 [2] : vector<4x5x5xf32> to vector<4x5xf32>
    %410 = vector.shape_cast %409 : vector<4x5xf32> to vector<4x5x1xf32>
    %411 = tpu.reciprocal %410 {approx = true} : vector<4x5x1xf32> -> vector<4x5x1xf32>
    %412 = vector.broadcast %411 : vector<4x5x1xf32> to vector<4x5x5xf32>
    %413 = arith.mulf %408, %412 : vector<4x5x5xf32>
    %414 = arith.truncf %413 : vector<4x5x5xf32> to vector<4x5x5xbf16>
    %415 = arith.truncf %398 : vector<4x5x8xf32> to vector<4x5x8xbf16>
    "tpu.trace_start"() <{level = 10 : i32, message = "hst,htd->hsd"}> : () -> ()
    %cst_236 = arith.constant dense<0.000000e+00> : vector<4x5x8xf32>
    %416 = tpu.matmul %414, %415, %cst_236 {dimension_numbers = #tpu.dot_dimension_numbers<[2], [1], [1], [2], [0, 0, 0, 1, 1, 2], [0], [0]>} : vector<4x5x5xbf16>, vector<4x5x8xbf16>, vector<4x5x8xf32> -> vector<4x5x8xf32>
    "tpu.trace_stop"() : () -> ()
    %417 = arith.truncf %416 : vector<4x5x8xf32> to vector<4x5x8xbf16>
    %c0_237 = arith.constant 0 : index
    %c0_238 = arith.constant 0 : index
    %c0_239 = arith.constant 0 : index
    %c0_240 = arith.constant 0 : index
    %418 = vector.load %arg14[%c0_237, %c0_238, %c0_239, %c0_240] : memref<2x4x8x32xbf16, #tpu.memory_space<vmem>>, vector<1x4x8x32xbf16>
    %419 = vector.shape_cast %418 : vector<1x4x8x32xbf16> to vector<4x8x32xbf16>
    "tpu.trace_start"() <{level = 10 : i32, message = "hsd,hdo->hso"}> : () -> ()
    %cst_241 = arith.constant dense<0.000000e+00> : vector<4x5x32xf32>
    %420 = tpu.matmul %417, %419, %cst_241 {dimension_numbers = #tpu.dot_dimension_numbers<[2], [1], [1], [2], [0, 0, 0, 1, 1, 2], [0], [0]>} : vector<4x5x8xbf16>, vector<4x8x32xbf16>, vector<4x5x32xf32> -> vector<4x5x32xf32>
    "tpu.trace_stop"() : () -> ()
    %cst_242 = arith.constant dense<0.000000e+00> : vector<5x32xf32>
    %421 = vector.multi_reduction <add>, %420, %cst_242 [0] : vector<4x5x32xf32> to vector<5x32xf32>
    %422 = arith.addf %347, %421 : vector<5x32xf32>
    %c0_243 = arith.constant 0 : index
    %c0_244 = arith.constant 0 : index
    %c0_245 = arith.constant 0 : index
    %423 = vector.load %arg15[%c0_243, %c0_244, %c0_245] : memref<2x1x32xf32, #tpu.memory_space<vmem>>, vector<1x1x32xf32>
    %424 = vector.shape_cast %423 : vector<1x1x32xf32> to vector<1x32xf32>
    %425 = vector.broadcast %424 : vector<1x32xf32> to vector<5x32xf32>
    %426 = arith.addf %422, %425 : vector<5x32xf32>
    %c0_246 = arith.constant 0 : index
    %c0_247 = arith.constant 0 : index
    %c0_248 = arith.constant 0 : index
    %427 = vector.load %arg16[%c0_246, %c0_247, %c0_248] : memref<2x1x32xf32, #tpu.memory_space<vmem>>, vector<1x1x32xf32>
    %428 = vector.shape_cast %427 : vector<1x1x32xf32> to vector<1x32xf32>
    %c0_249 = arith.constant 0 : index
    %c0_250 = arith.constant 0 : index
    %c0_251 = arith.constant 0 : index
    %429 = vector.load %arg17[%c0_249, %c0_250, %c0_251] : memref<2x1x32xf32, #tpu.memory_space<vmem>>, vector<1x1x32xf32>
    %430 = vector.shape_cast %429 : vector<1x1x32xf32> to vector<1x32xf32>
    %cst_252 = arith.constant dense<0.000000e+00> : vector<5xf32>
    %431 = vector.multi_reduction <add>, %426, %cst_252 [1] : vector<5x32xf32> to vector<5xf32>
    %432 = vector.shape_cast %431 : vector<5xf32> to vector<5x1xf32>
    %cst_253 = arith.constant 3.200000e+01 : f32
    %433 = vector.broadcast %cst_253 : f32 to vector<5x1xf32>
    %434 = arith.divf %432, %433 : vector<5x1xf32>
    %435 = vector.broadcast %434 : vector<5x1xf32> to vector<5x32xf32>
    %436 = arith.subf %426, %435 : vector<5x32xf32>
    %437 = arith.mulf %436, %436 : vector<5x32xf32>
    %cst_254 = arith.constant dense<0.000000e+00> : vector<5xf32>
    %438 = vector.multi_reduction <add>, %437, %cst_254 [1] : vector<5x32xf32> to vector<5xf32>
    %439 = vector.shape_cast %438 : vector<5xf32> to vector<5x1xf32>
    %cst_255 = arith.constant 3.200000e+01 : f32
    %440 = vector.broadcast %cst_255 : f32 to vector<5x1xf32>
    %441 = arith.divf %439, %440 : vector<5x1xf32>
    %442 = vector.broadcast %434 : vector<5x1xf32> to vector<5x32xf32>
    %443 = arith.subf %426, %442 : vector<5x32xf32>
    %cst_256 = arith.constant 9.99999974E-6 : f32
    %444 = vector.broadcast %cst_256 : f32 to vector<5x1xf32>
    %445 = arith.addf %441, %444 : vector<5x1xf32>
    %446 = math.rsqrt %445 : vector<5x1xf32>
    %447 = vector.broadcast %446 : vector<5x1xf32> to vector<5x32xf32>
    %448 = arith.mulf %443, %447 : vector<5x32xf32>
    %449 = vector.broadcast %428 : vector<1x32xf32> to vector<5x32xf32>
    %450 = arith.mulf %448, %449 : vector<5x32xf32>
    %451 = vector.broadcast %430 : vector<1x32xf32> to vector<5x32xf32>
    %452 = arith.addf %450, %451 : vector<5x32xf32>
    %453 = arith.truncf %452 : vector<5x32xf32> to vector<5x32xbf16>
    %c0_257 = arith.constant 0 : index
    %c0_258 = arith.constant 0 : index
    %c0_259 = arith.constant 0 : index
    %454 = vector.load %arg18[%c0_257, %c0_258, %c0_259] : memref<2x32x128xbf16, #tpu.memory_space<vmem>>, vector<1x32x128xbf16>
    %455 = vector.shape_cast %454 : vector<1x32x128xbf16> to vector<32x128xbf16>
    %cst_260 = arith.constant dense<0.000000e+00> : vector<5x128xf32>
    %456 = tpu.matmul %453, %455, %cst_260 {dimension_numbers = #tpu.dot_dimension_numbers<[1], [0], [0], [1], [0, 0, 1, 1], [], []>} : vector<5x32xbf16>, vector<32x128xbf16>, vector<5x128xf32> -> vector<5x128xf32>
    %c0_261 = arith.constant 0 : index
    %c0_262 = arith.constant 0 : index
    %c0_263 = arith.constant 0 : index
    %457 = vector.load %arg19[%c0_261, %c0_262, %c0_263] : memref<2x1x128xf32, #tpu.memory_space<vmem>>, vector<1x1x128xf32>
    %458 = vector.shape_cast %457 : vector<1x1x128xf32> to vector<1x128xf32>
    %459 = vector.broadcast %458 : vector<1x128xf32> to vector<5x128xf32>
    %460 = arith.addf %456, %459 : vector<5x128xf32>
    %cst_264 = arith.constant 1.702000e+00 : f32
    %461 = vector.broadcast %cst_264 : f32 to vector<5x128xf32>
    %462 = arith.mulf %461, %460 : vector<5x128xf32>
    %463 = arith.negf %462 : vector<5x128xf32>
    %464 = math.exp %463 : vector<5x128xf32>
    %cst_265 = arith.constant 1.000000e+00 : f32
    %465 = vector.broadcast %cst_265 : f32 to vector<5x128xf32>
    %466 = arith.addf %465, %464 : vector<5x128xf32>
    %467 = arith.divf %465, %466 : vector<5x128xf32>
    %468 = arith.mulf %460, %467 : vector<5x128xf32>
    %469 = arith.truncf %468 : vector<5x128xf32> to vector<5x128xbf16>
    %c0_266 = arith.constant 0 : index
    %c0_267 = arith.constant 0 : index
    %c0_268 = arith.constant 0 : index
    %470 = vector.load %arg20[%c0_266, %c0_267, %c0_268] : memref<2x128x32xbf16, #tpu.memory_space<vmem>>, vector<1x128x32xbf16>
    %471 = vector.shape_cast %470 : vector<1x128x32xbf16> to vector<128x32xbf16>
    %cst_269 = arith.constant dense<0.000000e+00> : vector<5x32xf32>
    %472 = tpu.matmul %469, %471, %cst_269 {dimension_numbers = #tpu.dot_dimension_numbers<[1], [0], [0], [1], [0, 0, 1, 1], [], []>} : vector<5x128xbf16>, vector<128x32xbf16>, vector<5x32xf32> -> vector<5x32xf32>
    %c0_270 = arith.constant 0 : index
    %c0_271 = arith.constant 0 : index
    %c0_272 = arith.constant 0 : index
    %473 = vector.load %arg21[%c0_270, %c0_271, %c0_272] : memref<2x1x32xf32, #tpu.memory_space<vmem>>, vector<1x1x32xf32>
    %474 = vector.shape_cast %473 : vector<1x1x32xf32> to vector<1x32xf32>
    %475 = vector.broadcast %474 : vector<1x32xf32> to vector<5x32xf32>
    %476 = arith.addf %472, %475 : vector<5x32xf32>
    %477 = arith.addf %426, %476 : vector<5x32xf32>
    %478 = vector.extract_strided_slice %477 {offsets = [0, 0], sizes = [1, 32], strides = [1, 1]} : vector<5x32xf32> to vector<1x32xf32>
    %c1_273 = arith.constant 1 : index
    %c0_274 = arith.constant 0 : index
    %c0_275 = arith.constant 0 : index
    %479 = vector.load %arg6[%c1_273, %c0_274, %c0_275] : memref<2x1x32xf32, #tpu.memory_space<vmem>>, vector<1x1x32xf32>
    %480 = vector.shape_cast %479 : vector<1x1x32xf32> to vector<1x32xf32>
    %c1_276 = arith.constant 1 : index
    %c0_277 = arith.constant 0 : index
    %c0_278 = arith.constant 0 : index
    %481 = vector.load %arg7[%c1_276, %c0_277, %c0_278] : memref<2x1x32xf32, #tpu.memory_space<vmem>>, vector<1x1x32xf32>
    %482 = vector.shape_cast %481 : vector<1x1x32xf32> to vector<1x32xf32>
    %cst_279 = arith.constant dense<0.000000e+00> : vector<5xf32>
    %483 = vector.multi_reduction <add>, %477, %cst_279 [1] : vector<5x32xf32> to vector<5xf32>
    %484 = vector.shape_cast %483 : vector<5xf32> to vector<5x1xf32>
    %cst_280 = arith.constant 3.200000e+01 : f32
    %485 = vector.broadcast %cst_280 : f32 to vector<5x1xf32>
    %486 = arith.divf %484, %485 : vector<5x1xf32>
    %487 = vector.broadcast %486 : vector<5x1xf32> to vector<5x32xf32>
    %488 = arith.subf %477, %487 : vector<5x32xf32>
    %489 = arith.mulf %488, %488 : vector<5x32xf32>
    %cst_281 = arith.constant dense<0.000000e+00> : vector<5xf32>
    %490 = vector.multi_reduction <add>, %489, %cst_281 [1] : vector<5x32xf32> to vector<5xf32>
    %491 = vector.shape_cast %490 : vector<5xf32> to vector<5x1xf32>
    %cst_282 = arith.constant 3.200000e+01 : f32
    %492 = vector.broadcast %cst_282 : f32 to vector<5x1xf32>
    %493 = arith.divf %491, %492 : vector<5x1xf32>
    %494 = vector.broadcast %486 : vector<5x1xf32> to vector<5x32xf32>
    %495 = arith.subf %477, %494 : vector<5x32xf32>
    %cst_283 = arith.constant 9.99999974E-6 : f32
    %496 = vector.broadcast %cst_283 : f32 to vector<5x1xf32>
    %497 = arith.addf %493, %496 : vector<5x1xf32>
    %498 = math.rsqrt %497 : vector<5x1xf32>
    %499 = vector.broadcast %498 : vector<5x1xf32> to vector<5x32xf32>
    %500 = arith.mulf %495, %499 : vector<5x32xf32>
    %501 = vector.broadcast %480 : vector<1x32xf32> to vector<5x32xf32>
    %502 = arith.mulf %500, %501 : vector<5x32xf32>
    %503 = vector.broadcast %482 : vector<1x32xf32> to vector<5x32xf32>
    %504 = arith.addf %502, %503 : vector<5x32xf32>
    %505 = arith.truncf %504 : vector<5x32xf32> to vector<5x32xbf16>
    %506 = vector.shape_cast %505 : vector<5x32xbf16> to vector<1x5x32xbf16>
    %507 = vector.shape_cast %506 : vector<1x5x32xbf16> to vector<1x5x32xbf16>
    %508 = vector.broadcast %507 : vector<1x5x32xbf16> to vector<4x5x32xbf16>
    %c1_284 = arith.constant 1 : index
    %c0_285 = arith.constant 0 : index
    %c0_286 = arith.constant 0 : index
    %c0_287 = arith.constant 0 : index
    %509 = vector.load %arg8[%c1_284, %c0_285, %c0_286, %c0_287] : memref<2x4x32x8xbf16, #tpu.memory_space<vmem>>, vector<1x4x32x8xbf16>
    %510 = vector.shape_cast %509 : vector<1x4x32x8xbf16> to vector<4x32x8xbf16>
    "tpu.trace_start"() <{level = 10 : i32, message = "hsd,hde->hse"}> : () -> ()
    %cst_288 = arith.constant dense<0.000000e+00> : vector<4x5x8xf32>
    %511 = tpu.matmul %508, %510, %cst_288 {dimension_numbers = #tpu.dot_dimension_numbers<[2], [1], [1], [2], [0, 0, 0, 1, 1, 2], [0], [0]>} : vector<4x5x32xbf16>, vector<4x32x8xbf16>, vector<4x5x8xf32> -> vector<4x5x8xf32>
    "tpu.trace_stop"() : () -> ()
    %c1_289 = arith.constant 1 : index
    %c0_290 = arith.constant 0 : index
    %c0_291 = arith.constant 0 : index
    %c0_292 = arith.constant 0 : index
    %512 = vector.load %arg11[%c1_289, %c0_290, %c0_291, %c0_292] : memref<2x4x1x8xf32, #tpu.memory_space<vmem>>, vector<1x4x1x8xf32>
    %513 = vector.shape_cast %512 : vector<1x4x1x8xf32> to vector<4x1x8xf32>
    %514 = vector.broadcast %513 : vector<4x1x8xf32> to vector<4x5x8xf32>
    %515 = arith.addf %511, %514 : vector<4x5x8xf32>
    %c1_293 = arith.constant 1 : index
    %c0_294 = arith.constant 0 : index
    %c0_295 = arith.constant 0 : index
    %c0_296 = arith.constant 0 : index
    %516 = vector.load %arg9[%c1_293, %c0_294, %c0_295, %c0_296] : memref<2x4x32x8xbf16, #tpu.memory_space<vmem>>, vector<1x4x32x8xbf16>
    %517 = vector.shape_cast %516 : vector<1x4x32x8xbf16> to vector<4x32x8xbf16>
    "tpu.trace_start"() <{level = 10 : i32, message = "hsd,hde->hse"}> : () -> ()
    %cst_297 = arith.constant dense<0.000000e+00> : vector<4x5x8xf32>
    %518 = tpu.matmul %508, %517, %cst_297 {dimension_numbers = #tpu.dot_dimension_numbers<[2], [1], [1], [2], [0, 0, 0, 1, 1, 2], [0], [0]>} : vector<4x5x32xbf16>, vector<4x32x8xbf16>, vector<4x5x8xf32> -> vector<4x5x8xf32>
    "tpu.trace_stop"() : () -> ()
    %c1_298 = arith.constant 1 : index
    %c0_299 = arith.constant 0 : index
    %c0_300 = arith.constant 0 : index
    %c0_301 = arith.constant 0 : index
    %519 = vector.load %arg12[%c1_298, %c0_299, %c0_300, %c0_301] : memref<2x4x1x8xf32, #tpu.memory_space<vmem>>, vector<1x4x1x8xf32>
    %520 = vector.shape_cast %519 : vector<1x4x1x8xf32> to vector<4x1x8xf32>
    %521 = vector.broadcast %520 : vector<4x1x8xf32> to vector<4x5x8xf32>
    %522 = arith.addf %518, %521 : vector<4x5x8xf32>
    %c1_302 = arith.constant 1 : index
    %c0_303 = arith.constant 0 : index
    %c0_304 = arith.constant 0 : index
    %c0_305 = arith.constant 0 : index
    %523 = vector.load %arg10[%c1_302, %c0_303, %c0_304, %c0_305] : memref<2x4x32x8xbf16, #tpu.memory_space<vmem>>, vector<1x4x32x8xbf16>
    %524 = vector.shape_cast %523 : vector<1x4x32x8xbf16> to vector<4x32x8xbf16>
    "tpu.trace_start"() <{level = 10 : i32, message = "hsd,hde->hse"}> : () -> ()
    %cst_306 = arith.constant dense<0.000000e+00> : vector<4x5x8xf32>
    %525 = tpu.matmul %508, %524, %cst_306 {dimension_numbers = #tpu.dot_dimension_numbers<[2], [1], [1], [2], [0, 0, 0, 1, 1, 2], [0], [0]>} : vector<4x5x32xbf16>, vector<4x32x8xbf16>, vector<4x5x8xf32> -> vector<4x5x8xf32>
    "tpu.trace_stop"() : () -> ()
    %c1_307 = arith.constant 1 : index
    %c0_308 = arith.constant 0 : index
    %c0_309 = arith.constant 0 : index
    %c0_310 = arith.constant 0 : index
    %526 = vector.load %arg13[%c1_307, %c0_308, %c0_309, %c0_310] : memref<2x4x1x8xf32, #tpu.memory_space<vmem>>, vector<1x4x1x8xf32>
    %527 = vector.shape_cast %526 : vector<1x4x1x8xf32> to vector<4x1x8xf32>
    %528 = vector.broadcast %527 : vector<4x1x8xf32> to vector<4x5x8xf32>
    %529 = arith.addf %525, %528 : vector<4x5x8xf32>
    %530 = arith.truncf %515 : vector<4x5x8xf32> to vector<4x5x8xbf16>
    %531 = arith.truncf %522 : vector<4x5x8xf32> to vector<4x5x8xbf16>
    "tpu.trace_start"() <{level = 10 : i32, message = "hse,hte->hst"}> : () -> ()
    %cst_311 = arith.constant dense<0.000000e+00> : vector<4x5x5xf32>
    %532 = tpu.matmul %530, %531, %cst_311 {dimension_numbers = #tpu.dot_dimension_numbers<[2], [2], [1], [1], [0, 0, 0, 1, 1, 1], [0], [0]>} : vector<4x5x8xbf16>, vector<4x5x8xbf16>, vector<4x5x5xf32> -> vector<4x5x5xf32>
    "tpu.trace_stop"() : () -> ()
    %cst_312 = arith.constant 0.353553385 : f32
    %533 = vector.broadcast %cst_312 : f32 to vector<4x5x5xf32>
    %534 = arith.mulf %532, %533 : vector<4x5x5xf32>
    %cst_313 = arith.constant dense<0xFF800000> : vector<4x5xf32>
    %535 = vector.multi_reduction <maximumf>, %534, %cst_313 [2] : vector<4x5x5xf32> to vector<4x5xf32>
    %536 = vector.shape_cast %535 : vector<4x5xf32> to vector<4x5x1xf32>
    %537 = vector.broadcast %536 : vector<4x5x1xf32> to vector<4x5x5xf32>
    %538 = arith.subf %534, %537 : vector<4x5x5xf32>
    %539 = math.exp %538 : vector<4x5x5xf32>
    %cst_314 = arith.constant dense<0.000000e+00> : vector<4x5xf32>
    %540 = vector.multi_reduction <add>, %539, %cst_314 [2] : vector<4x5x5xf32> to vector<4x5xf32>
    %541 = vector.shape_cast %540 : vector<4x5xf32> to vector<4x5x1xf32>
    %542 = tpu.reciprocal %541 {approx = true} : vector<4x5x1xf32> -> vector<4x5x1xf32>
    %543 = vector.broadcast %542 : vector<4x5x1xf32> to vector<4x5x5xf32>
    %544 = arith.mulf %539, %543 : vector<4x5x5xf32>
    %545 = arith.truncf %544 : vector<4x5x5xf32> to vector<4x5x5xbf16>
    %546 = arith.truncf %529 : vector<4x5x8xf32> to vector<4x5x8xbf16>
    "tpu.trace_start"() <{level = 10 : i32, message = "hst,htd->hsd"}> : () -> ()
    %cst_315 = arith.constant dense<0.000000e+00> : vector<4x5x8xf32>
    %547 = tpu.matmul %545, %546, %cst_315 {dimension_numbers = #tpu.dot_dimension_numbers<[2], [1], [1], [2], [0, 0, 0, 1, 1, 2], [0], [0]>} : vector<4x5x5xbf16>, vector<4x5x8xbf16>, vector<4x5x8xf32> -> vector<4x5x8xf32>
    "tpu.trace_stop"() : () -> ()
    %548 = arith.truncf %547 : vector<4x5x8xf32> to vector<4x5x8xbf16>
    %c1_316 = arith.constant 1 : index
    %c0_317 = arith.constant 0 : index
    %c0_318 = arith.constant 0 : index
    %c0_319 = arith.constant 0 : index
    %549 = vector.load %arg14[%c1_316, %c0_317, %c0_318, %c0_319] : memref<2x4x8x32xbf16, #tpu.memory_space<vmem>>, vector<1x4x8x32xbf16>
    %550 = vector.shape_cast %549 : vector<1x4x8x32xbf16> to vector<4x8x32xbf16>
    "tpu.trace_start"() <{level = 10 : i32, message = "hsd,hdo->hso"}> : () -> ()
    %cst_320 = arith.constant dense<0.000000e+00> : vector<4x5x32xf32>
    %551 = tpu.matmul %548, %550, %cst_320 {dimension_numbers = #tpu.dot_dimension_numbers<[2], [1], [1], [2], [0, 0, 0, 1, 1, 2], [0], [0]>} : vector<4x5x8xbf16>, vector<4x8x32xbf16>, vector<4x5x32xf32> -> vector<4x5x32xf32>
    "tpu.trace_stop"() : () -> ()
    %cst_321 = arith.constant dense<0.000000e+00> : vector<5x32xf32>
    %552 = vector.multi_reduction <add>, %551, %cst_321 [0] : vector<4x5x32xf32> to vector<5x32xf32>
    %553 = arith.addf %477, %552 : vector<5x32xf32>
    %c1_322 = arith.constant 1 : index
    %c0_323 = arith.constant 0 : index
    %c0_324 = arith.constant 0 : index
    %554 = vector.load %arg15[%c1_322, %c0_323, %c0_324] : memref<2x1x32xf32, #tpu.memory_space<vmem>>, vector<1x1x32xf32>
    %555 = vector.shape_cast %554 : vector<1x1x32xf32> to vector<1x32xf32>
    %556 = vector.broadcast %555 : vector<1x32xf32> to vector<5x32xf32>
    %557 = arith.addf %553, %556 : vector<5x32xf32>
    %c1_325 = arith.constant 1 : index
    %c0_326 = arith.constant 0 : index
    %c0_327 = arith.constant 0 : index
    %558 = vector.load %arg16[%c1_325, %c0_326, %c0_327] : memref<2x1x32xf32, #tpu.memory_space<vmem>>, vector<1x1x32xf32>
    %559 = vector.shape_cast %558 : vector<1x1x32xf32> to vector<1x32xf32>
    %c1_328 = arith.constant 1 : index
    %c0_329 = arith.constant 0 : index
    %c0_330 = arith.constant 0 : index
    %560 = vector.load %arg17[%c1_328, %c0_329, %c0_330] : memref<2x1x32xf32, #tpu.memory_space<vmem>>, vector<1x1x32xf32>
    %561 = vector.shape_cast %560 : vector<1x1x32xf32> to vector<1x32xf32>
    %cst_331 = arith.constant dense<0.000000e+00> : vector<5xf32>
    %562 = vector.multi_reduction <add>, %557, %cst_331 [1] : vector<5x32xf32> to vector<5xf32>
    %563 = vector.shape_cast %562 : vector<5xf32> to vector<5x1xf32>
    %cst_332 = arith.constant 3.200000e+01 : f32
    %564 = vector.broadcast %cst_332 : f32 to vector<5x1xf32>
    %565 = arith.divf %563, %564 : vector<5x1xf32>
    %566 = vector.broadcast %565 : vector<5x1xf32> to vector<5x32xf32>
    %567 = arith.subf %557, %566 : vector<5x32xf32>
    %568 = arith.mulf %567, %567 : vector<5x32xf32>
    %cst_333 = arith.constant dense<0.000000e+00> : vector<5xf32>
    %569 = vector.multi_reduction <add>, %568, %cst_333 [1] : vector<5x32xf32> to vector<5xf32>
    %570 = vector.shape_cast %569 : vector<5xf32> to vector<5x1xf32>
    %cst_334 = arith.constant 3.200000e+01 : f32
    %571 = vector.broadcast %cst_334 : f32 to vector<5x1xf32>
    %572 = arith.divf %570, %571 : vector<5x1xf32>
    %573 = vector.broadcast %565 : vector<5x1xf32> to vector<5x32xf32>
    %574 = arith.subf %557, %573 : vector<5x32xf32>
    %cst_335 = arith.constant 9.99999974E-6 : f32
    %575 = vector.broadcast %cst_335 : f32 to vector<5x1xf32>
    %576 = arith.addf %572, %575 : vector<5x1xf32>
    %577 = math.rsqrt %576 : vector<5x1xf32>
    %578 = vector.broadcast %577 : vector<5x1xf32> to vector<5x32xf32>
    %579 = arith.mulf %574, %578 : vector<5x32xf32>
    %580 = vector.broadcast %559 : vector<1x32xf32> to vector<5x32xf32>
    %581 = arith.mulf %579, %580 : vector<5x32xf32>
    %582 = vector.broadcast %561 : vector<1x32xf32> to vector<5x32xf32>
    %583 = arith.addf %581, %582 : vector<5x32xf32>
    %584 = arith.truncf %583 : vector<5x32xf32> to vector<5x32xbf16>
    %c1_336 = arith.constant 1 : index
    %c0_337 = arith.constant 0 : index
    %c0_338 = arith.constant 0 : index
    %585 = vector.load %arg18[%c1_336, %c0_337, %c0_338] : memref<2x32x128xbf16, #tpu.memory_space<vmem>>, vector<1x32x128xbf16>
    %586 = vector.shape_cast %585 : vector<1x32x128xbf16> to vector<32x128xbf16>
    %cst_339 = arith.constant dense<0.000000e+00> : vector<5x128xf32>
    %587 = tpu.matmul %584, %586, %cst_339 {dimension_numbers = #tpu.dot_dimension_numbers<[1], [0], [0], [1], [0, 0, 1, 1], [], []>} : vector<5x32xbf16>, vector<32x128xbf16>, vector<5x128xf32> -> vector<5x128xf32>
    %c1_340 = arith.constant 1 : index
    %c0_341 = arith.constant 0 : index
    %c0_342 = arith.constant 0 : index
    %588 = vector.load %arg19[%c1_340, %c0_341, %c0_342] : memref<2x1x128xf32, #tpu.memory_space<vmem>>, vector<1x1x128xf32>
    %589 = vector.shape_cast %588 : vector<1x1x128xf32> to vector<1x128xf32>
    %590 = vector.broadcast %589 : vector<1x128xf32> to vector<5x128xf32>
    %591 = arith.addf %587, %590 : vector<5x128xf32>
    %cst_343 = arith.constant 1.702000e+00 : f32
    %592 = vector.broadcast %cst_343 : f32 to vector<5x128xf32>
    %593 = arith.mulf %592, %591 : vector<5x128xf32>
    %594 = arith.negf %593 : vector<5x128xf32>
    %595 = math.exp %594 : vector<5x128xf32>
    %cst_344 = arith.constant 1.000000e+00 : f32
    %596 = vector.broadcast %cst_344 : f32 to vector<5x128xf32>
    %597 = arith.addf %596, %595 : vector<5x128xf32>
    %598 = arith.divf %596, %597 : vector<5x128xf32>
    %599 = arith.mulf %591, %598 : vector<5x128xf32>
    %600 = arith.truncf %599 : vector<5x128xf32> to vector<5x128xbf16>
    %c1_345 = arith.constant 1 : index
    %c0_346 = arith.constant 0 : index
    %c0_347 = arith.constant 0 : index
    %601 = vector.load %arg20[%c1_345, %c0_346, %c0_347] : memref<2x128x32xbf16, #tpu.memory_space<vmem>>, vector<1x128x32xbf16>
    %602 = vector.shape_cast %601 : vector<1x128x32xbf16> to vector<128x32xbf16>
    %cst_348 = arith.constant dense<0.000000e+00> : vector<5x32xf32>
    %603 = tpu.matmul %600, %602, %cst_348 {dimension_numbers = #tpu.dot_dimension_numbers<[1], [0], [0], [1], [0, 0, 1, 1], [], []>} : vector<5x128xbf16>, vector<128x32xbf16>, vector<5x32xf32> -> vector<5x32xf32>
    %c1_349 = arith.constant 1 : index
    %c0_350 = arith.constant 0 : index
    %c0_351 = arith.constant 0 : index
    %604 = vector.load %arg21[%c1_349, %c0_350, %c0_351] : memref<2x1x32xf32, #tpu.memory_space<vmem>>, vector<1x1x32xf32>
    %605 = vector.shape_cast %604 : vector<1x1x32xf32> to vector<1x32xf32>
    %606 = vector.broadcast %605 : vector<1x32xf32> to vector<5x32xf32>
    %607 = arith.addf %603, %606 : vector<5x32xf32>
    %608 = arith.addf %557, %607 : vector<5x32xf32>
    %609 = vector.extract_strided_slice %608 {offsets = [0, 0], sizes = [1, 32], strides = [1, 1]} : vector<5x32xf32> to vector<1x32xf32>
    %c0_352 = arith.constant 0 : index
    %c0_353 = arith.constant 0 : index
    %610 = vector.load %arg22[%c0_352, %c0_353] : memref<1x32xf32, #tpu.memory_space<vmem>>, vector<1x32xf32>
    %c0_354 = arith.constant 0 : index
    %c0_355 = arith.constant 0 : index
    %611 = vector.load %arg23[%c0_354, %c0_355] : memref<1x32xf32, #tpu.memory_space<vmem>>, vector<1x32xf32>
    %cst_356 = arith.constant dense<0.000000e+00> : vector<1xf32>
    %612 = vector.multi_reduction <add>, %609, %cst_356 [1] : vector<1x32xf32> to vector<1xf32>
    %613 = vector.shape_cast %612 : vector<1xf32> to vector<1x1xf32>
    %cst_357 = arith.constant 3.200000e+01 : f32
    %614 = vector.broadcast %cst_357 : f32 to vector<1x1xf32>
    %615 = arith.divf %613, %614 : vector<1x1xf32>
    %616 = vector.broadcast %615 : vector<1x1xf32> to vector<1x32xf32>
    %617 = arith.subf %609, %616 : vector<1x32xf32>
    %618 = arith.mulf %617, %617 : vector<1x32xf32>
    %cst_358 = arith.constant dense<0.000000e+00> : vector<1xf32>
    %619 = vector.multi_reduction <add>, %618, %cst_358 [1] : vector<1x32xf32> to vector<1xf32>
    %620 = vector.shape_cast %619 : vector<1xf32> to vector<1x1xf32>
    %cst_359 = arith.constant 3.200000e+01 : f32
    %621 = vector.broadcast %cst_359 : f32 to vector<1x1xf32>
    %622 = arith.divf %620, %621 : vector<1x1xf32>
    %623 = vector.broadcast %615 : vector<1x1xf32> to vector<1x32xf32>
    %624 = arith.subf %609, %623 : vector<1x32xf32>
    %cst_360 = arith.constant 9.99999974E-6 : f32
    %625 = vector.broadcast %cst_360 : f32 to vector<1x1xf32>
    %626 = arith.addf %622, %625 : vector<1x1xf32>
    %627 = math.rsqrt %626 : vector<1x1xf32>
    %628 = vector.broadcast %627 : vector<1x1xf32> to vector<1x32xf32>
    %629 = arith.mulf %624, %628 : vector<1x32xf32>
    %630 = arith.mulf %629, %610 : vector<1x32xf32>
    %631 = arith.addf %630, %611 : vector<1x32xf32>
    %632 = arith.truncf %631 : vector<1x32xf32> to vector<1x32xbf16>
    %c0_361 = arith.constant 0 : index
    %c0_362 = arith.constant 0 : index
    %633 = vector.load %arg24[%c0_361, %c0_362] : memref<32x32xbf16, #tpu.memory_space<vmem>>, vector<32x32xbf16>
    %cst_363 = arith.constant dense<0.000000e+00> : vector<1x32xf32>
    %634 = tpu.matmul %632, %633, %cst_363 {dimension_numbers = #tpu.dot_dimension_numbers<[1], [0], [0], [1], [0, 0, 1, 1], [], []>} : vector<1x32xbf16>, vector<32x32xbf16>, vector<1x32xf32> -> vector<1x32xf32>
    %635 = tpu.concatenate %478, %631, %634 in 1 : vector<1x32xf32>, vector<1x32xf32>, vector<1x32xf32> -> vector<1x96xf32>
    %636 = tpu.concatenate %320, %635 in 0 : vector<1x96xf32>, vector<1x96xf32> -> vector<2x96xf32>
    %c0_364 = arith.constant 0 : index
    %c0_365 = arith.constant 0 : index
    %637 = vector.load %arg25[%c0_364, %c0_365] : memref<2x96xf32, #tpu.memory_space<vmem>>, vector<2x96xf32>
    tpu.vector_store %arg25[%c0_364, %c0_365], %636 {strides = array<i32>} : memref<2x96xf32, #tpu.memory_space<vmem>>, vector<2x96xf32>,
    return
  }
}

</mosaic_0001>

<bundles_post_ra>
// kernel: fwd.2
= control target key start
LH: loop header
LB: loop body
LE: loop exit
PB: predicated region body
PF: predicated region fallthrough
CT: control target
= control target key end

     0   :  { %v8968_v0 = vmov 0   ;;  %vm181_vm0 = vcmask 523264   ;;  %vm230_vm1 = vcmask 1040384   ;;  %vm235_vm2 = vcmask 258048   ;;  %s10656_s1 = inlined_call_operand.vmem [shape: bf16[192,32], index: 1, kind: input, shape index: {}]   ;;  %s10657_s0 = inlined_call_operand.vmem [shape: f32[8,192], index: 0, kind: input, shape index: {}]   ;;  %s10658_s2 = inlined_call_operand.vmem [shape: f32[1,32], index: 2, kind: input, shape index: {}]   ;;  %s10659_s3 = inlined_call_operand.vmem [shape: f32[5,32], index: 3, kind: input, shape index: {}]   ;;  %s10660_s4 = inlined_call_operand.vmem [shape: f32[1,32], index: 4, kind: input, shape index: {}]   ;;  %s10661_s5 = inlined_call_operand.vmem [shape: f32[1,32], index: 5, kind: input, shape index: {}]   ;;  %s10662_s8 = inlined_call_operand.vmem [shape: bf16[2,4,32,8], index: 8, kind: input, shape index: {}]   ;;  %s10663_s9 = inlined_call_operand.vmem [shape: bf16[2,4,32,8], index: 9, kind: input, shape index: {}]   ;;  %s10664_s10 = inlined_call_operand.vmem [shape: bf16[2,4,32,8], index: 10, kind: input, shape index: {}]   ;;  %s10665_s6 = inlined_call_operand.vmem [shape: f32[2,1,32], index: 6, kind: input, shape index: {}]   ;;  %s10666_s7 = inlined_call_operand.vmem [shape: f32[2,1,32], index: 7, kind: input, shape index: {}]   ;;  %s10667_s12 = inlined_call_operand.vmem [shape: f32[2,4,1,8], index: 12, kind: input, shape index: {}]   ;;  %s10668_s11 = inlined_call_operand.vmem [shape: f32[2,4,1,8], index: 11, kind: input, shape index: {}]   ;;  %s10669_s13 = inlined_call_operand.vmem [shape: f32[2,4,1,8], index: 13, kind: input, shape index: {}]   ;;  %s10670_s14 = inlined_call_operand.vmem [shape: bf16[2,4,8,32], index: 14, kind: input, shape index: {}]   ;;  %s10671_s15 = inlined_call_operand.vmem [shape: f32[2,1,32], index: 15, kind: input, shape index: {}]   ;;  %s10672_s18 = inlined_call_operand.vmem [shape: bf16[2,32,128], index: 18, kind: input, shape index: {}]   ;;  %s10673_s16 = inlined_call_operand.vmem [shape: f32[2,1,32], index: 16, kind: input, shape index: {}]   ;;  %s10674_s17 = inlined_call_operand.vmem [shape: f32[2,1,32], index: 17, kind: input, shape index: {}]   ;;  %s10675_s20 = inlined_call_operand.vmem [shape: bf16[2,128,32], index: 20, kind: input, shape index: {}]   ;;  %s10676_s19 = inlined_call_operand.vmem [shape: f32[2,1,128], index: 19, kind: input, shape index: {}]   ;;  %s10677_s21 = inlined_call_operand.vmem [shape: f32[2,1,32], index: 21, kind: input, shape index: {}]   ;;  %s10678_s24 = inlined_call_operand.vmem [shape: bf16[32,32], index: 24, kind: input, shape index: {}]   ;;  %s10679_s22 = inlined_call_operand.vmem [shape: f32[1,32], index: 22, kind: input, shape index: {}]   ;;  %s10680_s23 = inlined_call_operand.vmem [shape: f32[1,32], index: 23, kind: input, shape index: {}]   ;;  %s10681_s25 = inlined_call_operand.vmem [shape: f32[2,96], index: 25, kind: output, shape index: {}]  }
   0x1   :  { %10690 = sst [smem:[#allocation2_spill]] %s10656_s1  ;;  %185 = vmatprep.subr.bf16.mxu0 %v8968_v0  ;;  %v8969_v51 = vmov 0.0   ;;  %vm8970_vm3 = vmmov 0   ;;  %v7107_v61 = vld [vmem:[%s10666_s7] ss:$0 sm:$0xff]  ;;  %vm350_vm4 = vcmask 261120  }
   0x2   :  { %10691 = sst [smem:[#allocation3_spill]] %s10657_s0  ;;  %7914 = vmatprep.subr.bf16.mxu1 %v8969_v51  ;;  %7918 = vmatprep.mubr.msk.bf16.mxu1 %vm8970_vm3, %v8969_v51  ;;  %vm1062_vm5 = vcmask 64512   ;;  %vm1308_vm6 = vcmask 1041408   ;;  %vm1309_vm7 = vcmask 1042432   ;;  %vm1251_vm8 = vcmask 36864  }
   0x3   :  { %10692 = sst [smem:[#allocation4_spill]] %s10658_s2  ;;  %s10701_s28 = sld [smem:[#allocation3_spill]]  ;;  %vm1304_vm9 = vcmask 39936   ;;  %vm1504_vm10 = vcmask 1043456   ;;  %vm3583_vm11 = vcmask 253952   ;;  %vm7085_vm12 = vcmask 779264  }
   0x4   :  { %10693 = sst [smem:[#allocation5_spill]] %s10659_s3  ;;  %s10702_s3 = sld [smem:[#allocation4_spill]] }
   0x5   :  { %10694 = sst [smem:[#allocation6_spill]] %s10660_s4 }
   0x6   :  { %10695 = sst [smem:[#allocation7_spill]] %s10661_s5  ;;  %s10704_s27 = sld [smem:[#allocation6_spill]] }
   0x7   :  { %10696 = sst [smem:[#allocation8_spill]] %s10662_s8  ;;  %s10700_s8 = sld [smem:[#allocation2_spill]] }
   0x8   :  { %10697 = sst [smem:[#allocation9_spill]] %s10663_s9  ;;  %s10705_s5 = sld [smem:[#allocation7_spill]] }
   0x9   :  { %10698 = sst [smem:[#allocation10_spill]] %s10664_s10  ;;  %v82_v5 = vld [vmem:[%s10701_s28 + $0x8] sm:$0xff]  ;;  %v81_v15 = vld [vmem:[%s10701_s28] sm:$0xff]  ;;  %s10706_s2 = sld [smem:[#allocation8_spill]] }
   0xa   :  { %10699 = sst [smem:[#allocation11_spill]] %s10665_s6  ;;  %v84_v6 = vpack.c.bf16 %v82_v5, %v82_v5  ;;  %v83_v16 = vpack.c.bf16 %v81_v15, %v81_v15  ;;  %v225_v18 = vld [vmem:[%s10702_s3] sm:$0x1]  ;;  %s10708_s26 = sld [smem:[#allocation9_spill]] }
   0xb   :  { %s10707_s4 = sld [smem:[#allocation11_spill]]  ;;  %s10709_s9 = sld [smem:[#allocation10_spill]] }
   0xc   :  { %7103 = vmatprep.mubr.msk.bf16.mxu0 %vm181_vm0, %v84_v6  ;;  %v7104_v39 = vld [vmem:[%s10704_s27] ss:$0 sm:$0xff] }
   0xd   :  { %v8712_v1 = vld [vmem:[%s10700_s8] sm:$0xff]   ;;  %v8713_v2 = vld [vmem:[%s10700_s8 + $0x8] sm:$0xff]   ;;  %v8714_v3 = vld [vmem:[%s10700_s8 + $0x10] sm:$0xff]  }
   0xe   :  { %186 = vmatpush1.bf16.msra.mxu0 %v8712_v1  ;;  %v8715_v4 = vld [vmem:[%s10700_s8 + $0x18] sm:$0xff]   ;;  %v8716_v7 = vld [vmem:[%s10700_s8 + $0x20] sm:$0xff]   ;;  %v8717_v8 = vld [vmem:[%s10700_s8 + $0x28] sm:$0xff]  }
   0xf   :  { %187 = vmatprep.subr.bf16.mxu0 %v8968_v0  ;;  %v8718_v9 = vld [vmem:[%s10700_s8 + $0x30] sm:$0xff]   ;;  %v8719_v10 = vld [vmem:[%s10700_s8 + $0x38] sm:$0xff]   ;;  %v8720_v11 = vld [vmem:[%s10700_s8 + $0x40] sm:$0xff]  }
  0x10   :  { %v8721_v12 = vld [vmem:[%s10700_s8 + $0x48] sm:$0xff]   ;;  %v8722_v13 = vld [vmem:[%s10700_s8 + $0x50] sm:$0xff]   ;;  %v8723_v14 = vld [vmem:[%s10700_s8 + $0x58] sm:$0xff]   ;;  %s10703_s8 = sld [smem:[#allocation5_spill]] }
  0x11   :  { %v7105_v41 = vld [vmem:[%s10705_s5] ss:$0 sm:$0xff]  ;;  %v8725_v52 = vld [vmem:[%s10706_s2 + $0x10] sm:$0xff]   ;;  %v8726_v53 = vld [vmem:[%s10706_s2 + $0x8] sm:$0xff]  }
  0x12   :  { %188 = vmatpush1.bf16.msra.mxu0 %v8713_v2  ;;  %v8724_v50 = vld [vmem:[%s10706_s2] sm:$0xff]   ;;  %7915 = vmatpush3.bf16.msra.mxu1 %v8725_v52  ;;  %v8727_v54 = vld [vmem:[%s10706_s2 + $0x18] sm:$0xff]   ;;  %v8732_v5 = vld [vmem:[%s10706_s2 + $0x30] sm:$0xff]  }
  0x13   :  { %189 = vmatprep.subr.bf16.mxu0 %v8968_v0  ;;  %7916 = vmatprep.subr.bf16.mxu1 %v8969_v51  ;;  %v7106_v59 = vld [vmem:[%s10707_s4] ss:$0 sm:$0xff]  ;;  %v8742_v15 = vld [vmem:[%s10708_s26 + $0x30] sm:$0xff]  }
  0x14   :  { %v8729_v1 = vld [vmem:[%s10708_s26 + $0x20] sm:$0xff]  }
  0x15   :  { %v8733_v6 = vld [vmem:[%s10709_s9] sm:$0xff]  }
  0x16   :  { %190 = vmatpush1.bf16.msra.mxu0 %v8714_v3  ;;  %v226_v22 = vld [vmem:[%s10703_s8] sm:$0x1f]  ;;  %7917 = vmatpush3.bf16.msra.mxu1 %v8727_v54  ;;  %v8730_v3 = vld [vmem:[%s10706_s2 + $0x28] sm:$0xff]  }
  0x17   :  { %191 = vmatprep.subr.bf16.mxu0 %v8968_v0  ;;  %7922 = vmatprep.subr.bf16.mxu1 %v8969_v51  ;;  %v7126_v54 = vld [vmem:[%s10667_s12 + $0x2] ss:$0 sm:$0xff] }
  0x1a   :  { %192 = vmatpush1.bf16.msra.mxu0 %v8715_v4  ;;  %v8731_v4 = vld [vmem:[%s10708_s26 + $0x28] sm:$0xff]  }
  0x1b   :  { %193 = vmatprep.subr.bf16.mxu0 %v8968_v0 }
  0x1e   :  { %194 = vmatpush1.bf16.msra.mxu0 %v8716_v7  ;;  %v8734_v7 = vld [vmem:[%s10706_s2 + $0x38] sm:$0xff]  }
  0x1f   :  { %195 = vmatprep.subr.bf16.mxu0 %v8968_v0 }
  0x22   :  { %196 = vmatpush1.bf16.msra.mxu0 %v8717_v8  ;;  %v8735_v8 = vld [vmem:[%s10709_s9 + $0x8] sm:$0xff]  }
  0x23   :  { %197 = vmatprep.subr.bf16.mxu0 %v8968_v0 }
  0x26   :  { %198 = vmatpush1.bf16.msra.mxu0 %v8718_v9  ;;  %v8736_v9 = vld [vmem:[%s10708_s26] sm:$0xff]  }
  0x27   :  { %199 = vmatprep.subr.bf16.mxu0 %v8968_v0 }
  0x2a   :  { %200 = vmatpush1.bf16.msra.mxu0 %v8719_v10  ;;  %v8737_v10 = vld [vmem:[%s10709_s9 + $0x20] sm:$0xff]  }
  0x2b   :  { %201 = vmatprep.subr.bf16.mxu0 %v8968_v0 }
  0x2e   :  { %202 = vmatpush1.bf16.msra.mxu0 %v8720_v11  ;;  %v8738_v11 = vld [vmem:[%s10708_s26 + $0x8] sm:$0xff]  }
  0x2f   :  { %203 = vmatprep.subr.bf16.mxu0 %v8968_v0 }
  0x32   :  { %204 = vmatpush1.bf16.msra.mxu0 %v8721_v12  ;;  %v8739_v12 = vld [vmem:[%s10709_s9 + $0x28] sm:$0xff]  }
  0x33   :  { %205 = vmatprep.subr.bf16.mxu0 %v8968_v0 }
  0x36   :  { %206 = vmatpush1.bf16.msra.mxu0 %v8722_v13  ;;  %v8740_v13 = vld [vmem:[%s10708_s26 + $0x10] sm:$0xff]  }
  0x37   :  { %207 = vmatprep.subr.bf16.mxu0 %v8968_v0  ;;  %v8728_v0 = vld [vmem:[%s10706_s2 + $0x20] sm:$0xff]  }
  0x3a   :  { %208 = vmatpush1.bf16.msra.mxu0 %v8723_v14  ;;  %v8741_v14 = vld [vmem:[%s10708_s26 + $0x18] sm:$0xff]  }
  0x3b   :  { %7906 = vmatprep.subr.bf16.mxu0 %v8969_v51 }
  0x3d   :  { %218 = vmatmul.mubr.bf16.vlgmr.msra.gmra.mrb[0].mxu0 %v83_v16  ;;  %v8743_v16 = vld [vmem:[%s10708_s26 + $0x38] sm:$0xff]  }
  0x3e   :  { %7907 = vmatpush3.bf16.msra.mxu0 %v8724_v50  ;;  %7910 = vmatprep.mubr.msk.bf16.mxu0 %vm8970_vm3, %v8969_v51 }
  0x3f   :  { %7908 = vmatprep.subr.bf16.mxu0 %v8969_v51 }
  0x42   :  { %7909 = vmatpush3.bf16.msra.mxu0 %v8726_v53 }
  0x43   :  { %7954 = vmatprep.subr.bf16.mxu0 %v8969_v51 }
 0x110   :  { %v219_v17 = vpop.f32.mrb[0].mxu0 }
 0x111   :  { %v228_v19 = vrot.slane %v219_v17, 7  ;;  %v3669_v20 = vrot.slane %v219_v17, 3  ;;  %v221_v21 = vpop.f32.mrb[1].mxu0  ;;  %v8744_v17 = vld [vmem:[%s10709_s9 + $0x10] sm:$0xff]  }
 0x112   :  { %v222_v23 = vpop.f32.mrb[2].mxu0 }
 0x113   :  { %v223_v24 = vpop.f32.mrb[3].mxu0  ;;  %v231_v25 = vsel %vm230_vm1, %v225_v18, %v228_v19  ;;  %v3671_v26 = vsel %vm230_vm1, %v225_v18, %v3669_v20  ;;  %v8745_v18 = vld [vmem:[%s10709_s9 + $0x18] sm:$0xff]   ;;  %v8746_v19 = vld [vmem:[%s10709_s9 + $0x30] sm:$0xff]  }
 0x114   :  { %v232_v27 = vadd.f32 %v231_v25, %v226_v22  ;;  %v9155_v28 = vadd.f32 %v3671_v26, %v226_v22  ;;  %v8747_v20 = vld [vmem:[%s10709_s9 + $0x38] sm:$0xff]  }
 0x116   :  { %v236_v29 = vsel %vm235_vm2, %v232_v27, 0.0 }
 0x117   :  { %237 = vadd.xlane.f32.xlu0 %v236_v29 }
 0x1a4   :  { %v238_v30 = vpop.xlane.xlu0 %237 }
 0x1a5   :  { %v240_v31 = vmul.f32 0.03125, %v238_v30 }
 0x1a7   :  { %v241_v32 = vsub.f32 %v232_v27, %v240_v31 }
 0x1a9   :  { %v242_v33 = vmul.f32 %v241_v32, %v241_v32 }
 0x1ab   :  { %v243_v34 = vsel %vm235_vm2, %v242_v33, 0.0 }
 0x1ac   :  { %244 = vadd.xlane.f32.xlu0 %v243_v34 }
 0x239   :  { %v245_v35 = vpop.xlane.xlu0 %244 }
 0x23a   :  { %v246_v36 = vmul.f32 0.03125, %v245_v35 }
 0x23c   :  { %v247_v37 = vadd.f32 1e-05, %v246_v36 }
 0x23e   :  { %8864 = vrsqrt.f32 %v247_v37 }
 0x248   :  { %v8865_v38 = vpop.eup %8864 }
 0x249   :  { %v249_v40 = vmul.f32 %v8865_v38, %v241_v32 }
 0x24b   :  { %v256_v42 = vmul.f32 %v7104_v39, %v249_v40 }
 0x24d   :  { %v9165_v43 = vadd.f32 %v7105_v41, %v256_v42 }
 0x24f   :  { %v266_v44 = vsel %vm235_vm2, %v9165_v43, 0.0 }
 0x250   :  { %267 = vadd.xlane.f32.xlu1 %v266_v44 }
 0x2dd   :  { %v268_v45 = vpop.xlane.xlu1 %267 }
 0x2de   :  { %v269_v46 = vmul.f32 0.03125, %v268_v45 }
 0x2e0   :  { %v270_v47 = vsub.f32 %v9165_v43, %v269_v46 }
 0x2e2   :  { %v271_v48 = vmul.f32 %v270_v47, %v270_v47 }
 0x2e4   :  { %v272_v49 = vsel %vm235_vm2, %v271_v48, 0.0 }
 0x2e5   :  { %273 = vadd.xlane.f32.xlu1 %v272_v49 }
 0x372   :  { %v274_v55 = vpop.xlane.xlu1 %273 }
 0x373   :  { %v275_v56 = vmul.f32 0.03125, %v274_v55 }
 0x375   :  { %v276_v57 = vadd.f32 1e-05, %v275_v56 }
 0x377   :  { %8866 = vrsqrt.f32 %v276_v57 }
 0x381   :  { %v8867_v58 = vpop.eup %8866 }
 0x382   :  { %v278_v60 = vmul.f32 %v8867_v58, %v270_v47  ;;  %v7124_v47 = vld [vmem:[%s10667_s12] ss:$0 sm:$0xff] }
 0x384   :  { %v285_v62 = vmul.f32 %v7106_v59, %v278_v60  ;;  %v7108_v60 = vld [vmem:[%s10668_s11] ss:$0 sm:$0xff] }
 0x386   :  { %v292_v63 = vadd.f32 %v7107_v61, %v285_v62 }
 0x388   :  { %v9205_v2 = vpack.c.bf16 %v292_v63, %v292_v63  ;;  %v7125_v63 = vld [vmem:[%s10667_s12 + $0x1] ss:$0 sm:$0xff] }
 0x38a   :  { %7911 = vmatmul.mubr.msk.bf16.vlgmr.msra.gmra.mrb[4].mxu0 %vm350_vm4, %v9205_v2  ;;  %7919 = vmatmul.mubr.msk.bf16.vlgmr.msra.gmra.mrb[0].mxu1 %vm350_vm4, %v9205_v2 }
 0x38b   :  { %7923 = vmatpush3.bf16.msra.mxu1 %v8728_v0  ;;  %7955 = vmatpush3.bf16.msra.mxu0 %v8729_v1 }
 0x38c   :  { %7924 = vmatprep.subr.bf16.mxu1 %v8969_v51  ;;  %7956 = vmatprep.subr.bf16.mxu0 %v8969_v51 }
 0x38d   :  { %7926 = vmatprep.mubr.msk.bf16.mxu1 %vm8970_vm3, %v8969_v51  ;;  %7958 = vmatprep.mubr.msk.bf16.mxu0 %vm8970_vm3, %v8969_v51 }
 0x38f   :  { %7925 = vmatpush3.bf16.msra.mxu1 %v8730_v3  ;;  %7957 = vmatpush3.bf16.msra.mxu0 %v8731_v4  ;;  %v7140_v3 = vld [vmem:[%s10669_s13] ss:$0 sm:$0xff] }
 0x390   :  { %7930 = vmatprep.subr.bf16.mxu1 %v8969_v51  ;;  %7970 = vmatprep.subr.bf16.mxu0 %v8969_v51 }
 0x392   :  { %7927 = vmatmul.mubr.msk.bf16.vlgmr.msra.gmra.mrb[4].mxu1 %vm350_vm4, %v9205_v2  ;;  %7959 = vmatmul.mubr.msk.bf16.vlgmr.msra.gmra.mrb[8].mxu0 %vm350_vm4, %v9205_v2 }
 0x393   :  { %7931 = vmatpush3.bf16.msra.mxu1 %v8732_v5  ;;  %7971 = vmatpush3.bf16.msra.mxu0 %v8733_v6 }
 0x394   :  { %7932 = vmatprep.subr.bf16.mxu1 %v8969_v51  ;;  %7972 = vmatprep.subr.bf16.mxu0 %v8969_v51 }
 0x395   :  { %7934 = vmatprep.mubr.msk.bf16.mxu1 %vm8970_vm3, %v8969_v51  ;;  %7974 = vmatprep.mubr.msk.bf16.mxu0 %vm8970_vm3, %v8969_v51 }
 0x397   :  { %7933 = vmatpush3.bf16.msra.mxu1 %v8734_v7  ;;  %7973 = vmatpush3.bf16.msra.mxu0 %v8735_v8 }
 0x398   :  { %7938 = vmatprep.subr.bf16.mxu1 %v8969_v51  ;;  %7986 = vmatprep.subr.bf16.mxu0 %v8969_v51 }
 0x39a   :  { %7935 = vmatmul.mubr.msk.bf16.vlgmr.msra.gmra.mrb[8].mxu1 %vm350_vm4, %v9205_v2  ;;  %7975 = vmatmul.mubr.msk.bf16.vlgmr.msra.gmra.mrb[12].mxu0 %vm350_vm4, %v9205_v2 }
 0x39b   :  { %7939 = vmatpush3.bf16.msra.mxu1 %v8736_v9  ;;  %7987 = vmatpush3.bf16.msra.mxu0 %v8737_v10  ;;  %v7109_v10 = vld [vmem:[%s10668_s11 + $0x1] ss:$0 sm:$0xff] }
 0x39c   :  { %7940 = vmatprep.subr.bf16.mxu1 %v8969_v51  ;;  %7988 = vmatprep.subr.bf16.mxu0 %v8969_v51 }
 0x39d   :  { %7942 = vmatprep.mubr.msk.bf16.mxu1 %vm8970_vm3, %v8969_v51  ;;  %7990 = vmatprep.mubr.msk.bf16.mxu0 %vm8970_vm3, %v8969_v51 }
 0x39f   :  { %7941 = vmatpush3.bf16.msra.mxu1 %v8738_v11  ;;  %7989 = vmatpush3.bf16.msra.mxu0 %v8739_v12  ;;  %v7110_v11 = vld [vmem:[%s10668_s11 + $0x2] ss:$0 sm:$0xff] }
 0x3a0   :  { %7946 = vmatprep.subr.bf16.mxu1 %v8969_v51  ;;  %8002 = vmatprep.subr.bf16.mxu0 %v8969_v51 }
 0x3a2   :  { %7943 = vmatmul.mubr.msk.bf16.vlgmr.msra.gmra.mrb[12].mxu1 %vm350_vm4, %v9205_v2  ;;  %7991 = vmatmul.mubr.msk.bf16.vlgmr.msra.gmra.mrb[16].mxu0 %vm350_vm4, %v9205_v2 }
 0x3a3   :  { %7947 = vmatpush3.bf16.msra.mxu1 %v8740_v13  ;;  %7950 = vmatprep.mubr.msk.bf16.mxu1 %vm8970_vm3, %v8969_v51 }
 0x3a4   :  { %7948 = vmatprep.subr.bf16.mxu1 %v8969_v51  ;;  %8004 = vmatprep.mubr.msk.bf16.mxu0 %vm8970_vm3, %v8969_v51 }
 0x3a7   :  { %7949 = vmatpush3.bf16.msra.mxu1 %v8741_v14 }
 0x3a8   :  { %7962 = vmatprep.subr.bf16.mxu1 %v8969_v51 }
 0x3aa   :  { %7951 = vmatmul.mubr.msk.bf16.vlgmr.msra.gmra.mrb[16].mxu1 %vm350_vm4, %v9205_v2 }
 0x3ab   :  { %7963 = vmatpush3.bf16.msra.mxu1 %v8742_v15  ;;  %7966 = vmatprep.mubr.msk.bf16.mxu1 %vm8970_vm3, %v8969_v51  ;;  %v8971_v15 = vmov 65535  }
 0x3ac   :  { %7964 = vmatprep.subr.bf16.mxu1 %v8969_v51 }
 0x3af   :  { %7965 = vmatpush3.bf16.msra.mxu1 %v8743_v16  ;;  %v1310_v16 = vsel %vm1308_vm6, 4294967295, %v8971_v15 }
 0x3b0   :  { %7978 = vmatprep.subr.bf16.mxu1 %v8969_v51 }
 0x3b2   :  { %7967 = vmatmul.mubr.msk.bf16.vlgmr.msra.gmra.mrb[20].mxu1 %vm350_vm4, %v9205_v2 }
 0x3b3   :  { %7979 = vmatpush3.bf16.msra.mxu1 %v8744_v17  ;;  %7982 = vmatprep.mubr.msk.bf16.mxu1 %vm8970_vm3, %v8969_v51  ;;  %v7127_v17 = vld [vmem:[%s10667_s12 + $0x3] ss:$0 sm:$0xff] }
 0x3b4   :  { %7980 = vmatprep.subr.bf16.mxu1 %v8969_v51 }
 0x3b7   :  { %7981 = vmatpush3.bf16.msra.mxu1 %v8745_v18 }
 0x3b8   :  { %7994 = vmatprep.subr.bf16.mxu1 %v8969_v51 }
 0x3ba   :  { %7983 = vmatmul.mubr.msk.bf16.vlgmr.msra.gmra.mrb[24].mxu1 %vm350_vm4, %v9205_v2 }
 0x3bb   :  { %7995 = vmatpush3.bf16.msra.mxu1 %v8746_v19  ;;  %7998 = vmatprep.mubr.msk.bf16.mxu1 %vm8970_vm3, %v8969_v51 }
 0x3bc   :  { %7996 = vmatprep.subr.bf16.mxu1 %v8969_v51 }
 0x3bf   :  { %7997 = vmatpush3.bf16.msra.mxu1 %v8747_v20 }
 0x3c0   :  { %8008 = vmatprep.subr.bf16.mxu1 %v8969_v51 }
 0x3c2   :  { %7999 = vmatmul.mubr.msk.bf16.vlgmr.msra.gmra.mrb[28].mxu1 %vm350_vm4, %v9205_v2 }
 0x3c3   :  { %8010 = vmatprep.mubr.msk.bf16.mxu1 %vm8970_vm3, %v8969_v51 }
 0x45d   :  { %v388_v21 = vpop.f32.mrb[4].mxu0  ;;  %v9329_v22 = vpop.f32.mrb[0].mxu1 }
 0x45e   :  { %v7912_v23 = vpop.f32.mrb[5].mxu0  ;;  %v7920_v24 = vpop.f32.mrb[1].mxu1  ;;  %v389_v0 = vadd.f32 %v7108_v60, %v388_v21  ;;  %v441_v18 = vadd.f32 %v7109_v10, %v9329_v22  ;;  %v7111_v22 = vld [vmem:[%s10668_s11 + $0x3] ss:$0 sm:$0xff] }
 0x45f   :  { %v391_v25 = vpop.f32.mrb[6].mxu0  ;;  %v443_v26 = vpop.f32.mrb[2].mxu1  ;;  %v9369_v23 = vsel %vm1309_vm7, %v1310_v16, 0 }
 0x460   :  { %v7913_v27 = vpop.f32.mrb[7].mxu0  ;;  %v7921_v29 = vpop.f32.mrb[3].mxu1  ;;  %v1054_v7 = vpack.c.bf16 %v389_v0, %v389_v0 }
 0x461   :  { %v1055_v27 = vpack.c.bf16 %v441_v18, %v441_v18 }
 0x465   :  { %v492_v30 = vpop.f32.mrb[4].mxu1  ;;  %v744_v31 = vpop.f32.mrb[8].mxu0 }
 0x466   :  { %v7928_v32 = vpop.f32.mrb[5].mxu1  ;;  %v7960_v33 = vpop.f32.mrb[9].mxu0  ;;  %v745_v61 = vadd.f32 %v7126_v54, %v744_v31  ;;  %v493_v19 = vadd.f32 %v7110_v11, %v492_v30 }
 0x467   :  { %v495_v34 = vpop.f32.mrb[6].mxu1  ;;  %v747_v35 = vpop.f32.mrb[10].mxu0 }
 0x468   :  { %v7929_v36 = vpop.f32.mrb[7].mxu1  ;;  %v7961_v37 = vpop.f32.mrb[11].mxu0  ;;  %v1060_v2 = vpack.c.bf16 %v745_v61, %v745_v61  ;;  %v1056_v29 = vpack.c.bf16 %v493_v19, %v493_v19  ;;  %v7141_v34 = vld [vmem:[%s10669_s13 + $0x1] ss:$0 sm:$0xff] }
 0x46a   :  { %v1159_v13 = vsel %vm1062_vm5, %v1060_v2, 0 }
 0x46d   :  { %v9331_v38 = vpop.f32.mrb[8].mxu1  ;;  %v892_v39 = vpop.f32.mrb[12].mxu0 }
 0x46e   :  { %v7936_v40 = vpop.f32.mrb[9].mxu1  ;;  %v7976_v41 = vpop.f32.mrb[13].mxu0  ;;  %v893_v12 = vadd.f32 %v7140_v3, %v892_v39  ;;  %v545_v35 = vadd.f32 %v7111_v22, %v9331_v38 }
 0x46f   :  { %v547_v42 = vpop.f32.mrb[10].mxu1  ;;  %v895_v44 = vpop.f32.mrb[14].mxu0 }
 0x470   :  { %v7937_v45 = vpop.f32.mrb[11].mxu1  ;;  %v7977_v46 = vpop.f32.mrb[15].mxu0  ;;  %v1300_v20 = vpack.c.bf16 %v893_v12, %v893_v12  ;;  %v1057_v41 = vpack.c.bf16 %v545_v35, %v545_v35 }
 0x472   :  { %v1313_v30 = vand.u32 %v9369_v23, %v1300_v20 }
 0x475   :  { %v640_v48 = vpop.f32.mrb[12].mxu1  ;;  %v9336_v49 = vpop.f32.mrb[16].mxu0 }
 0x476   :  { %v641_v50 = vadd.f32 %v7124_v47, %v640_v48  ;;  %v7944_v52 = vpop.f32.mrb[13].mxu1  ;;  %v7992_v53 = vpop.f32.mrb[17].mxu0 }
 0x477   :  { %v643_v55 = vpop.f32.mrb[14].mxu1  ;;  %v999_v56 = vpop.f32.mrb[18].mxu0 }
 0x478   :  { %v1058_v57 = vpack.c.bf16 %v641_v50, %v641_v50  ;;  %v7945_v58 = vpop.f32.mrb[15].mxu1  ;;  %v7993_v59 = vpop.f32.mrb[19].mxu0 }
 0x47a   :  { %v1067_v62 = vsel %vm1062_vm5, %v1058_v57, 0 }
 0x47b   :  { %8003 = vmatpush3.bf16.xpose.msra.mxu0 %v1067_v62 }
 0x47c   :  { %8014 = vmatprep.subr.bf16.mxu0 %v8969_v51 }
 0x47d   :  { %v692_v1 = vpop.f32.mrb[16].mxu1 }
 0x47e   :  { %v693_v4 = vadd.f32 %v7125_v63, %v692_v1  ;;  %v7952_v5 = vpop.f32.mrb[17].mxu1 }
 0x47f   :  { %v695_v6 = vpop.f32.mrb[18].mxu1 }
 0x480   :  { %v1059_v8 = vpack.c.bf16 %v693_v4, %v693_v4  ;;  %v7953_v9 = vpop.f32.mrb[19].mxu1 }
 0x482   :  { %v1113_v14 = vsel %vm1062_vm5, %v1059_v8, 0  ;;  %8005 = vmatmul.mubr.msk.bf16.vlgmr.msra.gmra.mrb[20].mxu0 %vm1062_vm5, %v1054_v7 }
 0x483   :  { %8009 = vmatpush3.bf16.xpose.msra.mxu1 %v1113_v14  ;;  %8015 = vmatpush3.bf16.xpose.msra.mxu0 %v1159_v13 }
 0x484   :  { %8016 = vmatprep.mubr.msk.bf16.mxu0 %vm8970_vm3, %v8969_v51  ;;  %8020 = vmatprep.subr.bf16.mxu1 %v8969_v51 }
 0x485   :  { %v796_v21 = vpop.f32.mrb[20].mxu1  ;;  %8026 = vmatprep.subr.bf16.mxu0 %v8969_v51 }
 0x486   :  { %v797_v24 = vadd.f32 %v7127_v17, %v796_v21  ;;  %v7968_v25 = vpop.f32.mrb[21].mxu1 }
 0x487   :  { %v799_v26 = vpop.f32.mrb[22].mxu1 }
 0x488   :  { %v1061_v31 = vpack.c.bf16 %v797_v24, %v797_v24  ;;  %v7969_v32 = vpop.f32.mrb[23].mxu1 }
 0x48a   :  { %v1205_v33 = vsel %vm1062_vm5, %v1061_v31, 0  ;;  %8011 = vmatmul.mubr.msk.bf16.vlgmr.msra.gmra.mrb[32].mxu1 %vm1062_vm5, %v1055_v27  ;;  %8017 = vmatmul.mubr.msk.bf16.vlgmr.msra.gmra.mrb[24].mxu0 %vm1062_vm5, %v1056_v29 }
 0x48b   :  { %8021 = vmatpush3.bf16.xpose.msra.mxu1 %v1205_v33  ;;  %8027 = vmatpush3.bf16.msra.mxu0 %v1313_v30 }
 0x48c   :  { %8022 = vmatprep.mubr.msk.bf16.mxu1 %vm8970_vm3, %v8969_v51  ;;  %8032 = vmatprep.subr.bf16.mxu1 %v8969_v51 }
 0x48d   :  { %v944_v36 = vpop.f32.mrb[24].mxu1  ;;  %8028 = vmatprep.mubr.msk.bf16.mxu0 %vm8970_vm3, %v8969_v51  ;;  %8038 = vmatprep.subr.bf16.mxu0 %v8969_v51 }
 0x48e   :  { %v945_v37 = vadd.f32 %v7141_v34, %v944_v36  ;;  %v7984_v39 = vpop.f32.mrb[25].mxu1  ;;  %v7142_v34 = vld [vmem:[%s10669_s13 + $0x2] ss:$0 sm:$0xff] }
 0x48f   :  { %v947_v40 = vpop.f32.mrb[26].mxu1  ;;  %v997_v35 = vadd.f32 %v7142_v34, %v9336_v49 }
 0x490   :  { %v1301_v42 = vpack.c.bf16 %v945_v37, %v945_v37  ;;  %v7985_v44 = vpop.f32.mrb[27].mxu1 }
 0x491   :  { %v1302_v40 = vpack.c.bf16 %v997_v35, %v997_v35 }
 0x492   :  { %v1359_v45 = vand.u32 %v9369_v23, %v1301_v42  ;;  %8023 = vmatmul.mubr.msk.bf16.vlgmr.msra.gmra.mrb[36].mxu1 %vm1062_vm5, %v1057_v41  ;;  %v7143_v41 = vld [vmem:[%s10669_s13 + $0x3] ss:$0 sm:$0xff] }
 0x493   :  { %8034 = vmatprep.mubr.msk.bf16.mxu1 %vm8970_vm3, %v8969_v51 }
 0x494   :  { %8033 = vmatpush3.bf16.msra.mxu1 %v1359_v45  ;;  %v1405_v45 = vand.u32 %v9369_v23, %v1302_v40 }
 0x495   :  { %v9392_v38 = vpop.f32.mrb[28].mxu1  ;;  %8044 = vmatprep.subr.bf16.mxu1 %v8969_v51 }
 0x496   :  { %v8000_v46 = vpop.f32.mrb[29].mxu1 }
 0x497   :  { %v1051_v47 = vpop.f32.mrb[30].mxu1  ;;  %v1049_v46 = vadd.f32 %v7143_v41, %v9392_v38 }
 0x498   :  { %v8001_v48 = vpop.f32.mrb[31].mxu1 }
 0x499   :  { %v1303_v48 = vpack.c.bf16 %v1049_v46, %v1049_v46 }
 0x555   :  { %v1103_v50 = vpop.f32.mrb[20].mxu0 }
 0x556   :  { %v1247_v52 = vmul.f32 0.35355338, %v1103_v50  ;;  %v8006_v53 = vpop.f32.mrb[21].mxu0 }
 0x557   :  { %v1106_v54 = vpop.f32.mrb[22].mxu0 }
 0x558   :  { %v8007_v55 = vpop.f32.mrb[23].mxu0  ;;  %v1252_v56 = vsel %vm1251_vm8, %v1247_v52, -inf }
 0x559   :  { %1253 = vmax.xlane.f32.xlu0 %v1252_v56  ;;  %v1451_v55 = vand.u32 %v9369_v23, %v1303_v48 }
 0x55d   :  { %v1149_v57 = vpop.f32.mrb[32].mxu1  ;;  %v1195_v58 = vpop.f32.mrb[24].mxu0 }
 0x55e   :  { %v1248_v59 = vmul.f32 0.35355338, %v1149_v57  ;;  %v1249_v60 = vmul.f32 0.35355338, %v1195_v58  ;;  %v8012_v61 = vpop.f32.mrb[33].mxu1  ;;  %v8018_v62 = vpop.f32.mrb[25].mxu0 }
 0x55f   :  { %v1152_v63 = vpop.f32.mrb[34].mxu1  ;;  %v1198_v0 = vpop.f32.mrb[26].mxu0  ;;  %v1498_v61 = vld [vmem:[%s10670_s14 + $0x4] sm:$0xf] }
 0x560   :  { %v8013_v1 = vpop.f32.mrb[35].mxu1  ;;  %v8019_v2 = vpop.f32.mrb[27].mxu0  ;;  %v1255_v3 = vsel %vm1251_vm8, %v1248_v59, -inf  ;;  %v1258_v4 = vsel %vm1251_vm8, %v1249_v60, -inf  ;;  %v1552_v62 = vsel %vm1504_vm10, %v1498_v61, 0 }
 0x561   :  { %1256 = vmax.xlane.f32.xlu1 %v1255_v3  ;;  %1259 = vmax.xlane.f32.xlu0 %v1258_v4  ;;  %v1499_v63 = vld [vmem:[%s10670_s14 + $0x8] sm:$0xf] }
 0x562   :  { %v1598_v3 = vsel %vm1504_vm10, %v1499_v63, 0 }
 0x565   :  { %v1241_v5 = vpop.f32.mrb[36].mxu1 }
 0x566   :  { %v1250_v6 = vmul.f32 0.35355338, %v1241_v5  ;;  %v8024_v7 = vpop.f32.mrb[37].mxu1 }
 0x567   :  { %v1244_v8 = vpop.f32.mrb[38].mxu1 }
 0x568   :  { %v8025_v9 = vpop.f32.mrb[39].mxu1  ;;  %v1261_v10 = vsel %vm1251_vm8, %v1250_v6, -inf }
 0x569   :  { %1262 = vmax.xlane.f32.xlu1 %v1261_v10 }
 0x5e6   :  { %v1254_v11 = vpop.xlane.xlu0 %1253 }
 0x5e7   :  { %v1264_v12 = vsub.f32 %v1247_v52, %v1254_v11 }
 0x5e9   :  { %v1268_v13 = vmul.f32 1.442695, %v1264_v12 }
 0x5eb   :  { %8868 = vpow2.f32 %v1268_v13 }
 0x5ee   :  { %v1257_v14 = vpop.xlane.xlu1 %1256  ;;  %v1260_v15 = vpop.xlane.xlu0 %1259 }
 0x5ef   :  { %v1265_v16 = vsub.f32 %v1248_v59, %v1257_v14  ;;  %v1266_v17 = vsub.f32 %v1249_v60, %v1260_v15  ;;  %v1497_v59 = vld [vmem:[%s10670_s14] sm:$0xf] }
 0x5f0   :  { %v1506_v60 = vsel %vm1504_vm10, %v1497_v59, 0  ;;  %v8748_v59 = vld [vmem:[%s10672_s18] sm:$0xff]  }
 0x5f1   :  { %v1270_v18 = vmul.f32 1.442695, %v1265_v16  ;;  %v1272_v19 = vmul.f32 1.442695, %v1266_v17 }
 0x5f3   :  { %8870 = vpow2.f32 %v1270_v18 }
 0x5f4   :  { %8872 = vpow2.f32 %v1272_v19 }
 0x5f5   :  { %v8869_v20 = vpop.eup %8868 }
 0x5f6   :  { %v1263_v21 = vpop.xlane.xlu1 %1262  ;;  %v1276_v24 = vsel %vm1251_vm8, %v8869_v20, 0.0 }
 0x5f7   :  { %v1267_v25 = vsub.f32 %v1250_v6, %v1263_v21  ;;  %1277 = vadd.xlane.f32.xlu0 %v1276_v24  ;;  %v1500_v6 = vld [vmem:[%s10670_s14 + $0xc] sm:$0xf] }
 0x5f8   :  { %v1644_v11 = vsel %vm1504_vm10, %v1500_v6, 0  ;;  %v8750_v6 = vld [vmem:[%s10675_s20] sm:$0xff]  }
 0x5f9   :  { %v1274_v26 = vmul.f32 1.442695, %v1267_v25 }
 0x5fb   :  { %8874 = vpow2.f32 %v1274_v26 }
 0x5fd   :  { %v8871_v27 = vpop.eup %8870 }
 0x5fe   :  { %v8873_v29 = vpop.eup %8872  ;;  %v1279_v31 = vsel %vm1251_vm8, %v8871_v27, 0.0 }
 0x5ff   :  { %1280 = vadd.xlane.f32.xlu1 %v1279_v31  ;;  %v1282_v32 = vsel %vm1251_vm8, %v8873_v29, 0.0 }
 0x600   :  { %1283 = vadd.xlane.f32.xlu0 %v1282_v32 }
 0x605   :  { %v8875_v22 = vpop.eup %8874 }
 0x606   :  { %v1285_v30 = vsel %vm1251_vm8, %v8875_v22, 0.0 }
 0x607   :  { %1286 = vadd.xlane.f32.xlu1 %v1285_v30 }
 0x684   :  { %v1278_v33 = vpop.xlane.xlu0 %1277 }
 0x685   :  { %8876 = vrcp.f32 %v1278_v33 }
 0x68c   :  { %v1281_v36 = vpop.xlane.xlu1 %1280 }
 0x68d   :  { %8878 = vrcp.f32 %v1281_v36  ;;  %v1284_v37 = vpop.xlane.xlu0 %1283 }
 0x68e   :  { %8880 = vrcp.f32 %v1284_v37 }
 0x68f   :  { %v8877_v39 = vpop.eup %8876 }
 0x690   :  { %v1292_v42 = vmul.f32 %v8877_v39, %v8869_v20 }
 0x692   :  { %v1296_v44 = vpack.c.bf16 %v1292_v42, %v1292_v42 }
 0x694   :  { %v1287_v47 = vpop.xlane.xlu1 %1286  ;;  %8029 = vmatmul.mubr.msk.bf16.vlgmr.msra.gmra.mrb[28].mxu0 %vm1304_vm9, %v1296_v44 }
 0x695   :  { %8882 = vrcp.f32 %v1287_v47  ;;  %8039 = vmatpush3.bf16.msra.mxu0 %v1405_v45  ;;  %8040 = vmatprep.mubr.msk.bf16.mxu0 %vm8970_vm3, %v8969_v51 }
 0x696   :  { %8050 = vmatprep.subr.bf16.mxu0 %v8969_v51 }
 0x697   :  { %v8879_v49 = vpop.eup %8878 }
 0x698   :  { %v8881_v50 = vpop.eup %8880  ;;  %v1293_v52 = vmul.f32 %v8879_v49, %v8871_v27 }
 0x699   :  { %v1294_v53 = vmul.f32 %v8881_v50, %v8873_v29  ;;  %v7168_v50 = vld [vmem:[%s10671_s15] ss:$0 sm:$0xff] }
 0x69a   :  { %v1297_v54 = vpack.c.bf16 %v1293_v52, %v1293_v52 }
 0x69b   :  { %v1298_v56 = vpack.c.bf16 %v1294_v53, %v1294_v53 }
 0x69c   :  { %8035 = vmatmul.mubr.msk.bf16.vlgmr.msra.gmra.mrb[40].mxu1 %vm1304_vm9, %v1297_v54 }
 0x69d   :  { %8041 = vmatmul.mubr.msk.bf16.vlgmr.msra.gmra.mrb[32].mxu0 %vm1304_vm9, %v1298_v56  ;;  %8045 = vmatpush3.bf16.msra.mxu1 %v1451_v55 }
 0x69e   :  { %8046 = vmatprep.mubr.msk.bf16.mxu1 %vm8970_vm3, %v8969_v51  ;;  %8052 = vmatprep.mubr.msk.bf16.mxu0 %vm8970_vm3, %v8969_v51 }
 0x69f   :  { %v8883_v38 = vpop.eup %8882  ;;  %8056 = vmatprep.subr.bf16.mxu1 %v8969_v51  ;;  %8051 = vmatpush3.bf16.msra.mxu0 %v1506_v60 }
 0x6a0   :  { %v1295_v57 = vmul.f32 %v8883_v38, %v8875_v22  ;;  %8062 = vmatprep.subr.bf16.mxu0 %v8969_v51 }
 0x6a2   :  { %v1299_v58 = vpack.c.bf16 %v1295_v57, %v1295_v57 }
 0x6a4   :  { %8047 = vmatmul.mubr.msk.bf16.vlgmr.msra.gmra.mrb[44].mxu1 %vm1304_vm9, %v1299_v58 }
 0x6a5   :  { %8058 = vmatprep.mubr.msk.bf16.mxu1 %vm8970_vm3, %v8969_v51  ;;  %8057 = vmatpush3.bf16.msra.mxu1 %v1552_v62 }
 0x6a6   :  { %8068 = vmatprep.subr.bf16.mxu1 %v8969_v51 }
 0x767   :  { %v1349_v0 = vpop.f32.mrb[28].mxu0 }
 0x768   :  { %v1493_v1 = vpack.c.bf16 %v1349_v0, %v1349_v0  ;;  %v8030_v2 = vpop.f32.mrb[29].mxu0  ;;  %v7169_v0 = vld [vmem:[%s10673_s16] ss:$0 sm:$0xff] }
 0x769   :  { %v1352_v4 = vpop.f32.mrb[30].mxu0  ;;  %v7170_v2 = vld [vmem:[%s10674_s17] ss:$0 sm:$0xff] }
 0x76a   :  { %v8031_v5 = vpop.f32.mrb[31].mxu0  ;;  %8053 = vmatmul.mubr.msk.bf16.vlgmr.msra.gmra.mrb[36].mxu0 %vm1062_vm5, %v1493_v1 }
 0x76b   :  { %8063 = vmatpush3.bf16.msra.mxu0 %v1598_v3  ;;  %8064 = vmatprep.mubr.msk.bf16.mxu0 %vm8970_vm3, %v8969_v51 }
 0x76c   :  { %8074 = vmatprep.subr.bf16.mxu0 %v8969_v51 }
 0x76f   :  { %v1395_v7 = vpop.f32.mrb[40].mxu1 }
 0x770   :  { %v1494_v8 = vpack.c.bf16 %v1395_v7, %v1395_v7  ;;  %v1441_v9 = vpop.f32.mrb[32].mxu0  ;;  %v8036_v10 = vpop.f32.mrb[41].mxu1  ;;  %v8751_v7 = vld [vmem:[%s10675_s20 + $0x8] sm:$0xff]  }
 0x771   :  { %v1495_v12 = vpack.c.bf16 %v1441_v9, %v1441_v9  ;;  %v8042_v13 = vpop.f32.mrb[33].mxu0  ;;  %v1398_v14 = vpop.f32.mrb[42].mxu1  ;;  %v8753_v9 = vld [vmem:[%s10675_s20 + $0x18] sm:$0xff]   ;;  %v8754_v10 = vld [vmem:[%s10675_s20 + $0x20] sm:$0xff]  }
 0x772   :  { %v1444_v15 = vpop.f32.mrb[34].mxu0  ;;  %v8037_v16 = vpop.f32.mrb[43].mxu1  ;;  %8059 = vmatmul.mubr.msk.bf16.vlgmr.msra.gmra.mrb[48].mxu1 %vm1062_vm5, %v1494_v8  ;;  %v8752_v8 = vld [vmem:[%s10675_s20 + $0x10] sm:$0xff]   ;;  %v8757_v13 = vld [vmem:[%s10675_s20 + $0x38] sm:$0xff]   ;;  %v7171_v14 = vld [vmem:[%s10676_s19] ss:$0 sm:$0xff] }
 0x773   :  { %v8043_v17 = vpop.f32.mrb[35].mxu0  ;;  %8065 = vmatmul.mubr.msk.bf16.vlgmr.msra.gmra.mrb[40].mxu0 %vm1062_vm5, %v1495_v12  ;;  %8069 = vmatpush3.bf16.msra.mxu1 %v1644_v11  ;;  %v8755_v11 = vld [vmem:[%s10675_s20 + $0x28] sm:$0xff]   ;;  %v8756_v12 = vld [vmem:[%s10675_s20 + $0x30] sm:$0xff]  }
 0x774   :  { %8070 = vmatprep.mubr.msk.bf16.mxu1 %vm8970_vm3, %v8969_v51  ;;  %8078 = vmatprep.mubr.msk.bf16.mxu0 %vm8970_vm3, %v8969_v51 }
 0x775   :  { %8082 = vmatprep.subr.bf16.mxu1 %v8969_v51  ;;  %8075 = vmatpush3.bf16.msra.mxu0 %v8748_v59 }
 0x776   :  { %8076 = vmatprep.subr.bf16.mxu0 %v8969_v51 }
 0x777   :  { %v1487_v18 = vpop.f32.mrb[44].mxu1 }
 0x778   :  { %v1496_v19 = vpack.c.bf16 %v1487_v18, %v1487_v18  ;;  %v8048_v20 = vpop.f32.mrb[45].mxu1 }
 0x779   :  { %v1490_v21 = vpop.f32.mrb[46].mxu1 }
 0x77a   :  { %v8049_v24 = vpop.f32.mrb[47].mxu1  ;;  %8071 = vmatmul.mubr.msk.bf16.vlgmr.msra.gmra.mrb[52].mxu1 %vm1062_vm5, %v1496_v19 }
 0x77b   :  { %8098 = vmatprep.mubr.msk.bf16.mxu1 %vm8970_vm3, %v8969_v51  ;;  %8083 = vmatpush3.bf16.msra.mxu1 %v8750_v6  ;;  %v8775_v6 = vld [vmem:[%s10708_s26 + $0x58] sm:$0xff]  }
 0x77c   :  { %8084 = vmatprep.subr.bf16.mxu1 %v8969_v51 }
 0x77f   :  { %8085 = vmatpush3.bf16.msra.mxu1 %v8751_v7  ;;  %v8776_v7 = vld [vmem:[%s10708_s26 + $0x70] sm:$0xff]  }
 0x780   :  { %8086 = vmatprep.subr.bf16.mxu1 %v8969_v51 }
 0x783   :  { %8087 = vmatpush3.bf16.msra.mxu1 %v8752_v8  ;;  %v8777_v8 = vld [vmem:[%s10708_s26 + $0x78] sm:$0xff]  }
 0x784   :  { %8088 = vmatprep.subr.bf16.mxu1 %v8969_v51 }
 0x787   :  { %8089 = vmatpush3.bf16.msra.mxu1 %v8753_v9  ;;  %v8778_v9 = vld [vmem:[%s10709_s9 + $0x50] sm:$0xff]  }
 0x788   :  { %8090 = vmatprep.subr.bf16.mxu1 %v8969_v51 }
 0x78b   :  { %8091 = vmatpush3.bf16.msra.mxu1 %v8754_v10  ;;  %v8779_v10 = vld [vmem:[%s10709_s9 + $0x58] sm:$0xff]  }
 0x78c   :  { %8092 = vmatprep.subr.bf16.mxu1 %v8969_v51 }
 0x78f   :  { %8093 = vmatpush3.bf16.msra.mxu1 %v8755_v11  ;;  %v8780_v11 = vld [vmem:[%s10709_s9 + $0x70] sm:$0xff]  }
 0x790   :  { %8094 = vmatprep.subr.bf16.mxu1 %v8969_v51 }
 0x793   :  { %8095 = vmatpush3.bf16.msra.mxu1 %v8756_v12  ;;  %v8781_v12 = vld [vmem:[%s10709_s9 + $0x78] sm:$0xff]  }
 0x794   :  { %8096 = vmatprep.subr.bf16.mxu1 %v8969_v51 }
 0x797   :  { %8097 = vmatpush3.bf16.msra.mxu1 %v8757_v13  ;;  %v7245_v13 = vld [vmem:[%s10667_s12 + $0x4] ss:$0 sm:$0xff] }
 0x798   :  { %8134 = vmatprep.subr.bf16.mxu1 %v8969_v51 }
 0x83d   :  { %v1542_v25 = vpop.f32.mrb[36].mxu0 }
 0x83e   :  { %v8054_v26 = vpop.f32.mrb[37].mxu0  ;;  %v1686_v32 = vsel %vm235_vm2, %v1542_v25, 0.0 }
 0x83f   :  { %v1545_v27 = vpop.f32.mrb[38].mxu0 }
 0x840   :  { %v8055_v29 = vpop.f32.mrb[39].mxu0 }
 0x845   :  { %v1588_v31 = vpop.f32.mrb[48].mxu1 }
 0x846   :  { %v1687_v22 = vsel %vm235_vm2, %v1588_v31, 0.0  ;;  %v1634_v30 = vpop.f32.mrb[40].mxu0  ;;  %v8060_v33 = vpop.f32.mrb[49].mxu1  ;;  %v7176_v31 = vld [vmem:[%s10677_s21] ss:$0 sm:$0xff] }
 0x847   :  { %v1688_v34 = vadd.f32 %v1687_v22, %v1686_v32  ;;  %v8066_v35 = vpop.f32.mrb[41].mxu0  ;;  %v1591_v36 = vpop.f32.mrb[50].mxu1  ;;  %v1689_v37 = vsel %vm235_vm2, %v1634_v30, 0.0 }
 0x848   :  { %v1637_v39 = vpop.f32.mrb[42].mxu0  ;;  %v8061_v40 = vpop.f32.mrb[51].mxu1 }
 0x849   :  { %v1690_v41 = vadd.f32 %v1689_v37, %v1688_v34  ;;  %v8067_v42 = vpop.f32.mrb[43].mxu0 }
 0x84d   :  { %v1680_v44 = vpop.f32.mrb[52].mxu1 }
 0x84e   :  { %v1691_v45 = vsel %vm235_vm2, %v1680_v44, 0.0  ;;  %v8072_v46 = vpop.f32.mrb[53].mxu1  ;;  %v8758_v44 = vld [vmem:[%s10706_s2 + $0x40] sm:$0xff]  }
 0x84f   :  { %v1692_v47 = vadd.f32 %v1691_v45, %v1690_v41  ;;  %v1683_v49 = vpop.f32.mrb[54].mxu1  ;;  %v8759_v45 = vld [vmem:[%s10708_s26 + $0x40] sm:$0xff]   ;;  %v8760_v46 = vld [vmem:[%s10706_s2 + $0x48] sm:$0xff]  }
 0x850   :  { %v8073_v48 = vpop.f32.mrb[55].mxu1 }
 0x851   :  { %v1693_v52 = vadd.f32 %v1692_v47, %v9165_v43  ;;  %v8749_v43 = vld [vmem:[%s10672_s18 + $0x8] sm:$0xff]  }
 0x852   :  { %8077 = vmatpush3.bf16.msra.mxu0 %v8749_v43  ;;  %v8761_v47 = vld [vmem:[%s10708_s26 + $0x48] sm:$0xff]   ;;  %v8764_v43 = vld [vmem:[%s10706_s2 + $0x58] sm:$0xff]  }
 0x853   :  { %v9467_v53 = vadd.f32 %v7168_v50, %v1693_v52  ;;  %8102 = vmatprep.subr.bf16.mxu0 %v8969_v51 }
 0x855   :  { %v1704_v54 = vsel %vm235_vm2, %v9467_v53, 0.0 }
 0x856   :  { %1705 = vadd.xlane.f32.xlu0 %v1704_v54 }
 0x8e3   :  { %v1706_v55 = vpop.xlane.xlu0 %1705 }
 0x8e4   :  { %v1707_v56 = vmul.f32 0.03125, %v1706_v55  ;;  %v7188_v55 = vld [vmem:[%s10666_s7 + $0x1] ss:$0 sm:$0xff] }
 0x8e6   :  { %v1708_v38 = vsub.f32 %v9467_v53, %v1707_v56 }
 0x8e8   :  { %v1709_v57 = vmul.f32 %v1708_v38, %v1708_v38 }
 0x8ea   :  { %v1710_v58 = vsel %vm235_vm2, %v1709_v57, 0.0  ;;  %v8762_v57 = vld [vmem:[%s10706_s2 + $0x50] sm:$0xff]  }
 0x8eb   :  { %1711 = vadd.xlane.f32.xlu1 %v1710_v58  ;;  %v8763_v58 = vld [vmem:[%s10708_s26 + $0x60] sm:$0xff]  }
 0x978   :  { %v1712_v60 = vpop.xlane.xlu1 %1711 }
 0x979   :  { %v1713_v61 = vmul.f32 0.03125, %v1712_v60  ;;  %v8765_v60 = vld [vmem:[%s10708_s26 + $0x68] sm:$0xff]  }
 0x97b   :  { %v1714_v62 = vadd.f32 1e-05, %v1713_v61  ;;  %v8766_v61 = vld [vmem:[%s10706_s2 + $0x60] sm:$0xff]  }
 0x97d   :  { %8884 = vrsqrt.f32 %v1714_v62  ;;  %v8767_v62 = vld [vmem:[%s10709_s9 + $0x40] sm:$0xff]  }
 0x987   :  { %v8885_v63 = vpop.eup %8884 }
 0x988   :  { %v1716_v1 = vmul.f32 %v8885_v63, %v1708_v38  ;;  %v8768_v63 = vld [vmem:[%s10706_s2 + $0x68] sm:$0xff]  }
 0x98a   :  { %v1723_v3 = vmul.f32 %v7169_v0, %v1716_v1  ;;  %v8769_v0 = vld [vmem:[%s10709_s9 + $0x48] sm:$0xff]   ;;  %v8770_v1 = vld [vmem:[%s10706_s2 + $0x70] sm:$0xff]  }
 0x98c   :  { %v1730_v4 = vadd.f32 %v7170_v2, %v1723_v3  ;;  %v8771_v2 = vld [vmem:[%s10709_s9 + $0x60] sm:$0xff]   ;;  %v8772_v3 = vld [vmem:[%s10706_s2 + $0x78] sm:$0xff]  }
 0x98e   :  { %v1731_v5 = vpack.c.bf16 %v1730_v4, %v1730_v4  ;;  %v8773_v4 = vld [vmem:[%s10709_s9 + $0x68] sm:$0xff]  }
 0x990   :  { %8079 = vmatmul.mubr.msk.bf16.vlgmr.msra.gmra.mrb[44].mxu0 %vm350_vm4, %v1731_v5  ;;  %v8774_v5 = vld [vmem:[%s10708_s26 + $0x50] sm:$0xff]  }
 0x991   :  { %8106 = vmatprep.mubr.msk.bf16.mxu0 %vm8970_vm3, %v8969_v51  ;;  %8103 = vmatpush3.bf16.msra.mxu0 %v8758_v44 }
 0x992   :  { %8104 = vmatprep.subr.bf16.mxu0 %v8969_v51 }
 0x995   :  { %8105 = vmatpush3.bf16.msra.mxu0 %v8760_v46  ;;  %v7281_v46 = vld [vmem:[%s10669_s13 + $0x4] ss:$0 sm:$0xff] }
 0x996   :  { %8110 = vmatprep.subr.bf16.mxu0 %v8969_v51 }
 0xa63   :  { %v1792_v15 = vpop.f32.mrb[44].mxu0 }
 0xa64   :  { %v1793_v16 = vadd.f32 %v7171_v14, %v1792_v15  ;;  %v8080_v17 = vpop.f32.mrb[45].mxu0 }
 0xa65   :  { %v1795_v18 = vpop.f32.mrb[46].mxu0 }
 0xa66   :  { %v7175_v19 = vmul.f32 -1.702, %v1793_v16  ;;  %v8081_v20 = vpop.f32.mrb[47].mxu0 }
 0xa68   :  { %v1800_v21 = vmul.f32 1.442695, %v7175_v19 }
 0xa6a   :  { %8886 = vpow2.f32 %v1800_v21 }
 0xa74   :  { %v8887_v24 = vpop.eup %8886 }
 0xa75   :  { %v1802_v25 = vadd.f32 1.0, %v8887_v24 }
 0xa77   :  { %8888 = vrcp.f32 %v1802_v25 }
 0xa81   :  { %v8889_v26 = vpop.eup %8888 }
 0xa82   :  { %v1805_v27 = vmul.f32 %v8889_v26, %v1793_v16  ;;  %v7209_v26 = vld [vmem:[%s10668_s11 + $0x4] ss:$0 sm:$0xff] }
 0xa84   :  { %v1806_v29 = vpack.c.bf16 %v1805_v27, %v1805_v27 }
 0xa86   :  { %8099 = vmatmul.mubr.bf16.vlgmr.msra.gmra.mrb[56].mxu1 %v1806_v29  ;;  %v7247_v29 = vld [vmem:[%s10667_s12 + $0x6] ss:$0 sm:$0xff] }
 0xa87   :  { %8138 = vmatprep.mubr.msk.bf16.mxu1 %vm8970_vm3, %v8969_v51  ;;  %8135 = vmatpush3.bf16.msra.mxu1 %v8759_v45  ;;  %v7211_v45 = vld [vmem:[%s10668_s11 + $0x6] ss:$0 sm:$0xff] }
 0xa88   :  { %8136 = vmatprep.subr.bf16.mxu1 %v8969_v51 }
 0xa8b   :  { %8137 = vmatpush3.bf16.msra.mxu1 %v8761_v47 }
 0xa8c   :  { %8150 = vmatprep.subr.bf16.mxu1 %v8969_v51 }
 0xb59   :  { %v1912_v32 = vpop.f32.mrb[56].mxu1 }
 0xb5a   :  { %v1913_v22 = vadd.f32 %v7176_v31, %v1912_v32  ;;  %v8100_v30 = vpop.f32.mrb[57].mxu1 }
 0xb5b   :  { %v1915_v33 = vpop.f32.mrb[58].mxu1 }
 0xb5c   :  { %v9531_v34 = vadd.f32 %v1913_v22, %v9467_v53  ;;  %v8101_v35 = vpop.f32.mrb[59].mxu1  ;;  %v7187_v53 = vld [vmem:[%s10707_s4 + $0x1] ss:$0 sm:$0xff] }
 0xb5e   :  { %v1923_v36 = vsel %vm235_vm2, %v9531_v34, 0.0 }
 0xb5f   :  { %1924 = vadd.xlane.f32.xlu0 %v1923_v36 }
 0xbec   :  { %v1925_v37 = vpop.xlane.xlu0 %1924 }
 0xbed   :  { %v1926_v39 = vmul.f32 0.03125, %v1925_v37 }
 0xbef   :  { %v1927_v40 = vsub.f32 %v9531_v34, %v1926_v39 }
 0xbf1   :  { %v1928_v41 = vmul.f32 %v1927_v40, %v1927_v40 }
 0xbf3   :  { %v1929_v42 = vsel %vm235_vm2, %v1928_v41, 0.0 }
 0xbf4   :  { %1930 = vadd.xlane.f32.xlu1 %v1929_v42 }
 0xc81   :  { %v1931_v49 = vpop.xlane.xlu1 %1930 }
 0xc82   :  { %v1932_v48 = vmul.f32 0.03125, %v1931_v49 }
 0xc84   :  { %v1933_v50 = vadd.f32 1e-05, %v1932_v48 }
 0xc86   :  { %8890 = vrsqrt.f32 %v1933_v50 }
 0xc90   :  { %v8891_v52 = vpop.eup %8890 }
 0xc91   :  { %v1935_v54 = vmul.f32 %v8891_v52, %v1927_v40 }
 0xc93   :  { %v1942_v56 = vmul.f32 %v7187_v53, %v1935_v54 }
 0xc95   :  { %v1949_v38 = vadd.f32 %v7188_v55, %v1942_v56 }
 0xc97   :  { %v9565_v59 = vpack.c.bf16 %v1949_v38, %v1949_v38 }
 0xc99   :  { %8107 = vmatmul.mubr.msk.bf16.vlgmr.msra.gmra.mrb[48].mxu0 %vm350_vm4, %v9565_v59  ;;  %8139 = vmatmul.mubr.msk.bf16.vlgmr.msra.gmra.mrb[60].mxu1 %vm350_vm4, %v9565_v59 }
 0xc9a   :  { %8111 = vmatpush3.bf16.msra.mxu0 %v8762_v57  ;;  %8151 = vmatpush3.bf16.msra.mxu1 %v8763_v58 }
 0xc9b   :  { %8112 = vmatprep.subr.bf16.mxu0 %v8969_v51  ;;  %8152 = vmatprep.subr.bf16.mxu1 %v8969_v51 }
 0xc9c   :  { %8114 = vmatprep.mubr.msk.bf16.mxu0 %vm8970_vm3, %v8969_v51  ;;  %8154 = vmatprep.mubr.msk.bf16.mxu1 %vm8970_vm3, %v8969_v51 }
 0xc9e   :  { %8113 = vmatpush3.bf16.msra.mxu0 %v8764_v43  ;;  %8153 = vmatpush3.bf16.msra.mxu1 %v8765_v60 }
 0xc9f   :  { %8118 = vmatprep.subr.bf16.mxu0 %v8969_v51  ;;  %8166 = vmatprep.subr.bf16.mxu1 %v8969_v51 }
 0xca1   :  { %8115 = vmatmul.mubr.msk.bf16.vlgmr.msra.gmra.mrb[52].mxu0 %vm350_vm4, %v9565_v59  ;;  %8155 = vmatmul.mubr.msk.bf16.vlgmr.msra.gmra.mrb[64].mxu1 %vm350_vm4, %v9565_v59 }
 0xca2   :  { %8119 = vmatpush3.bf16.msra.mxu0 %v8766_v61  ;;  %8167 = vmatpush3.bf16.msra.mxu1 %v8767_v62 }
 0xca3   :  { %8120 = vmatprep.subr.bf16.mxu0 %v8969_v51  ;;  %8168 = vmatprep.subr.bf16.mxu1 %v8969_v51 }
 0xca4   :  { %8122 = vmatprep.mubr.msk.bf16.mxu0 %vm8970_vm3, %v8969_v51  ;;  %8170 = vmatprep.mubr.msk.bf16.mxu1 %vm8970_vm3, %v8969_v51 }
 0xca6   :  { %8121 = vmatpush3.bf16.msra.mxu0 %v8768_v63  ;;  %8169 = vmatpush3.bf16.msra.mxu1 %v8769_v0 }
 0xca7   :  { %8126 = vmatprep.subr.bf16.mxu0 %v8969_v51  ;;  %8182 = vmatprep.subr.bf16.mxu1 %v8969_v51 }
 0xca9   :  { %8123 = vmatmul.mubr.msk.bf16.vlgmr.msra.gmra.mrb[56].mxu0 %vm350_vm4, %v9565_v59  ;;  %8171 = vmatmul.mubr.msk.bf16.vlgmr.msra.gmra.mrb[68].mxu1 %vm350_vm4, %v9565_v59 }
 0xcaa   :  { %8127 = vmatpush3.bf16.msra.mxu0 %v8770_v1  ;;  %8183 = vmatpush3.bf16.msra.mxu1 %v8771_v2 }
 0xcab   :  { %8128 = vmatprep.subr.bf16.mxu0 %v8969_v51  ;;  %8184 = vmatprep.subr.bf16.mxu1 %v8969_v51 }
 0xcac   :  { %8130 = vmatprep.mubr.msk.bf16.mxu0 %vm8970_vm3, %v8969_v51  ;;  %8186 = vmatprep.mubr.msk.bf16.mxu1 %vm8970_vm3, %v8969_v51 }
 0xcae   :  { %8129 = vmatpush3.bf16.msra.mxu0 %v8772_v3  ;;  %8185 = vmatpush3.bf16.msra.mxu1 %v8773_v4  ;;  %v7246_v3 = vld [vmem:[%s10667_s12 + $0x5] ss:$0 sm:$0xff] }
 0xcaf   :  { %8142 = vmatprep.subr.bf16.mxu0 %v8969_v51  ;;  %8198 = vmatprep.subr.bf16.mxu1 %v8969_v51 }
 0xcb1   :  { %8131 = vmatmul.mubr.msk.bf16.vlgmr.msra.gmra.mrb[60].mxu0 %vm350_vm4, %v9565_v59  ;;  %8187 = vmatmul.mubr.msk.bf16.vlgmr.msra.gmra.mrb[72].mxu1 %vm350_vm4, %v9565_v59 }
 0xcb2   :  { %8143 = vmatpush3.bf16.msra.mxu0 %v8774_v5  ;;  %8146 = vmatprep.mubr.msk.bf16.mxu0 %vm8970_vm3, %v8969_v51 }
 0xcb3   :  { %8144 = vmatprep.subr.bf16.mxu0 %v8969_v51  ;;  %8200 = vmatprep.mubr.msk.bf16.mxu1 %vm8970_vm3, %v8969_v51 }
 0xcb6   :  { %8145 = vmatpush3.bf16.msra.mxu0 %v8775_v6 }
 0xcb7   :  { %8158 = vmatprep.subr.bf16.mxu0 %v8969_v51 }
 0xcb9   :  { %8147 = vmatmul.mubr.msk.bf16.vlgmr.msra.gmra.mrb[64].mxu0 %vm350_vm4, %v9565_v59 }
 0xcba   :  { %8159 = vmatpush3.bf16.msra.mxu0 %v8776_v7  ;;  %8162 = vmatprep.mubr.msk.bf16.mxu0 %vm8970_vm3, %v8969_v51 }
 0xcbb   :  { %8160 = vmatprep.subr.bf16.mxu0 %v8969_v51 }
 0xcbe   :  { %8161 = vmatpush3.bf16.msra.mxu0 %v8777_v8 }
 0xcbf   :  { %8174 = vmatprep.subr.bf16.mxu0 %v8969_v51 }
 0xcc1   :  { %8163 = vmatmul.mubr.msk.bf16.vlgmr.msra.gmra.mrb[68].mxu0 %vm350_vm4, %v9565_v59 }
 0xcc2   :  { %8175 = vmatpush3.bf16.msra.mxu0 %v8778_v9  ;;  %8178 = vmatprep.mubr.msk.bf16.mxu0 %vm8970_vm3, %v8969_v51 }
 0xcc3   :  { %8176 = vmatprep.subr.bf16.mxu0 %v8969_v51 }
 0xcc6   :  { %8177 = vmatpush3.bf16.msra.mxu0 %v8779_v10  ;;  %v7210_v10 = vld [vmem:[%s10668_s11 + $0x5] ss:$0 sm:$0xff] }
 0xcc7   :  { %8190 = vmatprep.subr.bf16.mxu0 %v8969_v51 }
 0xcc9   :  { %8179 = vmatmul.mubr.msk.bf16.vlgmr.msra.gmra.mrb[72].mxu0 %vm350_vm4, %v9565_v59 }
 0xcca   :  { %8191 = vmatpush3.bf16.msra.mxu0 %v8780_v11  ;;  %8194 = vmatprep.mubr.msk.bf16.mxu0 %vm8970_vm3, %v8969_v51 }
 0xccb   :  { %8192 = vmatprep.subr.bf16.mxu0 %v8969_v51 }
 0xcce   :  { %8193 = vmatpush3.bf16.msra.mxu0 %v8781_v12  ;;  %v7248_v12 = vld [vmem:[%s10667_s12 + $0x7] ss:$0 sm:$0xff] }
 0xccf   :  { %8204 = vmatprep.subr.bf16.mxu0 %v8969_v51 }
 0xcd1   :  { %8195 = vmatmul.mubr.msk.bf16.vlgmr.msra.gmra.mrb[76].mxu0 %vm350_vm4, %v9565_v59 }
 0xcd2   :  { %8206 = vmatprep.mubr.msk.bf16.mxu0 %vm8970_vm3, %v8969_v51 }
 0xd6c   :  { %v2046_v14 = vpop.f32.mrb[48].mxu0  ;;  %v2300_v15 = vpop.f32.mrb[60].mxu1 }
 0xd6d   :  { %v2301_v16 = vadd.f32 %v7245_v13, %v2300_v15  ;;  %v8108_v17 = vpop.f32.mrb[49].mxu0  ;;  %v8140_v18 = vpop.f32.mrb[61].mxu1  ;;  %v2047_v31 = vadd.f32 %v7209_v26, %v2046_v14 }
 0xd6e   :  { %v2049_v19 = vpop.f32.mrb[50].mxu0  ;;  %v2303_v20 = vpop.f32.mrb[62].mxu1 }
 0xd6f   :  { %v2720_v21 = vpack.c.bf16 %v2301_v16, %v2301_v16  ;;  %v8109_v24 = vpop.f32.mrb[51].mxu0  ;;  %v8141_v25 = vpop.f32.mrb[63].mxu1  ;;  %v2716_v39 = vpack.c.bf16 %v2047_v31, %v2047_v31 }
 0xd70   :  { %v7282_v25 = vld [vmem:[%s10669_s13 + $0x5] ss:$0 sm:$0xff] }
 0xd71   :  { %v2728_v27 = vsel %vm1062_vm5, %v2720_v21, 0  ;;  %v7212_v21 = vld [vmem:[%s10668_s11 + $0x7] ss:$0 sm:$0xff] }
 0xd72   :  { %8199 = vmatpush3.bf16.xpose.msra.mxu1 %v2728_v27 }
 0xd73   :  { %8210 = vmatprep.subr.bf16.mxu1 %v8969_v51 }
 0xd74   :  { %v2098_v32 = vpop.f32.mrb[52].mxu0  ;;  %v2404_v22 = vpop.f32.mrb[64].mxu1 }
 0xd75   :  { %v2405_v30 = vadd.f32 %v7247_v29, %v2404_v22  ;;  %v8116_v33 = vpop.f32.mrb[53].mxu0  ;;  %v8156_v35 = vpop.f32.mrb[65].mxu1  ;;  %v2099_v13 = vadd.f32 %v7210_v10, %v2098_v32 }
 0xd76   :  { %v2101_v36 = vpop.f32.mrb[54].mxu0  ;;  %v2407_v37 = vpop.f32.mrb[66].mxu1 }
 0xd77   :  { %v2722_v40 = vpack.c.bf16 %v2405_v30, %v2405_v30  ;;  %v8117_v41 = vpop.f32.mrb[55].mxu0  ;;  %v8157_v42 = vpop.f32.mrb[67].mxu1  ;;  %v2717_v18 = vpack.c.bf16 %v2099_v13, %v2099_v13 }
 0xd79   :  { %v2820_v44 = vsel %vm1062_vm5, %v2722_v40, 0  ;;  %8201 = vmatmul.mubr.msk.bf16.vlgmr.msra.gmra.mrb[76].mxu1 %vm1062_vm5, %v2716_v39 }
 0xd7a   :  { %8211 = vmatpush3.bf16.xpose.msra.mxu1 %v2820_v44  ;;  %8212 = vmatprep.mubr.msk.bf16.mxu1 %vm8970_vm3, %v8969_v51 }
 0xd7b   :  { %8222 = vmatprep.subr.bf16.mxu1 %v8969_v51 }
 0xd7c   :  { %v2150_v47 = vpop.f32.mrb[56].mxu0  ;;  %v2554_v49 = vpop.f32.mrb[68].mxu1 }
 0xd7d   :  { %v2151_v48 = vadd.f32 %v7211_v45, %v2150_v47  ;;  %v2555_v50 = vadd.f32 %v7281_v46, %v2554_v49  ;;  %v8124_v52 = vpop.f32.mrb[57].mxu0  ;;  %v8172_v53 = vpop.f32.mrb[69].mxu1 }
 0xd7e   :  { %v2153_v54 = vpop.f32.mrb[58].mxu0  ;;  %v2557_v55 = vpop.f32.mrb[70].mxu1 }
 0xd7f   :  { %v2718_v56 = vpack.c.bf16 %v2151_v48, %v2151_v48  ;;  %v2960_v38 = vpack.c.bf16 %v2555_v50, %v2555_v50  ;;  %v8125_v57 = vpop.f32.mrb[59].mxu0  ;;  %v8173_v58 = vpop.f32.mrb[71].mxu1 }
 0xd81   :  { %v2968_v59 = vand.u32 %v2960_v38, %v9369_v23  ;;  %8213 = vmatmul.mubr.msk.bf16.vlgmr.msra.gmra.mrb[80].mxu1 %vm1062_vm5, %v2718_v56 }
 0xd82   :  { %8224 = vmatprep.mubr.msk.bf16.mxu1 %vm8970_vm3, %v8969_v51 }
 0xd83   :  { %8223 = vmatpush3.bf16.msra.mxu1 %v2968_v59 }
 0xd84   :  { %v2202_v43 = vpop.f32.mrb[60].mxu0  ;;  %v9715_v60 = vpop.f32.mrb[72].mxu1  ;;  %8234 = vmatprep.subr.bf16.mxu1 %v8969_v51 }
 0xd85   :  { %v8132_v61 = vpop.f32.mrb[61].mxu0  ;;  %v8188_v62 = vpop.f32.mrb[73].mxu1  ;;  %v2203_v26 = vadd.f32 %v7212_v21, %v2202_v43 }
 0xd86   :  { %v2205_v63 = vpop.f32.mrb[62].mxu0  ;;  %v2661_v0 = vpop.f32.mrb[74].mxu1 }
 0xd87   :  { %v8133_v1 = vpop.f32.mrb[63].mxu0  ;;  %v8189_v2 = vpop.f32.mrb[75].mxu1  ;;  %v2719_v22 = vpack.c.bf16 %v2203_v26, %v2203_v26 }
 0xd8c   :  { %v2352_v4 = vpop.f32.mrb[64].mxu0 }
 0xd8d   :  { %v2353_v5 = vadd.f32 %v7246_v3, %v2352_v4  ;;  %v8148_v6 = vpop.f32.mrb[65].mxu0 }
 0xd8e   :  { %v2355_v7 = vpop.f32.mrb[66].mxu0 }
 0xd8f   :  { %v2721_v8 = vpack.c.bf16 %v2353_v5, %v2353_v5  ;;  %v8149_v9 = vpop.f32.mrb[67].mxu0 }
 0xd91   :  { %v2774_v11 = vsel %vm1062_vm5, %v2721_v8, 0 }
 0xd92   :  { %8205 = vmatpush3.bf16.xpose.msra.mxu0 %v2774_v11 }
 0xd93   :  { %8216 = vmatprep.subr.bf16.mxu0 %v8969_v51 }
 0xd94   :  { %v2456_v14 = vpop.f32.mrb[68].mxu0 }
 0xd95   :  { %v2457_v15 = vadd.f32 %v7248_v12, %v2456_v14  ;;  %v8164_v16 = vpop.f32.mrb[69].mxu0 }
 0xd96   :  { %v2459_v17 = vpop.f32.mrb[70].mxu0 }
 0xd97   :  { %v2723_v19 = vpack.c.bf16 %v2457_v15, %v2457_v15  ;;  %v8165_v20 = vpop.f32.mrb[71].mxu0 }
 0xd99   :  { %v2866_v24 = vsel %vm1062_vm5, %v2723_v19, 0  ;;  %8207 = vmatmul.mubr.msk.bf16.vlgmr.msra.gmra.mrb[80].mxu0 %vm1062_vm5, %v2717_v18 }
 0xd9a   :  { %8217 = vmatpush3.bf16.xpose.msra.mxu0 %v2866_v24  ;;  %8218 = vmatprep.mubr.msk.bf16.mxu0 %vm8970_vm3, %v8969_v51 }
 0xd9b   :  { %8228 = vmatprep.subr.bf16.mxu0 %v8969_v51 }
 0xd9c   :  { %v2606_v27 = vpop.f32.mrb[72].mxu0 }
 0xd9d   :  { %v2607_v29 = vadd.f32 %v7282_v25, %v2606_v27  ;;  %v8180_v31 = vpop.f32.mrb[73].mxu0  ;;  %v7283_v25 = vld [vmem:[%s10669_s13 + $0x6] ss:$0 sm:$0xff] }
 0xd9e   :  { %v2609_v32 = vpop.f32.mrb[74].mxu0  ;;  %v2659_v26 = vadd.f32 %v7283_v25, %v9715_v60 }
 0xd9f   :  { %v2961_v30 = vpack.c.bf16 %v2607_v29, %v2607_v29  ;;  %v8181_v33 = vpop.f32.mrb[75].mxu0 }
 0xda0   :  { %v2962_v31 = vpack.c.bf16 %v2659_v26, %v2659_v26 }
 0xda1   :  { %v3014_v35 = vand.u32 %v2961_v30, %v9369_v23  ;;  %8219 = vmatmul.mubr.msk.bf16.vlgmr.msra.gmra.mrb[84].mxu0 %vm1062_vm5, %v2719_v22 }
 0xda2   :  { %8230 = vmatprep.mubr.msk.bf16.mxu0 %vm8970_vm3, %v8969_v51  ;;  %v3060_v30 = vand.u32 %v2962_v31, %v9369_v23 }
 0xda3   :  { %8229 = vmatpush3.bf16.msra.mxu0 %v3014_v35 }
 0xda4   :  { %v9744_v36 = vpop.f32.mrb[76].mxu0  ;;  %8240 = vmatprep.subr.bf16.mxu0 %v8969_v51 }
 0xda5   :  { %v8196_v37 = vpop.f32.mrb[77].mxu0 }
 0xda6   :  { %v2713_v39 = vpop.f32.mrb[78].mxu0 }
 0xda7   :  { %v8197_v40 = vpop.f32.mrb[79].mxu0  ;;  %v7284_v39 = vld [vmem:[%s10669_s13 + $0x7] ss:$0 sm:$0xff] }
 0xda8   :  { %v2711_v40 = vadd.f32 %v7284_v39, %v9744_v36  ;;  %v7305_v36 = vld [vmem:[%s10670_s14 + $0x10] sm:$0xf] }
 0xe4c   :  { %v2764_v41 = vpop.f32.mrb[76].mxu1 }
 0xe4d   :  { %v2908_v42 = vmul.f32 0.35355338, %v2764_v41  ;;  %v8202_v44 = vpop.f32.mrb[77].mxu1 }
 0xe4e   :  { %v2767_v45 = vpop.f32.mrb[78].mxu1  ;;  %v2963_v44 = vpack.c.bf16 %v2711_v40, %v2711_v40 }
 0xe4f   :  { %v8203_v46 = vpop.f32.mrb[79].mxu1  ;;  %v2912_v47 = vsel %vm1251_vm8, %v2908_v42, -inf }
 0xe50   :  { %2913 = vmax.xlane.f32.xlu0 %v2912_v47  ;;  %v3106_v47 = vand.u32 %v2963_v44, %v9369_v23 }
 0xe54   :  { %v2856_v49 = vpop.f32.mrb[80].mxu1 }
 0xe55   :  { %v2910_v48 = vmul.f32 0.35355338, %v2856_v49  ;;  %v8214_v50 = vpop.f32.mrb[81].mxu1 }
 0xe56   :  { %v2859_v52 = vpop.f32.mrb[82].mxu1 }
 0xe57   :  { %v8215_v53 = vpop.f32.mrb[83].mxu1  ;;  %v2918_v54 = vsel %vm1251_vm8, %v2910_v48, -inf  ;;  %v3161_v52 = vsel %vm1504_vm10, %v7305_v36, 0 }
 0xe58   :  { %2919 = vmax.xlane.f32.xlu0 %v2918_v54  ;;  %v7306_v53 = vld [vmem:[%s10670_s14 + $0x14] sm:$0xf] }
 0xe59   :  { %v3207_v54 = vsel %vm1504_vm10, %v7306_v53, 0 }
 0xe6c   :  { %v2810_v55 = vpop.f32.mrb[80].mxu0 }
 0xe6d   :  { %v2909_v56 = vmul.f32 0.35355338, %v2810_v55  ;;  %v8208_v38 = vpop.f32.mrb[81].mxu0  ;;  %v7307_v55 = vld [vmem:[%s10670_s14 + $0x18] sm:$0xf] }
 0xe6e   :  { %v2813_v57 = vpop.f32.mrb[82].mxu0 }
 0xe6f   :  { %v8209_v58 = vpop.f32.mrb[83].mxu0  ;;  %v2915_v59 = vsel %vm1251_vm8, %v2909_v56, -inf }
 0xe70   :  { %2916 = vmax.xlane.f32.xlu1 %v2915_v59  ;;  %v3253_v58 = vsel %vm1504_vm10, %v7307_v55, 0 }
 0xe74   :  { %v2902_v43 = vpop.f32.mrb[84].mxu0 }
 0xe75   :  { %v2911_v61 = vmul.f32 0.35355338, %v2902_v43  ;;  %v8220_v62 = vpop.f32.mrb[85].mxu0 }
 0xe76   :  { %v2905_v63 = vpop.f32.mrb[86].mxu0 }
 0xe77   :  { %v8221_v0 = vpop.f32.mrb[87].mxu0  ;;  %v2921_v1 = vsel %vm1251_vm8, %v2911_v61, -inf }
 0xe78   :  { %2922 = vmax.xlane.f32.xlu1 %v2921_v1 }
 0xedd   :  { %v2914_v2 = vpop.xlane.xlu0 %2913 }
 0xede   :  { %v2924_v3 = vsub.f32 %v2908_v42, %v2914_v2  ;;  %v7308_v2 = vld [vmem:[%s10670_s14 + $0x1c] sm:$0xf] }
 0xee0   :  { %v2928_v4 = vmul.f32 1.442695, %v2924_v3 }
 0xee2   :  { %8892 = vpow2.f32 %v2928_v4 }
 0xee5   :  { %v2920_v5 = vpop.xlane.xlu0 %2919 }
 0xee6   :  { %v2926_v6 = vsub.f32 %v2910_v48, %v2920_v5 }
 0xee8   :  { %v2932_v7 = vmul.f32 1.442695, %v2926_v6  ;;  %v3299_v6 = vsel %vm1504_vm10, %v7308_v2, 0  ;;  %v7318_v2 = vld [vmem:[%s10674_s17 + $0x1] ss:$0 sm:$0xff] }
 0xeea   :  { %8894 = vpow2.f32 %v2932_v7 }
 0xeec   :  { %v8893_v8 = vpop.eup %8892 }
 0xeed   :  { %v2936_v9 = vsel %vm1251_vm8, %v8893_v8, 0.0 }
 0xeee   :  { %2937 = vadd.xlane.f32.xlu0 %v2936_v9 }
 0xef4   :  { %v8895_v10 = vpop.eup %8894 }
 0xef5   :  { %v2942_v11 = vsel %vm1251_vm8, %v8895_v10, 0.0 }
 0xef6   :  { %2943 = vadd.xlane.f32.xlu0 %v2942_v11 }
 0xefd   :  { %v2917_v12 = vpop.xlane.xlu1 %2916 }
 0xefe   :  { %v2925_v13 = vsub.f32 %v2909_v56, %v2917_v12 }
 0xf00   :  { %v2930_v14 = vmul.f32 1.442695, %v2925_v13 }
 0xf02   :  { %8896 = vpow2.f32 %v2930_v14 }
 0xf05   :  { %v2923_v15 = vpop.xlane.xlu1 %2922 }
 0xf06   :  { %v2927_v16 = vsub.f32 %v2911_v61, %v2923_v15 }
 0xf08   :  { %v2934_v17 = vmul.f32 1.442695, %v2927_v16 }
 0xf0a   :  { %8898 = vpow2.f32 %v2934_v17 }
 0xf0c   :  { %v8897_v18 = vpop.eup %8896 }
 0xf0d   :  { %v2939_v19 = vsel %vm1251_vm8, %v8897_v18, 0.0 }
 0xf0e   :  { %2940 = vadd.xlane.f32.xlu1 %v2939_v19 }
 0xf14   :  { %v8899_v20 = vpop.eup %8898 }
 0xf15   :  { %v2945_v21 = vsel %vm1251_vm8, %v8899_v20, 0.0 }
 0xf16   :  { %2946 = vadd.xlane.f32.xlu1 %v2945_v21 }
 0xf7b   :  { %v2938_v24 = vpop.xlane.xlu0 %2937 }
 0xf7c   :  { %8900 = vrcp.f32 %v2938_v24 }
 0xf83   :  { %v2944_v27 = vpop.xlane.xlu0 %2943 }
 0xf84   :  { %8902 = vrcp.f32 %v2944_v27 }
 0xf86   :  { %v8901_v29 = vpop.eup %8900 }
 0xf87   :  { %v2952_v32 = vmul.f32 %v8901_v29, %v8893_v8 }
 0xf89   :  { %v2956_v22 = vpack.c.bf16 %v2952_v32, %v2952_v32 }
 0xf8b   :  { %8225 = vmatmul.mubr.msk.bf16.vlgmr.msra.gmra.mrb[84].mxu1 %vm1304_vm9, %v2956_v22 }
 0xf8c   :  { %8235 = vmatpush3.bf16.msra.mxu1 %v3060_v30  ;;  %8236 = vmatprep.mubr.msk.bf16.mxu1 %vm8970_vm3, %v8969_v51 }
 0xf8d   :  { %8246 = vmatprep.subr.bf16.mxu1 %v8969_v51 }
 0xf8e   :  { %v8903_v33 = vpop.eup %8902 }
 0xf8f   :  { %v2954_v35 = vmul.f32 %v8903_v33, %v8895_v10 }
 0xf91   :  { %v2958_v37 = vpack.c.bf16 %v2954_v35, %v2954_v35 }
 0xf93   :  { %8237 = vmatmul.mubr.msk.bf16.vlgmr.msra.gmra.mrb[88].mxu1 %vm1304_vm9, %v2958_v37 }
 0xf94   :  { %8248 = vmatprep.mubr.msk.bf16.mxu1 %vm8970_vm3, %v8969_v51  ;;  %8247 = vmatpush3.bf16.msra.mxu1 %v3161_v52 }
 0xf95   :  { %8258 = vmatprep.subr.bf16.mxu1 %v8969_v51 }
 0xf9b   :  { %v2941_v60 = vpop.xlane.xlu1 %2940 }
 0xf9c   :  { %8904 = vrcp.f32 %v2941_v60 }
 0xfa3   :  { %v2947_v41 = vpop.xlane.xlu1 %2946 }
 0xfa4   :  { %8906 = vrcp.f32 %v2947_v41  ;;  %v7314_v41 = vld [vmem:[%s10671_s15 + $0x1] ss:$0 sm:$0xff] }
 0xfa6   :  { %v8905_v42 = vpop.eup %8904 }
 0xfa7   :  { %v2953_v45 = vmul.f32 %v8905_v42, %v8897_v18 }
 0xfa9   :  { %v2957_v46 = vpack.c.bf16 %v2953_v45, %v2953_v45 }
 0xfab   :  { %8231 = vmatmul.mubr.msk.bf16.vlgmr.msra.gmra.mrb[88].mxu0 %vm1304_vm9, %v2957_v46  ;;  %v3675_v46 = vsel %vm235_vm2, %v9155_v28, 0.0 }
 0xfac   :  { %8241 = vmatpush3.bf16.msra.mxu0 %v3106_v47  ;;  %8242 = vmatprep.mubr.msk.bf16.mxu0 %vm8970_vm3, %v8969_v51 }
 0xfad   :  { %8252 = vmatprep.subr.bf16.mxu0 %v8969_v51 }
 0xfae   :  { %v8907_v49 = vpop.eup %8906 }
 0xfaf   :  { %v2955_v48 = vmul.f32 %v8907_v49, %v8899_v20 }
 0xfb1   :  { %v2959_v50 = vpack.c.bf16 %v2955_v48, %v2955_v48 }
 0xfb3   :  { %8243 = vmatmul.mubr.msk.bf16.vlgmr.msra.gmra.mrb[92].mxu0 %vm1304_vm9, %v2959_v50 }
 0xfb4   :  { %8254 = vmatprep.mubr.msk.bf16.mxu0 %vm8970_vm3, %v8969_v51  ;;  %8253 = vmatpush3.bf16.msra.mxu0 %v3207_v54 }
 0xfb5   :  { %8264 = vmatprep.subr.bf16.mxu0 %v8969_v51 }
0x105e   :  { %v3004_v56 = vpop.f32.mrb[84].mxu1 }
0x105f   :  { %v3148_v38 = vpack.c.bf16 %v3004_v56, %v3004_v56  ;;  %v8226_v57 = vpop.f32.mrb[85].mxu1 }
0x1060   :  { %v3007_v59 = vpop.f32.mrb[86].mxu1  ;;  %v8783_v57 = vld [vmem:[%s10672_s18 + $0x18] sm:$0xff]  }
0x1061   :  { %v8227_v43 = vpop.f32.mrb[87].mxu1  ;;  %8249 = vmatmul.mubr.msk.bf16.vlgmr.msra.gmra.mrb[92].mxu1 %vm1062_vm5, %v3148_v38  ;;  %v8782_v38 = vld [vmem:[%s10672_s18 + $0x10] sm:$0xff]  }
0x1062   :  { %8259 = vmatpush3.bf16.msra.mxu1 %v3253_v58  ;;  %8260 = vmatprep.mubr.msk.bf16.mxu1 %vm8970_vm3, %v8969_v51 }
0x1063   :  { %8270 = vmatprep.subr.bf16.mxu1 %v8969_v51 }
0x1066   :  { %v3096_v61 = vpop.f32.mrb[88].mxu1 }
0x1067   :  { %v3150_v62 = vpack.c.bf16 %v3096_v61, %v3096_v61  ;;  %v8238_v63 = vpop.f32.mrb[89].mxu1 }
0x1068   :  { %v3099_v0 = vpop.f32.mrb[90].mxu1 }
0x1069   :  { %v8239_v1 = vpop.f32.mrb[91].mxu1  ;;  %8261 = vmatmul.mubr.msk.bf16.vlgmr.msra.gmra.mrb[96].mxu1 %vm1062_vm5, %v3150_v62  ;;  %v7317_v0 = vld [vmem:[%s10673_s16 + $0x1] ss:$0 sm:$0xff] }
0x106a   :  { %8274 = vmatprep.mubr.msk.bf16.mxu1 %vm8970_vm3, %v8969_v51  ;;  %8271 = vmatpush3.bf16.msra.mxu1 %v8782_v38 }
0x106b   :  { %8272 = vmatprep.subr.bf16.mxu1 %v8969_v51 }
0x106e   :  { %8273 = vmatpush3.bf16.msra.mxu1 %v8783_v57  ;;  %v8795_v57 = vld [vmem:[%s10708_s26 + $0x18] sm:$0xff]  }
0x106f   :  { %8298 = vmatprep.subr.bf16.mxu1 %v8969_v51 }
0x107e   :  { %v3050_v3 = vpop.f32.mrb[88].mxu0 }
0x107f   :  { %v3149_v4 = vpack.c.bf16 %v3050_v3, %v3050_v3  ;;  %v8232_v5 = vpop.f32.mrb[89].mxu0 }
0x1080   :  { %v3053_v7 = vpop.f32.mrb[90].mxu0  ;;  %v7358_v5 = vld [vmem:[%s10704_s27] ss:$0 sm:$0xff] }
0x1081   :  { %v8233_v8 = vpop.f32.mrb[91].mxu0  ;;  %8255 = vmatmul.mubr.msk.bf16.vlgmr.msra.gmra.mrb[96].mxu0 %vm1062_vm5, %v3149_v4 }
0x1082   :  { %8265 = vmatpush3.bf16.msra.mxu0 %v3299_v6  ;;  %8266 = vmatprep.mubr.msk.bf16.mxu0 %vm8970_vm3, %v8969_v51  ;;  %v7359_v8 = vld [vmem:[%s10705_s5] ss:$0 sm:$0xff] }
0x1083   :  { %8278 = vmatprep.subr.bf16.mxu0 %v8969_v51 }
0x1086   :  { %v3142_v9 = vpop.f32.mrb[92].mxu0 }
0x1087   :  { %v3151_v10 = vpack.c.bf16 %v3142_v9, %v3142_v9  ;;  %v8244_v11 = vpop.f32.mrb[93].mxu0 }
0x1088   :  { %v3145_v12 = vpop.f32.mrb[94].mxu0 }
0x1089   :  { %v8245_v13 = vpop.f32.mrb[95].mxu0  ;;  %8267 = vmatmul.mubr.msk.bf16.vlgmr.msra.gmra.mrb[100].mxu0 %vm1062_vm5, %v3151_v10 }
0x108a   :  { %8294 = vmatprep.mubr.msk.bf16.mxu0 %vm8970_vm3, %v8969_v51  ;;  %v8784_v13 = vld [vmem:[%s10675_s20 + $0x40] sm:$0xff]  }
0x108b   :  { %8279 = vmatpush3.bf16.msra.mxu0 %v8784_v13 }
0x108c   :  { %8280 = vmatprep.subr.bf16.mxu0 %v8969_v51 }
0x1134   :  { %v3197_v14 = vpop.f32.mrb[92].mxu1 }
0x1135   :  { %v8250_v15 = vpop.f32.mrb[93].mxu1  ;;  %v3341_v25 = vsel %vm235_vm2, %v3197_v14, 0.0  ;;  %v8785_v14 = vld [vmem:[%s10675_s20 + $0x48] sm:$0xff]  }
0x1136   :  { %v3200_v16 = vpop.f32.mrb[94].mxu1  ;;  %8281 = vmatpush3.bf16.msra.mxu0 %v8785_v14  ;;  %v8786_v15 = vld [vmem:[%s10675_s20 + $0x50] sm:$0xff]  }
0x1137   :  { %v8251_v17 = vpop.f32.mrb[95].mxu1  ;;  %8282 = vmatprep.subr.bf16.mxu0 %v8969_v51  ;;  %v8787_v16 = vld [vmem:[%s10675_s20 + $0x58] sm:$0xff]  }
0x1138   :  { %v8788_v17 = vld [vmem:[%s10675_s20 + $0x60] sm:$0xff]  }
0x113a   :  { %8283 = vmatpush3.bf16.msra.mxu0 %v8786_v15 }
0x113b   :  { %8284 = vmatprep.subr.bf16.mxu0 %v8969_v51 }
0x113c   :  { %v3289_v18 = vpop.f32.mrb[96].mxu1 }
0x113d   :  { %v8262_v19 = vpop.f32.mrb[97].mxu1  ;;  %v3344_v32 = vsel %vm235_vm2, %v3289_v18, 0.0  ;;  %v8789_v18 = vld [vmem:[%s10675_s20 + $0x68] sm:$0xff]  }
0x113e   :  { %v3292_v20 = vpop.f32.mrb[98].mxu1  ;;  %8285 = vmatpush3.bf16.msra.mxu0 %v8787_v16  ;;  %v8790_v19 = vld [vmem:[%s10675_s20 + $0x70] sm:$0xff]  }
0x113f   :  { %v8263_v21 = vpop.f32.mrb[99].mxu1  ;;  %8286 = vmatprep.subr.bf16.mxu0 %v8969_v51  ;;  %v8791_v20 = vld [vmem:[%s10675_s20 + $0x78] sm:$0xff]  }
0x1142   :  { %8287 = vmatpush3.bf16.msra.mxu0 %v8788_v17 }
0x1143   :  { %8288 = vmatprep.subr.bf16.mxu0 %v8969_v51 }
0x1146   :  { %8289 = vmatpush3.bf16.msra.mxu0 %v8789_v18 }
0x1147   :  { %8290 = vmatprep.subr.bf16.mxu0 %v8969_v51 }
0x114a   :  { %8291 = vmatpush3.bf16.msra.mxu0 %v8790_v19 }
0x114b   :  { %8292 = vmatprep.subr.bf16.mxu0 %v8969_v51 }
0x114e   :  { %8293 = vmatpush3.bf16.msra.mxu0 %v8791_v20 }
0x114f   :  { %8330 = vmatprep.subr.bf16.mxu0 %v8969_v51 }
0x1154   :  { %v3243_v24 = vpop.f32.mrb[96].mxu0 }
0x1155   :  { %v3342_v26 = vsel %vm235_vm2, %v3243_v24, 0.0  ;;  %v8256_v27 = vpop.f32.mrb[97].mxu0 }
0x1156   :  { %v3343_v29 = vadd.f32 %v3342_v26, %v3341_v25  ;;  %v3246_v31 = vpop.f32.mrb[98].mxu0 }
0x1157   :  { %v8257_v22 = vpop.f32.mrb[99].mxu0 }
0x1158   :  { %v3345_v30 = vadd.f32 %v3344_v32, %v3343_v29  ;;  %v7324_v29 = vld [vmem:[%s10676_s19 + $0x1] ss:$0 sm:$0xff] }
0x115c   :  { %v3335_v33 = vpop.f32.mrb[100].mxu0 }
0x115d   :  { %v3346_v35 = vsel %vm235_vm2, %v3335_v33, 0.0  ;;  %v8268_v37 = vpop.f32.mrb[101].mxu0 }
0x115e   :  { %v3347_v60 = vadd.f32 %v3346_v35, %v3345_v30  ;;  %v3338_v39 = vpop.f32.mrb[102].mxu0 }
0x115f   :  { %v8269_v40 = vpop.f32.mrb[103].mxu0 }
0x1160   :  { %v3348_v42 = vadd.f32 %v3347_v60, %v9531_v34 }
0x1162   :  { %v9819_v44 = vadd.f32 %v7314_v41, %v3348_v42  ;;  %v8792_v42 = vld [vmem:[%s10706_s2 + $0x30] sm:$0xff]  }
0x1164   :  { %v3362_v45 = vsel %vm235_vm2, %v9819_v44, 0.0 }
0x1165   :  { %3363 = vadd.xlane.f32.xlu0 %v3362_v45 }
0x1169   :  { %3676 = vadd.xlane.f32.xlu0 %v3675_v46  ;;  %v8793_v46 = vld [vmem:[%s10706_s2 + $0x38] sm:$0xff]  }
0x11f2   :  { %v3364_v47 = vpop.xlane.xlu0 %3363 }
0x11f3   :  { %v3365_v49 = vmul.f32 0.03125, %v3364_v47 }
0x11f5   :  { %v3366_v48 = vsub.f32 %v9819_v44, %v3365_v49 }
0x11f6   :  { %v3677_v50 = vpop.xlane.xlu0 %3676 }
0x11f7   :  { %v3678_v36 = vmul.f32 0.03125, %v3677_v50  ;;  %v3367_v52 = vmul.f32 %v3366_v48, %v3366_v48 }
0x11f9   :  { %v3679_v53 = vsub.f32 %v9155_v28, %v3678_v36  ;;  %v3368_v54 = vsel %vm235_vm2, %v3367_v52, 0.0  ;;  %v7360_v36 = vld [vmem:[%s10707_s4] ss:$0 sm:$0xff] }
0x11fa   :  { %3369 = vadd.xlane.f32.xlu1 %v3368_v54 }
0x11fb   :  { %v3680_v55 = vmul.f32 %v3679_v53, %v3679_v53 }
0x11fd   :  { %v3681_v56 = vsel %vm235_vm2, %v3680_v55, 0.0 }
0x11fe   :  { %3682 = vadd.xlane.f32.xlu1 %v3681_v56  ;;  %v8794_v56 = vld [vmem:[%s10708_s26 + $0x10] sm:$0xff]  }
0x1287   :  { %v3370_v28 = vpop.xlane.xlu1 %3369 }
0x1288   :  { %v3371_v58 = vmul.f32 0.03125, %v3370_v28  ;;  %v8796_v28 = vld [vmem:[%s10708_s26 + $0x30] sm:$0xff]  }
0x128a   :  { %v3372_v59 = vadd.f32 1e-05, %v3371_v58  ;;  %v8797_v58 = vld [vmem:[%s10708_s26 + $0x38] sm:$0xff]  }
0x128b   :  { %v3683_v43 = vpop.xlane.xlu1 %3682 }
0x128c   :  { %8908 = vrsqrt.f32 %v3372_v59  ;;  %v3684_v61 = vmul.f32 0.03125, %v3683_v43  ;;  %v8798_v59 = vld [vmem:[%s10709_s9 + $0x10] sm:$0xff]   ;;  %v8799_v43 = vld [vmem:[%s10709_s9 + $0x18] sm:$0xff]  }
0x128e   :  { %v3685_v62 = vadd.f32 1e-05, %v3684_v61  ;;  %v8800_v61 = vld [vmem:[%s10709_s9 + $0x30] sm:$0xff]  }
0x1290   :  { %8910 = vrsqrt.f32 %v3685_v62  ;;  %v8801_v62 = vld [vmem:[%s10709_s9 + $0x38] sm:$0xff]  }
0x1296   :  { %v8909_v63 = vpop.eup %8908 }
0x1297   :  { %v3374_v1 = vmul.f32 %v8909_v63, %v3366_v48  ;;  %v7346_v63 = vld [vmem:[%s10677_s21 + $0x1] ss:$0 sm:$0xff] }
0x1299   :  { %v3381_v3 = vmul.f32 %v7317_v0, %v3374_v1 }
0x129a   :  { %v8911_v4 = vpop.eup %8910 }
0x129b   :  { %v3388_v6 = vadd.f32 %v7318_v2, %v3381_v3  ;;  %v3687_v7 = vmul.f32 %v8911_v4, %v3679_v53  ;;  %v7361_v53 = vld [vmem:[%s10666_s7] ss:$0 sm:$0xff] }
0x129d   :  { %v3389_v9 = vpack.c.bf16 %v3388_v6, %v3388_v6  ;;  %v3694_v10 = vmul.f32 %v7358_v5, %v3687_v7 }
0x129f   :  { %8275 = vmatmul.mubr.msk.bf16.vlgmr.msra.gmra.mrb[100].mxu1 %vm350_vm4, %v3389_v9  ;;  %v9850_v11 = vadd.f32 %v7359_v8, %v3694_v10 }
0x12a0   :  { %8302 = vmatprep.mubr.msk.bf16.mxu1 %vm8970_vm3, %v8969_v51 }
0x12a1   :  { %v3704_v12 = vsel %vm235_vm2, %v9850_v11, 0.0 }
0x12a2   :  { %3705 = vadd.xlane.f32.xlu1 %v3704_v12  ;;  %v7379_v12 = vld [vmem:[%s10667_s12 + $0x1] ss:$0 sm:$0xff] }
0x132f   :  { %v3706_v21 = vpop.xlane.xlu1 %3705 }
0x1330   :  { %v3707_v24 = vmul.f32 0.03125, %v3706_v21 }
0x1332   :  { %v3708_v25 = vsub.f32 %v9850_v11, %v3707_v24 }
0x1334   :  { %v3709_v26 = vmul.f32 %v3708_v25, %v3708_v25 }
0x1336   :  { %v3710_v27 = vsel %vm235_vm2, %v3709_v26, 0.0 }
0x1337   :  { %3711 = vadd.xlane.f32.xlu1 %v3710_v27 }
0x1372   :  { %v3452_v31 = vpop.f32.mrb[100].mxu1 }
0x1373   :  { %v3453_v32 = vadd.f32 %v7324_v29, %v3452_v31  ;;  %v8276_v22 = vpop.f32.mrb[101].mxu1 }
0x1374   :  { %v3455_v30 = vpop.f32.mrb[102].mxu1 }
0x1375   :  { %v7328_v33 = vmul.f32 -1.702, %v3453_v32  ;;  %v8277_v35 = vpop.f32.mrb[103].mxu1 }
0x1377   :  { %v3460_v37 = vmul.f32 1.442695, %v7328_v33 }
0x1379   :  { %8912 = vpow2.f32 %v3460_v37 }
0x1383   :  { %v8913_v60 = vpop.eup %8912 }
0x1384   :  { %v3462_v39 = vadd.f32 1.0, %v8913_v60 }
0x1386   :  { %8914 = vrcp.f32 %v3462_v39 }
0x1390   :  { %v8915_v40 = vpop.eup %8914 }
0x1391   :  { %v3465_v41 = vmul.f32 %v8915_v40, %v3453_v32  ;;  %v8802_v40 = vld [vmem:[%s10678_s24] sm:$0xff]  }
0x1392   :  { %8299 = vmatpush3.bf16.msra.mxu1 %v8802_v40 }
0x1393   :  { %v3466_v45 = vpack.c.bf16 %v3465_v41, %v3465_v41  ;;  %v8803_v41 = vld [vmem:[%s10678_s24 + $0x8] sm:$0xff]   ;;  %8300 = vmatprep.subr.bf16.mxu1 %v8969_v51 }
0x1395   :  { %8295 = vmatmul.mubr.bf16.vlgmr.msra.gmra.mrb[104].mxu0 %v3466_v45 }
0x1396   :  { %8331 = vmatpush3.bf16.msra.mxu0 %v8792_v42  ;;  %8334 = vmatprep.mubr.msk.bf16.mxu0 %vm8970_vm3, %v8969_v51 }
0x1397   :  { %8332 = vmatprep.subr.bf16.mxu0 %v8969_v51  ;;  %8301 = vmatpush3.bf16.msra.mxu1 %v8803_v41 }
0x1398   :  { %8306 = vmatprep.subr.bf16.mxu1 %v8969_v51 }
0x139a   :  { %8333 = vmatpush3.bf16.msra.mxu0 %v8793_v46 }
0x139b   :  { %8346 = vmatprep.subr.bf16.mxu0 %v8969_v51 }
0x13c4   :  { %v3712_v47 = vpop.xlane.xlu1 %3711 }
0x13c5   :  { %v3713_v49 = vmul.f32 0.03125, %v3712_v47 }
0x13c7   :  { %v3714_v48 = vadd.f32 1e-05, %v3713_v49  ;;  %v3581_v49 = vld [vmem:[%s10679_s22] sm:$0x1] }
0x13c9   :  { %8916 = vrsqrt.f32 %v3714_v48 }
0x13d3   :  { %v8917_v50 = vpop.eup %8916 }
0x13d4   :  { %v3716_v52 = vmul.f32 %v8917_v50, %v3708_v25  ;;  %v3582_v50 = vld [vmem:[%s10680_s23] sm:$0x1] }
0x13d6   :  { %v3723_v54 = vmul.f32 %v7360_v36, %v3716_v52 }
0x13d8   :  { %v3730_v55 = vadd.f32 %v7361_v53, %v3723_v54  ;;  %v8804_v53 = vld [vmem:[%s10706_s2] sm:$0xff]  }
0x13da   :  { %v9912_v38 = vpack.c.bf16 %v3730_v55, %v3730_v55  ;;  %v8805_v55 = vld [vmem:[%s10706_s2 + $0x8] sm:$0xff]  }
0x13dc   :  { %8335 = vmatmul.mubr.msk.bf16.vlgmr.msra.gmra.mrb[108].mxu0 %vm350_vm4, %v9912_v38 }
0x13dd   :  { %8347 = vmatpush3.bf16.msra.mxu0 %v8794_v56  ;;  %8350 = vmatprep.mubr.msk.bf16.mxu0 %vm8970_vm3, %v8969_v51  ;;  %v8806_v56 = vld [vmem:[%s10706_s2 + $0x10] sm:$0xff]  }
0x13de   :  { %8348 = vmatprep.subr.bf16.mxu0 %v8969_v51 }
0x13e1   :  { %8349 = vmatpush3.bf16.msra.mxu0 %v8795_v57  ;;  %v8807_v57 = vld [vmem:[%s10706_s2 + $0x18] sm:$0xff]  }
0x13e2   :  { %8362 = vmatprep.subr.bf16.mxu0 %v8969_v51 }
0x13e4   :  { %8351 = vmatmul.mubr.msk.bf16.vlgmr.msra.gmra.mrb[112].mxu0 %vm350_vm4, %v9912_v38 }
0x13e5   :  { %8363 = vmatpush3.bf16.msra.mxu0 %v8796_v28  ;;  %8366 = vmatprep.mubr.msk.bf16.mxu0 %vm8970_vm3, %v8969_v51  ;;  %v8808_v28 = vld [vmem:[%s10706_s2 + $0x20] sm:$0xff]  }
0x13e6   :  { %8364 = vmatprep.subr.bf16.mxu0 %v8969_v51 }
0x13e9   :  { %8365 = vmatpush3.bf16.msra.mxu0 %v8797_v58  ;;  %v8809_v58 = vld [vmem:[%s10706_s2 + $0x28] sm:$0xff]  }
0x13ea   :  { %8378 = vmatprep.subr.bf16.mxu0 %v8969_v51 }
0x13ec   :  { %8367 = vmatmul.mubr.msk.bf16.vlgmr.msra.gmra.mrb[116].mxu0 %vm350_vm4, %v9912_v38 }
0x13ed   :  { %8379 = vmatpush3.bf16.msra.mxu0 %v8798_v59  ;;  %8382 = vmatprep.mubr.msk.bf16.mxu0 %vm8970_vm3, %v8969_v51  ;;  %v8810_v59 = vld [vmem:[%s10708_s26] sm:$0xff]  }
0x13ee   :  { %8380 = vmatprep.subr.bf16.mxu0 %v8969_v51 }
0x13f1   :  { %8381 = vmatpush3.bf16.msra.mxu0 %v8799_v43  ;;  %v8811_v43 = vld [vmem:[%s10708_s26 + $0x8] sm:$0xff]  }
0x13f2   :  { %8394 = vmatprep.subr.bf16.mxu0 %v8969_v51 }
0x13f4   :  { %8383 = vmatmul.mubr.msk.bf16.vlgmr.msra.gmra.mrb[120].mxu0 %vm350_vm4, %v9912_v38 }
0x13f5   :  { %8395 = vmatpush3.bf16.msra.mxu0 %v8800_v61  ;;  %8398 = vmatprep.mubr.msk.bf16.mxu0 %vm8970_vm3, %v8969_v51  ;;  %v8812_v61 = vld [vmem:[%s10708_s26 + $0x20] sm:$0xff]  }
0x13f6   :  { %8396 = vmatprep.subr.bf16.mxu0 %v8969_v51 }
0x13f9   :  { %8397 = vmatpush3.bf16.msra.mxu0 %v8801_v62  ;;  %v8813_v62 = vld [vmem:[%s10708_s26 + $0x28] sm:$0xff]  }
0x13fa   :  { %8408 = vmatprep.subr.bf16.mxu0 %v8969_v51 }
0x13fc   :  { %8399 = vmatmul.mubr.msk.bf16.vlgmr.msra.gmra.mrb[124].mxu0 %vm350_vm4, %v9912_v38 }
0x13fd   :  { %8410 = vmatprep.mubr.msk.bf16.mxu0 %vm8970_vm3, %v8969_v51 }
0x1468   :  { %v3574_v0 = vpop.f32.mrb[104].mxu0 }
0x1469   :  { %v3575_v1 = vadd.f32 %v7346_v63, %v3574_v0  ;;  %v8296_v2 = vpop.f32.mrb[105].mxu0  ;;  %v8814_v63 = vld [vmem:[%s10709_s9] sm:$0xff]   ;;  %v8815_v0 = vld [vmem:[%s10709_s9 + $0x8] sm:$0xff]  }
0x146a   :  { %v3577_v3 = vpop.f32.mrb[106].mxu0  ;;  %v8817_v2 = vld [vmem:[%s10709_s9 + $0x28] sm:$0xff]  }
0x146b   :  { %v8297_v4 = vpop.f32.mrb[107].mxu0  ;;  %v3580_v5 = vadd.f32 %v3575_v1, %v9819_v44  ;;  %v8816_v1 = vld [vmem:[%s10709_s9 + $0x20] sm:$0xff]  }
0x146d   :  { %v3584_v6 = vsel %vm3583_vm11, %v3580_v5, 0.0 }
0x146e   :  { %3585 = vadd.xlane.f32.xlu0 %v3584_v6 }
0x14af   :  { %v9968_v7 = vpop.f32.mrb[108].mxu0 }
0x14b0   :  { %v8336_v8 = vpop.f32.mrb[109].mxu0 }
0x14b1   :  { %v3984_v9 = vpop.f32.mrb[110].mxu0 }
0x14b2   :  { %v8337_v10 = vpop.f32.mrb[111].mxu0 }
0x14b3   :  { %v7381_v10 = vld [vmem:[%s10667_s12 + $0x3] ss:$0 sm:$0xff] }
0x14b7   :  { %v4129_v13 = vpop.f32.mrb[112].mxu0 }
0x14b8   :  { %v4130_v14 = vadd.f32 %v7379_v12, %v4129_v13  ;;  %v8352_v15 = vpop.f32.mrb[113].mxu0 }
0x14b9   :  { %v4132_v16 = vpop.f32.mrb[114].mxu0 }
0x14ba   :  { %v4496_v17 = vpack.c.bf16 %v4130_v14, %v4130_v14  ;;  %v8353_v18 = vpop.f32.mrb[115].mxu0 }
0x14bc   :  { %v4549_v44 = vsel %vm1062_vm5, %v4496_v17, 0  ;;  %v7395_v17 = vld [vmem:[%s10669_s13 + $0x1] ss:$0 sm:$0xff] }
0x14bd   :  { %8409 = vmatpush3.bf16.xpose.msra.mxu0 %v4549_v44 }
0x14be   :  { %8420 = vmatprep.subr.bf16.mxu0 %v8969_v51 }
0x14bf   :  { %v9975_v19 = vpop.f32.mrb[116].mxu0 }
0x14c0   :  { %v8368_v20 = vpop.f32.mrb[117].mxu0  ;;  %v4234_v14 = vadd.f32 %v7381_v10, %v9975_v19 }
0x14c1   :  { %v4236_v21 = vpop.f32.mrb[118].mxu0 }
0x14c2   :  { %v8369_v24 = vpop.f32.mrb[119].mxu0  ;;  %v4498_v16 = vpack.c.bf16 %v4234_v14, %v4234_v14 }
0x14c7   :  { %v9977_v25 = vpop.f32.mrb[120].mxu0 }
0x14c8   :  { %v8384_v26 = vpop.f32.mrb[121].mxu0  ;;  %v4382_v19 = vadd.f32 %v7395_v17, %v9977_v25 }
0x14c9   :  { %v4384_v27 = vpop.f32.mrb[122].mxu0  ;;  %v7365_v26 = vld [vmem:[%s10668_s11 + $0x3] ss:$0 sm:$0xff] }
0x14ca   :  { %v8385_v29 = vpop.f32.mrb[123].mxu0  ;;  %v4641_v27 = vsel %vm1062_vm5, %v4498_v16, 0 }
0x14cb   :  { %v3982_v29 = vadd.f32 %v7365_v26, %v9968_v7 }
0x14cf   :  { %v9979_v31 = vpop.f32.mrb[124].mxu0 }
0x14d0   :  { %v8400_v32 = vpop.f32.mrb[125].mxu0 }
0x14d1   :  { %v4488_v22 = vpop.f32.mrb[126].mxu0  ;;  %v4736_v32 = vpack.c.bf16 %v4382_v19, %v4382_v19 }
0x14d2   :  { %v8401_v30 = vpop.f32.mrb[127].mxu0 }
0x14d3   :  { %v4789_v25 = vand.u32 %v4736_v32, %v9369_v23 }
0x14fb   :  { %v3586_v33 = vpop.xlane.xlu0 %3585 }
0x14fc   :  { %v3587_v35 = vmul.f32 0.03125, %v3586_v33 }
0x14fe   :  { %v3588_v37 = vsub.f32 %v3580_v5, %v3587_v35  ;;  %v4494_v35 = vpack.c.bf16 %v3982_v29, %v3982_v29 }
0x1500   :  { %v3589_v60 = vmul.f32 %v3588_v37, %v3588_v37 }
0x1502   :  { %v3590_v39 = vsel %vm3583_vm11, %v3589_v60, 0.0  ;;  %v7378_v60 = vld [vmem:[%s10667_s12] ss:$0 sm:$0xff] }
0x1503   :  { %3591 = vadd.xlane.f32.xlu0 %v3590_v39 }
0x1590   :  { %v3592_v42 = vpop.xlane.xlu0 %3591 }
0x1591   :  { %v3593_v45 = vmul.f32 0.03125, %v3592_v42 }
0x1593   :  { %v3594_v46 = vadd.f32 1e-05, %v3593_v45 }
0x1595   :  { %8918 = vrsqrt.f32 %v3594_v46  ;;  %v7362_v46 = vld [vmem:[%s10668_s11] ss:$0 sm:$0xff] }
0x159f   :  { %v8919_v47 = vpop.eup %8918 }
0x15a0   :  { %v3596_v48 = vmul.f32 %v8919_v47, %v3588_v37 }
0x15a2   :  { %v3597_v36 = vmul.f32 %v3596_v48, %v3581_v49  ;;  %v7380_v49 = vld [vmem:[%s10667_s12 + $0x2] ss:$0 sm:$0xff] }
0x15a4   :  { %v9996_v52 = vadd.f32 %v3597_v36, %v3582_v50 }
0x15a6   :  { %v3599_v54 = vpack.c.bf16 %v9996_v52, %v9996_v52 }
0x15a8   :  { %8303 = vmatmul.mubr.msk.bf16.vlgmr.msra.gmra.mrb[104].mxu1 %vm350_vm4, %v3599_v54 }
0x15a9   :  { %8307 = vmatpush3.bf16.msra.mxu1 %v8804_v53  ;;  %8310 = vmatprep.mubr.msk.bf16.mxu1 %vm8970_vm3, %v8969_v51 }
0x15aa   :  { %8308 = vmatprep.subr.bf16.mxu1 %v8969_v51 }
0x15ad   :  { %8309 = vmatpush3.bf16.msra.mxu1 %v8805_v55 }
0x15ae   :  { %8314 = vmatprep.subr.bf16.mxu1 %v8969_v51 }
0x15b0   :  { %8311 = vmatmul.mubr.msk.bf16.vlgmr.msra.gmra.mrb[108].mxu1 %vm350_vm4, %v9912_v38 }
0x15b1   :  { %8315 = vmatpush3.bf16.msra.mxu1 %v8806_v56  ;;  %8318 = vmatprep.mubr.msk.bf16.mxu1 %vm8970_vm3, %v8969_v51 }
0x15b2   :  { %8316 = vmatprep.subr.bf16.mxu1 %v8969_v51 }
0x15b5   :  { %8317 = vmatpush3.bf16.msra.mxu1 %v8807_v57 }
0x15b6   :  { %8322 = vmatprep.subr.bf16.mxu1 %v8969_v51 }
0x15b8   :  { %8319 = vmatmul.mubr.msk.bf16.vlgmr.msra.gmra.mrb[112].mxu1 %vm350_vm4, %v9912_v38 }
0x15b9   :  { %8323 = vmatpush3.bf16.msra.mxu1 %v8808_v28  ;;  %8326 = vmatprep.mubr.msk.bf16.mxu1 %vm8970_vm3, %v8969_v51  ;;  %v7364_v28 = vld [vmem:[%s10668_s11 + $0x2] ss:$0 sm:$0xff] }
0x15ba   :  { %8324 = vmatprep.subr.bf16.mxu1 %v8969_v51 }
0x15bd   :  { %8325 = vmatpush3.bf16.msra.mxu1 %v8809_v58 }
0x15be   :  { %8338 = vmatprep.subr.bf16.mxu1 %v8969_v51 }
0x15c0   :  { %8327 = vmatmul.mubr.msk.bf16.vlgmr.msra.gmra.mrb[116].mxu1 %vm350_vm4, %v9912_v38 }
0x15c1   :  { %8339 = vmatpush3.bf16.msra.mxu1 %v8810_v59  ;;  %8342 = vmatprep.mubr.msk.bf16.mxu1 %vm8970_vm3, %v8969_v51  ;;  %v7394_v59 = vld [vmem:[%s10669_s13] ss:$0 sm:$0xff] }
0x15c2   :  { %8340 = vmatprep.subr.bf16.mxu1 %v8969_v51 }
0x15c5   :  { %8341 = vmatpush3.bf16.msra.mxu1 %v8811_v43 }
0x15c6   :  { %8354 = vmatprep.subr.bf16.mxu1 %v8969_v51 }
0x15c8   :  { %8343 = vmatmul.mubr.msk.bf16.vlgmr.msra.gmra.mrb[120].mxu1 %vm350_vm4, %v9912_v38 }
0x15c9   :  { %8355 = vmatpush3.bf16.msra.mxu1 %v8812_v61  ;;  %8358 = vmatprep.mubr.msk.bf16.mxu1 %vm8970_vm3, %v8969_v51 }
0x15ca   :  { %8356 = vmatprep.subr.bf16.mxu1 %v8969_v51 }
0x15cd   :  { %8357 = vmatpush3.bf16.msra.mxu1 %v8813_v62 }
0x15ce   :  { %8370 = vmatprep.subr.bf16.mxu1 %v8969_v51 }
0x15d0   :  { %8359 = vmatmul.mubr.msk.bf16.vlgmr.msra.gmra.mrb[124].mxu1 %vm350_vm4, %v9912_v38 }
0x15d1   :  { %8371 = vmatpush3.bf16.msra.mxu1 %v8814_v63  ;;  %8374 = vmatprep.mubr.msk.bf16.mxu1 %vm8970_vm3, %v8969_v51 }
0x15d2   :  { %8372 = vmatprep.subr.bf16.mxu1 %v8969_v51 }
0x15d5   :  { %8373 = vmatpush3.bf16.msra.mxu1 %v8815_v0 }
0x15d6   :  { %8386 = vmatprep.subr.bf16.mxu1 %v8969_v51 }
0x15d8   :  { %8375 = vmatmul.mubr.msk.bf16.vlgmr.msra.gmra.mrb[128].mxu1 %vm350_vm4, %v9912_v38 }
0x15d9   :  { %8387 = vmatpush3.bf16.msra.mxu1 %v8816_v1  ;;  %8390 = vmatprep.mubr.msk.bf16.mxu1 %vm8970_vm3, %v8969_v51 }
0x15da   :  { %8388 = vmatprep.subr.bf16.mxu1 %v8969_v51 }
0x15dd   :  { %8389 = vmatpush3.bf16.msra.mxu1 %v8817_v2 }
0x15de   :  { %8402 = vmatprep.subr.bf16.mxu1 %v8969_v51 }
0x15e0   :  { %8391 = vmatmul.mubr.msk.bf16.vlgmr.msra.gmra.mrb[132].mxu1 %vm350_vm4, %v9912_v38  ;;  %v7363_v38 = vld [vmem:[%s10668_s11 + $0x1] ss:$0 sm:$0xff] }
0x15e1   :  { %8404 = vmatprep.mubr.msk.bf16.mxu1 %vm8970_vm3, %v8969_v51 }
0x167b   :  { %v10087_v3 = vpop.f32.mrb[104].mxu1 }
0x167c   :  { %v8304_v4 = vpop.f32.mrb[105].mxu1 }
0x167d   :  { %v3656_v5 = vpop.f32.mrb[106].mxu1 }
0x167e   :  { %v8305_v6 = vpop.f32.mrb[107].mxu1 }
0x1683   :  { %v3825_v8 = vpop.f32.mrb[108].mxu1 }
0x1684   :  { %v8312_v9 = vpop.f32.mrb[109].mxu1  ;;  %v3826_v48 = vadd.f32 %v7362_v46, %v3825_v8 }
0x1685   :  { %v3828_v12 = vpop.f32.mrb[110].mxu1 }
0x1686   :  { %v8313_v13 = vpop.f32.mrb[111].mxu1  ;;  %v4491_v55 = vpack.c.bf16 %v3826_v48, %v3826_v48 }
0x168b   :  { %v3877_v15 = vpop.f32.mrb[112].mxu1 }
0x168c   :  { %v3878_v18 = vadd.f32 %v7363_v38, %v3877_v15  ;;  %v8320_v44 = vpop.f32.mrb[113].mxu1 }
0x168d   :  { %v3880_v20 = vpop.f32.mrb[114].mxu1 }
0x168e   :  { %v4492_v21 = vpack.c.bf16 %v3878_v18, %v3878_v18  ;;  %v8321_v24 = vpop.f32.mrb[115].mxu1 }
0x1690   :  { %8411 = vmatmul.mubr.msk.bf16.vlgmr.msra.gmra.mrb[128].mxu0 %vm1062_vm5, %v4492_v21 }
0x1691   :  { %8421 = vmatpush3.bf16.xpose.msra.mxu0 %v4641_v27  ;;  %8422 = vmatprep.mubr.msk.bf16.mxu0 %vm8970_vm3, %v8969_v51 }
0x1692   :  { %8432 = vmatprep.subr.bf16.mxu0 %v8969_v51 }
0x1693   :  { %v3929_v22 = vpop.f32.mrb[116].mxu1 }
0x1694   :  { %v8328_v30 = vpop.f32.mrb[117].mxu1  ;;  %v3930_v43 = vadd.f32 %v7364_v28, %v3929_v22 }
0x1695   :  { %v3932_v33 = vpop.f32.mrb[118].mxu1 }
0x1696   :  { %v8329_v37 = vpop.f32.mrb[119].mxu1  ;;  %v4493_v1 = vpack.c.bf16 %v3930_v43, %v3930_v43 }
0x1698   :  { %8423 = vmatmul.mubr.msk.bf16.vlgmr.msra.gmra.mrb[132].mxu0 %vm1062_vm5, %v4494_v35 }
0x1699   :  { %8433 = vmatpush3.bf16.msra.mxu0 %v4789_v25  ;;  %8434 = vmatprep.mubr.msk.bf16.mxu0 %vm8970_vm3, %v8969_v51 }
0x169a   :  { %8444 = vmatprep.subr.bf16.mxu0 %v8969_v51 }
0x169b   :  { %v4077_v7 = vpop.f32.mrb[120].mxu1 }
0x169c   :  { %v4078_v39 = vadd.f32 %v7378_v60, %v4077_v7  ;;  %v8344_v40 = vpop.f32.mrb[121].mxu1 }
0x169d   :  { %v4080_v41 = vpop.f32.mrb[122].mxu1 }
0x169e   :  { %v4495_v42 = vpack.c.bf16 %v4078_v39, %v4078_v39  ;;  %v8345_v45 = vpop.f32.mrb[123].mxu1 }
0x16a0   :  { %v4503_v47 = vsel %vm1062_vm5, %v4495_v42, 0 }
0x16a1   :  { %8403 = vmatpush3.bf16.xpose.msra.mxu1 %v4503_v47 }
0x16a2   :  { %8414 = vmatprep.subr.bf16.mxu1 %v8969_v51 }
0x16a3   :  { %v4181_v50 = vpop.f32.mrb[124].mxu1 }
0x16a4   :  { %v4182_v36 = vadd.f32 %v7380_v49, %v4181_v50  ;;  %v8360_v53 = vpop.f32.mrb[125].mxu1 }
0x16a5   :  { %v4184_v54 = vpop.f32.mrb[126].mxu1 }
0x16a6   :  { %v4497_v56 = vpack.c.bf16 %v4182_v36, %v4182_v36  ;;  %v8361_v57 = vpop.f32.mrb[127].mxu1 }
0x16a8   :  { %v4595_v58 = vsel %vm1062_vm5, %v4497_v56, 0  ;;  %8405 = vmatmul.mubr.msk.bf16.vlgmr.msra.gmra.mrb[136].mxu1 %vm1062_vm5, %v4491_v55 }
0x16a9   :  { %8415 = vmatpush3.bf16.xpose.msra.mxu1 %v4595_v58  ;;  %8416 = vmatprep.mubr.msk.bf16.mxu1 %vm8970_vm3, %v8969_v51 }
0x16aa   :  { %8426 = vmatprep.subr.bf16.mxu1 %v8969_v51 }
0x16ab   :  { %v4329_v61 = vpop.f32.mrb[128].mxu1 }
0x16ac   :  { %v4330_v62 = vadd.f32 %v7394_v59, %v4329_v61  ;;  %v8376_v63 = vpop.f32.mrb[129].mxu1  ;;  %v7397_v61 = vld [vmem:[%s10669_s13 + $0x3] ss:$0 sm:$0xff] }
0x16ad   :  { %v4332_v0 = vpop.f32.mrb[130].mxu1 }
0x16ae   :  { %v4735_v2 = vpack.c.bf16 %v4330_v62, %v4330_v62  ;;  %v8377_v4 = vpop.f32.mrb[131].mxu1  ;;  %v4486_v62 = vadd.f32 %v7397_v61, %v9979_v31 }
0x16b0   :  { %v4743_v5 = vand.u32 %v4735_v2, %v9369_v23  ;;  %8417 = vmatmul.mubr.msk.bf16.vlgmr.msra.gmra.mrb[140].mxu1 %vm1062_vm5, %v4493_v1  ;;  %v4738_v1 = vpack.c.bf16 %v4486_v62, %v4486_v62 }
0x16b1   :  { %8428 = vmatprep.mubr.msk.bf16.mxu1 %vm8970_vm3, %v8969_v51 }
0x16b2   :  { %8427 = vmatpush3.bf16.msra.mxu1 %v4743_v5  ;;  %v4881_v5 = vand.u32 %v4738_v1, %v9369_v23 }
0x16b3   :  { %v10140_v6 = vpop.f32.mrb[132].mxu1  ;;  %8438 = vmatprep.subr.bf16.mxu1 %v8969_v51 }
0x16b4   :  { %v8392_v8 = vpop.f32.mrb[133].mxu1 }
0x16b5   :  { %v4436_v9 = vpop.f32.mrb[134].mxu1 }
0x16b6   :  { %v8393_v10 = vpop.f32.mrb[135].mxu1 }
0x1763   :  { %v4585_v12 = vpop.f32.mrb[128].mxu0 }
0x1764   :  { %v4684_v13 = vmul.f32 0.35355338, %v4585_v12  ;;  %v8412_v14 = vpop.f32.mrb[129].mxu0  ;;  %v7396_v12 = vld [vmem:[%s10669_s13 + $0x2] ss:$0 sm:$0xff] }
0x1765   :  { %v4588_v38 = vpop.f32.mrb[130].mxu0 }
0x1766   :  { %v8413_v15 = vpop.f32.mrb[131].mxu0  ;;  %v4690_v16 = vsel %vm1251_vm8, %v4684_v13, -inf }
0x1767   :  { %4691 = vmax.xlane.f32.xlu1 %v4690_v16 }
0x176b   :  { %v4677_v17 = vpop.f32.mrb[132].mxu0 }
0x176c   :  { %v4686_v18 = vmul.f32 0.35355338, %v4677_v17  ;;  %v8424_v44 = vpop.f32.mrb[133].mxu0 }
0x176d   :  { %v4680_v20 = vpop.f32.mrb[134].mxu0 }
0x176e   :  { %v8425_v21 = vpop.f32.mrb[135].mxu0  ;;  %v4696_v24 = vsel %vm1251_vm8, %v4686_v18, -inf }
0x176f   :  { %4697 = vmax.xlane.f32.xlu1 %v4696_v24 }
0x177b   :  { %v4539_v26 = vpop.f32.mrb[136].mxu1 }
0x177c   :  { %v4683_v19 = vmul.f32 0.35355338, %v4539_v26  ;;  %v8406_v27 = vpop.f32.mrb[137].mxu1  ;;  %v4927_v26 = vld [vmem:[%s10670_s14] sm:$0xf] }
0x177d   :  { %v4542_v29 = vpop.f32.mrb[138].mxu1  ;;  %v4930_v27 = vld [vmem:[%s10670_s14 + $0xc] sm:$0xf] }
0x177e   :  { %v8407_v32 = vpop.f32.mrb[139].mxu1  ;;  %v4687_v22 = vsel %vm1251_vm8, %v4683_v19, -inf }
0x177f   :  { %4688 = vmax.xlane.f32.xlu0 %v4687_v22 }
0x1783   :  { %v4631_v30 = vpop.f32.mrb[140].mxu1 }
0x1784   :  { %v4685_v33 = vmul.f32 0.35355338, %v4631_v30  ;;  %v8418_v35 = vpop.f32.mrb[141].mxu1  ;;  %v5073_v30 = vsel %vm1504_vm10, %v4930_v27, 0 }
0x1785   :  { %v4634_v37 = vpop.f32.mrb[142].mxu1 }
0x1786   :  { %v8419_v25 = vpop.f32.mrb[143].mxu1  ;;  %v4693_v60 = vsel %vm1251_vm8, %v4685_v33, -inf }
0x1787   :  { %4694 = vmax.xlane.f32.xlu0 %v4693_v60 }
0x17f4   :  { %v4692_v7 = vpop.xlane.xlu1 %4691 }
0x17f5   :  { %v4700_v39 = vsub.f32 %v4684_v13, %v4692_v7  ;;  %v4434_v13 = vadd.f32 %v7396_v12, %v10140_v6  ;;  %v4928_v6 = vld [vmem:[%s10670_s14 + $0x4] sm:$0xf] }
0x17f6   :  { %v4981_v24 = vsel %vm1504_vm10, %v4928_v6, 0 }
0x17f7   :  { %v4705_v40 = vmul.f32 1.442695, %v4700_v39  ;;  %v4737_v15 = vpack.c.bf16 %v4434_v13, %v4434_v13 }
0x17f9   :  { %8920 = vpow2.f32 %v4705_v40  ;;  %v4929_v40 = vld [vmem:[%s10670_s14 + $0x8] sm:$0xf] }
0x17fc   :  { %v4698_v41 = vpop.xlane.xlu1 %4697 }
0x17fd   :  { %v4702_v42 = vsub.f32 %v4686_v18, %v4698_v41  ;;  %v4835_v18 = vand.u32 %v4737_v15, %v9369_v23  ;;  %v7422_v15 = vld [vmem:[%s10671_s15] ss:$0 sm:$0xff] }
0x17ff   :  { %v4709_v45 = vmul.f32 1.442695, %v4702_v42 }
0x1801   :  { %8922 = vpow2.f32 %v4709_v45 }
0x1803   :  { %v8921_v46 = vpop.eup %8920 }
0x1804   :  { %v4714_v47 = vsel %vm1251_vm8, %v8921_v46, 0.0 }
0x1805   :  { %4715 = vadd.xlane.f32.xlu1 %v4714_v47 }
0x180b   :  { %v8923_v49 = vpop.eup %8922 }
0x180c   :  { %v4689_v48 = vpop.xlane.xlu0 %4688  ;;  %v4720_v50 = vsel %vm1251_vm8, %v8923_v49, 0.0 }
0x180d   :  { %v4699_v36 = vsub.f32 %v4683_v19, %v4689_v48  ;;  %4721 = vadd.xlane.f32.xlu1 %v4720_v50  ;;  %v4935_v19 = vsel %vm1504_vm10, %v4927_v26, 0  ;;  %v8818_v26 = vld [vmem:[%s10672_s18] sm:$0xff]  }
0x180f   :  { %v4703_v53 = vmul.f32 1.442695, %v4699_v36 }
0x1811   :  { %8924 = vpow2.f32 %v4703_v53 }
0x1814   :  { %v4695_v54 = vpop.xlane.xlu0 %4694 }
0x1815   :  { %v4701_v55 = vsub.f32 %v4685_v33, %v4695_v54 }
0x1817   :  { %v4707_v56 = vmul.f32 1.442695, %v4701_v55 }
0x1819   :  { %8926 = vpow2.f32 %v4707_v56 }
0x181b   :  { %v8925_v57 = vpop.eup %8924 }
0x181c   :  { %v4711_v28 = vsel %vm1251_vm8, %v8925_v57, 0.0 }
0x181d   :  { %4712 = vadd.xlane.f32.xlu0 %v4711_v28 }
0x1823   :  { %v8927_v58 = vpop.eup %8926 }
0x1824   :  { %v4717_v59 = vsel %vm1251_vm8, %v8927_v58, 0.0 }
0x1825   :  { %4718 = vadd.xlane.f32.xlu0 %v4717_v59 }
0x1892   :  { %v4716_v43 = vpop.xlane.xlu1 %4715 }
0x1893   :  { %8928 = vrcp.f32 %v4716_v43 }
0x189a   :  { %v4722_v63 = vpop.xlane.xlu1 %4721 }
0x189b   :  { %8930 = vrcp.f32 %v4722_v63 }
0x189d   :  { %v8929_v0 = vpop.eup %8928 }
0x189e   :  { %v4728_v2 = vmul.f32 %v8929_v0, %v8921_v46  ;;  %v5027_v46 = vsel %vm1504_vm10, %v4929_v40, 0  ;;  %v8823_v40 = vld [vmem:[%s10675_s20 + $0x18] sm:$0xff]  }
0x18a0   :  { %v4732_v4 = vpack.c.bf16 %v4728_v2, %v4728_v2 }
0x18a2   :  { %8435 = vmatmul.mubr.msk.bf16.vlgmr.msra.gmra.mrb[136].mxu0 %vm1304_vm9, %v4732_v4 }
0x18a3   :  { %8445 = vmatpush3.bf16.msra.mxu0 %v4881_v5  ;;  %8446 = vmatprep.mubr.msk.bf16.mxu0 %vm8970_vm3, %v8969_v51 }
0x18a4   :  { %8456 = vmatprep.subr.bf16.mxu0 %v8969_v51 }
0x18a5   :  { %v8931_v8 = vpop.eup %8930 }
0x18a6   :  { %v4730_v9 = vmul.f32 %v8931_v8, %v8923_v49 }
0x18a8   :  { %v4734_v10 = vpack.c.bf16 %v4730_v9, %v4730_v9 }
0x18aa   :  { %v4713_v31 = vpop.xlane.xlu0 %4712  ;;  %8447 = vmatmul.mubr.msk.bf16.vlgmr.msra.gmra.mrb[140].mxu0 %vm1304_vm9, %v4734_v10 }
0x18ab   :  { %8932 = vrcp.f32 %v4713_v31  ;;  %8458 = vmatprep.mubr.msk.bf16.mxu0 %vm8970_vm3, %v8969_v51  ;;  %8457 = vmatpush3.bf16.msra.mxu0 %v4981_v24 }
0x18ac   :  { %8468 = vmatprep.subr.bf16.mxu0 %v8969_v51 }
0x18b2   :  { %v4719_v14 = vpop.xlane.xlu0 %4718 }
0x18b3   :  { %8934 = vrcp.f32 %v4719_v14 }
0x18b5   :  { %v8933_v38 = vpop.eup %8932 }
0x18b6   :  { %v4727_v16 = vmul.f32 %v8933_v38, %v8925_v57 }
0x18b8   :  { %v4731_v17 = vpack.c.bf16 %v4727_v16, %v4727_v16 }
0x18ba   :  { %8429 = vmatmul.mubr.msk.bf16.vlgmr.msra.gmra.mrb[144].mxu1 %vm1304_vm9, %v4731_v17 }
0x18bb   :  { %8439 = vmatpush3.bf16.msra.mxu1 %v4835_v18  ;;  %8440 = vmatprep.mubr.msk.bf16.mxu1 %vm8970_vm3, %v8969_v51 }
0x18bc   :  { %8450 = vmatprep.subr.bf16.mxu1 %v8969_v51 }
0x18bd   :  { %v8935_v44 = vpop.eup %8934 }
0x18be   :  { %v4729_v20 = vmul.f32 %v8935_v44, %v8927_v58 }
0x18c0   :  { %v4733_v21 = vpack.c.bf16 %v4729_v20, %v4729_v20 }
0x18c2   :  { %8441 = vmatmul.mubr.msk.bf16.vlgmr.msra.gmra.mrb[148].mxu1 %vm1304_vm9, %v4733_v21 }
0x18c3   :  { %8452 = vmatprep.mubr.msk.bf16.mxu1 %vm8970_vm3, %v8969_v51  ;;  %8451 = vmatpush3.bf16.msra.mxu1 %v4935_v19 }
0x18c4   :  { %8462 = vmatprep.subr.bf16.mxu1 %v8969_v51 }
0x1975   :  { %v4825_v29 = vpop.f32.mrb[136].mxu0 }
0x1976   :  { %v4924_v32 = vpack.c.bf16 %v4825_v29, %v4825_v29  ;;  %v8436_v22 = vpop.f32.mrb[137].mxu0 }
0x1977   :  { %v4828_v33 = vpop.f32.mrb[138].mxu0  ;;  %v7423_v22 = vld [vmem:[%s10673_s16] ss:$0 sm:$0xff] }
0x1978   :  { %v8437_v35 = vpop.f32.mrb[139].mxu0  ;;  %8459 = vmatmul.mubr.msk.bf16.vlgmr.msra.gmra.mrb[144].mxu0 %vm1062_vm5, %v4924_v32  ;;  %v7424_v33 = vld [vmem:[%s10674_s17] ss:$0 sm:$0xff] }
0x1979   :  { %8469 = vmatpush3.bf16.msra.mxu0 %v5073_v30  ;;  %8470 = vmatprep.mubr.msk.bf16.mxu0 %vm8970_vm3, %v8969_v51 }
0x197a   :  { %8482 = vmatprep.subr.bf16.mxu0 %v8969_v51 }
0x197d   :  { %v4917_v37 = vpop.f32.mrb[140].mxu0 }
0x197e   :  { %v4926_v25 = vpack.c.bf16 %v4917_v37, %v4917_v37  ;;  %v8448_v60 = vpop.f32.mrb[141].mxu0 }
0x197f   :  { %v4920_v7 = vpop.f32.mrb[142].mxu0  ;;  %v8820_v60 = vld [vmem:[%s10675_s20] sm:$0xff]  }
0x1980   :  { %v8449_v39 = vpop.f32.mrb[143].mxu0  ;;  %8471 = vmatmul.mubr.msk.bf16.vlgmr.msra.gmra.mrb[148].mxu0 %vm1062_vm5, %v4926_v25  ;;  %v8821_v7 = vld [vmem:[%s10675_s20 + $0x8] sm:$0xff]  }
0x1981   :  { %8498 = vmatprep.mubr.msk.bf16.mxu0 %vm8970_vm3, %v8969_v51  ;;  %8483 = vmatpush3.bf16.msra.mxu0 %v8820_v60  ;;  %v8822_v39 = vld [vmem:[%s10675_s20 + $0x10] sm:$0xff]   ;;  %v8843_v60 = vld [vmem:[%s10709_s9 + $0x68] sm:$0xff]  }
0x1982   :  { %8484 = vmatprep.subr.bf16.mxu0 %v8969_v51 }
0x1985   :  { %8485 = vmatpush3.bf16.msra.mxu0 %v8821_v7  ;;  %v8844_v7 = vld [vmem:[%s10708_s26 + $0x50] sm:$0xff]  }
0x1986   :  { %8486 = vmatprep.subr.bf16.mxu0 %v8969_v51 }
0x1989   :  { %8487 = vmatpush3.bf16.msra.mxu0 %v8822_v39  ;;  %v8845_v39 = vld [vmem:[%s10708_s26 + $0x58] sm:$0xff]  }
0x198a   :  { %8488 = vmatprep.subr.bf16.mxu0 %v8969_v51 }
0x198d   :  { %v4779_v41 = vpop.f32.mrb[144].mxu1  ;;  %8489 = vmatpush3.bf16.msra.mxu0 %v8823_v40  ;;  %v8846_v40 = vld [vmem:[%s10708_s26 + $0x70] sm:$0xff]  }
0x198e   :  { %v4923_v42 = vpack.c.bf16 %v4779_v41, %v4779_v41  ;;  %v8430_v45 = vpop.f32.mrb[145].mxu1  ;;  %8490 = vmatprep.subr.bf16.mxu0 %v8969_v51  ;;  %v8824_v41 = vld [vmem:[%s10675_s20 + $0x20] sm:$0xff]  }
0x198f   :  { %v4782_v47 = vpop.f32.mrb[146].mxu1  ;;  %v8826_v45 = vld [vmem:[%s10675_s20 + $0x30] sm:$0xff]  }
0x1990   :  { %v8431_v49 = vpop.f32.mrb[147].mxu1  ;;  %8453 = vmatmul.mubr.msk.bf16.vlgmr.msra.gmra.mrb[152].mxu1 %vm1062_vm5, %v4923_v42  ;;  %v8825_v42 = vld [vmem:[%s10675_s20 + $0x28] sm:$0xff]   ;;  %v7425_v47 = vld [vmem:[%s10676_s19] ss:$0 sm:$0xff] }
0x1991   :  { %8463 = vmatpush3.bf16.msra.mxu1 %v5027_v46  ;;  %8464 = vmatprep.mubr.msk.bf16.mxu1 %vm8970_vm3, %v8969_v51  ;;  %v8827_v46 = vld [vmem:[%s10675_s20 + $0x38] sm:$0xff]  }
0x1992   :  { %8474 = vmatprep.subr.bf16.mxu1 %v8969_v51  ;;  %8491 = vmatpush3.bf16.msra.mxu0 %v8824_v41  ;;  %v8847_v41 = vld [vmem:[%s10708_s26 + $0x78] sm:$0xff]  }
0x1993   :  { %8492 = vmatprep.subr.bf16.mxu0 %v8969_v51 }
0x1995   :  { %v4871_v48 = vpop.f32.mrb[148].mxu1 }
0x1996   :  { %v4925_v50 = vpack.c.bf16 %v4871_v48, %v4871_v48  ;;  %v8442_v36 = vpop.f32.mrb[149].mxu1  ;;  %8493 = vmatpush3.bf16.msra.mxu0 %v8825_v42  ;;  %v8848_v42 = vld [vmem:[%s10709_s9 + $0x50] sm:$0xff]  }
0x1997   :  { %v4874_v53 = vpop.f32.mrb[150].mxu1  ;;  %8494 = vmatprep.subr.bf16.mxu0 %v8969_v51 }
0x1998   :  { %v8443_v54 = vpop.f32.mrb[151].mxu1  ;;  %8465 = vmatmul.mubr.msk.bf16.vlgmr.msra.gmra.mrb[156].mxu1 %vm1062_vm5, %v4925_v50 }
0x1999   :  { %8478 = vmatprep.mubr.msk.bf16.mxu1 %vm8970_vm3, %v8969_v51  ;;  %8475 = vmatpush3.bf16.msra.mxu1 %v8818_v26  ;;  %v8832_v26 = vld [vmem:[%s10706_s2 + $0x50] sm:$0xff]  }
0x199a   :  { %8476 = vmatprep.subr.bf16.mxu1 %v8969_v51  ;;  %8495 = vmatpush3.bf16.msra.mxu0 %v8826_v45  ;;  %v8849_v45 = vld [vmem:[%s10709_s9 + $0x58] sm:$0xff]  }
0x199b   :  { %8496 = vmatprep.subr.bf16.mxu0 %v8969_v51 }
0x199e   :  { %8497 = vmatpush3.bf16.msra.mxu0 %v8827_v46  ;;  %v8850_v46 = vld [vmem:[%s10709_s9 + $0x70] sm:$0xff]  }
0x199f   :  { %8534 = vmatprep.subr.bf16.mxu0 %v8969_v51 }
0x1a4b   :  { %v5017_v55 = vpop.f32.mrb[144].mxu0 }
0x1a4c   :  { %v8460_v56 = vpop.f32.mrb[145].mxu0  ;;  %v5116_v63 = vsel %vm235_vm2, %v5017_v55, 0.0 }
0x1a4d   :  { %v5020_v57 = vpop.f32.mrb[146].mxu0 }
0x1a4e   :  { %v8461_v28 = vpop.f32.mrb[147].mxu0 }
0x1a53   :  { %v5109_v58 = vpop.f32.mrb[148].mxu0 }
0x1a54   :  { %v8472_v59 = vpop.f32.mrb[149].mxu0  ;;  %v5120_v13 = vsel %vm235_vm2, %v5109_v58, 0.0 }
0x1a55   :  { %v5112_v43 = vpop.f32.mrb[150].mxu0 }
0x1a56   :  { %v8473_v61 = vpop.f32.mrb[151].mxu0  ;;  %v7430_v43 = vld [vmem:[%s10677_s21] ss:$0 sm:$0xff] }
0x1a63   :  { %v4971_v62 = vpop.f32.mrb[152].mxu1 }
0x1a64   :  { %v5115_v0 = vsel %vm235_vm2, %v4971_v62, 0.0  ;;  %v8454_v1 = vpop.f32.mrb[153].mxu1 }
0x1a65   :  { %v5117_v2 = vadd.f32 %v5116_v63, %v5115_v0  ;;  %v4974_v4 = vpop.f32.mrb[154].mxu1 }
0x1a66   :  { %v8455_v5 = vpop.f32.mrb[155].mxu1 }
0x1a6b   :  { %v5063_v8 = vpop.f32.mrb[156].mxu1 }
0x1a6c   :  { %v5118_v9 = vsel %vm235_vm2, %v5063_v8, 0.0  ;;  %v8466_v10 = vpop.f32.mrb[157].mxu1 }
0x1a6d   :  { %v5119_v31 = vadd.f32 %v5118_v9, %v5117_v2  ;;  %v5066_v12 = vpop.f32.mrb[158].mxu1 }
0x1a6e   :  { %v8467_v14 = vpop.f32.mrb[159].mxu1  ;;  %v8828_v12 = vld [vmem:[%s10706_s2 + $0x40] sm:$0xff]  }
0x1a6f   :  { %v5121_v38 = vadd.f32 %v5120_v13, %v5119_v31  ;;  %v8829_v13 = vld [vmem:[%s10708_s26 + $0x40] sm:$0xff]   ;;  %v8830_v14 = vld [vmem:[%s10706_s2 + $0x48] sm:$0xff]  }
0x1a71   :  { %v5122_v16 = vadd.f32 %v5121_v38, %v9850_v11  ;;  %v8819_v11 = vld [vmem:[%s10672_s18 + $0x8] sm:$0xff]  }
0x1a72   :  { %8477 = vmatpush3.bf16.msra.mxu1 %v8819_v11  ;;  %v8831_v38 = vld [vmem:[%s10708_s26 + $0x48] sm:$0xff]   ;;  %v8833_v11 = vld [vmem:[%s10708_s26 + $0x60] sm:$0xff]  }
0x1a73   :  { %v10215_v17 = vadd.f32 %v7422_v15, %v5122_v16  ;;  %8502 = vmatprep.subr.bf16.mxu1 %v8969_v51 }
0x1a75   :  { %v5133_v18 = vsel %vm235_vm2, %v10215_v17, 0.0 }
0x1a76   :  { %5134 = vadd.xlane.f32.xlu0 %v5133_v18 }
0x1b03   :  { %v5135_v44 = vpop.xlane.xlu0 %5134 }
0x1b04   :  { %v5136_v20 = vmul.f32 0.03125, %v5135_v44  ;;  %v7441_v44 = vld [vmem:[%s10707_s4 + $0x1] ss:$0 sm:$0xff] }
0x1b06   :  { %v5137_v21 = vsub.f32 %v10215_v17, %v5136_v20 }
0x1b08   :  { %v5138_v6 = vmul.f32 %v5137_v21, %v5137_v21 }
0x1b0a   :  { %v5139_v24 = vsel %vm235_vm2, %v5138_v6, 0.0 }
0x1b0b   :  { %5140 = vadd.xlane.f32.xlu1 %v5139_v24 }
0x1b98   :  { %v5141_v19 = vpop.xlane.xlu1 %5140 }
0x1b99   :  { %v5142_v27 = vmul.f32 0.03125, %v5141_v19 }
0x1b9b   :  { %v5143_v29 = vadd.f32 1e-05, %v5142_v27  ;;  %v8834_v27 = vld [vmem:[%s10706_s2 + $0x58] sm:$0xff]  }
0x1b9d   :  { %8936 = vrsqrt.f32 %v5143_v29  ;;  %v8835_v29 = vld [vmem:[%s10708_s26 + $0x68] sm:$0xff]  }
0x1ba7   :  { %v8937_v32 = vpop.eup %8936 }
0x1ba8   :  { %v5145_v30 = vmul.f32 %v8937_v32, %v5137_v21  ;;  %v7442_v21 = vld [vmem:[%s10666_s7 + $0x1] ss:$0 sm:$0xff] }
0x1ba9   :  { %v8836_v32 = vld [vmem:[%s10706_s2 + $0x60] sm:$0xff]  }
0x1baa   :  { %v5152_v35 = vmul.f32 %v7423_v22, %v5145_v30  ;;  %v8837_v22 = vld [vmem:[%s10709_s9 + $0x40] sm:$0xff]   ;;  %v8838_v30 = vld [vmem:[%s10706_s2 + $0x68] sm:$0xff]  }
0x1bac   :  { %v5159_v37 = vadd.f32 %v7424_v33, %v5152_v35  ;;  %v8839_v33 = vld [vmem:[%s10709_s9 + $0x48] sm:$0xff]   ;;  %v8840_v35 = vld [vmem:[%s10706_s2 + $0x70] sm:$0xff]  }
0x1bae   :  { %v5160_v25 = vpack.c.bf16 %v5159_v37, %v5159_v37  ;;  %v8841_v37 = vld [vmem:[%s10709_s9 + $0x60] sm:$0xff]  }
0x1bb0   :  { %8479 = vmatmul.mubr.msk.bf16.vlgmr.msra.gmra.mrb[160].mxu1 %vm350_vm4, %v5160_v25  ;;  %v8842_v25 = vld [vmem:[%s10706_s2 + $0x78] sm:$0xff]  }
0x1bb1   :  { %8506 = vmatprep.mubr.msk.bf16.mxu1 %vm8970_vm3, %v8969_v51  ;;  %8503 = vmatpush3.bf16.msra.mxu1 %v8828_v12 }
0x1bb2   :  { %8504 = vmatprep.subr.bf16.mxu1 %v8969_v51 }
0x1bb5   :  { %8505 = vmatpush3.bf16.msra.mxu1 %v8830_v14 }
0x1bb6   :  { %8510 = vmatprep.subr.bf16.mxu1 %v8969_v51 }
0x1c83   :  { %v5221_v49 = vpop.f32.mrb[160].mxu1 }
0x1c84   :  { %v5222_v48 = vadd.f32 %v7425_v47, %v5221_v49  ;;  %v8480_v50 = vpop.f32.mrb[161].mxu1  ;;  %v8851_v47 = vld [vmem:[%s10709_s9 + $0x78] sm:$0xff]   ;;  %v7499_v49 = vld [vmem:[%s10667_s12 + $0x4] ss:$0 sm:$0xff] }
0x1c85   :  { %v5224_v36 = vpop.f32.mrb[162].mxu1 }
0x1c86   :  { %v7429_v53 = vmul.f32 -1.702, %v5222_v48  ;;  %v8481_v54 = vpop.f32.mrb[163].mxu1 }
0x1c88   :  { %v5229_v55 = vmul.f32 1.442695, %v7429_v53 }
0x1c8a   :  { %8938 = vpow2.f32 %v5229_v55 }
0x1c94   :  { %v8939_v56 = vpop.eup %8938 }
0x1c95   :  { %v5231_v57 = vadd.f32 1.0, %v8939_v56 }
0x1c97   :  { %8940 = vrcp.f32 %v5231_v57 }
0x1ca1   :  { %v8941_v28 = vpop.eup %8940 }
0x1ca2   :  { %v5234_v58 = vmul.f32 %v8941_v28, %v5222_v48 }
0x1ca4   :  { %v5235_v59 = vpack.c.bf16 %v5234_v58, %v5234_v58 }
0x1ca6   :  { %8499 = vmatmul.mubr.bf16.vlgmr.msra.gmra.mrb[152].mxu0 %v5235_v59  ;;  %v7463_v59 = vld [vmem:[%s10668_s11 + $0x4] ss:$0 sm:$0xff] }
0x1ca7   :  { %8538 = vmatprep.mubr.msk.bf16.mxu0 %vm8970_vm3, %v8969_v51  ;;  %8535 = vmatpush3.bf16.msra.mxu0 %v8829_v13 }
0x1ca8   :  { %8536 = vmatprep.subr.bf16.mxu0 %v8969_v51 }
0x1cab   :  { %8537 = vmatpush3.bf16.msra.mxu0 %v8831_v38  ;;  %v7465_v38 = vld [vmem:[%s10668_s11 + $0x6] ss:$0 sm:$0xff] }
0x1cac   :  { %8550 = vmatprep.subr.bf16.mxu0 %v8969_v51 }
0x1d79   :  { %v5341_v61 = vpop.f32.mrb[152].mxu0 }
0x1d7a   :  { %v5342_v62 = vadd.f32 %v7430_v43, %v5341_v61  ;;  %v8500_v63 = vpop.f32.mrb[153].mxu0  ;;  %v7501_v61 = vld [vmem:[%s10667_s12 + $0x6] ss:$0 sm:$0xff] }
0x1d7b   :  { %v5344_v0 = vpop.f32.mrb[154].mxu0 }
0x1d7c   :  { %v10279_v1 = vadd.f32 %v5342_v62, %v10215_v17  ;;  %v8501_v2 = vpop.f32.mrb[155].mxu0 }
0x1d7e   :  { %v5350_v4 = vsel %vm235_vm2, %v10279_v1, 0.0 }
0x1d7f   :  { %5351 = vadd.xlane.f32.xlu0 %v5350_v4 }
0x1e0c   :  { %v5352_v5 = vpop.xlane.xlu0 %5351 }
0x1e0d   :  { %v5353_v8 = vmul.f32 0.03125, %v5352_v5 }
0x1e0f   :  { %v5354_v9 = vsub.f32 %v10279_v1, %v5353_v8 }
0x1e11   :  { %v5355_v10 = vmul.f32 %v5354_v9, %v5354_v9 }
0x1e13   :  { %v5356_v31 = vsel %vm235_vm2, %v5355_v10, 0.0 }
0x1e14   :  { %5357 = vadd.xlane.f32.xlu1 %v5356_v31 }
0x1ea1   :  { %v5358_v15 = vpop.xlane.xlu1 %5357 }
0x1ea2   :  { %v5359_v16 = vmul.f32 0.03125, %v5358_v15  ;;  %v7535_v15 = vld [vmem:[%s10669_s13 + $0x4] ss:$0 sm:$0xff] }
0x1ea4   :  { %v5360_v17 = vadd.f32 1e-05, %v5359_v16 }
0x1ea6   :  { %8942 = vrsqrt.f32 %v5360_v17 }
0x1eb0   :  { %v8943_v18 = vpop.eup %8942 }
0x1eb1   :  { %v5362_v20 = vmul.f32 %v8943_v18, %v5354_v9 }
0x1eb3   :  { %v5369_v6 = vmul.f32 %v7441_v44, %v5362_v20 }
0x1eb5   :  { %v5376_v24 = vadd.f32 %v7442_v21, %v5369_v6 }
0x1eb7   :  { %v10313_v19 = vpack.c.bf16 %v5376_v24, %v5376_v24 }
0x1eb9   :  { %8507 = vmatmul.mubr.msk.bf16.vlgmr.msra.gmra.mrb[164].mxu1 %vm350_vm4, %v10313_v19  ;;  %8539 = vmatmul.mubr.msk.bf16.vlgmr.msra.gmra.mrb[156].mxu0 %vm350_vm4, %v10313_v19 }
0x1eba   :  { %8511 = vmatpush3.bf16.msra.mxu1 %v8832_v26  ;;  %8551 = vmatpush3.bf16.msra.mxu0 %v8833_v11 }
0x1ebb   :  { %8512 = vmatprep.subr.bf16.mxu1 %v8969_v51  ;;  %8552 = vmatprep.subr.bf16.mxu0 %v8969_v51 }
0x1ebc   :  { %8514 = vmatprep.mubr.msk.bf16.mxu1 %vm8970_vm3, %v8969_v51  ;;  %8554 = vmatprep.mubr.msk.bf16.mxu0 %vm8970_vm3, %v8969_v51 }
0x1ebe   :  { %8513 = vmatpush3.bf16.msra.mxu1 %v8834_v27  ;;  %8553 = vmatpush3.bf16.msra.mxu0 %v8835_v29 }
0x1ebf   :  { %8518 = vmatprep.subr.bf16.mxu1 %v8969_v51  ;;  %8566 = vmatprep.subr.bf16.mxu0 %v8969_v51 }
0x1ec1   :  { %8515 = vmatmul.mubr.msk.bf16.vlgmr.msra.gmra.mrb[168].mxu1 %vm350_vm4, %v10313_v19  ;;  %8555 = vmatmul.mubr.msk.bf16.vlgmr.msra.gmra.mrb[160].mxu0 %vm350_vm4, %v10313_v19 }
0x1ec2   :  { %8519 = vmatpush3.bf16.msra.mxu1 %v8836_v32  ;;  %8567 = vmatpush3.bf16.msra.mxu0 %v8837_v22 }
0x1ec3   :  { %8520 = vmatprep.subr.bf16.mxu1 %v8969_v51  ;;  %8568 = vmatprep.subr.bf16.mxu0 %v8969_v51 }
0x1ec4   :  { %8522 = vmatprep.mubr.msk.bf16.mxu1 %vm8970_vm3, %v8969_v51  ;;  %8570 = vmatprep.mubr.msk.bf16.mxu0 %vm8970_vm3, %v8969_v51 }
0x1ec6   :  { %8521 = vmatpush3.bf16.msra.mxu1 %v8838_v30  ;;  %8569 = vmatpush3.bf16.msra.mxu0 %v8839_v33 }
0x1ec7   :  { %8526 = vmatprep.subr.bf16.mxu1 %v8969_v51  ;;  %8582 = vmatprep.subr.bf16.mxu0 %v8969_v51 }
0x1ec9   :  { %8523 = vmatmul.mubr.msk.bf16.vlgmr.msra.gmra.mrb[172].mxu1 %vm350_vm4, %v10313_v19  ;;  %8571 = vmatmul.mubr.msk.bf16.vlgmr.msra.gmra.mrb[164].mxu0 %vm350_vm4, %v10313_v19 }
0x1eca   :  { %8527 = vmatpush3.bf16.msra.mxu1 %v8840_v35  ;;  %8583 = vmatpush3.bf16.msra.mxu0 %v8841_v37 }
0x1ecb   :  { %8528 = vmatprep.subr.bf16.mxu1 %v8969_v51  ;;  %8584 = vmatprep.subr.bf16.mxu0 %v8969_v51 }
0x1ecc   :  { %8530 = vmatprep.mubr.msk.bf16.mxu1 %vm8970_vm3, %v8969_v51  ;;  %8586 = vmatprep.mubr.msk.bf16.mxu0 %vm8970_vm3, %v8969_v51 }
0x1ece   :  { %8529 = vmatpush3.bf16.msra.mxu1 %v8842_v25  ;;  %8585 = vmatpush3.bf16.msra.mxu0 %v8843_v60 }
0x1ecf   :  { %8542 = vmatprep.subr.bf16.mxu1 %v8969_v51  ;;  %8598 = vmatprep.subr.bf16.mxu0 %v8969_v51 }
0x1ed1   :  { %8531 = vmatmul.mubr.msk.bf16.vlgmr.msra.gmra.mrb[176].mxu1 %vm350_vm4, %v10313_v19  ;;  %8587 = vmatmul.mubr.msk.bf16.vlgmr.msra.gmra.mrb[168].mxu0 %vm350_vm4, %v10313_v19 }
0x1ed2   :  { %8543 = vmatpush3.bf16.msra.mxu1 %v8844_v7  ;;  %8546 = vmatprep.mubr.msk.bf16.mxu1 %vm8970_vm3, %v8969_v51  ;;  %v7500_v7 = vld [vmem:[%s10667_s12 + $0x5] ss:$0 sm:$0xff] }
0x1ed3   :  { %8544 = vmatprep.subr.bf16.mxu1 %v8969_v51  ;;  %8600 = vmatprep.mubr.msk.bf16.mxu0 %vm8970_vm3, %v8969_v51 }
0x1ed6   :  { %8545 = vmatpush3.bf16.msra.mxu1 %v8845_v39 }
0x1ed7   :  { %8558 = vmatprep.subr.bf16.mxu1 %v8969_v51 }
0x1ed9   :  { %8547 = vmatmul.mubr.msk.bf16.vlgmr.msra.gmra.mrb[180].mxu1 %vm350_vm4, %v10313_v19 }
0x1eda   :  { %8559 = vmatpush3.bf16.msra.mxu1 %v8846_v40  ;;  %8562 = vmatprep.mubr.msk.bf16.mxu1 %vm8970_vm3, %v8969_v51 }
0x1edb   :  { %8560 = vmatprep.subr.bf16.mxu1 %v8969_v51 }
0x1ede   :  { %8561 = vmatpush3.bf16.msra.mxu1 %v8847_v41 }
0x1edf   :  { %8574 = vmatprep.subr.bf16.mxu1 %v8969_v51 }
0x1ee1   :  { %8563 = vmatmul.mubr.msk.bf16.vlgmr.msra.gmra.mrb[184].mxu1 %vm350_vm4, %v10313_v19 }
0x1ee2   :  { %8575 = vmatpush3.bf16.msra.mxu1 %v8848_v42  ;;  %8578 = vmatprep.mubr.msk.bf16.mxu1 %vm8970_vm3, %v8969_v51 }
0x1ee3   :  { %8576 = vmatprep.subr.bf16.mxu1 %v8969_v51 }
0x1ee6   :  { %8577 = vmatpush3.bf16.msra.mxu1 %v8849_v45 }
0x1ee7   :  { %8590 = vmatprep.subr.bf16.mxu1 %v8969_v51 }
0x1ee9   :  { %8579 = vmatmul.mubr.msk.bf16.vlgmr.msra.gmra.mrb[188].mxu1 %vm350_vm4, %v10313_v19 }
0x1eea   :  { %8591 = vmatpush3.bf16.msra.mxu1 %v8850_v46  ;;  %8594 = vmatprep.mubr.msk.bf16.mxu1 %vm8970_vm3, %v8969_v51 }
0x1eeb   :  { %8592 = vmatprep.subr.bf16.mxu1 %v8969_v51 }
0x1eee   :  { %8593 = vmatpush3.bf16.msra.mxu1 %v8851_v47  ;;  %v7464_v47 = vld [vmem:[%s10668_s11 + $0x5] ss:$0 sm:$0xff] }
0x1eef   :  { %8604 = vmatprep.subr.bf16.mxu1 %v8969_v51 }
0x1ef1   :  { %8595 = vmatmul.mubr.msk.bf16.vlgmr.msra.gmra.mrb[192].mxu1 %vm350_vm4, %v10313_v19 }
0x1ef2   :  { %8606 = vmatprep.mubr.msk.bf16.mxu1 %vm8970_vm3, %v8969_v51 }
0x1f8c   :  { %v5471_v48 = vpop.f32.mrb[164].mxu1  ;;  %v5723_v50 = vpop.f32.mrb[156].mxu0 }
0x1f8d   :  { %v5724_v36 = vadd.f32 %v7499_v49, %v5723_v50  ;;  %v8508_v53 = vpop.f32.mrb[165].mxu1  ;;  %v8540_v54 = vpop.f32.mrb[157].mxu0  ;;  %v5472_v62 = vadd.f32 %v7463_v59, %v5471_v48  ;;  %v7502_v48 = vld [vmem:[%s10667_s12 + $0x7] ss:$0 sm:$0xff] }
0x1f8e   :  { %v5474_v55 = vpop.f32.mrb[166].mxu1  ;;  %v5726_v56 = vpop.f32.mrb[158].mxu0 }
0x1f8f   :  { %v6141_v57 = vpack.c.bf16 %v5724_v36, %v5724_v36  ;;  %v8509_v28 = vpop.f32.mrb[167].mxu1  ;;  %v8541_v58 = vpop.f32.mrb[159].mxu0  ;;  %v6137_v10 = vpack.c.bf16 %v5472_v62, %v5472_v62 }
0x1f90   :  { %v7466_v58 = vld [vmem:[%s10668_s11 + $0x7] ss:$0 sm:$0xff] }
0x1f91   :  { %v6149_v43 = vsel %vm1062_vm5, %v6141_v57, 0 }
0x1f92   :  { %8599 = vmatpush3.bf16.xpose.msra.mxu0 %v6149_v43  ;;  %v7536_v43 = vld [vmem:[%s10669_s13 + $0x5] ss:$0 sm:$0xff] }
0x1f93   :  { %8610 = vmatprep.subr.bf16.mxu0 %v8969_v51 }
0x1f94   :  { %v5523_v63 = vpop.f32.mrb[168].mxu1  ;;  %v5827_v0 = vpop.f32.mrb[160].mxu0 }
0x1f95   :  { %v5828_v2 = vadd.f32 %v7501_v61, %v5827_v0  ;;  %v8516_v4 = vpop.f32.mrb[169].mxu1  ;;  %v8556_v5 = vpop.f32.mrb[161].mxu0  ;;  %v5524_v50 = vadd.f32 %v7464_v47, %v5523_v63 }
0x1f96   :  { %v5526_v8 = vpop.f32.mrb[170].mxu1  ;;  %v5830_v9 = vpop.f32.mrb[162].mxu0 }
0x1f97   :  { %v6143_v31 = vpack.c.bf16 %v5828_v2, %v5828_v2  ;;  %v8517_v12 = vpop.f32.mrb[171].mxu1  ;;  %v8557_v13 = vpop.f32.mrb[163].mxu0  ;;  %v6138_v56 = vpack.c.bf16 %v5524_v50, %v5524_v50 }
0x1f99   :  { %v6241_v14 = vsel %vm1062_vm5, %v6143_v31, 0  ;;  %8601 = vmatmul.mubr.msk.bf16.vlgmr.msra.gmra.mrb[172].mxu0 %vm1062_vm5, %v6137_v10 }
0x1f9a   :  { %8611 = vmatpush3.bf16.xpose.msra.mxu0 %v6241_v14  ;;  %8612 = vmatprep.mubr.msk.bf16.mxu0 %vm8970_vm3, %v8969_v51 }
0x1f9b   :  { %8622 = vmatprep.subr.bf16.mxu0 %v8969_v51 }
0x1f9c   :  { %v5575_v16 = vpop.f32.mrb[172].mxu1  ;;  %v5975_v17 = vpop.f32.mrb[164].mxu0 }
0x1f9d   :  { %v5576_v18 = vadd.f32 %v7465_v38, %v5575_v16  ;;  %v5976_v44 = vadd.f32 %v7535_v15, %v5975_v17  ;;  %v8524_v20 = vpop.f32.mrb[173].mxu1  ;;  %v8572_v21 = vpop.f32.mrb[165].mxu0 }
0x1f9e   :  { %v5578_v6 = vpop.f32.mrb[174].mxu1  ;;  %v5978_v24 = vpop.f32.mrb[166].mxu0 }
0x1f9f   :  { %v6139_v26 = vpack.c.bf16 %v5576_v18, %v5576_v18  ;;  %v6381_v11 = vpack.c.bf16 %v5976_v44, %v5976_v44  ;;  %v8525_v19 = vpop.f32.mrb[175].mxu1  ;;  %v8573_v27 = vpop.f32.mrb[167].mxu0 }
0x1fa1   :  { %v6389_v29 = vand.u32 %v6381_v11, %v9369_v23  ;;  %8613 = vmatmul.mubr.msk.bf16.vlgmr.msra.gmra.mrb[176].mxu0 %vm1062_vm5, %v6139_v26 }
0x1fa2   :  { %8624 = vmatprep.mubr.msk.bf16.mxu0 %vm8970_vm3, %v8969_v51 }
0x1fa3   :  { %8623 = vmatpush3.bf16.msra.mxu0 %v6389_v29 }
0x1fa4   :  { %v5627_v32 = vpop.f32.mrb[176].mxu1  ;;  %v10463_v22 = vpop.f32.mrb[168].mxu0  ;;  %8634 = vmatprep.subr.bf16.mxu0 %v8969_v51 }
0x1fa5   :  { %v8532_v30 = vpop.f32.mrb[177].mxu1  ;;  %v8588_v33 = vpop.f32.mrb[169].mxu0  ;;  %v5628_v61 = vadd.f32 %v7466_v58, %v5627_v32 }
0x1fa6   :  { %v5630_v35 = vpop.f32.mrb[178].mxu1  ;;  %v6082_v37 = vpop.f32.mrb[170].mxu0 }
0x1fa7   :  { %v8533_v25 = vpop.f32.mrb[179].mxu1  ;;  %v8589_v60 = vpop.f32.mrb[171].mxu0  ;;  %v6140_v4 = vpack.c.bf16 %v5628_v61, %v5628_v61 }
0x1fac   :  { %v5775_v39 = vpop.f32.mrb[180].mxu1 }
0x1fad   :  { %v5776_v40 = vadd.f32 %v7500_v7, %v5775_v39  ;;  %v8548_v41 = vpop.f32.mrb[181].mxu1 }
0x1fae   :  { %v5778_v42 = vpop.f32.mrb[182].mxu1 }
0x1faf   :  { %v6142_v45 = vpack.c.bf16 %v5776_v40, %v5776_v40  ;;  %v8549_v46 = vpop.f32.mrb[183].mxu1 }
0x1fb1   :  { %v6195_v49 = vsel %vm1062_vm5, %v6142_v45, 0 }
0x1fb2   :  { %8605 = vmatpush3.bf16.xpose.msra.mxu1 %v6195_v49 }
0x1fb3   :  { %8616 = vmatprep.subr.bf16.mxu1 %v8969_v51 }
0x1fb4   :  { %v5879_v36 = vpop.f32.mrb[184].mxu1 }
0x1fb5   :  { %v5880_v53 = vadd.f32 %v7502_v48, %v5879_v36  ;;  %v8564_v54 = vpop.f32.mrb[185].mxu1 }
0x1fb6   :  { %v5882_v55 = vpop.f32.mrb[186].mxu1 }
0x1fb7   :  { %v6144_v57 = vpack.c.bf16 %v5880_v53, %v5880_v53  ;;  %v8565_v28 = vpop.f32.mrb[187].mxu1 }
0x1fb9   :  { %v6287_v59 = vsel %vm1062_vm5, %v6144_v57, 0  ;;  %8607 = vmatmul.mubr.msk.bf16.vlgmr.msra.gmra.mrb[196].mxu1 %vm1062_vm5, %v6138_v56 }
0x1fba   :  { %8617 = vmatpush3.bf16.xpose.msra.mxu1 %v6287_v59  ;;  %8618 = vmatprep.mubr.msk.bf16.mxu1 %vm8970_vm3, %v8969_v51 }
0x1fbb   :  { %8628 = vmatprep.subr.bf16.mxu1 %v8969_v51 }
0x1fbc   :  { %v6027_v62 = vpop.f32.mrb[188].mxu1 }
0x1fbd   :  { %v6028_v63 = vadd.f32 %v7536_v43, %v6027_v62  ;;  %v8580_v0 = vpop.f32.mrb[189].mxu1  ;;  %v7537_v62 = vld [vmem:[%s10669_s13 + $0x6] ss:$0 sm:$0xff] }
0x1fbe   :  { %v6030_v2 = vpop.f32.mrb[190].mxu1 }
0x1fbf   :  { %v6382_v5 = vpack.c.bf16 %v6028_v63, %v6028_v63  ;;  %v8581_v8 = vpop.f32.mrb[191].mxu1  ;;  %v6080_v63 = vadd.f32 %v7537_v62, %v10463_v22 }
0x1fc1   :  { %v6435_v9 = vand.u32 %v6382_v5, %v9369_v23  ;;  %8619 = vmatmul.mubr.msk.bf16.vlgmr.msra.gmra.mrb[200].mxu1 %vm1062_vm5, %v6140_v4  ;;  %v6383_v4 = vpack.c.bf16 %v6080_v63, %v6080_v63 }
0x1fc2   :  { %8630 = vmatprep.mubr.msk.bf16.mxu1 %vm8970_vm3, %v8969_v51 }
0x1fc3   :  { %8629 = vmatpush3.bf16.msra.mxu1 %v6435_v9  ;;  %v6481_v9 = vand.u32 %v6383_v4, %v9369_v23 }
0x1fc4   :  { %v10492_v10 = vpop.f32.mrb[192].mxu1  ;;  %8640 = vmatprep.subr.bf16.mxu1 %v8969_v51 }
0x1fc5   :  { %v8596_v31 = vpop.f32.mrb[193].mxu1 }
0x1fc6   :  { %v6134_v12 = vpop.f32.mrb[194].mxu1 }
0x1fc7   :  { %v8597_v13 = vpop.f32.mrb[195].mxu1 }
0x206c   :  { %v6185_v14 = vpop.f32.mrb[172].mxu0 }
0x206d   :  { %v6329_v38 = vmul.f32 0.35355338, %v6185_v14  ;;  %v8602_v15 = vpop.f32.mrb[173].mxu0  ;;  %v7538_v14 = vld [vmem:[%s10669_s13 + $0x7] ss:$0 sm:$0xff] }
0x206e   :  { %v6188_v16 = vpop.f32.mrb[174].mxu0 }
0x206f   :  { %v8603_v17 = vpop.f32.mrb[175].mxu0  ;;  %v6333_v18 = vsel %vm1251_vm8, %v6329_v38, -inf }
0x2070   :  { %6334 = vmax.xlane.f32.xlu0 %v6333_v18 }
0x2074   :  { %v6277_v44 = vpop.f32.mrb[176].mxu0 }
0x2075   :  { %v6331_v20 = vmul.f32 0.35355338, %v6277_v44  ;;  %v8614_v21 = vpop.f32.mrb[177].mxu0 }
0x2076   :  { %v6280_v6 = vpop.f32.mrb[178].mxu0 }
0x2077   :  { %v8615_v24 = vpop.f32.mrb[179].mxu0  ;;  %v6339_v26 = vsel %vm1251_vm8, %v6331_v20, -inf }
0x2078   :  { %6340 = vmax.xlane.f32.xlu0 %v6339_v26  ;;  %v7560_v26 = vld [vmem:[%s10670_s14 + $0x14] sm:$0xf] }
0x208c   :  { %v6231_v11 = vpop.f32.mrb[196].mxu1 }
0x208d   :  { %v6330_v19 = vmul.f32 0.35355338, %v6231_v11  ;;  %v8608_v27 = vpop.f32.mrb[197].mxu1  ;;  %v6627_v11 = vsel %vm1504_vm10, %v7560_v26, 0  ;;  %v8853_v26 = vld [vmem:[%s10672_s18 + $0x18] sm:$0xff]  }
0x208e   :  { %v6234_v29 = vpop.f32.mrb[198].mxu1 }
0x208f   :  { %v8609_v32 = vpop.f32.mrb[199].mxu1  ;;  %v6336_v30 = vsel %vm1251_vm8, %v6330_v19, -inf }
0x2090   :  { %6337 = vmax.xlane.f32.xlu1 %v6336_v30 }
0x2094   :  { %v6323_v33 = vpop.f32.mrb[200].mxu1 }
0x2095   :  { %v6332_v35 = vmul.f32 0.35355338, %v6323_v33  ;;  %v8620_v37 = vpop.f32.mrb[201].mxu1 }
0x2096   :  { %v6326_v25 = vpop.f32.mrb[202].mxu1 }
0x2097   :  { %v8621_v60 = vpop.f32.mrb[203].mxu1  ;;  %v6342_v7 = vsel %vm1251_vm8, %v6332_v35, -inf }
0x2098   :  { %6343 = vmax.xlane.f32.xlu1 %v6342_v7 }
0x20fd   :  { %v6335_v39 = vpop.xlane.xlu0 %6334 }
0x20fe   :  { %v6345_v40 = vsub.f32 %v6329_v38, %v6335_v39  ;;  %v6132_v38 = vadd.f32 %v7538_v14, %v10492_v10 }
0x2100   :  { %v6349_v41 = vmul.f32 1.442695, %v6345_v40  ;;  %v6384_v17 = vpack.c.bf16 %v6132_v38, %v6132_v38  ;;  %v7562_v40 = vld [vmem:[%s10670_s14 + $0x1c] sm:$0xf] }
0x2102   :  { %8944 = vpow2.f32 %v6349_v41 }
0x2105   :  { %v6341_v42 = vpop.xlane.xlu0 %6340 }
0x2106   :  { %v6347_v45 = vsub.f32 %v6331_v20, %v6341_v42  ;;  %v6527_v20 = vand.u32 %v6384_v17, %v9369_v23  ;;  %v7559_v23 = vld [vmem:[%s10670_s14 + $0x10] sm:$0xf] }
0x2107   :  { %v6581_v10 = vsel %vm1504_vm10, %v7559_v23, 0 }
0x2108   :  { %v6353_v46 = vmul.f32 1.442695, %v6347_v45 }
0x210a   :  { %8946 = vpow2.f32 %v6353_v46  ;;  %v6719_v46 = vsel %vm1504_vm10, %v7562_v40, 0  ;;  %v8857_v40 = vld [vmem:[%s10675_s20 + $0x58] sm:$0xff]  }
0x210c   :  { %v8945_v47 = vpop.eup %8944 }
0x210d   :  { %v6357_v49 = vsel %vm1251_vm8, %v8945_v47, 0.0 }
0x210e   :  { %6358 = vadd.xlane.f32.xlu0 %v6357_v49 }
0x2114   :  { %v8947_v48 = vpop.eup %8946 }
0x2115   :  { %v6363_v50 = vsel %vm1251_vm8, %v8947_v48, 0.0 }
0x2116   :  { %6364 = vadd.xlane.f32.xlu0 %v6363_v50 }
0x211d   :  { %v6338_v36 = vpop.xlane.xlu1 %6337 }
0x211e   :  { %v6346_v53 = vsub.f32 %v6330_v19, %v6338_v36  ;;  %v7561_v19 = vld [vmem:[%s10670_s14 + $0x18] sm:$0xf] }
0x211f   :  { %v6673_v30 = vsel %vm1504_vm10, %v7561_v19, 0 }
0x2120   :  { %v6351_v54 = vmul.f32 1.442695, %v6346_v53 }
0x2122   :  { %8948 = vpow2.f32 %v6351_v54 }
0x2125   :  { %v6344_v55 = vpop.xlane.xlu1 %6343 }
0x2126   :  { %v6348_v56 = vsub.f32 %v6332_v35, %v6344_v55 }
0x2128   :  { %v6355_v57 = vmul.f32 1.442695, %v6348_v56 }
0x212a   :  { %8950 = vpow2.f32 %v6355_v57 }
0x212c   :  { %v8949_v28 = vpop.eup %8948 }
0x212d   :  { %v6360_v58 = vsel %vm1251_vm8, %v8949_v28, 0.0 }
0x212e   :  { %6361 = vadd.xlane.f32.xlu1 %v6360_v58 }
0x2134   :  { %v8951_v59 = vpop.eup %8950 }
0x2135   :  { %v6366_v43 = vsel %vm1251_vm8, %v8951_v59, 0.0 }
0x2136   :  { %6367 = vadd.xlane.f32.xlu1 %v6366_v43 }
0x219b   :  { %v6359_v61 = vpop.xlane.xlu0 %6358 }
0x219c   :  { %8952 = vrcp.f32 %v6359_v61 }
0x21a3   :  { %v6365_v0 = vpop.xlane.xlu0 %6364 }
0x21a4   :  { %8954 = vrcp.f32 %v6365_v0 }
0x21a6   :  { %v8953_v2 = vpop.eup %8952 }
0x21a7   :  { %v6373_v5 = vmul.f32 %v8953_v2, %v8945_v47 }
0x21a9   :  { %v6377_v8 = vpack.c.bf16 %v6373_v5, %v6373_v5 }
0x21ab   :  { %8625 = vmatmul.mubr.msk.bf16.vlgmr.msra.gmra.mrb[180].mxu0 %vm1304_vm9, %v6377_v8 }
0x21ac   :  { %8635 = vmatpush3.bf16.msra.mxu0 %v6481_v9  ;;  %8636 = vmatprep.mubr.msk.bf16.mxu0 %vm8970_vm3, %v8969_v51 }
0x21ad   :  { %8646 = vmatprep.subr.bf16.mxu0 %v8969_v51 }
0x21ae   :  { %v8955_v31 = vpop.eup %8954 }
0x21af   :  { %v6375_v12 = vmul.f32 %v8955_v31, %v8947_v48 }
0x21b1   :  { %v6379_v13 = vpack.c.bf16 %v6375_v12, %v6375_v12 }
0x21b3   :  { %8637 = vmatmul.mubr.msk.bf16.vlgmr.msra.gmra.mrb[184].mxu0 %vm1304_vm9, %v6379_v13 }
0x21b4   :  { %8648 = vmatprep.mubr.msk.bf16.mxu0 %vm8970_vm3, %v8969_v51  ;;  %8647 = vmatpush3.bf16.msra.mxu0 %v6581_v10  ;;  %v8852_v10 = vld [vmem:[%s10672_s18 + $0x10] sm:$0xff]  }
0x21b5   :  { %8658 = vmatprep.subr.bf16.mxu0 %v8969_v51 }
0x21bb   :  { %v6362_v22 = vpop.xlane.xlu1 %6361 }
0x21bc   :  { %8956 = vrcp.f32 %v6362_v22 }
0x21c3   :  { %v6368_v15 = vpop.xlane.xlu1 %6367 }
0x21c4   :  { %8958 = vrcp.f32 %v6368_v15 }
0x21c6   :  { %v8957_v16 = vpop.eup %8956 }
0x21c7   :  { %v6374_v18 = vmul.f32 %v8957_v16, %v8949_v28  ;;  %v7568_v16 = vld [vmem:[%s10671_s15 + $0x1] ss:$0 sm:$0xff] }
0x21c9   :  { %v6378_v44 = vpack.c.bf16 %v6374_v18, %v6374_v18 }
0x21cb   :  { %8631 = vmatmul.mubr.msk.bf16.vlgmr.msra.gmra.mrb[204].mxu1 %vm1304_vm9, %v6378_v44 }
0x21cc   :  { %8641 = vmatpush3.bf16.msra.mxu1 %v6527_v20  ;;  %8642 = vmatprep.mubr.msk.bf16.mxu1 %vm8970_vm3, %v8969_v51 }
0x21cd   :  { %8652 = vmatprep.subr.bf16.mxu1 %v8969_v51 }
0x21ce   :  { %v8959_v21 = vpop.eup %8958 }
0x21cf   :  { %v6376_v6 = vmul.f32 %v8959_v21, %v8951_v59 }
0x21d1   :  { %v6380_v24 = vpack.c.bf16 %v6376_v6, %v6376_v6 }
0x21d3   :  { %8643 = vmatmul.mubr.msk.bf16.vlgmr.msra.gmra.mrb[208].mxu1 %vm1304_vm9, %v6380_v24 }
0x21d4   :  { %8654 = vmatprep.mubr.msk.bf16.mxu1 %vm8970_vm3, %v8969_v51  ;;  %8653 = vmatpush3.bf16.msra.mxu1 %v6627_v11 }
0x21d5   :  { %8664 = vmatprep.subr.bf16.mxu1 %v8969_v51 }
0x227e   :  { %v6425_v27 = vpop.f32.mrb[180].mxu0 }
0x227f   :  { %v6569_v29 = vpack.c.bf16 %v6425_v27, %v6425_v27  ;;  %v8626_v32 = vpop.f32.mrb[181].mxu0 }
0x2280   :  { %v6428_v33 = vpop.f32.mrb[182].mxu0  ;;  %v7571_v32 = vld [vmem:[%s10673_s16 + $0x1] ss:$0 sm:$0xff] }
0x2281   :  { %v8627_v35 = vpop.f32.mrb[183].mxu0  ;;  %8649 = vmatmul.mubr.msk.bf16.vlgmr.msra.gmra.mrb[188].mxu0 %vm1062_vm5, %v6569_v29  ;;  %v7572_v33 = vld [vmem:[%s10674_s17 + $0x1] ss:$0 sm:$0xff] }
0x2282   :  { %8659 = vmatpush3.bf16.msra.mxu0 %v6673_v30  ;;  %8660 = vmatprep.mubr.msk.bf16.mxu0 %vm8970_vm3, %v8969_v51 }
0x2283   :  { %8670 = vmatprep.subr.bf16.mxu0 %v8969_v51 }
0x2286   :  { %v6517_v37 = vpop.f32.mrb[184].mxu0 }
0x2287   :  { %v6571_v25 = vpack.c.bf16 %v6517_v37, %v6517_v37  ;;  %v8638_v60 = vpop.f32.mrb[185].mxu0 }
0x2288   :  { %v6520_v7 = vpop.f32.mrb[186].mxu0  ;;  %v8854_v60 = vld [vmem:[%s10675_s20 + $0x40] sm:$0xff]  }
0x2289   :  { %v8639_v39 = vpop.f32.mrb[187].mxu0  ;;  %8661 = vmatmul.mubr.msk.bf16.vlgmr.msra.gmra.mrb[192].mxu0 %vm1062_vm5, %v6571_v25  ;;  %v8855_v7 = vld [vmem:[%s10675_s20 + $0x48] sm:$0xff]  }
0x228a   :  { %8674 = vmatprep.mubr.msk.bf16.mxu0 %vm8970_vm3, %v8969_v51  ;;  %8671 = vmatpush3.bf16.msra.mxu0 %v8852_v10  ;;  %v8856_v39 = vld [vmem:[%s10675_s20 + $0x50] sm:$0xff]  }
0x228b   :  { %8672 = vmatprep.subr.bf16.mxu0 %v8969_v51 }
0x228e   :  { %8673 = vmatpush3.bf16.msra.mxu0 %v8853_v26 }
0x228f   :  { %8698 = vmatprep.subr.bf16.mxu0 %v8969_v51 }
0x229e   :  { %v6471_v41 = vpop.f32.mrb[204].mxu1 }
0x229f   :  { %v6570_v42 = vpack.c.bf16 %v6471_v41, %v6471_v41  ;;  %v8632_v45 = vpop.f32.mrb[205].mxu1  ;;  %v8858_v41 = vld [vmem:[%s10675_s20 + $0x60] sm:$0xff]  }
0x22a0   :  { %v6474_v47 = vpop.f32.mrb[206].mxu1  ;;  %v8860_v45 = vld [vmem:[%s10675_s20 + $0x70] sm:$0xff]  }
0x22a1   :  { %v8633_v49 = vpop.f32.mrb[207].mxu1  ;;  %8655 = vmatmul.mubr.msk.bf16.vlgmr.msra.gmra.mrb[212].mxu1 %vm1062_vm5, %v6570_v42  ;;  %v8859_v42 = vld [vmem:[%s10675_s20 + $0x68] sm:$0xff]   ;;  %v7578_v47 = vld [vmem:[%s10676_s19 + $0x1] ss:$0 sm:$0xff]  ;;  %s8972_s19 = smov 32  }
0x22a2   :  { %8665 = vmatpush3.bf16.msra.mxu1 %v6719_v46  ;;  %8666 = vmatprep.mubr.msk.bf16.mxu1 %vm8970_vm3, %v8969_v51  ;;  %v8861_v46 = vld [vmem:[%s10675_s20 + $0x78] sm:$0xff]  }
0x22a3   :  { %8678 = vmatprep.subr.bf16.mxu1 %v8969_v51 }
0x22a6   :  { %v6563_v48 = vpop.f32.mrb[208].mxu1 }
0x22a7   :  { %v6572_v50 = vpack.c.bf16 %v6563_v48, %v6563_v48  ;;  %v8644_v36 = vpop.f32.mrb[209].mxu1 }
0x22a8   :  { %v6566_v53 = vpop.f32.mrb[210].mxu1 }
0x22a9   :  { %v8645_v54 = vpop.f32.mrb[211].mxu1  ;;  %8667 = vmatmul.mubr.msk.bf16.vlgmr.msra.gmra.mrb[216].mxu1 %vm1062_vm5, %v6572_v50 }
0x22aa   :  { %8694 = vmatprep.mubr.msk.bf16.mxu1 %vm8970_vm3, %v8969_v51  ;;  %8679 = vmatpush3.bf16.msra.mxu1 %v8854_v60 }
0x22ab   :  { %8680 = vmatprep.subr.bf16.mxu1 %v8969_v51 }
0x22ae   :  { %8681 = vmatpush3.bf16.msra.mxu1 %v8855_v7 }
0x22af   :  { %8682 = vmatprep.subr.bf16.mxu1 %v8969_v51 }
0x22b2   :  { %8683 = vmatpush3.bf16.msra.mxu1 %v8856_v39 }
0x22b3   :  { %8684 = vmatprep.subr.bf16.mxu1 %v8969_v51 }
0x22b6   :  { %8685 = vmatpush3.bf16.msra.mxu1 %v8857_v40 }
0x22b7   :  { %8686 = vmatprep.subr.bf16.mxu1 %v8969_v51 }
0x22ba   :  { %8687 = vmatpush3.bf16.msra.mxu1 %v8858_v41 }
0x22bb   :  { %8688 = vmatprep.subr.bf16.mxu1 %v8969_v51 }
0x22be   :  { %8689 = vmatpush3.bf16.msra.mxu1 %v8859_v42 }
0x22bf   :  { %8690 = vmatprep.subr.bf16.mxu1 %v8969_v51 }
0x22c2   :  { %8691 = vmatpush3.bf16.msra.mxu1 %v8860_v45 }
0x22c3   :  { %8692 = vmatprep.subr.bf16.mxu1 %v8969_v51 }
0x22c6   :  { %8693 = vmatpush3.bf16.msra.mxu1 %v8861_v46 }
0x2354   :  { %v6617_v55 = vpop.f32.mrb[188].mxu0 }
0x2355   :  { %v8650_v56 = vpop.f32.mrb[189].mxu0  ;;  %v6761_v63 = vsel %vm235_vm2, %v6617_v55, 0.0 }
0x2356   :  { %v6620_v57 = vpop.f32.mrb[190].mxu0 }
0x2357   :  { %v8651_v28 = vpop.f32.mrb[191].mxu0 }
0x235c   :  { %v6709_v58 = vpop.f32.mrb[192].mxu0 }
0x235d   :  { %v8662_v59 = vpop.f32.mrb[193].mxu0  ;;  %v6764_v8 = vsel %vm235_vm2, %v6709_v58, 0.0 }
0x235e   :  { %v6712_v43 = vpop.f32.mrb[194].mxu0 }
0x235f   :  { %v8663_v61 = vpop.f32.mrb[195].mxu0  ;;  %v7600_v43 = vld [vmem:[%s10677_s21 + $0x1] ss:$0 sm:$0xff] }
0x2374   :  { %v6663_v62 = vpop.f32.mrb[212].mxu1 }
0x2375   :  { %v6762_v0 = vsel %vm235_vm2, %v6663_v62, 0.0  ;;  %v8656_v2 = vpop.f32.mrb[213].mxu1 }
0x2376   :  { %v6763_v4 = vadd.f32 %v6762_v0, %v6761_v63  ;;  %v6666_v5 = vpop.f32.mrb[214].mxu1 }
0x2377   :  { %v8657_v9 = vpop.f32.mrb[215].mxu1 }
0x2378   :  { %v6765_v31 = vadd.f32 %v6764_v8, %v6763_v4 }
0x237c   :  { %v6755_v12 = vpop.f32.mrb[216].mxu1 }
0x237d   :  { %v6766_v13 = vsel %vm235_vm2, %v6755_v12, 0.0  ;;  %v8668_v22 = vpop.f32.mrb[217].mxu1 }
0x237e   :  { %v6767_v14 = vadd.f32 %v6766_v13, %v6765_v31  ;;  %v6758_v38 = vpop.f32.mrb[218].mxu1  ;;  %v8862_v22 = vld [vmem:[%s10678_s24] sm:$0xff]  }
0x237f   :  { %v8669_v15 = vpop.f32.mrb[219].mxu1 }
0x2380   :  { %v6768_v17 = vadd.f32 %v6767_v14, %v10279_v1  ;;  %v8863_v14 = vld [vmem:[%s10678_s24 + $0x8] sm:$0xff]   ;;  %s8973_s24 = smov 64  }
0x2382   :  { %v10567_v18 = vadd.f32 %v7568_v16, %v6768_v17 }
0x2384   :  { %v6779_v44 = vsel %vm235_vm2, %v10567_v18, 0.0 }
0x2385   :  { %6780 = vadd.xlane.f32.xlu0 %v6779_v44  ;;  %v6995_v44 = vld [vmem:[%s10680_s23] sm:$0x1] }
0x2412   :  { %v6781_v20 = vpop.xlane.xlu0 %6780 }
0x2413   :  { %v6782_v21 = vmul.f32 0.03125, %v6781_v20 }
0x2415   :  { %v6783_v6 = vsub.f32 %v10567_v18, %v6782_v21 }
0x2417   :  { %v6784_v24 = vmul.f32 %v6783_v6, %v6783_v6 }
0x2419   :  { %v6785_v23 = vsel %vm235_vm2, %v6784_v24, 0.0 }
0x241a   :  { %6786 = vadd.xlane.f32.xlu1 %v6785_v23 }
0x24a7   :  { %v6787_v11 = vpop.xlane.xlu1 %6786 }
0x24a8   :  { %v6788_v19 = vmul.f32 0.03125, %v6787_v11 }
0x24aa   :  { %v6789_v27 = vadd.f32 1e-05, %v6788_v19 }
0x24ac   :  { %8960 = vrsqrt.f32 %v6789_v27 }
0x24b6   :  { %v8961_v29 = vpop.eup %8960 }
0x24b7   :  { %v6791_v30 = vmul.f32 %v8961_v29, %v6783_v6 }
0x24b9   :  { %v6798_v35 = vmul.f32 %v7571_v32, %v6791_v30 }
0x24bb   :  { %v6805_v37 = vadd.f32 %v7572_v33, %v6798_v35 }
0x24bd   :  { %v6806_v25 = vpack.c.bf16 %v6805_v37, %v6805_v37 }
0x24bf   :  { %8675 = vmatmul.mubr.msk.bf16.vlgmr.msra.gmra.mrb[196].mxu0 %vm350_vm4, %v6806_v25 }
0x24c0   :  { %8702 = vmatprep.mubr.msk.bf16.mxu0 %vm8970_vm3, %v8969_v51  ;;  %8699 = vmatpush3.bf16.msra.mxu0 %v8862_v22 }
0x24c1   :  { %8700 = vmatprep.subr.bf16.mxu0 %v8969_v51 }
0x24c4   :  { %8701 = vmatpush3.bf16.msra.mxu0 %v8863_v14 }
0x2592   :  { %v6867_v49 = vpop.f32.mrb[196].mxu0 }
0x2593   :  { %v6868_v48 = vadd.f32 %v7578_v47, %v6867_v49  ;;  %v8676_v50 = vpop.f32.mrb[197].mxu0 }
0x2594   :  { %v6870_v36 = vpop.f32.mrb[198].mxu0 }
0x2595   :  { %v7582_v53 = vmul.f32 -1.702, %v6868_v48  ;;  %v8677_v54 = vpop.f32.mrb[199].mxu0 }
0x2597   :  { %v6875_v55 = vmul.f32 1.442695, %v7582_v53 }
0x2599   :  { %8962 = vpow2.f32 %v6875_v55 }
0x25a3   :  { %v8963_v56 = vpop.eup %8962 }
0x25a4   :  { %v6877_v57 = vadd.f32 1.0, %v8963_v56 }
0x25a6   :  { %8964 = vrcp.f32 %v6877_v57 }
0x25b0   :  { %v8965_v28 = vpop.eup %8964 }
0x25b1   :  { %v6880_v58 = vmul.f32 %v8965_v28, %v6868_v48 }
0x25b3   :  { %v6881_v59 = vpack.c.bf16 %v6880_v58, %v6880_v58 }
0x25b5   :  { %8695 = vmatmul.mubr.bf16.vlgmr.msra.gmra.mrb[220].mxu1 %v6881_v59 }
0x2688   :  { %v6987_v61 = vpop.f32.mrb[220].mxu1 }
0x2689   :  { %v6988_v62 = vadd.f32 %v7600_v43, %v6987_v61  ;;  %v8696_v63 = vpop.f32.mrb[221].mxu1 }
0x268a   :  { %v6990_v0 = vpop.f32.mrb[222].mxu1 }
0x268b   :  { %v8697_v2 = vpop.f32.mrb[223].mxu1  ;;  %v6993_v4 = vadd.f32 %v6988_v62, %v10567_v18 }
0x268d   :  { %v6996_v5 = vsel %vm3583_vm11, %v6993_v4, 0.0 }
0x268e   :  { %6997 = vadd.xlane.f32.xlu0 %v6996_v5 }
0x271b   :  { %v6998_v8 = vpop.xlane.xlu0 %6997 }
0x271c   :  { %v6999_v9 = vmul.f32 0.03125, %v6998_v8 }
0x271e   :  { %v7000_v31 = vsub.f32 %v6993_v4, %v6999_v9 }
0x2720   :  { %v7001_v12 = vmul.f32 %v7000_v31, %v7000_v31 }
0x2722   :  { %v7002_v13 = vsel %vm3583_vm11, %v7001_v12, 0.0 }
0x2723   :  { %7003 = vadd.xlane.f32.xlu1 %v7002_v13 }
0x2734   :  { %3660 = vrot.lane.b32.xlu1 %v9996_v52, %s8972_s19  ;;  %v6994_v52 = vld [vmem:[%s10679_s22] sm:$0x1] }
0x27b0   :  { %v7004_v38 = vpop.xlane.xlu1 %7003 }
0x27b1   :  { %v7005_v15 = vmul.f32 0.03125, %v7004_v38 }
0x27b3   :  { %v7006_v16 = vadd.f32 1e-05, %v7005_v15 }
0x27b4   :  { %v3661_v26 = vpop.permute.xlu1 %3660 }
0x27b5   :  { %8966 = vrsqrt.f32 %v7006_v16  ;;  %v3667_v32 = vsel %vm350_vm4, %v9531_v34, %v3661_v26 }
0x27bf   :  { %v8967_v17 = vpop.eup %8966 }
0x27c0   :  { %v7008_v18 = vmul.f32 %v8967_v17, %v7000_v31 }
0x27c2   :  { %v7009_v20 = vmul.f32 %v7008_v18, %v6994_v52 }
0x27c4   :  { %v7010_v21 = vadd.f32 %v7009_v20, %v6995_v44 }
0x27c6   :  { %7072 = vrot.lane.b32.xlu0 %v7010_v21, %s8972_s19  ;;  %v7011_v6 = vpack.c.bf16 %v7010_v21, %v7010_v21 }
0x27c8   :  { %8703 = vmatmul.mubr.msk.bf16.vlgmr.msra.gmra.mrb[200].mxu0 %vm350_vm4, %v7011_v6 }
0x2838   :  { %v7073_v11 = vpop.permute.xlu0 %7072 }
0x2839   :  { %v7079_v19 = vsel %vm350_vm4, %v10279_v1, %v7073_v11 }
0x289b   :  { %v7065_v51 = vpop.f32.mrb[200].mxu0 }
0x289c   :  { %7076 = vrot.lane.b32.xlu1 %v7065_v51, %s8973_s24  ;;  %v8704_v24 = vpop.f32.mrb[201].mxu0 }
0x289d   :  { %v7068_v23 = vpop.f32.mrb[202].mxu0 }
0x289e   :  { %v8705_v10 = vpop.f32.mrb[203].mxu0 }
0x28a0   :  { %3664 = vrot.lane.b32.xlu1 %v10087_v3, %s8973_s24 }
0x290e   :  { %v7077_v27 = vpop.permute.xlu1 %7076 }
0x290f   :  { %v7080_v29 = vsel %vm181_vm0, %v7079_v19, %v7077_v27 }
0x2910   :  { %v7082_v30 = vrot.slane %v7080_v29, 7 }
0x2912   :  { %v3665_v33 = vpop.permute.xlu1 %3664 }
0x2913   :  { %v3668_v35 = vsel %vm181_vm0, %v3667_v32, %v3665_v33 }
0x2914   :  { %v7084_v37 = vsel %vm230_vm1, %v3668_v35, %v7082_v30 }
0x2915   :  { %7086 = vst.msk [vmem:[%s10681_s25] sm:$0x3] %vm7085_vm12, %v7084_v37 }

// kernel: fwd.3
= control target key start
LH: loop header
LB: loop body
LE: loop exit
PB: predicated region body
PF: predicated region fallthrough
CT: control target
= control target key end

     0   :  { %s10358_s0 = inlined_call_operand.vmem [shape: f32[4,8,32], index: 0, kind: input, shape index: {}]   ;;  %s10359_s1 = inlined_call_operand.vmem [shape: f32[8,32], index: 1, kind: input, shape index: {}]   ;;  %s10360_s2 = inlined_call_operand.vmem [shape: f32[4,32], index: 2, kind: input, shape index: {}]   ;;  %s10361_s3 = inlined_call_operand.vmem [shape: f32[1,1,32], index: 3, kind: input, shape index: {}]   ;;  %s10362_s4 = inlined_call_operand.vmem [shape: f32[1,1,32], index: 4, kind: input, shape index: {}]   ;;  %s10363_s5 = inlined_call_operand.vmem [shape: bf16[1,4,32,8], index: 5, kind: input, shape index: {}]   ;;  %s10364_s6 = inlined_call_operand.vmem [shape: bf16[1,4,32,8], index: 6, kind: input, shape index: {}]   ;;  %s10365_s7 = inlined_call_operand.vmem [shape: bf16[1,4,32,8], index: 7, kind: input, shape index: {}]   ;;  %s10366_s8 = inlined_call_operand.vmem [shape: f32[1,4,1,8], index: 8, kind: input, shape index: {}]   ;;  %s10367_s9 = inlined_call_operand.vmem [shape: f32[1,4,1,8], index: 9, kind: input, shape index: {}]   ;;  %s10368_s10 = inlined_call_operand.vmem [shape: f32[1,4,1,8], index: 10, kind: input, shape index: {}]   ;;  %s10369_s11 = inlined_call_operand.vmem [shape: bf16[1,4,8,32], index: 11, kind: input, shape index: {}]   ;;  %s10370_s12 = inlined_call_operand.vmem [shape: f32[1,1,32], index: 12, kind: input, shape index: {}]   ;;  %s10371_s13 = inlined_call_operand.vmem [shape: f32[1,1,32], index: 13, kind: input, shape index: {}]   ;;  %s10372_s14 = inlined_call_operand.vmem [shape: f32[1,1,32], index: 14, kind: input, shape index: {}]   ;;  %s10373_s15 = inlined_call_operand.vmem [shape: bf16[1,32,128], index: 15, kind: input, shape index: {}]   ;;  %s10374_s16 = inlined_call_operand.vmem [shape: f32[1,1,128], index: 16, kind: input, shape index: {}]   ;;  %s10375_s17 = inlined_call_operand.vmem [shape: bf16[1,128,32], index: 17, kind: input, shape index: {}]   ;;  %s10376_s18 = inlined_call_operand.vmem [shape: f32[1,1,32], index: 18, kind: input, shape index: {}]   ;;  %s10377_s19 = inlined_call_operand.vmem [shape: f32[1,32], index: 19, kind: input, shape index: {}]   ;;  %s10378_s20 = inlined_call_operand.vmem [shape: f32[1,32], index: 20, kind: input, shape index: {}]   ;;  %s10379_s21 = inlined_call_operand.vmem [shape: bf16[32,32], index: 21, kind: input, shape index: {}]   ;;  %s10380_s22 = inlined_call_operand.vmem [shape: f32[2,32], index: 22, kind: input, shape index: {}]   ;;  %s10381_s23 = inlined_call_operand.hbm [shape: f32[4,32], index: 23, kind: output, shape index: {0}]   ;;  %s10382_s24 = inlined_call_operand.hbm [shape: f32[2,4], index: 24, kind: output, shape index: {1}]  }
   0x1   :  { %10393 = sst [smem:[#allocation8_spill]] %s10358_s0 }
   0x2   :  { %10394 = sst [smem:[#allocation9_spill]] %s10359_s1 }
   0x3   :  { %10395 = sst [smem:[#allocation10_spill]] %s10360_s2 }
   0x4   :  { %10396 = sst [smem:[#allocation11_spill]] %s10361_s3 }
   0x5   :  { %10397 = sst [smem:[#allocation12_spill]] %s10362_s4 }
   0x6   :  { %10398 = sst [smem:[#allocation13_spill]] %s10363_s5 }
   0x7   :  { %10399 = sst [smem:[#allocation14_spill]] %s10364_s6 }
   0x8   :  { %10400 = sst [smem:[#allocation15_spill]] %s10365_s7 }
   0x9   :  { %10401 = sst [smem:[#allocation16_spill]] %s10366_s8 }
   0xa   :  { %10402 = sst [smem:[#allocation17_spill]] %s10381_s23 }
   0xb   :  { %10403 = sst [smem:[#allocation18_spill]] %s10382_s24 }
   0xc   :  { %30 = vsyncpa [#allocation3], 0  ;;  %s10404_s27 = sld [smem:[#allocation9_spill]]  ;;  %s10405_s2 = sld [smem:[#allocation8_spill]]  ;;  %vm90_vm0 = vcmask 261120  }
  0x12   :  { %v79_v0 = vld [vmem:[%s10404_s27] sm:$0xff] }
  0x13   :  { %v86_v1 = vld [vmem:[%s10405_s2] sm:$0xff] }
  0x14   :  { %v8811_v2 = vadd.f32 %v86_v1, %v79_v0 }
  0x16   :  { %v91_v3 = vsel %vm90_vm0, %v8811_v2, 0.0 }
  0x17   :  { %92 = vadd.xlane.f32.xlu0 %v91_v3 }
  0x18   :  { %31 = vsyncpa [#allocation5], 0  ;;  %s10406_s7 = sld [smem:[#allocation13_spill]]  ;;  %v8675_v11 = vmov 0.0   ;;  %vm8676_vm1 = vmmov 0   ;;  %s10407_s28 = sld [smem:[#allocation11_spill]] }
  0x19   :  { %7569 = vmatprep.subr.bf16.mxu0 %v8675_v11  ;;  %7577 = vmatprep.subr.bf16.mxu1 %v8675_v11  ;;  %s10408_s0 = sld [smem:[#allocation12_spill]]  ;;  %s10409_s30 = sld [smem:[#allocation14_spill]]  ;;  %v6963_v60 = vld [vmem:[%s10367_s9] ss:$0 sm:$0xff]  ;;  %v8987_v61 = vld [vmem:[%s10367_s9 + $0x1] ss:$0 sm:$0xff] }
  0x1a   :  { %7573 = vmatprep.mubr.msk.bf16.mxu0 %vm8676_vm1, %v8675_v11  ;;  %7581 = vmatprep.mubr.msk.bf16.mxu1 %vm8676_vm1, %v8675_v11  ;;  %s10410_s6 = sld [smem:[#allocation15_spill]]  ;;  %vm887_vm2 = vcmask 64512   ;;  %s10411_s4 = sld [smem:[#allocation16_spill]]  ;;  %vm1135_vm3 = vcmask 1043456   ;;  %vm6777_vm5 = vcmask 257024  }
  0x1e   :  { %v8389_v9 = vld [vmem:[%s10406_s7] sm:$0xff]   ;;  %v8390_v10 = vld [vmem:[%s10406_s7 + $0x10] sm:$0xff]   ;;  %v8391_v12 = vld [vmem:[%s10406_s7 + $0x8] sm:$0xff]  }
  0x1f   :  { %7570 = vmatpush3.bf16.msra.mxu0 %v8389_v9  ;;  %7578 = vmatpush3.bf16.msra.mxu1 %v8390_v10  ;;  %v8392_v13 = vld [vmem:[%s10406_s7 + $0x18] sm:$0xff]   ;;  %v8842_v18 = vld [vmem:[%s10407_s28] ss:$0 sm:$0xff]  ;;  %v8394_v24 = vld [vmem:[%s10406_s7 + $0x30] sm:$0xff]  }
  0x20   :  { %7571 = vmatprep.subr.bf16.mxu0 %v8675_v11  ;;  %7579 = vmatprep.subr.bf16.mxu1 %v8675_v11  ;;  %v8847_v20 = vld [vmem:[%s10408_s0] ss:$0 sm:$0xff]  ;;  %v8395_v26 = vld [vmem:[%s10406_s7 + $0x28] sm:$0xff]   ;;  %v8396_v27 = vld [vmem:[%s10406_s7 + $0x38] sm:$0xff]  }
  0x21   :  { %v8393_v23 = vld [vmem:[%s10406_s7 + $0x20] sm:$0xff]   ;;  %v8398_v29 = vld [vmem:[%s10409_s30 + $0x10] sm:$0xff]   ;;  %v8399_v30 = vld [vmem:[%s10409_s30 + $0x8] sm:$0xff]  }
  0x22   :  { %v8397_v28 = vld [vmem:[%s10409_s30] sm:$0xff]   ;;  %v8400_v31 = vld [vmem:[%s10409_s30 + $0x18] sm:$0xff]   ;;  %v8402_v33 = vld [vmem:[%s10409_s30 + $0x30] sm:$0xff]  }
  0x23   :  { %7572 = vmatpush3.bf16.msra.mxu0 %v8391_v12  ;;  %7580 = vmatpush3.bf16.msra.mxu1 %v8392_v13  ;;  %v8401_v32 = vld [vmem:[%s10409_s30 + $0x20] sm:$0xff]   ;;  %v8403_v34 = vld [vmem:[%s10409_s30 + $0x28] sm:$0xff]   ;;  %v8404_v35 = vld [vmem:[%s10409_s30 + $0x38] sm:$0xff]  }
  0x24   :  { %7585 = vmatprep.subr.bf16.mxu0 %v8675_v11  ;;  %7593 = vmatprep.subr.bf16.mxu1 %v8675_v11  ;;  %v8405_v36 = vld [vmem:[%s10410_s6] sm:$0xff]   ;;  %v8406_v37 = vld [vmem:[%s10410_s6 + $0x10] sm:$0xff]   ;;  %v8407_v38 = vld [vmem:[%s10410_s6 + $0x8] sm:$0xff]  }
  0x25   :  { %v8408_v39 = vld [vmem:[%s10410_s6 + $0x18] sm:$0xff]   ;;  %v8409_v40 = vld [vmem:[%s10410_s6 + $0x20] sm:$0xff]   ;;  %v8410_v41 = vld [vmem:[%s10410_s6 + $0x30] sm:$0xff]  }
  0x26   :  { %v8411_v42 = vld [vmem:[%s10410_s6 + $0x28] sm:$0xff]   ;;  %v8412_v43 = vld [vmem:[%s10410_s6 + $0x38] sm:$0xff]   ;;  %v8993_v12 = vld [vmem:[%s10411_s4] ss:$0 sm:$0xff] }
  0x27   :  { %v8998_v13 = vld [vmem:[%s10411_s4 + $0x1] ss:$0 sm:$0xff] }
  0xa4   :  { %v93_v4 = vpop.xlane.xlu0 %92 }
  0xa5   :  { %v95_v5 = vmul.f32 0.03125, %v93_v4 }
  0xa7   :  { %v96_v6 = vsub.f32 %v8811_v2, %v95_v5 }
  0xa9   :  { %v97_v7 = vmul.f32 %v96_v6, %v96_v6 }
  0xab   :  { %v98_v8 = vsel %vm90_vm0, %v97_v7, 0.0 }
  0xac   :  { %99 = vadd.xlane.f32.xlu0 %v98_v8 }
 0x139   :  { %v100_v14 = vpop.xlane.xlu0 %99 }
 0x13a   :  { %v101_v15 = vmul.f32 0.03125, %v100_v14 }
 0x13c   :  { %v102_v16 = vadd.f32 1e-05, %v101_v15 }
 0x13e   :  { %8527 = vrsqrt.f32 %v102_v16  ;;  %v6965_v16 = vld [vmem:[%s10367_s9 + $0x2] ss:$0 sm:$0xff] }
 0x148   :  { %v8528_v17 = vpop.eup %8527 }
 0x149   :  { %v104_v19 = vmul.f32 %v8528_v17, %v96_v6  ;;  %v9008_v17 = vld [vmem:[%s10367_s9 + $0x3] ss:$0 sm:$0xff] }
 0x14b   :  { %v111_v21 = vmul.f32 %v8842_v18, %v104_v19 }
 0x14d   :  { %v118_v22 = vadd.f32 %v8847_v20, %v111_v21 }
 0x14f   :  { %v8857_v25 = vpack.c.bf16 %v118_v22, %v118_v22 }
 0x151   :  { %7574 = vmatmul.mubr.msk.bf16.vlgmr.msra.gmra.mrb[0].mxu0 %vm90_vm0, %v8857_v25  ;;  %7582 = vmatmul.mubr.msk.bf16.vlgmr.msra.gmra.mrb[0].mxu1 %vm90_vm0, %v8857_v25 }
 0x152   :  { %7586 = vmatpush3.bf16.msra.mxu0 %v8393_v23  ;;  %7594 = vmatpush3.bf16.msra.mxu1 %v8394_v24 }
 0x153   :  { %7587 = vmatprep.subr.bf16.mxu0 %v8675_v11  ;;  %7595 = vmatprep.subr.bf16.mxu1 %v8675_v11 }
 0x154   :  { %7589 = vmatprep.mubr.msk.bf16.mxu0 %vm8676_vm1, %v8675_v11  ;;  %7597 = vmatprep.mubr.msk.bf16.mxu1 %vm8676_vm1, %v8675_v11 }
 0x156   :  { %7588 = vmatpush3.bf16.msra.mxu0 %v8395_v26  ;;  %7596 = vmatpush3.bf16.msra.mxu1 %v8396_v27 }
 0x157   :  { %7601 = vmatprep.subr.bf16.mxu0 %v8675_v11  ;;  %7609 = vmatprep.subr.bf16.mxu1 %v8675_v11 }
 0x159   :  { %7590 = vmatmul.mubr.msk.bf16.vlgmr.msra.gmra.mrb[4].mxu0 %vm90_vm0, %v8857_v25  ;;  %7598 = vmatmul.mubr.msk.bf16.vlgmr.msra.gmra.mrb[4].mxu1 %vm90_vm0, %v8857_v25 }
 0x15a   :  { %7602 = vmatpush3.bf16.msra.mxu0 %v8397_v28  ;;  %7610 = vmatpush3.bf16.msra.mxu1 %v8398_v29 }
 0x15b   :  { %7603 = vmatprep.subr.bf16.mxu0 %v8675_v11  ;;  %7611 = vmatprep.subr.bf16.mxu1 %v8675_v11 }
 0x15c   :  { %7605 = vmatprep.mubr.msk.bf16.mxu0 %vm8676_vm1, %v8675_v11  ;;  %7613 = vmatprep.mubr.msk.bf16.mxu1 %vm8676_vm1, %v8675_v11 }
 0x15e   :  { %7604 = vmatpush3.bf16.msra.mxu0 %v8399_v30  ;;  %7612 = vmatpush3.bf16.msra.mxu1 %v8400_v31 }
 0x15f   :  { %7617 = vmatprep.subr.bf16.mxu0 %v8675_v11  ;;  %7625 = vmatprep.subr.bf16.mxu1 %v8675_v11 }
 0x161   :  { %7606 = vmatmul.mubr.msk.bf16.vlgmr.msra.gmra.mrb[8].mxu0 %vm90_vm0, %v8857_v25  ;;  %7614 = vmatmul.mubr.msk.bf16.vlgmr.msra.gmra.mrb[8].mxu1 %vm90_vm0, %v8857_v25 }
 0x162   :  { %7618 = vmatpush3.bf16.msra.mxu0 %v8401_v32  ;;  %7626 = vmatpush3.bf16.msra.mxu1 %v8402_v33 }
 0x163   :  { %7619 = vmatprep.subr.bf16.mxu0 %v8675_v11  ;;  %7627 = vmatprep.subr.bf16.mxu1 %v8675_v11 }
 0x164   :  { %7621 = vmatprep.mubr.msk.bf16.mxu0 %vm8676_vm1, %v8675_v11  ;;  %7629 = vmatprep.mubr.msk.bf16.mxu1 %vm8676_vm1, %v8675_v11 }
 0x166   :  { %7620 = vmatpush3.bf16.msra.mxu0 %v8403_v34  ;;  %7628 = vmatpush3.bf16.msra.mxu1 %v8404_v35 }
 0x167   :  { %7633 = vmatprep.subr.bf16.mxu0 %v8675_v11  ;;  %7641 = vmatprep.subr.bf16.mxu1 %v8675_v11 }
 0x169   :  { %7622 = vmatmul.mubr.msk.bf16.vlgmr.msra.gmra.mrb[12].mxu0 %vm90_vm0, %v8857_v25  ;;  %7630 = vmatmul.mubr.msk.bf16.vlgmr.msra.gmra.mrb[12].mxu1 %vm90_vm0, %v8857_v25 }
 0x16a   :  { %7634 = vmatpush3.bf16.msra.mxu0 %v8405_v36  ;;  %7642 = vmatpush3.bf16.msra.mxu1 %v8406_v37  ;;  %v9018_v36 = vld [vmem:[%s10411_s4 + $0x2] ss:$0 sm:$0xff]  ;;  %v9023_v37 = vld [vmem:[%s10411_s4 + $0x3] ss:$0 sm:$0xff] }
 0x16b   :  { %7635 = vmatprep.subr.bf16.mxu0 %v8675_v11  ;;  %7643 = vmatprep.subr.bf16.mxu1 %v8675_v11 }
 0x16c   :  { %7637 = vmatprep.mubr.msk.bf16.mxu0 %vm8676_vm1, %v8675_v11  ;;  %7645 = vmatprep.mubr.msk.bf16.mxu1 %vm8676_vm1, %v8675_v11 }
 0x16e   :  { %7636 = vmatpush3.bf16.msra.mxu0 %v8407_v38  ;;  %7644 = vmatpush3.bf16.msra.mxu1 %v8408_v39 }
 0x16f   :  { %7649 = vmatprep.subr.bf16.mxu0 %v8675_v11  ;;  %7657 = vmatprep.subr.bf16.mxu1 %v8675_v11 }
 0x171   :  { %7638 = vmatmul.mubr.msk.bf16.vlgmr.msra.gmra.mrb[16].mxu0 %vm90_vm0, %v8857_v25  ;;  %7646 = vmatmul.mubr.msk.bf16.vlgmr.msra.gmra.mrb[16].mxu1 %vm90_vm0, %v8857_v25 }
 0x172   :  { %7650 = vmatpush3.bf16.msra.mxu0 %v8409_v40  ;;  %7658 = vmatpush3.bf16.msra.mxu1 %v8410_v41  ;;  %v6979_v40 = vld [vmem:[%s10368_s10] ss:$0 sm:$0xff]  ;;  %v9035_v41 = vld [vmem:[%s10368_s10 + $0x1] ss:$0 sm:$0xff] }
 0x173   :  { %7651 = vmatprep.subr.bf16.mxu0 %v8675_v11  ;;  %7659 = vmatprep.subr.bf16.mxu1 %v8675_v11 }
 0x174   :  { %7653 = vmatprep.mubr.msk.bf16.mxu0 %vm8676_vm1, %v8675_v11  ;;  %7661 = vmatprep.mubr.msk.bf16.mxu1 %vm8676_vm1, %v8675_v11 }
 0x176   :  { %7652 = vmatpush3.bf16.msra.mxu0 %v8411_v42  ;;  %7660 = vmatpush3.bf16.msra.mxu1 %v8412_v43 }
 0x177   :  { %7665 = vmatprep.subr.bf16.mxu0 %v8675_v11  ;;  %7671 = vmatprep.subr.bf16.mxu1 %v8675_v11 }
 0x179   :  { %7654 = vmatmul.mubr.msk.bf16.vlgmr.msra.gmra.mrb[20].mxu0 %vm90_vm0, %v8857_v25  ;;  %7662 = vmatmul.mubr.msk.bf16.vlgmr.msra.gmra.mrb[20].mxu1 %vm90_vm0, %v8857_v25 }
 0x17a   :  { %7667 = vmatprep.mubr.msk.bf16.mxu0 %vm8676_vm1, %v8675_v11  ;;  %7673 = vmatprep.mubr.msk.bf16.mxu1 %vm8676_vm1, %v8675_v11 }
 0x224   :  { %v213_v44 = vpop.f32.mrb[0].mxu0  ;;  %v265_v45 = vpop.f32.mrb[0].mxu1 }
 0x225   :  { %v7575_v46 = vpop.f32.mrb[1].mxu0  ;;  %v7583_v47 = vpop.f32.mrb[1].mxu1  ;;  %v214_v19 = vadd.f32 %v8993_v12, %v213_v44  ;;  %v266_v21 = vadd.f32 %v8998_v13, %v265_v45 }
 0x226   :  { %v216_v48 = vpop.f32.mrb[2].mxu0  ;;  %v268_v49 = vpop.f32.mrb[2].mxu1 }
 0x227   :  { %v7576_v50 = vpop.f32.mrb[3].mxu0  ;;  %v7584_v51 = vpop.f32.mrb[3].mxu1  ;;  %v879_v30 = vpack.c.bf16 %v214_v19, %v214_v19  ;;  %v880_v31 = vpack.c.bf16 %v266_v21, %v266_v21 }
 0x22c   :  { %v317_v52 = vpop.f32.mrb[4].mxu0  ;;  %v369_v53 = vpop.f32.mrb[4].mxu1 }
 0x22d   :  { %v7591_v54 = vpop.f32.mrb[5].mxu0  ;;  %v7599_v55 = vpop.f32.mrb[5].mxu1  ;;  %v318_v42 = vadd.f32 %v9018_v36, %v317_v52  ;;  %v370_v43 = vadd.f32 %v9023_v37, %v369_v53 }
 0x22e   :  { %v320_v56 = vpop.f32.mrb[6].mxu0  ;;  %v372_v57 = vpop.f32.mrb[6].mxu1 }
 0x22f   :  { %v7592_v58 = vpop.f32.mrb[7].mxu0  ;;  %v7600_v59 = vpop.f32.mrb[7].mxu1  ;;  %v881_v52 = vpack.c.bf16 %v318_v42, %v318_v42  ;;  %v882_v53 = vpack.c.bf16 %v370_v43, %v370_v43 }
 0x234   :  { %v465_v62 = vpop.f32.mrb[8].mxu0  ;;  %v517_v63 = vpop.f32.mrb[8].mxu1 }
 0x235   :  { %v466_v0 = vadd.f32 %v6963_v60, %v465_v62  ;;  %v518_v1 = vadd.f32 %v8987_v61, %v517_v63  ;;  %v7607_v3 = vpop.f32.mrb[9].mxu0  ;;  %v7615_v4 = vpop.f32.mrb[9].mxu1 }
 0x236   :  { %v468_v5 = vpop.f32.mrb[10].mxu0  ;;  %v520_v6 = vpop.f32.mrb[10].mxu1 }
 0x237   :  { %v883_v7 = vpack.c.bf16 %v466_v0, %v466_v0  ;;  %v884_v8 = vpack.c.bf16 %v518_v1, %v518_v1  ;;  %v7608_v9 = vpop.f32.mrb[11].mxu0  ;;  %v7616_v10 = vpop.f32.mrb[11].mxu1  ;;  %v80_v6 = vlaneseq }
 0x239   :  { %v892_v14 = vsel %vm887_vm2, %v883_v7, 0  ;;  %v938_v15 = vsel %vm887_vm2, %v884_v8, 0  ;;  %v81_v7 = vshrl.u32 %v80_v6, 7  ;;  %v83_v8 = vand.u32 127, %v80_v6 }
 0x23a   :  { %7666 = vmatpush3.bf16.xpose.msra.mxu0 %v892_v14  ;;  %7672 = vmatpush3.bf16.xpose.msra.mxu1 %v938_v15 }
 0x23b   :  { %7677 = vmatprep.subr.bf16.mxu0 %v8675_v11  ;;  %7683 = vmatprep.subr.bf16.mxu1 %v8675_v11  ;;  %vm84_vm4 = vcmp.gt.s32.totalorder %v83_v8, %v81_v7 }
 0x23c   :  { %v569_v22 = vpop.f32.mrb[12].mxu0  ;;  %v621_v23 = vpop.f32.mrb[12].mxu1  ;;  %v9061_v14 = vsel %vm84_vm4, -1e+30, %v8675_v11 }
 0x23d   :  { %v570_v24 = vadd.f32 %v6965_v16, %v569_v22  ;;  %v622_v25 = vadd.f32 %v9008_v17, %v621_v23  ;;  %v7623_v26 = vpop.f32.mrb[13].mxu0  ;;  %v7631_v27 = vpop.f32.mrb[13].mxu1 }
 0x23e   :  { %v572_v28 = vpop.f32.mrb[14].mxu0  ;;  %v624_v29 = vpop.f32.mrb[14].mxu1 }
 0x23f   :  { %v885_v32 = vpack.c.bf16 %v570_v24, %v570_v24  ;;  %v886_v33 = vpack.c.bf16 %v622_v25, %v622_v25  ;;  %v7624_v34 = vpop.f32.mrb[15].mxu0  ;;  %v7632_v35 = vpop.f32.mrb[15].mxu1 }
 0x241   :  { %v984_v38 = vsel %vm887_vm2, %v885_v32, 0  ;;  %v1030_v39 = vsel %vm887_vm2, %v886_v33, 0  ;;  %7668 = vmatmul.mubr.msk.bf16.vlgmr.msra.gmra.mrb[24].mxu0 %vm887_vm2, %v879_v30  ;;  %7674 = vmatmul.mubr.msk.bf16.vlgmr.msra.gmra.mrb[24].mxu1 %vm887_vm2, %v880_v31 }
 0x242   :  { %7678 = vmatpush3.bf16.xpose.msra.mxu0 %v984_v38  ;;  %7684 = vmatpush3.bf16.xpose.msra.mxu1 %v1030_v39 }
 0x243   :  { %7679 = vmatprep.mubr.msk.bf16.mxu0 %vm8676_vm1, %v8675_v11  ;;  %7685 = vmatprep.mubr.msk.bf16.mxu1 %vm8676_vm1, %v8675_v11 }
 0x244   :  { %v717_v44 = vpop.f32.mrb[16].mxu0  ;;  %v769_v45 = vpop.f32.mrb[16].mxu1  ;;  %7689 = vmatprep.subr.bf16.mxu0 %v8675_v11  ;;  %7695 = vmatprep.subr.bf16.mxu1 %v8675_v11 }
 0x245   :  { %v718_v46 = vadd.f32 %v6979_v40, %v717_v44  ;;  %v770_v47 = vadd.f32 %v9035_v41, %v769_v45  ;;  %v7639_v48 = vpop.f32.mrb[17].mxu0  ;;  %v7647_v49 = vpop.f32.mrb[17].mxu1 }
 0x246   :  { %v720_v50 = vpop.f32.mrb[18].mxu0  ;;  %v772_v51 = vpop.f32.mrb[18].mxu1 }
 0x247   :  { %v1128_v54 = vpack.c.bf16 %v718_v46, %v718_v46  ;;  %v1129_v55 = vpack.c.bf16 %v770_v47, %v770_v47  ;;  %v7640_v56 = vpop.f32.mrb[19].mxu0  ;;  %v7648_v57 = vpop.f32.mrb[19].mxu1 }
 0x249   :  { %v1137_v58 = vsel %vm1135_vm3, %v1128_v54, 0  ;;  %v1183_v59 = vsel %vm1135_vm3, %v1129_v55, 0  ;;  %7680 = vmatmul.mubr.msk.bf16.vlgmr.msra.gmra.mrb[28].mxu0 %vm887_vm2, %v881_v52  ;;  %7686 = vmatmul.mubr.msk.bf16.vlgmr.msra.gmra.mrb[28].mxu1 %vm887_vm2, %v882_v53 }
 0x24a   :  { %7690 = vmatpush3.bf16.msra.mxu0 %v1137_v58  ;;  %7696 = vmatpush3.bf16.msra.mxu1 %v1183_v59 }
 0x24b   :  { %7691 = vmatprep.mubr.msk.bf16.mxu0 %vm8676_vm1, %v8675_v11  ;;  %7701 = vmatprep.subr.bf16.mxu0 %v8675_v11 }
 0x24c   :  { %v9053_v60 = vpop.f32.mrb[20].mxu0  ;;  %v9055_v62 = vpop.f32.mrb[20].mxu1  ;;  %7697 = vmatprep.mubr.msk.bf16.mxu1 %vm8676_vm1, %v8675_v11  ;;  %7707 = vmatprep.subr.bf16.mxu1 %v8675_v11 }
 0x24d   :  { %v7655_v63 = vpop.f32.mrb[21].mxu0  ;;  %v7663_v0 = vpop.f32.mrb[21].mxu1 }
 0x24e   :  { %v824_v1 = vpop.f32.mrb[22].mxu0  ;;  %v876_v3 = vpop.f32.mrb[22].mxu1 }
 0x24f   :  { %v7656_v4 = vpop.f32.mrb[23].mxu0  ;;  %v7664_v5 = vpop.f32.mrb[23].mxu1 }
 0x314   :  { %v928_v9 = vpop.f32.mrb[24].mxu0  ;;  %v974_v10 = vpop.f32.mrb[24].mxu1 }
 0x315   :  { %v1072_v15 = vmul.f32 0.35355338, %v928_v9  ;;  %v1073_v16 = vmul.f32 0.35355338, %v974_v10  ;;  %v7669_v19 = vpop.f32.mrb[25].mxu0  ;;  %v7675_v21 = vpop.f32.mrb[25].mxu1 }
 0x316   :  { %v931_v22 = vpop.f32.mrb[26].mxu0  ;;  %v977_v23 = vpop.f32.mrb[26].mxu1  ;;  %v6981_v9 = vld [vmem:[%s10368_s10 + $0x2] ss:$0 sm:$0xff] }
 0x317   :  { %v7670_v24 = vpop.f32.mrb[27].mxu0  ;;  %v7676_v25 = vpop.f32.mrb[27].mxu1  ;;  %v1076_v26 = vadd.f32 %v1072_v15, %v9061_v14  ;;  %v1077_v27 = vadd.f32 %v1073_v16, %v9061_v14  ;;  %v822_v10 = vadd.f32 %v6981_v9, %v9053_v60  ;;  %v9082_v16 = vld [vmem:[%s10368_s10 + $0x3] ss:$0 sm:$0xff] }
 0x318   :  { %v874_v23 = vadd.f32 %v9082_v16, %v9055_v62 }
 0x319   :  { %v1080_v28 = vsel %vm887_vm2, %v1076_v26, -inf  ;;  %v1083_v31 = vsel %vm887_vm2, %v1077_v27, -inf  ;;  %v1130_v22 = vpack.c.bf16 %v822_v10, %v822_v10 }
 0x31a   :  { %1081 = vmax.xlane.f32.xlu1 %v1080_v28  ;;  %v1131_v60 = vpack.c.bf16 %v874_v23, %v874_v23 }
 0x31c   :  { %v1020_v29 = vpop.f32.mrb[28].mxu0  ;;  %v1066_v30 = vpop.f32.mrb[28].mxu1  ;;  %v1275_v62 = vsel %vm1135_vm3, %v1131_v60, 0 }
 0x31d   :  { %v1074_v32 = vmul.f32 0.35355338, %v1020_v29  ;;  %v1075_v33 = vmul.f32 0.35355338, %v1066_v30  ;;  %v7681_v34 = vpop.f32.mrb[29].mxu0  ;;  %v7687_v35 = vpop.f32.mrb[29].mxu1 }
 0x31e   :  { %v1069_v38 = vpop.f32.mrb[30].mxu1  ;;  %1084 = vmax.xlane.f32.xlu1 %v1083_v31  ;;  %v1023_v39 = vpop.f32.mrb[30].mxu0 }
 0x31f   :  { %v7682_v40 = vpop.f32.mrb[31].mxu0  ;;  %v7688_v42 = vpop.f32.mrb[31].mxu1  ;;  %v1079_v43 = vadd.f32 %v1075_v33, %v9061_v14  ;;  %v1078_v44 = vadd.f32 %v1074_v32, %v9061_v14  ;;  %v1321_v32 = vld [vmem:[%s10369_s11] sm:$0xf] }
 0x320   :  { %v1329_v38 = vsel %vm1135_vm3, %v1321_v32, 0  ;;  %v1322_v40 = vld [vmem:[%s10369_s11 + $0x4] sm:$0xf] }
 0x321   :  { %v1089_v45 = vsel %vm887_vm2, %v1079_v43, -inf  ;;  %v1086_v46 = vsel %vm887_vm2, %v1078_v44, -inf  ;;  %v1375_v42 = vsel %vm1135_vm3, %v1322_v40, 0 }
 0x322   :  { %1090 = vmax.xlane.f32.xlu1 %v1089_v45  ;;  %1087 = vmax.xlane.f32.xlu0 %v1086_v46 }
 0x3a7   :  { %v1082_v47 = vpop.xlane.xlu1 %1081 }
 0x3a8   :  { %v1092_v48 = vsub.f32 %v1076_v26, %v1082_v47 }
 0x3aa   :  { %v1096_v49 = vmul.f32 1.442695, %v1092_v48 }
 0x3ab   :  { %v1085_v50 = vpop.xlane.xlu1 %1084 }
 0x3ac   :  { %8529 = vpow2.f32 %v1096_v49  ;;  %v1093_v51 = vsub.f32 %v1077_v27, %v1085_v50  ;;  %v1229_v27 = vsel %vm1135_vm3, %v1130_v22, 0  ;;  %v1324_v49 = vld [vmem:[%s10369_s11 + $0xc] sm:$0xf] }
 0x3ae   :  { %v1098_v52 = vmul.f32 1.442695, %v1093_v51 }
 0x3af   :  { %v1091_v53 = vpop.xlane.xlu1 %1090  ;;  %v1088_v54 = vpop.xlane.xlu0 %1087 }
 0x3b0   :  { %8531 = vpow2.f32 %v1098_v52  ;;  %v1095_v55 = vsub.f32 %v1079_v43, %v1091_v53  ;;  %v1094_v56 = vsub.f32 %v1078_v44, %v1088_v54  ;;  %v1323_v43 = vld [vmem:[%s10369_s11 + $0x8] sm:$0xf]  ;;  %v1467_v54 = vsel %vm1135_vm3, %v1324_v49, 0 }
 0x3b1   :  { %v1421_v47 = vsel %vm1135_vm3, %v1323_v43, 0  ;;  %v9150_v43 = vld [vmem:[%s10404_s27] sm:$0xff] }
 0x3b2   :  { %v1102_v57 = vmul.f32 1.442695, %v1095_v55  ;;  %v1100_v58 = vmul.f32 1.442695, %v1094_v56 }
 0x3b4   :  { %8533 = vpow2.f32 %v1102_v57 }
 0x3b5   :  { %8535 = vpow2.f32 %v1100_v58 }
 0x3b6   :  { %v8530_v59 = vpop.eup %8529 }
 0x3b7   :  { %v1104_v63 = vsel %vm887_vm2, %v8530_v59, 0.0 }
 0x3b8   :  { %1105 = vadd.xlane.f32.xlu0 %v1104_v63 }
 0x3ba   :  { %v8532_v0 = vpop.eup %8531 }
 0x3bb   :  { %v1107_v1 = vsel %vm887_vm2, %v8532_v0, 0.0 }
 0x3bc   :  { %1108 = vadd.xlane.f32.xlu1 %v1107_v1 }
 0x3be   :  { %v8534_v3 = vpop.eup %8533 }
 0x3bf   :  { %v8536_v4 = vpop.eup %8535  ;;  %v1113_v5 = vsel %vm887_vm2, %v8534_v3, 0.0 }
 0x3c0   :  { %1114 = vadd.xlane.f32.xlu1 %v1113_v5  ;;  %v1110_v6 = vsel %vm887_vm2, %v8536_v4, 0.0 }
 0x3c1   :  { %1111 = vadd.xlane.f32.xlu0 %v1110_v6 }
 0x445   :  { %v1106_v7 = vpop.xlane.xlu0 %1105 }
 0x446   :  { %8537 = vrcp.f32 %v1106_v7 }
 0x449   :  { %v1109_v8 = vpop.xlane.xlu1 %1108 }
 0x44a   :  { %8539 = vrcp.f32 %v1109_v8 }
 0x44d   :  { %v1115_v15 = vpop.xlane.xlu1 %1114 }
 0x44e   :  { %8541 = vrcp.f32 %v1115_v15  ;;  %v1112_v19 = vpop.xlane.xlu0 %1111 }
 0x44f   :  { %8543 = vrcp.f32 %v1112_v19 }
 0x450   :  { %v8538_v21 = vpop.eup %8537 }
 0x451   :  { %v1120_v24 = vmul.f32 %v8538_v21, %v8530_v59 }
 0x453   :  { %v1124_v25 = vpack.c.bf16 %v1120_v24, %v1120_v24 }
 0x454   :  { %v8540_v26 = vpop.eup %8539 }
 0x455   :  { %v1121_v28 = vmul.f32 %v8540_v26, %v8532_v0  ;;  %7692 = vmatmul.mubr.msk.bf16.vlgmr.msra.gmra.mrb[32].mxu0 %vm887_vm2, %v1124_v25 }
 0x456   :  { %7702 = vmatpush3.bf16.msra.mxu0 %v1229_v27  ;;  %7703 = vmatprep.mubr.msk.bf16.mxu0 %vm8676_vm1, %v8675_v11 }
 0x457   :  { %v1125_v29 = vpack.c.bf16 %v1121_v28, %v1121_v28  ;;  %7713 = vmatprep.subr.bf16.mxu0 %v8675_v11 }
 0x458   :  { %v8542_v30 = vpop.eup %8541 }
 0x459   :  { %v8544_v31 = vpop.eup %8543  ;;  %7698 = vmatmul.mubr.msk.bf16.vlgmr.msra.gmra.mrb[32].mxu1 %vm887_vm2, %v1125_v29  ;;  %v1123_v34 = vmul.f32 %v8542_v30, %v8534_v3 }
 0x45a   :  { %v1122_v33 = vmul.f32 %v8544_v31, %v8536_v4  ;;  %7708 = vmatpush3.bf16.msra.mxu1 %v1275_v62  ;;  %7709 = vmatprep.mubr.msk.bf16.mxu1 %vm8676_vm1, %v8675_v11 }
 0x45b   :  { %7719 = vmatprep.subr.bf16.mxu1 %v8675_v11  ;;  %v1127_v39 = vpack.c.bf16 %v1123_v34, %v1123_v34 }
 0x45c   :  { %v1126_v35 = vpack.c.bf16 %v1122_v33, %v1122_v33 }
 0x45e   :  { %7704 = vmatmul.mubr.msk.bf16.vlgmr.msra.gmra.mrb[36].mxu0 %vm887_vm2, %v1126_v35 }
 0x45f   :  { %7714 = vmatpush3.bf16.msra.mxu0 %v1329_v38  ;;  %7715 = vmatprep.mubr.msk.bf16.mxu0 %vm8676_vm1, %v8675_v11  ;;  %v7007_v38 = vld [vmem:[%s10370_s12] ss:$0 sm:$0xff] }
 0x460   :  { %7725 = vmatprep.subr.bf16.mxu0 %v8675_v11 }
 0x461   :  { %7710 = vmatmul.mubr.msk.bf16.vlgmr.msra.gmra.mrb[36].mxu1 %vm887_vm2, %v1127_v39  ;;  %v7024_v39 = vld [vmem:[%s10405_s2 + $0x8] sm:$0xff] }
 0x462   :  { %7721 = vmatprep.mubr.msk.bf16.mxu1 %vm8676_vm1, %v8675_v11  ;;  %7720 = vmatpush3.bf16.msra.mxu1 %v1375_v42 }
 0x463   :  { %7731 = vmatprep.subr.bf16.mxu1 %v8675_v11 }
 0x528   :  { %v1173_v44 = vpop.f32.mrb[32].mxu0 }
 0x529   :  { %v1317_v45 = vpack.c.bf16 %v1173_v44, %v1173_v44  ;;  %v7693_v46 = vpop.f32.mrb[33].mxu0  ;;  %v9153_v44 = vadd.f32 %v9150_v43, %v7024_v39  ;;  %v8432_v39 = vld [vmem:[%s10375_s17 + $0x8] sm:$0xff]  }
 0x52a   :  { %v1176_v48 = vpop.f32.mrb[34].mxu0 }
 0x52b   :  { %v7694_v50 = vpop.f32.mrb[35].mxu0  ;;  %7716 = vmatmul.mubr.msk.bf16.vlgmr.msra.gmra.mrb[40].mxu0 %vm887_vm2, %v1317_v45  ;;  %v1747_v46 = vsel %vm90_vm0, %v9153_v44, 0.0 }
 0x52c   :  { %v1219_v51 = vpop.f32.mrb[32].mxu1  ;;  %7726 = vmatpush3.bf16.msra.mxu0 %v1421_v47  ;;  %7727 = vmatprep.mubr.msk.bf16.mxu0 %vm8676_vm1, %v8675_v11 }
 0x52d   :  { %v1318_v52 = vpack.c.bf16 %v1219_v51, %v1219_v51  ;;  %v7699_v53 = vpop.f32.mrb[33].mxu1  ;;  %7737 = vmatprep.subr.bf16.mxu0 %v8675_v11 }
 0x52e   :  { %v1222_v55 = vpop.f32.mrb[34].mxu1 }
 0x52f   :  { %v7700_v56 = vpop.f32.mrb[35].mxu1  ;;  %7722 = vmatmul.mubr.msk.bf16.vlgmr.msra.gmra.mrb[40].mxu1 %vm887_vm2, %v1318_v52 }
 0x530   :  { %7732 = vmatpush3.bf16.msra.mxu1 %v1467_v54  ;;  %7733 = vmatprep.mubr.msk.bf16.mxu1 %vm8676_vm1, %v8675_v11  ;;  %v8413_v56 = vld [vmem:[%s10373_s15] sm:$0xff]  }
 0x531   :  { %v1265_v57 = vpop.f32.mrb[36].mxu0  ;;  %7745 = vmatprep.subr.bf16.mxu1 %v8675_v11 }
 0x532   :  { %v1319_v58 = vpack.c.bf16 %v1265_v57, %v1265_v57  ;;  %v7705_v59 = vpop.f32.mrb[37].mxu0  ;;  %v8414_v57 = vld [vmem:[%s10373_s15 + $0x8] sm:$0xff]  }
 0x533   :  { %v1268_v63 = vpop.f32.mrb[38].mxu0 }
 0x534   :  { %v7706_v0 = vpop.f32.mrb[39].mxu0  ;;  %7728 = vmatmul.mubr.msk.bf16.vlgmr.msra.gmra.mrb[44].mxu0 %vm887_vm2, %v1319_v58  ;;  %v1311_v1 = vpop.f32.mrb[36].mxu1 }
 0x535   :  { %v1320_v3 = vpack.c.bf16 %v1311_v1, %v1311_v1  ;;  %v7711_v4 = vpop.f32.mrb[37].mxu1  ;;  %7741 = vmatprep.mubr.msk.bf16.mxu0 %vm8676_vm1, %v8675_v11  ;;  %7738 = vmatpush3.bf16.msra.mxu0 %v8413_v56 }
 0x536   :  { %v1314_v5 = vpop.f32.mrb[38].mxu1  ;;  %7739 = vmatprep.subr.bf16.mxu0 %v8675_v11 }
 0x537   :  { %v7712_v6 = vpop.f32.mrb[39].mxu1  ;;  %7734 = vmatmul.mubr.msk.bf16.vlgmr.msra.gmra.mrb[44].mxu1 %vm887_vm2, %v1320_v3  ;;  %v7008_v5 = vld [vmem:[%s10371_s13] ss:$0 sm:$0xff] }
 0x538   :  { %7761 = vmatprep.mubr.msk.bf16.mxu1 %vm8676_vm1, %v8675_v11 }
 0x539   :  { %7740 = vmatpush3.bf16.msra.mxu0 %v8414_v57 }
 0x53a   :  { %7765 = vmatprep.subr.bf16.mxu0 %v8675_v11 }
 0x5fe   :  { %v1365_v7 = vpop.f32.mrb[40].mxu0 }
 0x5ff   :  { %v7717_v8 = vpop.f32.mrb[41].mxu0  ;;  %v1509_v19 = vsel %vm90_vm0, %v1365_v7, 0.0  ;;  %v7009_v7 = vld [vmem:[%s10372_s14] ss:$0 sm:$0xff] }
 0x600   :  { %v1368_v9 = vpop.f32.mrb[42].mxu0 }
 0x601   :  { %v7718_v10 = vpop.f32.mrb[43].mxu0 }
 0x602   :  { %v1411_v15 = vpop.f32.mrb[40].mxu1 }
 0x603   :  { %v1510_v21 = vsel %vm90_vm0, %v1411_v15, 0.0  ;;  %v7723_v22 = vpop.f32.mrb[41].mxu1 }
 0x604   :  { %v1511_v23 = vadd.f32 %v1510_v21, %v1509_v19  ;;  %v1414_v24 = vpop.f32.mrb[42].mxu1  ;;  %v8415_v19 = vld [vmem:[%s10406_s7] sm:$0xff]  }
 0x605   :  { %v7724_v25 = vpop.f32.mrb[43].mxu1  ;;  %v8416_v24 = vld [vmem:[%s10406_s7 + $0x8] sm:$0xff]  }
 0x607   :  { %v1457_v26 = vpop.f32.mrb[44].mxu0 }
 0x608   :  { %v1512_v27 = vsel %vm90_vm0, %v1457_v26, 0.0  ;;  %v7729_v60 = vpop.f32.mrb[45].mxu0  ;;  %v8419_v26 = vld [vmem:[%s10406_s7 + $0x20] sm:$0xff]  }
 0x609   :  { %v1513_v28 = vadd.f32 %v1512_v27, %v1511_v23  ;;  %v1460_v29 = vpop.f32.mrb[46].mxu0  ;;  %v8420_v27 = vld [vmem:[%s10406_s7 + $0x28] sm:$0xff]   ;;  %v8421_v60 = vld [vmem:[%s10406_s7 + $0x30] sm:$0xff]  }
 0x60a   :  { %v7730_v30 = vpop.f32.mrb[47].mxu0  ;;  %v1503_v31 = vpop.f32.mrb[44].mxu1  ;;  %v8423_v29 = vld [vmem:[%s10409_s30 + $0x10] sm:$0xff]  }
 0x60b   :  { %v1514_v62 = vsel %vm90_vm0, %v1503_v31, 0.0  ;;  %v7735_v32 = vpop.f32.mrb[45].mxu1  ;;  %v8424_v30 = vld [vmem:[%s10409_s30 + $0x18] sm:$0xff]   ;;  %v8425_v31 = vld [vmem:[%s10409_s30 + $0x30] sm:$0xff]  }
 0x60c   :  { %v1515_v33 = vadd.f32 %v1514_v62, %v1513_v28  ;;  %v1506_v34 = vpop.f32.mrb[46].mxu1  ;;  %v8422_v28 = vld [vmem:[%s10406_s7 + $0x38] sm:$0xff]   ;;  %v8427_v32 = vld [vmem:[%s10410_s6 + $0x10] sm:$0xff]  }
 0x60d   :  { %v7736_v35 = vpop.f32.mrb[47].mxu1  ;;  %v8426_v62 = vld [vmem:[%s10409_s30 + $0x38] sm:$0xff]   ;;  %v8429_v34 = vld [vmem:[%s10410_s6 + $0x30] sm:$0xff]  }
 0x60e   :  { %v1516_v40 = vadd.f32 %v1515_v33, %v8811_v2  ;;  %v8428_v33 = vld [vmem:[%s10410_s6 + $0x18] sm:$0xff]  }
 0x60f   :  { %v8430_v35 = vld [vmem:[%s10410_s6 + $0x38] sm:$0xff]  }
 0x610   :  { %v9145_v42 = vadd.f32 %v7007_v38, %v1516_v40  ;;  %v8431_v38 = vld [vmem:[%s10375_s17] sm:$0xff]   ;;  %v8433_v40 = vld [vmem:[%s10375_s17 + $0x10] sm:$0xff]  }
 0x611   :  { %7746 = vmatpush3.bf16.msra.mxu1 %v8431_v38 }
 0x612   :  { %v1527_v45 = vsel %vm90_vm0, %v9145_v42, 0.0  ;;  %7747 = vmatprep.subr.bf16.mxu1 %v8675_v11 }
 0x613   :  { %1528 = vadd.xlane.f32.xlu0 %v1527_v45  ;;  %v8434_v45 = vld [vmem:[%s10375_s17 + $0x18] sm:$0xff]  }
 0x615   :  { %7748 = vmatpush3.bf16.msra.mxu1 %v8432_v39 }
 0x616   :  { %7749 = vmatprep.subr.bf16.mxu1 %v8675_v11 }
 0x617   :  { %1748 = vadd.xlane.f32.xlu0 %v1747_v46  ;;  %v8435_v46 = vld [vmem:[%s10375_s17 + $0x20] sm:$0xff]  }
 0x619   :  { %7750 = vmatpush3.bf16.msra.mxu1 %v8433_v40 }
 0x61a   :  { %7751 = vmatprep.subr.bf16.mxu1 %v8675_v11 }
 0x61d   :  { %7752 = vmatpush3.bf16.msra.mxu1 %v8434_v45 }
 0x61e   :  { %7753 = vmatprep.subr.bf16.mxu1 %v8675_v11 }
 0x621   :  { %7754 = vmatpush3.bf16.msra.mxu1 %v8435_v46 }
 0x622   :  { %7755 = vmatprep.subr.bf16.mxu1 %v8675_v11 }
 0x6a0   :  { %v1529_v47 = vpop.xlane.xlu0 %1528 }
 0x6a1   :  { %v1530_v2 = vmul.f32 0.03125, %v1529_v47  ;;  %v8436_v47 = vld [vmem:[%s10375_s17 + $0x28] sm:$0xff]  }
 0x6a2   :  { %7756 = vmatpush3.bf16.msra.mxu1 %v8436_v47  ;;  %v8444_v47 = vld [vmem:[%s10410_s6 + $0x8] sm:$0xff]  }
 0x6a3   :  { %v1531_v48 = vsub.f32 %v9145_v42, %v1530_v2  ;;  %7757 = vmatprep.subr.bf16.mxu1 %v8675_v11  ;;  %v8437_v2 = vld [vmem:[%s10375_s17 + $0x30] sm:$0xff]  }
 0x6a4   :  { %v1749_v49 = vpop.xlane.xlu0 %1748 }
 0x6a5   :  { %v1532_v50 = vmul.f32 %v1531_v48, %v1531_v48  ;;  %v1750_v51 = vmul.f32 0.03125, %v1749_v49  ;;  %v7010_v49 = vld [vmem:[%s10374_s16] ss:$0 sm:$0xff] }
 0x6a6   :  { %7758 = vmatpush3.bf16.msra.mxu1 %v8437_v2 }
 0x6a7   :  { %v1533_v52 = vsel %vm90_vm0, %v1532_v50, 0.0  ;;  %v1751_v53 = vsub.f32 %v9153_v44, %v1750_v51  ;;  %7759 = vmatprep.subr.bf16.mxu1 %v8675_v11 }
 0x6a8   :  { %1534 = vadd.xlane.f32.xlu1 %v1533_v52 }
 0x6a9   :  { %v1752_v54 = vmul.f32 %v1751_v53, %v1751_v53 }
 0x6ab   :  { %v1753_v55 = vsel %vm90_vm0, %v1752_v54, 0.0 }
 0x6ac   :  { %1754 = vadd.xlane.f32.xlu1 %v1753_v55 }
 0x735   :  { %v1535_v58 = vpop.xlane.xlu1 %1534 }
 0x736   :  { %v1536_v59 = vmul.f32 0.03125, %v1535_v58 }
 0x738   :  { %v1537_v63 = vadd.f32 1e-05, %v1536_v59 }
 0x739   :  { %v1755_v0 = vpop.xlane.xlu1 %1754 }
 0x73a   :  { %8545 = vrsqrt.f32 %v1537_v63  ;;  %v1756_v1 = vmul.f32 0.03125, %v1755_v0 }
 0x73c   :  { %v1757_v3 = vadd.f32 1e-05, %v1756_v1 }
 0x73e   :  { %8547 = vrsqrt.f32 %v1757_v3 }
 0x744   :  { %v8546_v4 = vpop.eup %8545 }
 0x745   :  { %v1539_v6 = vmul.f32 %v8546_v4, %v1531_v48  ;;  %v8438_v48 = vld [vmem:[%s10375_s17 + $0x38] sm:$0xff]  }
 0x746   :  { %7760 = vmatpush3.bf16.msra.mxu1 %v8438_v48 }
 0x747   :  { %v1546_v8 = vmul.f32 %v7008_v5, %v1539_v6  ;;  %7797 = vmatprep.subr.bf16.mxu1 %v8675_v11 }
 0x748   :  { %v8548_v9 = vpop.eup %8547 }
 0x749   :  { %v1759_v10 = vmul.f32 %v8548_v9, %v1751_v53  ;;  %v1553_v15 = vadd.f32 %v7009_v7, %v1546_v8 }
 0x74b   :  { %v1766_v21 = vmul.f32 %v8842_v18, %v1759_v10  ;;  %v1554_v22 = vpack.c.bf16 %v1553_v15, %v1553_v15  ;;  %v8417_v18 = vld [vmem:[%s10406_s7 + $0x10] sm:$0xff]  }
 0x74d   :  { %v1773_v23 = vadd.f32 %v8847_v20, %v1766_v21  ;;  %7742 = vmatmul.mubr.msk.bf16.vlgmr.msra.gmra.mrb[48].mxu0 %vm90_vm0, %v1554_v22  ;;  %v8418_v20 = vld [vmem:[%s10406_s7 + $0x18] sm:$0xff]   ;;  %v8439_v22 = vld [vmem:[%s10409_s30] sm:$0xff]  }
 0x74e   :  { %7766 = vmatpush3.bf16.msra.mxu0 %v8415_v19  ;;  %7769 = vmatprep.mubr.msk.bf16.mxu0 %vm8676_vm1, %v8675_v11 }
 0x74f   :  { %7767 = vmatprep.subr.bf16.mxu0 %v8675_v11  ;;  %v9189_v25 = vpack.c.bf16 %v1773_v23, %v1773_v23 }
 0x752   :  { %7768 = vmatpush3.bf16.msra.mxu0 %v8416_v24 }
 0x753   :  { %7773 = vmatprep.subr.bf16.mxu0 %v8675_v11 }
 0x755   :  { %7770 = vmatmul.mubr.msk.bf16.vlgmr.msra.gmra.mrb[52].mxu0 %vm90_vm0, %v9189_v25 }
 0x756   :  { %7774 = vmatpush3.bf16.msra.mxu0 %v8417_v18  ;;  %7777 = vmatprep.mubr.msk.bf16.mxu0 %vm8676_vm1, %v8675_v11 }
 0x757   :  { %7775 = vmatprep.subr.bf16.mxu0 %v8675_v11 }
 0x75a   :  { %7776 = vmatpush3.bf16.msra.mxu0 %v8418_v20 }
 0x75b   :  { %7781 = vmatprep.subr.bf16.mxu0 %v8675_v11 }
 0x75d   :  { %7778 = vmatmul.mubr.msk.bf16.vlgmr.msra.gmra.mrb[56].mxu0 %vm90_vm0, %v9189_v25 }
 0x75e   :  { %7782 = vmatpush3.bf16.msra.mxu0 %v8419_v26  ;;  %7785 = vmatprep.mubr.msk.bf16.mxu0 %vm8676_vm1, %v8675_v11  ;;  %v8440_v26 = vld [vmem:[%s10409_s30 + $0x8] sm:$0xff]  }
 0x75f   :  { %7783 = vmatprep.subr.bf16.mxu0 %v8675_v11 }
 0x762   :  { %7784 = vmatpush3.bf16.msra.mxu0 %v8420_v27 }
 0x763   :  { %7789 = vmatprep.subr.bf16.mxu0 %v8675_v11 }
 0x765   :  { %7786 = vmatmul.mubr.msk.bf16.vlgmr.msra.gmra.mrb[60].mxu0 %vm90_vm0, %v9189_v25 }
 0x766   :  { %7790 = vmatpush3.bf16.msra.mxu0 %v8421_v60  ;;  %7793 = vmatprep.mubr.msk.bf16.mxu0 %vm8676_vm1, %v8675_v11  ;;  %v8441_v60 = vld [vmem:[%s10409_s30 + $0x20] sm:$0xff]  }
 0x767   :  { %7791 = vmatprep.subr.bf16.mxu0 %v8675_v11 }
 0x76a   :  { %7792 = vmatpush3.bf16.msra.mxu0 %v8422_v28 }
 0x76b   :  { %7805 = vmatprep.subr.bf16.mxu0 %v8675_v11 }
 0x76d   :  { %7794 = vmatmul.mubr.msk.bf16.vlgmr.msra.gmra.mrb[64].mxu0 %vm90_vm0, %v9189_v25 }
 0x76e   :  { %7806 = vmatpush3.bf16.msra.mxu0 %v8423_v29  ;;  %7809 = vmatprep.mubr.msk.bf16.mxu0 %vm8676_vm1, %v8675_v11 }
 0x76f   :  { %7807 = vmatprep.subr.bf16.mxu0 %v8675_v11 }
 0x772   :  { %7808 = vmatpush3.bf16.msra.mxu0 %v8424_v30 }
 0x773   :  { %7821 = vmatprep.subr.bf16.mxu0 %v8675_v11 }
 0x775   :  { %7810 = vmatmul.mubr.msk.bf16.vlgmr.msra.gmra.mrb[68].mxu0 %vm90_vm0, %v9189_v25 }
 0x776   :  { %7822 = vmatpush3.bf16.msra.mxu0 %v8425_v31  ;;  %7825 = vmatprep.mubr.msk.bf16.mxu0 %vm8676_vm1, %v8675_v11 }
 0x777   :  { %7823 = vmatprep.subr.bf16.mxu0 %v8675_v11 }
 0x77a   :  { %7824 = vmatpush3.bf16.msra.mxu0 %v8426_v62 }
 0x77b   :  { %7837 = vmatprep.subr.bf16.mxu0 %v8675_v11 }
 0x77d   :  { %7826 = vmatmul.mubr.msk.bf16.vlgmr.msra.gmra.mrb[72].mxu0 %vm90_vm0, %v9189_v25 }
 0x77e   :  { %7838 = vmatpush3.bf16.msra.mxu0 %v8427_v32  ;;  %7841 = vmatprep.mubr.msk.bf16.mxu0 %vm8676_vm1, %v8675_v11  ;;  %v8442_v32 = vld [vmem:[%s10409_s30 + $0x28] sm:$0xff]  }
 0x77f   :  { %7839 = vmatprep.subr.bf16.mxu0 %v8675_v11 }
 0x782   :  { %7840 = vmatpush3.bf16.msra.mxu0 %v8428_v33 }
 0x783   :  { %7853 = vmatprep.subr.bf16.mxu0 %v8675_v11 }
 0x785   :  { %7842 = vmatmul.mubr.msk.bf16.vlgmr.msra.gmra.mrb[76].mxu0 %vm90_vm0, %v9189_v25 }
 0x786   :  { %7854 = vmatpush3.bf16.msra.mxu0 %v8429_v34  ;;  %7857 = vmatprep.mubr.msk.bf16.mxu0 %vm8676_vm1, %v8675_v11 }
 0x787   :  { %7855 = vmatprep.subr.bf16.mxu0 %v8675_v11 }
 0x78a   :  { %7856 = vmatpush3.bf16.msra.mxu0 %v8430_v35  ;;  %v8443_v35 = vld [vmem:[%s10410_s6] sm:$0xff]  }
 0x78b   :  { %7867 = vmatprep.subr.bf16.mxu0 %v8675_v11 }
 0x78d   :  { %7858 = vmatmul.mubr.msk.bf16.vlgmr.msra.gmra.mrb[80].mxu0 %vm90_vm0, %v9189_v25 }
 0x78e   :  { %7869 = vmatprep.mubr.msk.bf16.mxu0 %vm8676_vm1, %v8675_v11 }
 0x820   :  { %v1615_v50 = vpop.f32.mrb[48].mxu0 }
 0x821   :  { %v1616_v51 = vadd.f32 %v7010_v49, %v1615_v50  ;;  %v7743_v52 = vpop.f32.mrb[49].mxu0  ;;  %v8445_v49 = vld [vmem:[%s10410_s6 + $0x20] sm:$0xff]  }
 0x822   :  { %v1618_v53 = vpop.f32.mrb[50].mxu0 }
 0x823   :  { %v7014_v54 = vmul.f32 -1.702, %v1616_v51  ;;  %v7744_v55 = vpop.f32.mrb[51].mxu0 }
 0x824   :  { %v8446_v55 = vld [vmem:[%s10410_s6 + $0x28] sm:$0xff]  }
 0x825   :  { %v1623_v56 = vmul.f32 1.442695, %v7014_v54 }
 0x827   :  { %8549 = vpow2.f32 %v1623_v56 }
 0x828   :  { %v9315_v57 = vpop.f32.mrb[52].mxu0 }
 0x829   :  { %v7771_v58 = vpop.f32.mrb[53].mxu0 }
 0x82a   :  { %v1871_v59 = vpop.f32.mrb[54].mxu0 }
 0x82b   :  { %v7772_v63 = vpop.f32.mrb[55].mxu0 }
 0x830   :  { %v1920_v0 = vpop.f32.mrb[56].mxu0 }
 0x831   :  { %v8550_v1 = vpop.eup %8549  ;;  %v7779_v3 = vpop.f32.mrb[57].mxu0  ;;  %v1921_v33 = vadd.f32 %v8998_v13, %v1920_v0 }
 0x832   :  { %v1625_v4 = vadd.f32 1.0, %v8550_v1  ;;  %v1923_v5 = vpop.f32.mrb[58].mxu0 }
 0x833   :  { %v7780_v6 = vpop.f32.mrb[59].mxu0  ;;  %v2535_v38 = vpack.c.bf16 %v1921_v33, %v1921_v33  ;;  %v7043_v5 = vld [vmem:[%s10367_s9] ss:$0 sm:$0xff] }
 0x834   :  { %8551 = vrcp.f32 %v1625_v4 }
 0x838   :  { %v9317_v7 = vpop.f32.mrb[60].mxu0 }
 0x839   :  { %v7787_v8 = vpop.f32.mrb[61].mxu0  ;;  %v1973_v33 = vadd.f32 %v9018_v36, %v9317_v7 }
 0x83a   :  { %v1975_v9 = vpop.f32.mrb[62].mxu0 }
 0x83b   :  { %v7788_v10 = vpop.f32.mrb[63].mxu0 }
 0x83e   :  { %v8552_v15 = vpop.eup %8551 }
 0x83f   :  { %v1628_v19 = vmul.f32 %v8552_v15, %v1616_v51 }
 0x840   :  { %v2024_v21 = vpop.f32.mrb[64].mxu0 }
 0x841   :  { %v1629_v23 = vpack.c.bf16 %v1628_v19, %v1628_v19  ;;  %v7795_v24 = vpop.f32.mrb[65].mxu0  ;;  %v2025_v2 = vadd.f32 %v9023_v37, %v2024_v21  ;;  %v7045_v21 = vld [vmem:[%s10367_s9 + $0x2] ss:$0 sm:$0xff] }
 0x842   :  { %v2027_v18 = vpop.f32.mrb[66].mxu0 }
 0x843   :  { %7762 = vmatmul.mubr.bf16.vlgmr.msra.gmra.mrb[48].mxu1 %v1629_v23  ;;  %v7796_v20 = vpop.f32.mrb[67].mxu0  ;;  %v2537_v50 = vpack.c.bf16 %v2025_v2, %v2025_v2 }
 0x844   :  { %7798 = vmatpush3.bf16.msra.mxu1 %v8439_v22  ;;  %7801 = vmatprep.mubr.msk.bf16.mxu1 %vm8676_vm1, %v8675_v11  ;;  %v1869_v22 = vadd.f32 %v8993_v12, %v9315_v57  ;;  %v7059_v57 = vld [vmem:[%s10368_s10] ss:$0 sm:$0xff] }
 0x845   :  { %7799 = vmatprep.subr.bf16.mxu1 %v8675_v11 }
 0x848   :  { %7800 = vmatpush3.bf16.msra.mxu1 %v8440_v26  ;;  %v2172_v27 = vpop.f32.mrb[68].mxu0 }
 0x849   :  { %v2173_v28 = vadd.f32 %v8987_v61, %v2172_v27  ;;  %7813 = vmatprep.subr.bf16.mxu1 %v8675_v11  ;;  %v7811_v29 = vpop.f32.mrb[69].mxu0  ;;  %v2534_v27 = vpack.c.bf16 %v1869_v22, %v1869_v22 }
 0x84a   :  { %v2175_v30 = vpop.f32.mrb[70].mxu0 }
 0x84b   :  { %v2539_v31 = vpack.c.bf16 %v2173_v28, %v2173_v28  ;;  %7802 = vmatmul.mubr.msk.bf16.vlgmr.msra.gmra.mrb[52].mxu1 %vm90_vm0, %v9189_v25  ;;  %v7812_v62 = vpop.f32.mrb[71].mxu0 }
 0x84c   :  { %7814 = vmatpush3.bf16.msra.mxu1 %v8441_v60  ;;  %7817 = vmatprep.mubr.msk.bf16.mxu1 %vm8676_vm1, %v8675_v11 }
 0x84d   :  { %v2592_v61 = vsel %vm887_vm2, %v2539_v31, 0  ;;  %7815 = vmatprep.subr.bf16.mxu1 %v8675_v11 }
 0x84e   :  { %7868 = vmatpush3.bf16.xpose.msra.mxu0 %v2592_v61 }
 0x84f   :  { %7879 = vmatprep.subr.bf16.mxu0 %v8675_v11 }
 0x850   :  { %7816 = vmatpush3.bf16.msra.mxu1 %v8442_v32  ;;  %v2276_v34 = vpop.f32.mrb[72].mxu0 }
 0x851   :  { %v2277_v39 = vadd.f32 %v9008_v17, %v2276_v34  ;;  %7829 = vmatprep.subr.bf16.mxu1 %v8675_v11  ;;  %v7827_v40 = vpop.f32.mrb[73].mxu0 }
 0x852   :  { %v2279_v13 = vpop.f32.mrb[74].mxu0 }
 0x853   :  { %v2541_v45 = vpack.c.bf16 %v2277_v39, %v2277_v39  ;;  %7818 = vmatmul.mubr.msk.bf16.vlgmr.msra.gmra.mrb[56].mxu1 %vm90_vm0, %v9189_v25  ;;  %v7828_v46 = vpop.f32.mrb[75].mxu0  ;;  %v2536_v13 = vpack.c.bf16 %v1973_v33, %v1973_v33 }
 0x854   :  { %7830 = vmatpush3.bf16.msra.mxu1 %v8443_v35  ;;  %7833 = vmatprep.mubr.msk.bf16.mxu1 %vm8676_vm1, %v8675_v11 }
 0x855   :  { %v2684_v17 = vsel %vm887_vm2, %v2541_v45, 0  ;;  %7870 = vmatmul.mubr.msk.bf16.vlgmr.msra.gmra.mrb[84].mxu0 %vm887_vm2, %v2535_v38  ;;  %7831 = vmatprep.subr.bf16.mxu1 %v8675_v11 }
 0x856   :  { %7880 = vmatpush3.bf16.xpose.msra.mxu0 %v2684_v17  ;;  %7881 = vmatprep.mubr.msk.bf16.mxu0 %vm8676_vm1, %v8675_v11 }
 0x857   :  { %7891 = vmatprep.subr.bf16.mxu0 %v8675_v11 }
 0x858   :  { %7832 = vmatpush3.bf16.msra.mxu1 %v8444_v47  ;;  %v2424_v48 = vpop.f32.mrb[76].mxu0 }
 0x859   :  { %7845 = vmatprep.subr.bf16.mxu1 %v8675_v11  ;;  %v2425_v37 = vadd.f32 %v9035_v41, %v2424_v48  ;;  %v7843_v51 = vpop.f32.mrb[77].mxu0 }
 0x85a   :  { %v2427_v52 = vpop.f32.mrb[78].mxu0 }
 0x85b   :  { %7834 = vmatmul.mubr.msk.bf16.vlgmr.msra.gmra.mrb[60].mxu1 %vm90_vm0, %v9189_v25  ;;  %v2783_v53 = vpack.c.bf16 %v2425_v37, %v2425_v37  ;;  %v7844_v54 = vpop.f32.mrb[79].mxu0 }
 0x85c   :  { %7846 = vmatpush3.bf16.msra.mxu1 %v8445_v49  ;;  %7849 = vmatprep.mubr.msk.bf16.mxu1 %vm8676_vm1, %v8675_v11 }
 0x85d   :  { %v2836_v56 = vsel %vm1135_vm3, %v2783_v53, 0  ;;  %7882 = vmatmul.mubr.msk.bf16.vlgmr.msra.gmra.mrb[88].mxu0 %vm887_vm2, %v2537_v50  ;;  %7847 = vmatprep.subr.bf16.mxu1 %v8675_v11 }
 0x85e   :  { %7892 = vmatpush3.bf16.msra.mxu0 %v2836_v56  ;;  %7893 = vmatprep.mubr.msk.bf16.mxu0 %vm8676_vm1, %v8675_v11 }
 0x85f   :  { %7903 = vmatprep.subr.bf16.mxu0 %v8675_v11 }
 0x860   :  { %7848 = vmatpush3.bf16.msra.mxu1 %v8446_v55  ;;  %v9381_v41 = vpop.f32.mrb[80].mxu0 }
 0x861   :  { %v7859_v58 = vpop.f32.mrb[81].mxu0  ;;  %7861 = vmatprep.subr.bf16.mxu1 %v8675_v11 }
 0x862   :  { %v2531_v59 = vpop.f32.mrb[82].mxu0 }
 0x863   :  { %7850 = vmatmul.mubr.msk.bf16.vlgmr.msra.gmra.mrb[64].mxu1 %vm90_vm0, %v9189_v25  ;;  %v7860_v63 = vpop.f32.mrb[83].mxu0 }
 0x864   :  { %7863 = vmatprep.mubr.msk.bf16.mxu1 %vm8676_vm1, %v8675_v11 }
 0x916   :  { %v9388_v0 = vpop.f32.mrb[48].mxu1 }
 0x917   :  { %v7763_v1 = vpop.f32.mrb[49].mxu1 }
 0x918   :  { %v1738_v3 = vpop.f32.mrb[50].mxu1 }
 0x919   :  { %v7764_v4 = vpop.f32.mrb[51].mxu1 }
 0x91e   :  { %v2120_v6 = vpop.f32.mrb[52].mxu1 }
 0x91f   :  { %v2121_v8 = vadd.f32 %v7043_v5, %v2120_v6  ;;  %v7803_v9 = vpop.f32.mrb[53].mxu1 }
 0x920   :  { %v2123_v10 = vpop.f32.mrb[54].mxu1 }
 0x921   :  { %v2538_v15 = vpack.c.bf16 %v2121_v8, %v2121_v8  ;;  %v7804_v19 = vpop.f32.mrb[55].mxu1 }
 0x923   :  { %v2546_v25 = vsel %vm887_vm2, %v2538_v15, 0 }
 0x924   :  { %7862 = vmatpush3.bf16.xpose.msra.mxu1 %v2546_v25 }
 0x925   :  { %7873 = vmatprep.subr.bf16.mxu1 %v8675_v11 }
 0x926   :  { %v2224_v23 = vpop.f32.mrb[56].mxu1 }
 0x927   :  { %v2225_v24 = vadd.f32 %v7045_v21, %v2224_v23  ;;  %v7819_v18 = vpop.f32.mrb[57].mxu1 }
 0x928   :  { %v2227_v20 = vpop.f32.mrb[58].mxu1  ;;  %v2628_v26 = vpop.f32.mrb[84].mxu0 }
 0x929   :  { %v2540_v60 = vpack.c.bf16 %v2225_v24, %v2225_v24  ;;  %v2727_v28 = vmul.f32 0.35355338, %v2628_v26  ;;  %v7820_v29 = vpop.f32.mrb[59].mxu1  ;;  %v7871_v30 = vpop.f32.mrb[85].mxu0 }
 0x92a   :  { %v2631_v31 = vpop.f32.mrb[86].mxu0 }
 0x92b   :  { %v2638_v62 = vsel %vm887_vm2, %v2540_v60, 0  ;;  %7864 = vmatmul.mubr.msk.bf16.vlgmr.msra.gmra.mrb[68].mxu1 %vm887_vm2, %v2534_v27  ;;  %v2731_v32 = vadd.f32 %v2727_v28, %v9061_v14  ;;  %v7872_v12 = vpop.f32.mrb[87].mxu0  ;;  %v2529_v27 = vadd.f32 %v9082_v16, %v9381_v41 }
 0x92c   :  { %7874 = vmatpush3.bf16.xpose.msra.mxu1 %v2638_v62  ;;  %7875 = vmatprep.mubr.msk.bf16.mxu1 %vm8676_vm1, %v8675_v11 }
 0x92d   :  { %v2737_v61 = vsel %vm887_vm2, %v2731_v32, -inf  ;;  %7885 = vmatprep.subr.bf16.mxu1 %v8675_v11  ;;  %v2785_v29 = vpack.c.bf16 %v2529_v27, %v2529_v27 }
 0x92e   :  { %v2372_v34 = vpop.f32.mrb[60].mxu1  ;;  %2738 = vmax.xlane.f32.xlu1 %v2737_v61 }
 0x92f   :  { %v2373_v35 = vadd.f32 %v7059_v57, %v2372_v34  ;;  %v7835_v38 = vpop.f32.mrb[61].mxu1  ;;  %v2928_v62 = vsel %vm1135_vm3, %v2785_v29, 0 }
 0x930   :  { %v2375_v39 = vpop.f32.mrb[62].mxu1  ;;  %v2720_v40 = vpop.f32.mrb[88].mxu0 }
 0x931   :  { %v2782_v45 = vpack.c.bf16 %v2373_v35, %v2373_v35  ;;  %v2729_v46 = vmul.f32 0.35355338, %v2720_v40  ;;  %v7836_v47 = vpop.f32.mrb[63].mxu1  ;;  %v7883_v2 = vpop.f32.mrb[89].mxu0 }
 0x932   :  { %v2723_v17 = vpop.f32.mrb[90].mxu0  ;;  %v7061_v2 = vld [vmem:[%s10368_s10 + $0x2] ss:$0 sm:$0xff] }
 0x933   :  { %v2790_v48 = vsel %vm1135_vm3, %v2782_v45, 0  ;;  %7876 = vmatmul.mubr.msk.bf16.vlgmr.msra.gmra.mrb[72].mxu1 %vm887_vm2, %v2536_v13  ;;  %v2733_v36 = vadd.f32 %v2729_v46, %v9061_v14  ;;  %v7884_v7 = vpop.f32.mrb[91].mxu0  ;;  %v2975_v45 = vld [vmem:[%s10369_s11 + $0x4] sm:$0xf] }
 0x934   :  { %7886 = vmatpush3.bf16.msra.mxu1 %v2790_v48  ;;  %7887 = vmatprep.mubr.msk.bf16.mxu1 %vm8676_vm1, %v8675_v11  ;;  %v3028_v46 = vsel %vm1135_vm3, %v2975_v45, 0  ;;  %v2977_v7 = vld [vmem:[%s10369_s11 + $0xc] sm:$0xf] }
 0x935   :  { %v2743_v49 = vsel %vm887_vm2, %v2733_v36, -inf  ;;  %7897 = vmatprep.subr.bf16.mxu1 %v8675_v11 }
 0x936   :  { %v9419_v50 = vpop.f32.mrb[64].mxu1  ;;  %2744 = vmax.xlane.f32.xlu1 %v2743_v49 }
 0x937   :  { %v7851_v37 = vpop.f32.mrb[65].mxu1  ;;  %v2477_v17 = vadd.f32 %v7061_v2, %v9419_v50 }
 0x938   :  { %v2479_v51 = vpop.f32.mrb[66].mxu1 }
 0x939   :  { %v7852_v52 = vpop.f32.mrb[67].mxu1  ;;  %v2784_v49 = vpack.c.bf16 %v2477_v17, %v2477_v17 }
 0x9bb   :  { %v2739_v53 = vpop.xlane.xlu1 %2738 }
 0x9bc   :  { %v2747_v54 = vsub.f32 %v2731_v32, %v2739_v53 }
 0x9be   :  { %v2752_v55 = vmul.f32 1.442695, %v2747_v54 }
 0x9c0   :  { %8553 = vpow2.f32 %v2752_v55  ;;  %v3120_v55 = vsel %vm1135_vm3, %v2977_v7, 0 }
 0x9c3   :  { %v2745_v56 = vpop.xlane.xlu1 %2744 }
 0x9c4   :  { %v2749_v58 = vsub.f32 %v2733_v36, %v2745_v56 }
 0x9c6   :  { %v2756_v59 = vmul.f32 1.442695, %v2749_v58  ;;  %v2882_v58 = vsel %vm1135_vm3, %v2784_v49, 0 }
 0x9c8   :  { %8555 = vpow2.f32 %v2756_v59 }
 0x9ca   :  { %v8554_v63 = vpop.eup %8553 }
 0x9cb   :  { %v2761_v1 = vsel %vm887_vm2, %v8554_v63, 0.0 }
 0x9cc   :  { %2762 = vadd.xlane.f32.xlu1 %v2761_v1 }
 0x9d2   :  { %v8556_v3 = vpop.eup %8555 }
 0x9d3   :  { %v2767_v4 = vsel %vm887_vm2, %v8556_v3, 0.0 }
 0x9d4   :  { %2768 = vadd.xlane.f32.xlu1 %v2767_v4 }
 0x9fe   :  { %v2582_v5 = vpop.f32.mrb[68].mxu1 }
 0x9ff   :  { %v2726_v6 = vmul.f32 0.35355338, %v2582_v5  ;;  %v7865_v8 = vpop.f32.mrb[69].mxu1 }
 0xa00   :  { %v2585_v9 = vpop.f32.mrb[70].mxu1 }
 0xa01   :  { %v7866_v10 = vpop.f32.mrb[71].mxu1  ;;  %v2730_v15 = vadd.f32 %v2726_v6, %v9061_v14 }
 0xa03   :  { %v2734_v19 = vsel %vm887_vm2, %v2730_v15, -inf }
 0xa04   :  { %2735 = vmax.xlane.f32.xlu0 %v2734_v19 }
 0xa06   :  { %v2674_v25 = vpop.f32.mrb[72].mxu1 }
 0xa07   :  { %v2728_v21 = vmul.f32 0.35355338, %v2674_v25  ;;  %v7877_v22 = vpop.f32.mrb[73].mxu1 }
 0xa08   :  { %v2677_v23 = vpop.f32.mrb[74].mxu1 }
 0xa09   :  { %v7878_v24 = vpop.f32.mrb[75].mxu1  ;;  %v2732_v18 = vadd.f32 %v2728_v21, %v9061_v14 }
 0xa0b   :  { %v2740_v20 = vsel %vm887_vm2, %v2732_v18, -inf }
 0xa0c   :  { %2741 = vmax.xlane.f32.xlu0 %v2740_v20 }
 0xa59   :  { %v2763_v26 = vpop.xlane.xlu1 %2762 }
 0xa5a   :  { %8557 = vrcp.f32 %v2763_v26 }
 0xa61   :  { %v2769_v60 = vpop.xlane.xlu1 %2768 }
 0xa62   :  { %8559 = vrcp.f32 %v2769_v60 }
 0xa64   :  { %v8558_v28 = vpop.eup %8557 }
 0xa65   :  { %v2775_v30 = vmul.f32 %v8558_v28, %v8554_v63  ;;  %v2974_v63 = vld [vmem:[%s10369_s11] sm:$0xf] }
 0xa66   :  { %v2982_v8 = vsel %vm1135_vm3, %v2974_v63, 0 }
 0xa67   :  { %v2779_v31 = vpack.c.bf16 %v2775_v30, %v2775_v30 }
 0xa69   :  { %7894 = vmatmul.mubr.msk.bf16.vlgmr.msra.gmra.mrb[92].mxu0 %vm887_vm2, %v2779_v31 }
 0xa6a   :  { %7904 = vmatpush3.bf16.msra.mxu0 %v2928_v62  ;;  %7905 = vmatprep.mubr.msk.bf16.mxu0 %vm8676_vm1, %v8675_v11 }
 0xa6b   :  { %7915 = vmatprep.subr.bf16.mxu0 %v8675_v11 }
 0xa6c   :  { %v8560_v32 = vpop.eup %8559 }
 0xa6d   :  { %v2777_v12 = vmul.f32 %v8560_v32, %v8556_v3 }
 0xa6f   :  { %v2781_v57 = vpack.c.bf16 %v2777_v12, %v2777_v12 }
 0xa71   :  { %7906 = vmatmul.mubr.msk.bf16.vlgmr.msra.gmra.mrb[96].mxu0 %vm887_vm2, %v2781_v57 }
 0xa72   :  { %7917 = vmatprep.mubr.msk.bf16.mxu0 %vm8676_vm1, %v8675_v11  ;;  %7916 = vmatpush3.bf16.msra.mxu0 %v3028_v46 }
 0xa73   :  { %7927 = vmatprep.subr.bf16.mxu0 %v8675_v11 }
 0xa91   :  { %v2736_v16 = vpop.xlane.xlu0 %2735 }
 0xa92   :  { %v2746_v41 = vsub.f32 %v2730_v15, %v2736_v16  ;;  %v2976_v15 = vld [vmem:[%s10369_s11 + $0x8] sm:$0xf] }
 0xa93   :  { %v3074_v24 = vsel %vm1135_vm3, %v2976_v15, 0 }
 0xa94   :  { %v2750_v33 = vmul.f32 1.442695, %v2746_v41 }
 0xa96   :  { %8561 = vpow2.f32 %v2750_v33 }
 0xa99   :  { %v2742_v61 = vpop.xlane.xlu0 %2741 }
 0xa9a   :  { %v2748_v34 = vsub.f32 %v2732_v18, %v2742_v61 }
 0xa9c   :  { %v2754_v35 = vmul.f32 1.442695, %v2748_v34 }
 0xa9e   :  { %8563 = vpow2.f32 %v2754_v35 }
 0xaa0   :  { %v8562_v38 = vpop.eup %8561 }
 0xaa1   :  { %v2758_v39 = vsel %vm887_vm2, %v8562_v38, 0.0 }
 0xaa2   :  { %2759 = vadd.xlane.f32.xlu0 %v2758_v39 }
 0xaa8   :  { %v8564_v40 = vpop.eup %8563 }
 0xaa9   :  { %v2764_v13 = vsel %vm887_vm2, %v8564_v40, 0.0 }
 0xaaa   :  { %2765 = vadd.xlane.f32.xlu0 %v2764_v13 }
 0xb2f   :  { %v2760_v47 = vpop.xlane.xlu0 %2759 }
 0xb30   :  { %8565 = vrcp.f32 %v2760_v47 }
 0xb37   :  { %v2766_v48 = vpop.xlane.xlu0 %2765 }
 0xb38   :  { %8567 = vrcp.f32 %v2766_v48  ;;  %v7087_v48 = vld [vmem:[%s10370_s12] ss:$0 sm:$0xff] }
 0xb3a   :  { %v8566_v36 = vpop.eup %8565 }
 0xb3b   :  { %v2774_v37 = vmul.f32 %v8566_v36, %v8562_v38  ;;  %v7104_v36 = vld [vmem:[%s10405_s2 + $0x10] sm:$0xff] }
 0xb3c   :  { %v2872_v51 = vpop.f32.mrb[92].mxu0 }
 0xb3d   :  { %v2971_v52 = vpack.c.bf16 %v2872_v51, %v2872_v51  ;;  %v7895_v53 = vpop.f32.mrb[93].mxu0  ;;  %v2778_v54 = vpack.c.bf16 %v2774_v37, %v2774_v37  ;;  %v9497_v37 = vadd.f32 %v9150_v43, %v7104_v36  ;;  %v8471_v36 = vld [vmem:[%s10375_s17 + $0x30] sm:$0xff]  }
 0xb3e   :  { %v2875_v56 = vpop.f32.mrb[94].mxu0 }
 0xb3f   :  { %7888 = vmatmul.mubr.msk.bf16.vlgmr.msra.gmra.mrb[76].mxu1 %vm887_vm2, %v2778_v54  ;;  %v7896_v50 = vpop.f32.mrb[95].mxu0  ;;  %7918 = vmatmul.mubr.msk.bf16.vlgmr.msra.gmra.mrb[100].mxu0 %vm887_vm2, %v2971_v52  ;;  %v3400_v52 = vsel %vm90_vm0, %v9497_v37, 0.0 }
 0xb40   :  { %7898 = vmatpush3.bf16.msra.mxu1 %v2882_v58  ;;  %7928 = vmatpush3.bf16.msra.mxu0 %v3120_v55 }
 0xb41   :  { %7899 = vmatprep.mubr.msk.bf16.mxu1 %vm8676_vm1, %v8675_v11  ;;  %7929 = vmatprep.mubr.msk.bf16.mxu0 %vm8676_vm1, %v8675_v11 }
 0xb42   :  { %v8568_v59 = vpop.eup %8567  ;;  %7909 = vmatprep.subr.bf16.mxu1 %v8675_v11  ;;  %7941 = vmatprep.subr.bf16.mxu0 %v8675_v11 }
 0xb43   :  { %v2776_v1 = vmul.f32 %v8568_v59, %v8564_v40 }
 0xb44   :  { %v2964_v3 = vpop.f32.mrb[96].mxu0 }
 0xb45   :  { %v2973_v4 = vpack.c.bf16 %v2964_v3, %v2964_v3  ;;  %v7907_v5 = vpop.f32.mrb[97].mxu0  ;;  %v2780_v6 = vpack.c.bf16 %v2776_v1, %v2776_v1  ;;  %v8447_v1 = vld [vmem:[%s10373_s15] sm:$0xff]   ;;  %v8448_v3 = vld [vmem:[%s10373_s15 + $0x8] sm:$0xff]  }
 0xb46   :  { %v2967_v9 = vpop.f32.mrb[98].mxu0 }
 0xb47   :  { %7900 = vmatmul.mubr.msk.bf16.vlgmr.msra.gmra.mrb[80].mxu1 %vm887_vm2, %v2780_v6  ;;  %v7908_v10 = vpop.f32.mrb[99].mxu0  ;;  %7930 = vmatmul.mubr.msk.bf16.vlgmr.msra.gmra.mrb[104].mxu0 %vm887_vm2, %v2973_v4 }
 0xb48   :  { %7910 = vmatpush3.bf16.msra.mxu1 %v2982_v8  ;;  %7911 = vmatprep.mubr.msk.bf16.mxu1 %vm8676_vm1, %v8675_v11 }
 0xb49   :  { %7921 = vmatprep.subr.bf16.mxu1 %v8675_v11  ;;  %7957 = vmatprep.mubr.msk.bf16.mxu0 %vm8676_vm1, %v8675_v11 }
 0xc12   :  { %v2826_v19 = vpop.f32.mrb[76].mxu1  ;;  %v3064_v25 = vpop.f32.mrb[100].mxu0 }
 0xc13   :  { %v2970_v21 = vpack.c.bf16 %v2826_v19, %v2826_v19  ;;  %v7889_v22 = vpop.f32.mrb[77].mxu1  ;;  %v7919_v23 = vpop.f32.mrb[101].mxu0  ;;  %v3163_v41 = vsel %vm90_vm0, %v3064_v25, 0.0  ;;  %v7088_v19 = vld [vmem:[%s10371_s13] ss:$0 sm:$0xff] }
 0xc14   :  { %v2829_v18 = vpop.f32.mrb[78].mxu1  ;;  %v3067_v20 = vpop.f32.mrb[102].mxu0 }
 0xc15   :  { %v7890_v26 = vpop.f32.mrb[79].mxu1  ;;  %7912 = vmatmul.mubr.msk.bf16.vlgmr.msra.gmra.mrb[84].mxu1 %vm887_vm2, %v2970_v21  ;;  %v7920_v27 = vpop.f32.mrb[103].mxu0  ;;  %v7089_v21 = vld [vmem:[%s10372_s14] ss:$0 sm:$0xff] }
 0xc16   :  { %7922 = vmatpush3.bf16.msra.mxu1 %v3074_v24  ;;  %7923 = vmatprep.mubr.msk.bf16.mxu1 %vm8676_vm1, %v8675_v11  ;;  %v7105_v24 = vld [vmem:[%s10407_s28] ss:$0 sm:$0xff] }
 0xc17   :  { %7933 = vmatprep.subr.bf16.mxu1 %v8675_v11  ;;  %v7106_v26 = vld [vmem:[%s10408_s0] ss:$0 sm:$0xff] }
 0xc18   :  { %v8449_v27 = vld [vmem:[%s10406_s7] sm:$0xff]  }
 0xc1a   :  { %v2918_v60 = vpop.f32.mrb[80].mxu1  ;;  %v3156_v28 = vpop.f32.mrb[104].mxu0 }
 0xc1b   :  { %v2972_v29 = vpack.c.bf16 %v2918_v60, %v2918_v60  ;;  %v7901_v30 = vpop.f32.mrb[81].mxu1  ;;  %v7931_v31 = vpop.f32.mrb[105].mxu0  ;;  %v3167_v47 = vsel %vm90_vm0, %v3156_v28, 0.0 }
 0xc1c   :  { %v2921_v62 = vpop.f32.mrb[82].mxu1  ;;  %v3159_v32 = vpop.f32.mrb[106].mxu0  ;;  %v8450_v30 = vld [vmem:[%s10406_s7 + $0x8] sm:$0xff]  }
 0xc1d   :  { %v7902_v12 = vpop.f32.mrb[83].mxu1  ;;  %7924 = vmatmul.mubr.msk.bf16.vlgmr.msra.gmra.mrb[88].mxu1 %vm887_vm2, %v2972_v29  ;;  %v7932_v57 = vpop.f32.mrb[107].mxu0  ;;  %v8451_v62 = vld [vmem:[%s10406_s7 + $0x10] sm:$0xff]   ;;  %v8452_v32 = vld [vmem:[%s10406_s7 + $0x18] sm:$0xff]  }
 0xc1e   :  { %7937 = vmatprep.mubr.msk.bf16.mxu1 %vm8676_vm1, %v8675_v11  ;;  %7934 = vmatpush3.bf16.msra.mxu1 %v8447_v1  ;;  %v8453_v12 = vld [vmem:[%s10406_s7 + $0x20] sm:$0xff]   ;;  %v8454_v57 = vld [vmem:[%s10406_s7 + $0x28] sm:$0xff]  }
 0xc1f   :  { %7935 = vmatprep.subr.bf16.mxu1 %v8675_v11 }
 0xc22   :  { %7936 = vmatpush3.bf16.msra.mxu1 %v8448_v3 }
 0xc23   :  { %7961 = vmatprep.subr.bf16.mxu1 %v8675_v11 }
 0xce8   :  { %v3018_v16 = vpop.f32.mrb[84].mxu1 }
 0xce9   :  { %v3162_v33 = vsel %vm90_vm0, %v3018_v16, 0.0  ;;  %v7913_v61 = vpop.f32.mrb[85].mxu1  ;;  %v8455_v16 = vld [vmem:[%s10406_s7 + $0x30] sm:$0xff]  }
 0xcea   :  { %v3164_v34 = vadd.f32 %v3163_v41, %v3162_v33  ;;  %v3021_v35 = vpop.f32.mrb[86].mxu1  ;;  %v8456_v41 = vld [vmem:[%s10406_s7 + $0x38] sm:$0xff]   ;;  %v8457_v33 = vld [vmem:[%s10409_s30 + $0x10] sm:$0xff]  }
 0xceb   :  { %v7914_v38 = vpop.f32.mrb[87].mxu1  ;;  %v8458_v61 = vld [vmem:[%s10409_s30 + $0x18] sm:$0xff]  }
 0xcec   :  { %v8460_v35 = vld [vmem:[%s10409_s30 + $0x38] sm:$0xff]   ;;  %v8461_v38 = vld [vmem:[%s10410_s6 + $0x10] sm:$0xff]  }
 0xcf0   :  { %v3110_v39 = vpop.f32.mrb[88].mxu1 }
 0xcf1   :  { %v3165_v40 = vsel %vm90_vm0, %v3110_v39, 0.0  ;;  %v7925_v13 = vpop.f32.mrb[89].mxu1  ;;  %v8462_v39 = vld [vmem:[%s10410_s6 + $0x18] sm:$0xff]  }
 0xcf2   :  { %v3166_v45 = vadd.f32 %v3165_v40, %v3164_v34  ;;  %v3113_v46 = vpop.f32.mrb[90].mxu1  ;;  %v8459_v34 = vld [vmem:[%s10409_s30 + $0x30] sm:$0xff]   ;;  %v8464_v13 = vld [vmem:[%s10410_s6 + $0x38] sm:$0xff]  }
 0xcf3   :  { %v7926_v2 = vpop.f32.mrb[91].mxu1  ;;  %v8463_v40 = vld [vmem:[%s10410_s6 + $0x30] sm:$0xff]   ;;  %v8466_v46 = vld [vmem:[%s10375_s17 + $0x8] sm:$0xff]  }
 0xcf4   :  { %v3168_v17 = vadd.f32 %v3167_v47, %v3166_v45  ;;  %v8465_v45 = vld [vmem:[%s10375_s17] sm:$0xff]   ;;  %v8467_v47 = vld [vmem:[%s10375_s17 + $0x10] sm:$0xff]   ;;  %v8468_v2 = vld [vmem:[%s10375_s17 + $0x18] sm:$0xff]  }
 0xcf5   :  { %7942 = vmatpush3.bf16.msra.mxu0 %v8465_v45  ;;  %v7110_v45 = vld [vmem:[%s10411_s4 + $0x3] ss:$0 sm:$0xff] }
 0xcf6   :  { %v3169_v7 = vadd.f32 %v3168_v17, %v9153_v44  ;;  %7943 = vmatprep.subr.bf16.mxu0 %v8675_v11  ;;  %v8469_v17 = vld [vmem:[%s10375_s17 + $0x20] sm:$0xff]  }
 0xcf8   :  { %v9494_v49 = vadd.f32 %v7087_v48, %v3169_v7  ;;  %v8470_v48 = vld [vmem:[%s10375_s17 + $0x28] sm:$0xff]   ;;  %v8472_v7 = vld [vmem:[%s10375_s17 + $0x38] sm:$0xff]  }
 0xcf9   :  { %7944 = vmatpush3.bf16.msra.mxu0 %v8466_v46 }
 0xcfa   :  { %v3180_v51 = vsel %vm90_vm0, %v9494_v49, 0.0  ;;  %7945 = vmatprep.subr.bf16.mxu0 %v8675_v11 }
 0xcfb   :  { %3181 = vadd.xlane.f32.xlu0 %v3180_v51  ;;  %v7090_v51 = vld [vmem:[%s10374_s16] ss:$0 sm:$0xff] }
 0xcfd   :  { %7946 = vmatpush3.bf16.msra.mxu0 %v8467_v47 }
 0xcfe   :  { %7947 = vmatprep.subr.bf16.mxu0 %v8675_v11 }
 0xcff   :  { %3401 = vadd.xlane.f32.xlu0 %v3400_v52 }
 0xd01   :  { %7948 = vmatpush3.bf16.msra.mxu0 %v8468_v2 }
 0xd02   :  { %7949 = vmatprep.subr.bf16.mxu0 %v8675_v11 }
 0xd05   :  { %7950 = vmatpush3.bf16.msra.mxu0 %v8469_v17  ;;  %v8478_v17 = vld [vmem:[%s10410_s6 + $0x8] sm:$0xff]  }
 0xd06   :  { %7951 = vmatprep.subr.bf16.mxu0 %v8675_v11 }
 0xd09   :  { %7952 = vmatpush3.bf16.msra.mxu0 %v8470_v48 }
 0xd0a   :  { %7953 = vmatprep.subr.bf16.mxu0 %v8675_v11 }
 0xd0d   :  { %7954 = vmatpush3.bf16.msra.mxu0 %v8471_v36 }
 0xd0e   :  { %7955 = vmatprep.subr.bf16.mxu0 %v8675_v11 }
 0xd11   :  { %7956 = vmatpush3.bf16.msra.mxu0 %v8472_v7  ;;  %v7140_v7 = vld [vmem:[%s10368_s10 + $0x1] ss:$0 sm:$0xff] }
 0xd12   :  { %7993 = vmatprep.subr.bf16.mxu0 %v8675_v11 }
 0xd88   :  { %v3182_v53 = vpop.xlane.xlu0 %3181 }
 0xd89   :  { %v3183_v54 = vmul.f32 0.03125, %v3182_v53 }
 0xd8b   :  { %v3184_v55 = vsub.f32 %v9494_v49, %v3183_v54 }
 0xd8c   :  { %v3402_v56 = vpop.xlane.xlu0 %3401 }
 0xd8d   :  { %v3185_v58 = vmul.f32 %v3184_v55, %v3184_v55  ;;  %v3403_v44 = vmul.f32 0.03125, %v3402_v56 }
 0xd8f   :  { %v3186_v50 = vsel %vm90_vm0, %v3185_v58, 0.0  ;;  %v3404_v43 = vsub.f32 %v9497_v37, %v3403_v44 }
 0xd90   :  { %3187 = vadd.xlane.f32.xlu1 %v3186_v50 }
 0xd91   :  { %v3405_v59 = vmul.f32 %v3404_v43, %v3404_v43 }
 0xd93   :  { %v3406_v63 = vsel %vm90_vm0, %v3405_v59, 0.0 }
 0xd94   :  { %3407 = vadd.xlane.f32.xlu1 %v3406_v63 }
 0xe1d   :  { %v3188_v4 = vpop.xlane.xlu1 %3187 }
 0xe1e   :  { %v3189_v5 = vmul.f32 0.03125, %v3188_v4 }
 0xe20   :  { %v3190_v6 = vadd.f32 1e-05, %v3189_v5 }
 0xe21   :  { %v3408_v8 = vpop.xlane.xlu1 %3407 }
 0xe22   :  { %8569 = vrsqrt.f32 %v3190_v6  ;;  %v3409_v9 = vmul.f32 0.03125, %v3408_v8 }
 0xe24   :  { %v3410_v10 = vadd.f32 1e-05, %v3409_v9 }
 0xe26   :  { %8571 = vrsqrt.f32 %v3410_v10 }
 0xe2c   :  { %v8570_v15 = vpop.eup %8569 }
 0xe2d   :  { %v3192_v25 = vmul.f32 %v8570_v15, %v3184_v55 }
 0xe2f   :  { %v3199_v22 = vmul.f32 %v7088_v19, %v3192_v25 }
 0xe30   :  { %v8572_v23 = vpop.eup %8571 }
 0xe31   :  { %v3412_v18 = vmul.f32 %v8572_v23, %v3404_v43  ;;  %v3206_v20 = vadd.f32 %v7089_v21, %v3199_v22  ;;  %v8473_v23 = vld [vmem:[%s10409_s30] sm:$0xff]  }
 0xe33   :  { %v3419_v60 = vmul.f32 %v7105_v24, %v3412_v18  ;;  %v3207_v28 = vpack.c.bf16 %v3206_v20, %v3206_v20 }
 0xe35   :  { %v3426_v29 = vadd.f32 %v7106_v26, %v3419_v60  ;;  %7938 = vmatmul.mubr.msk.bf16.vlgmr.msra.gmra.mrb[92].mxu1 %vm90_vm0, %v3207_v28  ;;  %v7124_v60 = vld [vmem:[%s10367_s9 + $0x1] ss:$0 sm:$0xff] }
 0xe36   :  { %7962 = vmatpush3.bf16.msra.mxu1 %v8449_v27  ;;  %7965 = vmatprep.mubr.msk.bf16.mxu1 %vm8676_vm1, %v8675_v11  ;;  %v8474_v27 = vld [vmem:[%s10409_s30 + $0x8] sm:$0xff]  }
 0xe37   :  { %7963 = vmatprep.subr.bf16.mxu1 %v8675_v11  ;;  %v9537_v31 = vpack.c.bf16 %v3426_v29, %v3426_v29  ;;  %v8475_v29 = vld [vmem:[%s10409_s30 + $0x20] sm:$0xff]  }
 0xe3a   :  { %7964 = vmatpush3.bf16.msra.mxu1 %v8450_v30 }
 0xe3b   :  { %7969 = vmatprep.subr.bf16.mxu1 %v8675_v11 }
 0xe3d   :  { %7966 = vmatmul.mubr.msk.bf16.vlgmr.msra.gmra.mrb[96].mxu1 %vm90_vm0, %v9537_v31 }
 0xe3e   :  { %7970 = vmatpush3.bf16.msra.mxu1 %v8451_v62  ;;  %7973 = vmatprep.mubr.msk.bf16.mxu1 %vm8676_vm1, %v8675_v11 }
 0xe3f   :  { %7971 = vmatprep.subr.bf16.mxu1 %v8675_v11 }
 0xe42   :  { %7972 = vmatpush3.bf16.msra.mxu1 %v8452_v32  ;;  %v7108_v32 = vld [vmem:[%s10411_s4 + $0x1] ss:$0 sm:$0xff] }
 0xe43   :  { %7977 = vmatprep.subr.bf16.mxu1 %v8675_v11 }
 0xe45   :  { %7974 = vmatmul.mubr.msk.bf16.vlgmr.msra.gmra.mrb[100].mxu1 %vm90_vm0, %v9537_v31 }
 0xe46   :  { %7978 = vmatpush3.bf16.msra.mxu1 %v8453_v12  ;;  %7981 = vmatprep.mubr.msk.bf16.mxu1 %vm8676_vm1, %v8675_v11 }
 0xe47   :  { %7979 = vmatprep.subr.bf16.mxu1 %v8675_v11 }
 0xe4a   :  { %7980 = vmatpush3.bf16.msra.mxu1 %v8454_v57 }
 0xe4b   :  { %7985 = vmatprep.subr.bf16.mxu1 %v8675_v11 }
 0xe4d   :  { %7982 = vmatmul.mubr.msk.bf16.vlgmr.msra.gmra.mrb[104].mxu1 %vm90_vm0, %v9537_v31 }
 0xe4e   :  { %7986 = vmatpush3.bf16.msra.mxu1 %v8455_v16  ;;  %7989 = vmatprep.mubr.msk.bf16.mxu1 %vm8676_vm1, %v8675_v11 }
 0xe4f   :  { %7987 = vmatprep.subr.bf16.mxu1 %v8675_v11 }
 0xe52   :  { %7988 = vmatpush3.bf16.msra.mxu1 %v8456_v41  ;;  %v8476_v41 = vld [vmem:[%s10409_s30 + $0x28] sm:$0xff]  }
 0xe53   :  { %8001 = vmatprep.subr.bf16.mxu1 %v8675_v11 }
 0xe55   :  { %7990 = vmatmul.mubr.msk.bf16.vlgmr.msra.gmra.mrb[108].mxu1 %vm90_vm0, %v9537_v31 }
 0xe56   :  { %8002 = vmatpush3.bf16.msra.mxu1 %v8457_v33  ;;  %8005 = vmatprep.mubr.msk.bf16.mxu1 %vm8676_vm1, %v8675_v11 }
 0xe57   :  { %8003 = vmatprep.subr.bf16.mxu1 %v8675_v11 }
 0xe5a   :  { %8004 = vmatpush3.bf16.msra.mxu1 %v8458_v61 }
 0xe5b   :  { %8017 = vmatprep.subr.bf16.mxu1 %v8675_v11 }
 0xe5d   :  { %8006 = vmatmul.mubr.msk.bf16.vlgmr.msra.gmra.mrb[112].mxu1 %vm90_vm0, %v9537_v31 }
 0xe5e   :  { %8018 = vmatpush3.bf16.msra.mxu1 %v8459_v34  ;;  %8021 = vmatprep.mubr.msk.bf16.mxu1 %vm8676_vm1, %v8675_v11  ;;  %v7126_v34 = vld [vmem:[%s10367_s9 + $0x3] ss:$0 sm:$0xff] }
 0xe5f   :  { %8019 = vmatprep.subr.bf16.mxu1 %v8675_v11 }
 0xe62   :  { %8020 = vmatpush3.bf16.msra.mxu1 %v8460_v35 }
 0xe63   :  { %8033 = vmatprep.subr.bf16.mxu1 %v8675_v11 }
 0xe65   :  { %8022 = vmatmul.mubr.msk.bf16.vlgmr.msra.gmra.mrb[116].mxu1 %vm90_vm0, %v9537_v31 }
 0xe66   :  { %8034 = vmatpush3.bf16.msra.mxu1 %v8461_v38  ;;  %8037 = vmatprep.mubr.msk.bf16.mxu1 %vm8676_vm1, %v8675_v11  ;;  %v8477_v38 = vld [vmem:[%s10410_s6] sm:$0xff]  }
 0xe67   :  { %8035 = vmatprep.subr.bf16.mxu1 %v8675_v11 }
 0xe6a   :  { %8036 = vmatpush3.bf16.msra.mxu1 %v8462_v39 }
 0xe6b   :  { %8049 = vmatprep.subr.bf16.mxu1 %v8675_v11 }
 0xe6d   :  { %8038 = vmatmul.mubr.msk.bf16.vlgmr.msra.gmra.mrb[120].mxu1 %vm90_vm0, %v9537_v31 }
 0xe6e   :  { %8050 = vmatpush3.bf16.msra.mxu1 %v8463_v40  ;;  %8053 = vmatprep.mubr.msk.bf16.mxu1 %vm8676_vm1, %v8675_v11 }
 0xe6f   :  { %8051 = vmatprep.subr.bf16.mxu1 %v8675_v11 }
 0xe72   :  { %8052 = vmatpush3.bf16.msra.mxu1 %v8464_v13 }
 0xe73   :  { %8063 = vmatprep.subr.bf16.mxu1 %v8675_v11 }
 0xe75   :  { %8054 = vmatmul.mubr.msk.bf16.vlgmr.msra.gmra.mrb[124].mxu1 %vm90_vm0, %v9537_v31 }
 0xe76   :  { %8065 = vmatprep.mubr.msk.bf16.mxu1 %vm8676_vm1, %v8675_v11 }
 0xf08   :  { %v3268_v52 = vpop.f32.mrb[92].mxu1 }
 0xf09   :  { %v3269_v53 = vadd.f32 %v7090_v51, %v3268_v52  ;;  %v7939_v54 = vpop.f32.mrb[93].mxu1  ;;  %v8479_v52 = vld [vmem:[%s10410_s6 + $0x20] sm:$0xff]  }
 0xf0a   :  { %v3271_v55 = vpop.f32.mrb[94].mxu1 }
 0xf0b   :  { %v7094_v56 = vmul.f32 -1.702, %v3269_v53  ;;  %v7940_v58 = vpop.f32.mrb[95].mxu1 }
 0xf0d   :  { %v3276_v44 = vmul.f32 1.442695, %v7094_v56 }
 0xf0f   :  { %8573 = vpow2.f32 %v3276_v44 }
 0xf10   :  { %v9663_v50 = vpop.f32.mrb[96].mxu1 }
 0xf11   :  { %v7967_v43 = vpop.f32.mrb[97].mxu1 }
 0xf12   :  { %v3524_v59 = vpop.f32.mrb[98].mxu1  ;;  %v8480_v43 = vld [vmem:[%s10410_s6 + $0x28] sm:$0xff]  }
 0xf13   :  { %v7968_v63 = vpop.f32.mrb[99].mxu1 }
 0xf18   :  { %v3573_v1 = vpop.f32.mrb[100].mxu1 }
 0xf19   :  { %v8574_v3 = vpop.eup %8573  ;;  %v7975_v4 = vpop.f32.mrb[101].mxu1  ;;  %v3574_v33 = vadd.f32 %v7108_v32, %v3573_v1 }
 0xf1a   :  { %v3278_v5 = vadd.f32 1.0, %v8574_v3  ;;  %v3576_v6 = vpop.f32.mrb[102].mxu1 }
 0xf1b   :  { %v7976_v8 = vpop.f32.mrb[103].mxu1  ;;  %v4188_v39 = vpack.c.bf16 %v3574_v33, %v3574_v33  ;;  %v7095_v6 = vld [vmem:[%s10376_s18] ss:$0 sm:$0xff] }
 0xf1c   :  { %8575 = vrcp.f32 %v3278_v5  ;;  %v7015_v5 = vld [vmem:[%s10376_s18] ss:$0 sm:$0xff] }
 0xf1d   :  { %v1736_v8 = vadd.f32 %v7015_v5, %v9388_v0 }
 0xf20   :  { %v9665_v9 = vpop.f32.mrb[104].mxu1 }
 0xf21   :  { %v7983_v10 = vpop.f32.mrb[105].mxu1 }
 0xf22   :  { %v3628_v15 = vpop.f32.mrb[106].mxu1 }
 0xf23   :  { %v7984_v19 = vpop.f32.mrb[107].mxu1 }
 0xf26   :  { %v8576_v25 = vpop.eup %8575 }
 0xf27   :  { %v3281_v21 = vmul.f32 %v8576_v25, %v3269_v53 }
 0xf28   :  { %v3677_v22 = vpop.f32.mrb[108].mxu1 }
 0xf29   :  { %v3282_v24 = vpack.c.bf16 %v3281_v21, %v3281_v21  ;;  %v7991_v18 = vpop.f32.mrb[109].mxu1  ;;  %v3678_v48 = vadd.f32 %v7110_v45, %v3677_v22 }
 0xf2a   :  { %v3680_v20 = vpop.f32.mrb[110].mxu1 }
 0xf2b   :  { %7958 = vmatmul.mubr.bf16.vlgmr.msra.gmra.mrb[108].mxu0 %v3282_v24  ;;  %v7992_v26 = vpop.f32.mrb[111].mxu1  ;;  %v4190_v53 = vpack.c.bf16 %v3678_v48, %v3678_v48  ;;  %v7123_v24 = vld [vmem:[%s10367_s9] ss:$0 sm:$0xff] }
 0xf2c   :  { %7994 = vmatpush3.bf16.msra.mxu0 %v8473_v23  ;;  %7997 = vmatprep.mubr.msk.bf16.mxu0 %vm8676_vm1, %v8675_v11 }
 0xf2d   :  { %7995 = vmatprep.subr.bf16.mxu0 %v8675_v11 }
 0xf30   :  { %7996 = vmatpush3.bf16.msra.mxu0 %v8474_v27  ;;  %v3825_v28 = vpop.f32.mrb[112].mxu1 }
 0xf31   :  { %v3826_v30 = vadd.f32 %v7124_v60, %v3825_v28  ;;  %8009 = vmatprep.subr.bf16.mxu0 %v8675_v11  ;;  %v8007_v62 = vpop.f32.mrb[113].mxu1  ;;  %v7125_v28 = vld [vmem:[%s10367_s9 + $0x2] ss:$0 sm:$0xff] }
 0xf32   :  { %v3828_v12 = vpop.f32.mrb[114].mxu1 }
 0xf33   :  { %v4192_v57 = vpack.c.bf16 %v3826_v30, %v3826_v30  ;;  %7998 = vmatmul.mubr.msk.bf16.vlgmr.msra.gmra.mrb[112].mxu0 %vm90_vm0, %v9537_v31  ;;  %v8008_v16 = vpop.f32.mrb[115].mxu1 }
 0xf34   :  { %8010 = vmatpush3.bf16.msra.mxu0 %v8475_v29  ;;  %8013 = vmatprep.mubr.msk.bf16.mxu0 %vm8676_vm1, %v8675_v11 }
 0xf35   :  { %v4245_v61 = vsel %vm887_vm2, %v4192_v57, 0  ;;  %8011 = vmatprep.subr.bf16.mxu0 %v8675_v11 }
 0xf36   :  { %8064 = vmatpush3.bf16.xpose.msra.mxu1 %v4245_v61 }
 0xf37   :  { %8075 = vmatprep.subr.bf16.mxu1 %v8675_v11 }
 0xf38   :  { %8012 = vmatpush3.bf16.msra.mxu0 %v8476_v41  ;;  %v3929_v35 = vpop.f32.mrb[116].mxu1 }
 0xf39   :  { %v3930_v40 = vadd.f32 %v7126_v34, %v3929_v35  ;;  %8025 = vmatprep.subr.bf16.mxu0 %v8675_v11  ;;  %v8023_v13 = vpop.f32.mrb[117].mxu1  ;;  %v7109_v35 = vld [vmem:[%s10411_s4 + $0x2] ss:$0 sm:$0xff] }
 0xf3a   :  { %v3932_v46 = vpop.f32.mrb[118].mxu1  ;;  %v7139_v13 = vld [vmem:[%s10368_s10] ss:$0 sm:$0xff]  ;;  %v3626_v45 = vadd.f32 %v7109_v35, %v9665_v9 }
 0xf3b   :  { %v4194_v47 = vpack.c.bf16 %v3930_v40, %v3930_v40  ;;  %8014 = vmatmul.mubr.msk.bf16.vlgmr.msra.gmra.mrb[116].mxu0 %vm90_vm0, %v9537_v31  ;;  %v8024_v2 = vpop.f32.mrb[119].mxu1 }
 0xf3c   :  { %8026 = vmatpush3.bf16.msra.mxu0 %v8477_v38  ;;  %8029 = vmatprep.mubr.msk.bf16.mxu0 %vm8676_vm1, %v8675_v11 }
 0xf3d   :  { %v4337_v36 = vsel %vm887_vm2, %v4194_v47, 0  ;;  %8066 = vmatmul.mubr.msk.bf16.vlgmr.msra.gmra.mrb[128].mxu1 %vm887_vm2, %v4188_v39  ;;  %8027 = vmatprep.subr.bf16.mxu0 %v8675_v11 }
 0xf3e   :  { %8076 = vmatpush3.bf16.xpose.msra.mxu1 %v4337_v36  ;;  %8077 = vmatprep.mubr.msk.bf16.mxu1 %vm8676_vm1, %v8675_v11 }
 0xf3f   :  { %8087 = vmatprep.subr.bf16.mxu1 %v8675_v11 }
 0xf40   :  { %8028 = vmatpush3.bf16.msra.mxu0 %v8478_v17  ;;  %v4077_v51 = vpop.f32.mrb[120].mxu1 }
 0xf41   :  { %8041 = vmatprep.subr.bf16.mxu0 %v8675_v11  ;;  %v4078_v54 = vadd.f32 %v7140_v7, %v4077_v51  ;;  %v8039_v55 = vpop.f32.mrb[121].mxu1  ;;  %v4189_v7 = vpack.c.bf16 %v3626_v45, %v3626_v45 }
 0xf42   :  { %v4080_v56 = vpop.f32.mrb[122].mxu1 }
 0xf43   :  { %8030 = vmatmul.mubr.msk.bf16.vlgmr.msra.gmra.mrb[120].mxu0 %vm90_vm0, %v9537_v31  ;;  %v4436_v58 = vpack.c.bf16 %v4078_v54, %v4078_v54  ;;  %v8040_v44 = vpop.f32.mrb[123].mxu1 }
 0xf44   :  { %8042 = vmatpush3.bf16.msra.mxu0 %v8479_v52  ;;  %8045 = vmatprep.mubr.msk.bf16.mxu0 %vm8676_vm1, %v8675_v11 }
 0xf45   :  { %v4489_v59 = vsel %vm1135_vm3, %v4436_v58, 0  ;;  %8078 = vmatmul.mubr.msk.bf16.vlgmr.msra.gmra.mrb[132].mxu1 %vm887_vm2, %v4190_v53  ;;  %8043 = vmatprep.subr.bf16.mxu0 %v8675_v11 }
 0xf46   :  { %8088 = vmatpush3.bf16.msra.mxu1 %v4489_v59  ;;  %8089 = vmatprep.mubr.msk.bf16.mxu1 %vm8676_vm1, %v8675_v11 }
 0xf47   :  { %8099 = vmatprep.subr.bf16.mxu1 %v8675_v11 }
 0xf48   :  { %8044 = vmatpush3.bf16.msra.mxu0 %v8480_v43  ;;  %v9739_v63 = vpop.f32.mrb[124].mxu1 }
 0xf49   :  { %v8055_v1 = vpop.f32.mrb[125].mxu1  ;;  %8057 = vmatprep.subr.bf16.mxu0 %v8675_v11 }
 0xf4a   :  { %v4184_v3 = vpop.f32.mrb[126].mxu1 }
 0xf4b   :  { %8046 = vmatmul.mubr.msk.bf16.vlgmr.msra.gmra.mrb[124].mxu0 %vm90_vm0, %v9537_v31  ;;  %v8056_v4 = vpop.f32.mrb[127].mxu1  ;;  %v9754_v31 = vadd.f32 %v1736_v8, %v9145_v42  ;;  %v7107_v42 = vld [vmem:[%s10411_s4] ss:$0 sm:$0xff] }
 0xf4c   :  { %8059 = vmatprep.mubr.msk.bf16.mxu0 %vm8676_vm1, %v8675_v11  ;;  %v3522_v29 = vadd.f32 %v7107_v42, %v9663_v50 }
 0xf4e   :  { %v4187_v16 = vpack.c.bf16 %v3522_v29, %v3522_v29 }
 0xffe   :  { %v3388_v10 = vpop.f32.mrb[108].mxu0 }
 0xfff   :  { %v3389_v15 = vadd.f32 %v7095_v6, %v3388_v10  ;;  %v7959_v19 = vpop.f32.mrb[109].mxu0 }
0x1000   :  { %v3391_v25 = vpop.f32.mrb[110].mxu0 }
0x1001   :  { %v9757_v21 = vadd.f32 %v3389_v15, %v9494_v49  ;;  %v7960_v22 = vpop.f32.mrb[111].mxu0 }
0x1003   :  { %v8379_v23 = vpack.c.bf16 %v9757_v21, %v9754_v31  ;;  %v8519_v31 = vld [vmem:[%s10375_s17 + $0x10] sm:$0xff]   ;;  %v8520_v21 = vld [vmem:[%s10375_s17 + $0x18] sm:$0xff]  }
0x1006   :  { %v3773_v18 = vpop.f32.mrb[112].mxu0 }
0x1007   :  { %v3774_v0 = vadd.f32 %v7123_v24, %v3773_v18  ;;  %v7999_v20 = vpop.f32.mrb[113].mxu0 }
0x1008   :  { %v3776_v26 = vpop.f32.mrb[114].mxu0 }
0x1009   :  { %v4191_v27 = vpack.c.bf16 %v3774_v0, %v3774_v0  ;;  %v8000_v60 = vpop.f32.mrb[115].mxu0 }
0x100b   :  { %v4199_v49 = vsel %vm887_vm2, %v4191_v27, 0 }
0x100c   :  { %8058 = vmatpush3.bf16.xpose.msra.mxu0 %v4199_v49 }
0x100d   :  { %8069 = vmatprep.subr.bf16.mxu0 %v8675_v11 }
0x100e   :  { %v3877_v30 = vpop.f32.mrb[116].mxu0 }
0x100f   :  { %v3878_v62 = vadd.f32 %v7125_v28, %v3877_v30  ;;  %v8015_v32 = vpop.f32.mrb[117].mxu0 }
0x1010   :  { %v3880_v12 = vpop.f32.mrb[118].mxu0  ;;  %v4281_v57 = vpop.f32.mrb[128].mxu1 }
0x1011   :  { %v4193_v41 = vpack.c.bf16 %v3878_v62, %v3878_v62  ;;  %v4380_v33 = vmul.f32 0.35355338, %v4281_v57  ;;  %v8016_v61 = vpop.f32.mrb[119].mxu0  ;;  %v8067_v34 = vpop.f32.mrb[129].mxu1 }
0x1012   :  { %v4284_v38 = vpop.f32.mrb[130].mxu1 }
0x1013   :  { %v4291_v39 = vsel %vm887_vm2, %v4193_v41, 0  ;;  %8060 = vmatmul.mubr.msk.bf16.vlgmr.msra.gmra.mrb[128].mxu0 %vm887_vm2, %v4187_v16  ;;  %v4384_v50 = vadd.f32 %v4380_v33, %v9061_v14  ;;  %v8068_v40 = vpop.f32.mrb[131].mxu1  ;;  %v7142_v16 = vld [vmem:[%s10368_s10 + $0x3] ss:$0 sm:$0xff] }
0x1014   :  { %8070 = vmatpush3.bf16.xpose.msra.mxu0 %v4291_v39  ;;  %8071 = vmatprep.mubr.msk.bf16.mxu0 %vm8676_vm1, %v8675_v11  ;;  %v4182_v41 = vadd.f32 %v7142_v16, %v9739_v63 }
0x1015   :  { %v4390_v46 = vsel %vm887_vm2, %v4384_v50, -inf  ;;  %8081 = vmatprep.subr.bf16.mxu0 %v8675_v11 }
0x1016   :  { %4391 = vmax.xlane.f32.xlu1 %v4390_v46  ;;  %v4025_v47 = vpop.f32.mrb[120].mxu0  ;;  %v4438_v34 = vpack.c.bf16 %v4182_v41, %v4182_v41 }
0x1017   :  { %v4026_v2 = vadd.f32 %v7139_v13, %v4025_v47  ;;  %v8031_v17 = vpop.f32.mrb[121].mxu0 }
0x1018   :  { %v4028_v48 = vpop.f32.mrb[122].mxu0  ;;  %v4373_v36 = vpop.f32.mrb[132].mxu1  ;;  %v4581_v39 = vsel %vm1135_vm3, %v4438_v34, 0 }
0x1019   :  { %v4435_v51 = vpack.c.bf16 %v4026_v2, %v4026_v2  ;;  %v4382_v52 = vmul.f32 0.35355338, %v4373_v36  ;;  %v8032_v53 = vpop.f32.mrb[123].mxu0  ;;  %v8079_v54 = vpop.f32.mrb[133].mxu1 }
0x101a   :  { %v4376_v55 = vpop.f32.mrb[134].mxu1 }
0x101b   :  { %v4443_v56 = vsel %vm1135_vm3, %v4435_v51, 0  ;;  %8072 = vmatmul.mubr.msk.bf16.vlgmr.msra.gmra.mrb[132].mxu0 %vm887_vm2, %v4189_v7  ;;  %v4386_v9 = vadd.f32 %v4382_v52, %v9061_v14  ;;  %v8080_v58 = vpop.f32.mrb[135].mxu1  ;;  %v4628_v52 = vld [vmem:[%s10369_s11 + $0x4] sm:$0xf]  ;;  %v7141_v55 = vld [vmem:[%s10368_s10 + $0x2] ss:$0 sm:$0xff] }
0x101c   :  { %8082 = vmatpush3.bf16.msra.mxu0 %v4443_v56  ;;  %8083 = vmatprep.mubr.msk.bf16.mxu0 %vm8676_vm1, %v8675_v11  ;;  %v4681_v53 = vsel %vm1135_vm3, %v4628_v52, 0 }
0x101d   :  { %v4396_v44 = vsel %vm887_vm2, %v4386_v9, -inf  ;;  %8093 = vmatprep.subr.bf16.mxu0 %v8675_v11 }
0x101e   :  { %4397 = vmax.xlane.f32.xlu1 %v4396_v44  ;;  %v9794_v43 = vpop.f32.mrb[124].mxu0  ;;  %v4630_v44 = vld [vmem:[%s10369_s11 + $0xc] sm:$0xf] }
0x101f   :  { %v8047_v59 = vpop.f32.mrb[125].mxu0  ;;  %v4130_v56 = vadd.f32 %v7141_v55, %v9794_v43 }
0x1020   :  { %v4132_v1 = vpop.f32.mrb[126].mxu0 }
0x1021   :  { %v8048_v3 = vpop.f32.mrb[127].mxu0  ;;  %v4437_v59 = vpack.c.bf16 %v4130_v56, %v4130_v56 }
0x10a3   :  { %v4392_v4 = vpop.xlane.xlu1 %4391 }
0x10a4   :  { %v4400_v5 = vsub.f32 %v4384_v50, %v4392_v4 }
0x10a6   :  { %v4405_v6 = vmul.f32 1.442695, %v4400_v5 }
0x10a8   :  { %8577 = vpow2.f32 %v4405_v6 }
0x10ab   :  { %v4398_v8 = vpop.xlane.xlu1 %4397 }
0x10ac   :  { %v4402_v10 = vsub.f32 %v4386_v9, %v4398_v8  ;;  %v4773_v8 = vsel %vm1135_vm3, %v4630_v44, 0 }
0x10ae   :  { %v4409_v15 = vmul.f32 1.442695, %v4402_v10 }
0x10b0   :  { %8579 = vpow2.f32 %v4409_v15  ;;  %v4535_v15 = vsel %vm1135_vm3, %v4437_v59, 0 }
0x10b2   :  { %v8578_v19 = vpop.eup %8577 }
0x10b3   :  { %v4414_v25 = vsel %vm887_vm2, %v8578_v19, 0.0 }
0x10b4   :  { %4415 = vadd.xlane.f32.xlu1 %v4414_v25  ;;  %v4627_v25 = vld [vmem:[%s10369_s11] sm:$0xf] }
0x10ba   :  { %v8580_v22 = vpop.eup %8579 }
0x10bb   :  { %v4420_v24 = vsel %vm887_vm2, %v8580_v22, 0.0 }
0x10bc   :  { %4421 = vadd.xlane.f32.xlu1 %v4420_v24 }
0x10e6   :  { %v4235_v18 = vpop.f32.mrb[128].mxu0 }
0x10e7   :  { %v4379_v0 = vmul.f32 0.35355338, %v4235_v18  ;;  %v8061_v20 = vpop.f32.mrb[129].mxu0 }
0x10e8   :  { %v4238_v26 = vpop.f32.mrb[130].mxu0 }
0x10e9   :  { %v8062_v27 = vpop.f32.mrb[131].mxu0  ;;  %v4383_v60 = vadd.f32 %v4379_v0, %v9061_v14  ;;  %v4635_v26 = vsel %vm1135_vm3, %v4627_v25, 0 }
0x10eb   :  { %v4387_v42 = vsel %vm887_vm2, %v4383_v60, -inf }
0x10ec   :  { %4388 = vmax.xlane.f32.xlu0 %v4387_v42  ;;  %v4629_v42 = vld [vmem:[%s10369_s11 + $0x8] sm:$0xf] }
0x10ee   :  { %v4327_v49 = vpop.f32.mrb[132].mxu0 }
0x10ef   :  { %v4381_v28 = vmul.f32 0.35355338, %v4327_v49  ;;  %v8073_v29 = vpop.f32.mrb[133].mxu0 }
0x10f0   :  { %v4330_v30 = vpop.f32.mrb[134].mxu0 }
0x10f1   :  { %v8074_v62 = vpop.f32.mrb[135].mxu0  ;;  %v4385_v32 = vadd.f32 %v4381_v28, %v9061_v14 }
0x10f3   :  { %v4393_v12 = vsel %vm887_vm2, %v4385_v32, -inf }
0x10f4   :  { %4394 = vmax.xlane.f32.xlu0 %v4393_v12 }
0x1141   :  { %v4416_v57 = vpop.xlane.xlu1 %4415 }
0x1142   :  { %8581 = vrcp.f32 %v4416_v57 }
0x1149   :  { %v4422_v33 = vpop.xlane.xlu1 %4421 }
0x114a   :  { %8583 = vrcp.f32 %v4422_v33 }
0x114c   :  { %v8582_v61 = vpop.eup %8581 }
0x114d   :  { %v4428_v35 = vmul.f32 %v8582_v61, %v8578_v19 }
0x114f   :  { %v4432_v38 = vpack.c.bf16 %v4428_v35, %v4428_v35 }
0x1151   :  { %8090 = vmatmul.mubr.msk.bf16.vlgmr.msra.gmra.mrb[136].mxu1 %vm887_vm2, %v4432_v38 }
0x1152   :  { %8100 = vmatpush3.bf16.msra.mxu1 %v4581_v39  ;;  %8101 = vmatprep.mubr.msk.bf16.mxu1 %vm8676_vm1, %v8675_v11 }
0x1153   :  { %8111 = vmatprep.subr.bf16.mxu1 %v8675_v11 }
0x1154   :  { %v8584_v50 = vpop.eup %8583 }
0x1155   :  { %v4430_v40 = vmul.f32 %v8584_v50, %v8580_v22 }
0x1157   :  { %v4434_v13 = vpack.c.bf16 %v4430_v40, %v4430_v40 }
0x1159   :  { %8102 = vmatmul.mubr.msk.bf16.vlgmr.msra.gmra.mrb[140].mxu1 %vm887_vm2, %v4434_v13 }
0x115a   :  { %8113 = vmatprep.mubr.msk.bf16.mxu1 %vm8676_vm1, %v8675_v11  ;;  %8112 = vmatpush3.bf16.msra.mxu1 %v4681_v53 }
0x115b   :  { %8123 = vmatprep.subr.bf16.mxu1 %v8675_v11 }
0x1179   :  { %v4389_v63 = vpop.xlane.xlu0 %4388 }
0x117a   :  { %v4399_v45 = vsub.f32 %v4383_v60, %v4389_v63 }
0x117c   :  { %v4403_v46 = vmul.f32 1.442695, %v4399_v45 }
0x117e   :  { %8585 = vpow2.f32 %v4403_v46 }
0x1181   :  { %v4395_v47 = vpop.xlane.xlu0 %4394 }
0x1182   :  { %v4401_v2 = vsub.f32 %v4385_v32, %v4395_v47  ;;  %v4727_v32 = vsel %vm1135_vm3, %v4629_v42, 0 }
0x1184   :  { %v4407_v17 = vmul.f32 1.442695, %v4401_v2 }
0x1186   :  { %8587 = vpow2.f32 %v4407_v17 }
0x1188   :  { %v8586_v48 = vpop.eup %8585 }
0x1189   :  { %v4411_v36 = vsel %vm887_vm2, %v8586_v48, 0.0 }
0x118a   :  { %4412 = vadd.xlane.f32.xlu0 %v4411_v36 }
0x1190   :  { %v8588_v7 = vpop.eup %8587 }
0x1191   :  { %v4417_v51 = vsel %vm887_vm2, %v8588_v7, 0.0 }
0x1192   :  { %4418 = vadd.xlane.f32.xlu0 %v4417_v51 }
0x1217   :  { %v4413_v54 = vpop.xlane.xlu0 %4412 }
0x1218   :  { %8589 = vrcp.f32 %v4413_v54 }
0x121f   :  { %v4419_v9 = vpop.xlane.xlu0 %4418 }
0x1220   :  { %8591 = vrcp.f32 %v4419_v9  ;;  %v7167_v9 = vld [vmem:[%s10370_s12] ss:$0 sm:$0xff] }
0x1222   :  { %v8590_v58 = vpop.eup %8589 }
0x1223   :  { %v4427_v1 = vmul.f32 %v8590_v58, %v8586_v48  ;;  %v7184_v58 = vld [vmem:[%s10405_s2 + $0x18] sm:$0xff] }
0x1224   :  { %v4525_v3 = vpop.f32.mrb[136].mxu1 }
0x1225   :  { %v4624_v4 = vpack.c.bf16 %v4525_v3, %v4525_v3  ;;  %v8091_v5 = vpop.f32.mrb[137].mxu1  ;;  %v4431_v6 = vpack.c.bf16 %v4427_v1, %v4427_v1  ;;  %v8626_v1 = vld [vmem:[%s10404_s27] sm:$0xff] }
0x1226   :  { %v4528_v10 = vpop.f32.mrb[138].mxu1  ;;  %v9876_v3 = vadd.f32 %v8626_v1, %v7184_v58  ;;  %v8503_v58 = vld [vmem:[%s10375_s17 + $0x20] sm:$0xff]   ;;  %v8505_v1 = vld [vmem:[%s10375_s17 + $0x30] sm:$0xff]  }
0x1227   :  { %8084 = vmatmul.mubr.msk.bf16.vlgmr.msra.gmra.mrb[136].mxu0 %vm887_vm2, %v4431_v6  ;;  %v8092_v43 = vpop.f32.mrb[139].mxu1  ;;  %8114 = vmatmul.mubr.msk.bf16.vlgmr.msra.gmra.mrb[144].mxu1 %vm887_vm2, %v4624_v4 }
0x1228   :  { %8094 = vmatpush3.bf16.msra.mxu0 %v4535_v15  ;;  %8124 = vmatpush3.bf16.msra.mxu1 %v4773_v8  ;;  %v5053_v5 = vsel %vm90_vm0, %v9876_v3, 0.0 }
0x1229   :  { %8095 = vmatprep.mubr.msk.bf16.mxu0 %vm8676_vm1, %v8675_v11  ;;  %8125 = vmatprep.mubr.msk.bf16.mxu1 %vm8676_vm1, %v8675_v11 }
0x122a   :  { %v8592_v19 = vpop.eup %8591  ;;  %8105 = vmatprep.subr.bf16.mxu0 %v8675_v11  ;;  %8137 = vmatprep.subr.bf16.mxu1 %v8675_v11 }
0x122b   :  { %v4429_v22 = vmul.f32 %v8592_v19, %v8588_v7 }
0x122c   :  { %v4617_v24 = vpop.f32.mrb[140].mxu1 }
0x122d   :  { %v4626_v18 = vpack.c.bf16 %v4617_v24, %v4617_v24  ;;  %v8103_v0 = vpop.f32.mrb[141].mxu1  ;;  %v4433_v20 = vpack.c.bf16 %v4429_v22, %v4429_v22 }
0x122e   :  { %v4620_v27 = vpop.f32.mrb[142].mxu1  ;;  %v8482_v0 = vld [vmem:[%s10373_s15 + $0x8] sm:$0xff]  }
0x122f   :  { %8096 = vmatmul.mubr.msk.bf16.vlgmr.msra.gmra.mrb[140].mxu0 %vm887_vm2, %v4433_v20  ;;  %v8104_v60 = vpop.f32.mrb[143].mxu1  ;;  %8126 = vmatmul.mubr.msk.bf16.vlgmr.msra.gmra.mrb[148].mxu1 %vm887_vm2, %v4626_v18  ;;  %v8481_v18 = vld [vmem:[%s10373_s15] sm:$0xff]  }
0x1230   :  { %8106 = vmatpush3.bf16.msra.mxu0 %v4635_v26  ;;  %8107 = vmatprep.mubr.msk.bf16.mxu0 %vm8676_vm1, %v8675_v11 }
0x1231   :  { %8117 = vmatprep.subr.bf16.mxu0 %v8675_v11  ;;  %8153 = vmatprep.mubr.msk.bf16.mxu1 %vm8676_vm1, %v8675_v11 }
0x12fa   :  { %v4479_v49 = vpop.f32.mrb[136].mxu0  ;;  %v4717_v28 = vpop.f32.mrb[144].mxu1 }
0x12fb   :  { %v4623_v29 = vpack.c.bf16 %v4479_v49, %v4479_v49  ;;  %v8085_v30 = vpop.f32.mrb[137].mxu0  ;;  %v8115_v62 = vpop.f32.mrb[145].mxu1  ;;  %v4816_v45 = vsel %vm90_vm0, %v4717_v28, 0.0 }
0x12fc   :  { %v4482_v12 = vpop.f32.mrb[138].mxu0  ;;  %v4720_v57 = vpop.f32.mrb[146].mxu1  ;;  %v9902_v62 = vld [vmem:[%s10372_s14] ss:$0 sm:$0xff] }
0x12fd   :  { %v8086_v16 = vpop.f32.mrb[139].mxu0  ;;  %8108 = vmatmul.mubr.msk.bf16.vlgmr.msra.gmra.mrb[144].mxu0 %vm887_vm2, %v4623_v29  ;;  %v8116_v41 = vpop.f32.mrb[147].mxu1  ;;  %v9897_v29 = vld [vmem:[%s10371_s13] ss:$0 sm:$0xff] }
0x12fe   :  { %8118 = vmatpush3.bf16.msra.mxu0 %v4727_v32  ;;  %8119 = vmatprep.mubr.msk.bf16.mxu0 %vm8676_vm1, %v8675_v11  ;;  %v7185_v57 = vld [vmem:[%s10407_s28] ss:$0 sm:$0xff] }
0x12ff   :  { %8129 = vmatprep.subr.bf16.mxu0 %v8675_v11 }
0x1302   :  { %v4571_v33 = vpop.f32.mrb[140].mxu0  ;;  %v4809_v61 = vpop.f32.mrb[148].mxu1 }
0x1303   :  { %v4625_v34 = vpack.c.bf16 %v4571_v33, %v4571_v33  ;;  %v8097_v35 = vpop.f32.mrb[141].mxu0  ;;  %v8127_v38 = vpop.f32.mrb[149].mxu1  ;;  %v4820_v54 = vsel %vm90_vm0, %v4809_v61, 0.0  ;;  %v7186_v33 = vld [vmem:[%s10408_s0] ss:$0 sm:$0xff] }
0x1304   :  { %v4574_v39 = vpop.f32.mrb[142].mxu0  ;;  %v4812_v50 = vpop.f32.mrb[150].mxu1  ;;  %v8483_v61 = vld [vmem:[%s10406_s7] sm:$0xff]  }
0x1305   :  { %v8098_v40 = vpop.f32.mrb[143].mxu0  ;;  %8120 = vmatmul.mubr.msk.bf16.vlgmr.msra.gmra.mrb[148].mxu0 %vm887_vm2, %v4625_v34  ;;  %v8128_v13 = vpop.f32.mrb[151].mxu1  ;;  %v8484_v39 = vld [vmem:[%s10406_s7 + $0x8] sm:$0xff]  }
0x1306   :  { %8133 = vmatprep.mubr.msk.bf16.mxu0 %vm8676_vm1, %v8675_v11  ;;  %8130 = vmatpush3.bf16.msra.mxu0 %v8481_v18  ;;  %v8485_v40 = vld [vmem:[%s10406_s7 + $0x10] sm:$0xff]   ;;  %v8486_v13 = vld [vmem:[%s10406_s7 + $0x18] sm:$0xff]  }
0x1307   :  { %8131 = vmatprep.subr.bf16.mxu0 %v8675_v11 }
0x130a   :  { %8132 = vmatpush3.bf16.msra.mxu0 %v8482_v0 }
0x130b   :  { %8157 = vmatprep.subr.bf16.mxu0 %v8675_v11 }
0x13d0   :  { %v4671_v63 = vpop.f32.mrb[144].mxu0 }
0x13d1   :  { %v4815_v46 = vsel %vm90_vm0, %v4671_v63, 0.0  ;;  %v8109_v47 = vpop.f32.mrb[145].mxu0  ;;  %v8487_v63 = vld [vmem:[%s10406_s7 + $0x20] sm:$0xff]  }
0x13d2   :  { %v4817_v2 = vadd.f32 %v4816_v45, %v4815_v46  ;;  %v4674_v17 = vpop.f32.mrb[146].mxu0  ;;  %v8488_v45 = vld [vmem:[%s10406_s7 + $0x28] sm:$0xff]   ;;  %v8489_v46 = vld [vmem:[%s10406_s7 + $0x30] sm:$0xff]   ;;  %v8490_v47 = vld [vmem:[%s10406_s7 + $0x38] sm:$0xff]  }
0x13d3   :  { %v8110_v48 = vpop.f32.mrb[147].mxu0  ;;  %v8492_v17 = vld [vmem:[%s10409_s30 + $0x18] sm:$0xff]  }
0x13d4   :  { %v8493_v48 = vld [vmem:[%s10409_s30 + $0x30] sm:$0xff]  }
0x13d8   :  { %v4763_v36 = vpop.f32.mrb[148].mxu0 }
0x13d9   :  { %v4818_v7 = vsel %vm90_vm0, %v4763_v36, 0.0  ;;  %v8121_v51 = vpop.f32.mrb[149].mxu0  ;;  %v8494_v36 = vld [vmem:[%s10409_s30 + $0x38] sm:$0xff]  }
0x13da   :  { %v4819_v52 = vadd.f32 %v4818_v7, %v4817_v2  ;;  %v4766_v53 = vpop.f32.mrb[150].mxu0  ;;  %v8491_v2 = vld [vmem:[%s10409_s30 + $0x10] sm:$0xff]   ;;  %v8496_v51 = vld [vmem:[%s10410_s6 + $0x18] sm:$0xff]  }
0x13db   :  { %v8122_v55 = vpop.f32.mrb[151].mxu0  ;;  %v8495_v7 = vld [vmem:[%s10410_s6 + $0x10] sm:$0xff]   ;;  %v8498_v53 = vld [vmem:[%s10410_s6 + $0x38] sm:$0xff]  }
0x13dc   :  { %v4821_v56 = vadd.f32 %v4820_v54, %v4819_v52  ;;  %v8497_v52 = vld [vmem:[%s10410_s6 + $0x30] sm:$0xff]   ;;  %v8499_v54 = vld [vmem:[%s10375_s17] sm:$0xff]   ;;  %v8500_v55 = vld [vmem:[%s10375_s17 + $0x8] sm:$0xff]  }
0x13dd   :  { %8138 = vmatpush3.bf16.msra.mxu1 %v8499_v54 }
0x13de   :  { %v4822_v44 = vadd.f32 %v4821_v56, %v9497_v37  ;;  %8139 = vmatprep.subr.bf16.mxu1 %v8675_v11  ;;  %v8501_v56 = vld [vmem:[%s10375_s17 + $0x10] sm:$0xff]  }
0x13e0   :  { %v9871_v59 = vadd.f32 %v7167_v9, %v4822_v44  ;;  %v8502_v9 = vld [vmem:[%s10375_s17 + $0x18] sm:$0xff]   ;;  %v8504_v44 = vld [vmem:[%s10375_s17 + $0x28] sm:$0xff]  }
0x13e1   :  { %8140 = vmatpush3.bf16.msra.mxu1 %v8500_v55 }
0x13e2   :  { %v4833_v4 = vsel %vm90_vm0, %v9871_v59, 0.0  ;;  %8141 = vmatprep.subr.bf16.mxu1 %v8675_v11 }
0x13e3   :  { %4834 = vadd.xlane.f32.xlu0 %v4833_v4  ;;  %v8506_v4 = vld [vmem:[%s10375_s17 + $0x38] sm:$0xff]  }
0x13e5   :  { %8142 = vmatpush3.bf16.msra.mxu1 %v8501_v56 }
0x13e6   :  { %8143 = vmatprep.subr.bf16.mxu1 %v8675_v11 }
0x13e7   :  { %5054 = vadd.xlane.f32.xlu0 %v5053_v5  ;;  %v10048_v5 = vld [vmem:[%s10374_s16] ss:$0 sm:$0xff] }
0x13e9   :  { %8144 = vmatpush3.bf16.msra.mxu1 %v8502_v9  ;;  %v7190_v9 = vld [vmem:[%s10411_s4 + $0x3] ss:$0 sm:$0xff] }
0x13ea   :  { %8145 = vmatprep.subr.bf16.mxu1 %v8675_v11 }
0x13ed   :  { %8146 = vmatpush3.bf16.msra.mxu1 %v8503_v58 }
0x13ee   :  { %8147 = vmatprep.subr.bf16.mxu1 %v8675_v11 }
0x13f1   :  { %8148 = vmatpush3.bf16.msra.mxu1 %v8504_v44 }
0x13f2   :  { %8149 = vmatprep.subr.bf16.mxu1 %v8675_v11 }
0x13f5   :  { %8150 = vmatpush3.bf16.msra.mxu1 %v8505_v1 }
0x13f6   :  { %8151 = vmatprep.subr.bf16.mxu1 %v8675_v11 }
0x13f9   :  { %8152 = vmatpush3.bf16.msra.mxu1 %v8506_v4  ;;  %v8512_v4 = vld [vmem:[%s10410_s6 + $0x8] sm:$0xff]  }
0x13fa   :  { %8189 = vmatprep.subr.bf16.mxu1 %v8675_v11 }
0x1470   :  { %v4835_v6 = vpop.xlane.xlu0 %4834 }
0x1471   :  { %v4836_v8 = vmul.f32 0.03125, %v4835_v6 }
0x1473   :  { %v4837_v37 = vsub.f32 %v9871_v59, %v4836_v8 }
0x1474   :  { %v5055_v10 = vpop.xlane.xlu0 %5054 }
0x1475   :  { %v4838_v15 = vmul.f32 %v4837_v37, %v4837_v37  ;;  %v5056_v43 = vmul.f32 0.03125, %v5055_v10 }
0x1477   :  { %v4839_v19 = vsel %vm90_vm0, %v4838_v15, 0.0  ;;  %v5057_v25 = vsub.f32 %v9876_v3, %v5056_v43 }
0x1478   :  { %4840 = vadd.xlane.f32.xlu1 %v4839_v19 }
0x1479   :  { %v5058_v22 = vmul.f32 %v5057_v25, %v5057_v25 }
0x147b   :  { %v5059_v24 = vsel %vm90_vm0, %v5058_v22, 0.0 }
0x147c   :  { %5060 = vadd.xlane.f32.xlu1 %v5059_v24 }
0x1505   :  { %v4841_v20 = vpop.xlane.xlu1 %4840 }
0x1506   :  { %v4842_v26 = vmul.f32 0.03125, %v4841_v20 }
0x1508   :  { %v4843_v27 = vadd.f32 1e-05, %v4842_v26 }
0x1509   :  { %v5061_v60 = vpop.xlane.xlu1 %5060 }
0x150a   :  { %8593 = vrsqrt.f32 %v4843_v27  ;;  %v5062_v42 = vmul.f32 0.03125, %v5061_v60 }
0x150c   :  { %v5063_v49 = vadd.f32 1e-05, %v5062_v42 }
0x150e   :  { %8595 = vrsqrt.f32 %v5063_v49 }
0x1514   :  { %v8594_v28 = vpop.eup %8593 }
0x1515   :  { %v4845_v30 = vmul.f32 %v8594_v28, %v4837_v37 }
0x1517   :  { %v4852_v32 = vmul.f32 %v9897_v29, %v4845_v30 }
0x1518   :  { %v8596_v12 = vpop.eup %8595 }
0x1519   :  { %v5065_v16 = vmul.f32 %v8596_v12, %v5057_v25  ;;  %v4859_v41 = vadd.f32 %v9902_v62, %v4852_v32 }
0x151b   :  { %v5072_v34 = vmul.f32 %v7185_v57, %v5065_v16  ;;  %v4860_v35 = vpack.c.bf16 %v4859_v41, %v4859_v41  ;;  %v8507_v41 = vld [vmem:[%s10409_s30] sm:$0xff]  }
0x151d   :  { %v5079_v38 = vadd.f32 %v7186_v33, %v5072_v34  ;;  %8134 = vmatmul.mubr.msk.bf16.vlgmr.msra.gmra.mrb[152].mxu0 %vm90_vm0, %v4860_v35 }
0x151e   :  { %8158 = vmatpush3.bf16.msra.mxu0 %v8483_v61  ;;  %8161 = vmatprep.mubr.msk.bf16.mxu0 %vm8676_vm1, %v8675_v11 }
0x151f   :  { %8159 = vmatprep.subr.bf16.mxu0 %v8675_v11  ;;  %v9922_v50 = vpack.c.bf16 %v5079_v38, %v5079_v38  ;;  %v8508_v38 = vld [vmem:[%s10409_s30 + $0x8] sm:$0xff]  }
0x1522   :  { %8160 = vmatpush3.bf16.msra.mxu0 %v8484_v39  ;;  %v7204_v39 = vld [vmem:[%s10367_s9 + $0x1] ss:$0 sm:$0xff] }
0x1523   :  { %8165 = vmatprep.subr.bf16.mxu0 %v8675_v11 }
0x1525   :  { %8162 = vmatmul.mubr.msk.bf16.vlgmr.msra.gmra.mrb[156].mxu0 %vm90_vm0, %v9922_v50 }
0x1526   :  { %8166 = vmatpush3.bf16.msra.mxu0 %v8485_v40  ;;  %8169 = vmatprep.mubr.msk.bf16.mxu0 %vm8676_vm1, %v8675_v11 }
0x1527   :  { %8167 = vmatprep.subr.bf16.mxu0 %v8675_v11 }
0x152a   :  { %8168 = vmatpush3.bf16.msra.mxu0 %v8486_v13  ;;  %v8509_v13 = vld [vmem:[%s10409_s30 + $0x20] sm:$0xff]  }
0x152b   :  { %8173 = vmatprep.subr.bf16.mxu0 %v8675_v11 }
0x152d   :  { %8170 = vmatmul.mubr.msk.bf16.vlgmr.msra.gmra.mrb[160].mxu0 %vm90_vm0, %v9922_v50 }
0x152e   :  { %8174 = vmatpush3.bf16.msra.mxu0 %v8487_v63  ;;  %8177 = vmatprep.mubr.msk.bf16.mxu0 %vm8676_vm1, %v8675_v11 }
0x152f   :  { %8175 = vmatprep.subr.bf16.mxu0 %v8675_v11 }
0x1532   :  { %8176 = vmatpush3.bf16.msra.mxu0 %v8488_v45 }
0x1533   :  { %8181 = vmatprep.subr.bf16.mxu0 %v8675_v11 }
0x1535   :  { %8178 = vmatmul.mubr.msk.bf16.vlgmr.msra.gmra.mrb[164].mxu0 %vm90_vm0, %v9922_v50 }
0x1536   :  { %8182 = vmatpush3.bf16.msra.mxu0 %v8489_v46  ;;  %8185 = vmatprep.mubr.msk.bf16.mxu0 %vm8676_vm1, %v8675_v11  ;;  %v7188_v46 = vld [vmem:[%s10411_s4 + $0x1] ss:$0 sm:$0xff] }
0x1537   :  { %8183 = vmatprep.subr.bf16.mxu0 %v8675_v11 }
0x153a   :  { %8184 = vmatpush3.bf16.msra.mxu0 %v8490_v47 }
0x153b   :  { %8197 = vmatprep.subr.bf16.mxu0 %v8675_v11 }
0x153d   :  { %8186 = vmatmul.mubr.msk.bf16.vlgmr.msra.gmra.mrb[168].mxu0 %vm90_vm0, %v9922_v50 }
0x153e   :  { %8198 = vmatpush3.bf16.msra.mxu0 %v8491_v2  ;;  %8201 = vmatprep.mubr.msk.bf16.mxu0 %vm8676_vm1, %v8675_v11 }
0x153f   :  { %8199 = vmatprep.subr.bf16.mxu0 %v8675_v11 }
0x1542   :  { %8200 = vmatpush3.bf16.msra.mxu0 %v8492_v17 }
0x1543   :  { %8213 = vmatprep.subr.bf16.mxu0 %v8675_v11 }
0x1545   :  { %8202 = vmatmul.mubr.msk.bf16.vlgmr.msra.gmra.mrb[172].mxu0 %vm90_vm0, %v9922_v50 }
0x1546   :  { %8214 = vmatpush3.bf16.msra.mxu0 %v8493_v48  ;;  %8217 = vmatprep.mubr.msk.bf16.mxu0 %vm8676_vm1, %v8675_v11  ;;  %v8510_v48 = vld [vmem:[%s10409_s30 + $0x28] sm:$0xff]  }
0x1547   :  { %8215 = vmatprep.subr.bf16.mxu0 %v8675_v11 }
0x154a   :  { %8216 = vmatpush3.bf16.msra.mxu0 %v8494_v36 }
0x154b   :  { %8229 = vmatprep.subr.bf16.mxu0 %v8675_v11 }
0x154d   :  { %8218 = vmatmul.mubr.msk.bf16.vlgmr.msra.gmra.mrb[176].mxu0 %vm90_vm0, %v9922_v50 }
0x154e   :  { %8230 = vmatpush3.bf16.msra.mxu0 %v8495_v7  ;;  %8233 = vmatprep.mubr.msk.bf16.mxu0 %vm8676_vm1, %v8675_v11 }
0x154f   :  { %8231 = vmatprep.subr.bf16.mxu0 %v8675_v11 }
0x1552   :  { %8232 = vmatpush3.bf16.msra.mxu0 %v8496_v51  ;;  %v7206_v51 = vld [vmem:[%s10367_s9 + $0x3] ss:$0 sm:$0xff] }
0x1553   :  { %8245 = vmatprep.subr.bf16.mxu0 %v8675_v11 }
0x1555   :  { %8234 = vmatmul.mubr.msk.bf16.vlgmr.msra.gmra.mrb[180].mxu0 %vm90_vm0, %v9922_v50 }
0x1556   :  { %8246 = vmatpush3.bf16.msra.mxu0 %v8497_v52  ;;  %8249 = vmatprep.mubr.msk.bf16.mxu0 %vm8676_vm1, %v8675_v11 }
0x1557   :  { %8247 = vmatprep.subr.bf16.mxu0 %v8675_v11 }
0x155a   :  { %8248 = vmatpush3.bf16.msra.mxu0 %v8498_v53  ;;  %v8511_v53 = vld [vmem:[%s10410_s6] sm:$0xff]  }
0x155b   :  { %8259 = vmatprep.subr.bf16.mxu0 %v8675_v11 }
0x155d   :  { %8250 = vmatmul.mubr.msk.bf16.vlgmr.msra.gmra.mrb[184].mxu0 %vm90_vm0, %v9922_v50 }
0x155e   :  { %8261 = vmatprep.mubr.msk.bf16.mxu0 %vm8676_vm1, %v8675_v11 }
0x15f0   :  { %v4921_v6 = vpop.f32.mrb[152].mxu0 }
0x15f1   :  { %v4922_v8 = vadd.f32 %v10048_v5, %v4921_v6  ;;  %v8135_v37 = vpop.f32.mrb[153].mxu0 }
0x15f2   :  { %v4924_v10 = vpop.f32.mrb[154].mxu0  ;;  %v7220_v37 = vld [vmem:[%s10368_s10 + $0x1] ss:$0 sm:$0xff] }
0x15f3   :  { %v7174_v15 = vmul.f32 -1.702, %v4922_v8  ;;  %v8136_v43 = vpop.f32.mrb[155].mxu0 }
0x15f5   :  { %v4929_v19 = vmul.f32 1.442695, %v7174_v15  ;;  %v8513_v15 = vld [vmem:[%s10410_s6 + $0x20] sm:$0xff]  }
0x15f7   :  { %8597 = vpow2.f32 %v4929_v19 }
0x15f8   :  { %v10051_v25 = vpop.f32.mrb[156].mxu0 }
0x15f9   :  { %v8163_v22 = vpop.f32.mrb[157].mxu0 }
0x15fa   :  { %v5177_v24 = vpop.f32.mrb[158].mxu0 }
0x15fb   :  { %v8164_v18 = vpop.f32.mrb[159].mxu0 }
0x1600   :  { %v5226_v0 = vpop.f32.mrb[160].mxu0 }
0x1601   :  { %v8598_v20 = vpop.eup %8597  ;;  %v8171_v26 = vpop.f32.mrb[161].mxu0  ;;  %v5227_v36 = vadd.f32 %v7188_v46, %v5226_v0 }
0x1602   :  { %v4931_v27 = vadd.f32 1.0, %v8598_v20  ;;  %v5229_v60 = vpop.f32.mrb[162].mxu0  ;;  %v8514_v20 = vld [vmem:[%s10410_s6 + $0x28] sm:$0xff]  }
0x1603   :  { %v8172_v42 = vpop.f32.mrb[163].mxu0  ;;  %v5841_v54 = vpack.c.bf16 %v5227_v36, %v5227_v36 }
0x1604   :  { %8599 = vrcp.f32 %v4931_v27 }
0x1608   :  { %v10053_v49 = vpop.f32.mrb[164].mxu0 }
0x1609   :  { %v8179_v28 = vpop.f32.mrb[165].mxu0 }
0x160a   :  { %v5281_v30 = vpop.f32.mrb[166].mxu0 }
0x160b   :  { %v8180_v32 = vpop.f32.mrb[167].mxu0 }
0x160e   :  { %v8600_v12 = vpop.eup %8599 }
0x160f   :  { %v4934_v57 = vmul.f32 %v8600_v12, %v4922_v8 }
0x1610   :  { %v5330_v16 = vpop.f32.mrb[168].mxu0 }
0x1611   :  { %v4935_v33 = vpack.c.bf16 %v4934_v57, %v4934_v57  ;;  %v8187_v61 = vpop.f32.mrb[169].mxu0  ;;  %v5331_v6 = vadd.f32 %v7190_v9, %v5330_v16  ;;  %v7203_v16 = vld [vmem:[%s10367_s9] ss:$0 sm:$0xff] }
0x1612   :  { %v5333_v34 = vpop.f32.mrb[170].mxu0 }
0x1613   :  { %8154 = vmatmul.mubr.bf16.vlgmr.msra.gmra.mrb[152].mxu1 %v4935_v33  ;;  %v8188_v35 = vpop.f32.mrb[171].mxu0  ;;  %v5843_v43 = vpack.c.bf16 %v5331_v6, %v5331_v6 }
0x1614   :  { %8190 = vmatpush3.bf16.msra.mxu1 %v8507_v41  ;;  %8193 = vmatprep.mubr.msk.bf16.mxu1 %vm8676_vm1, %v8675_v11 }
0x1615   :  { %8191 = vmatprep.subr.bf16.mxu1 %v8675_v11 }
0x1618   :  { %8192 = vmatpush3.bf16.msra.mxu1 %v8508_v38  ;;  %v5478_v40 = vpop.f32.mrb[172].mxu0 }
0x1619   :  { %v5479_v63 = vadd.f32 %v7204_v39, %v5478_v40  ;;  %8205 = vmatprep.subr.bf16.mxu1 %v8675_v11  ;;  %v8203_v45 = vpop.f32.mrb[173].mxu0  ;;  %v7205_v40 = vld [vmem:[%s10367_s9 + $0x2] ss:$0 sm:$0xff] }
0x161a   :  { %v5481_v47 = vpop.f32.mrb[174].mxu0 }
0x161b   :  { %v5845_v2 = vpack.c.bf16 %v5479_v63, %v5479_v63  ;;  %8194 = vmatmul.mubr.msk.bf16.vlgmr.msra.gmra.mrb[156].mxu1 %vm90_vm0, %v9922_v50  ;;  %v8204_v17 = vpop.f32.mrb[175].mxu0 }
0x161c   :  { %8206 = vmatpush3.bf16.msra.mxu1 %v8509_v13  ;;  %8209 = vmatprep.mubr.msk.bf16.mxu1 %vm8676_vm1, %v8675_v11 }
0x161d   :  { %v5898_v7 = vsel %vm887_vm2, %v5845_v2, 0  ;;  %8207 = vmatprep.subr.bf16.mxu1 %v8675_v11 }
0x161e   :  { %8260 = vmatpush3.bf16.xpose.msra.mxu0 %v5898_v7 }
0x161f   :  { %8271 = vmatprep.subr.bf16.mxu0 %v8675_v11 }
0x1620   :  { %8208 = vmatpush3.bf16.msra.mxu1 %v8510_v48  ;;  %v5582_v52 = vpop.f32.mrb[176].mxu0 }
0x1621   :  { %v5583_v55 = vadd.f32 %v7206_v51, %v5582_v52  ;;  %8221 = vmatprep.subr.bf16.mxu1 %v8675_v11  ;;  %v8219_v56 = vpop.f32.mrb[177].mxu0  ;;  %v7189_v52 = vld [vmem:[%s10411_s4 + $0x2] ss:$0 sm:$0xff] }
0x1622   :  { %v5585_v58 = vpop.f32.mrb[178].mxu0  ;;  %v7219_v56 = vld [vmem:[%s10368_s10] ss:$0 sm:$0xff]  ;;  %v5279_v9 = vadd.f32 %v7189_v52, %v10053_v49  ;;  %v7222_v52 = vld [vmem:[%s10368_s10 + $0x3] ss:$0 sm:$0xff] }
0x1623   :  { %v5847_v44 = vpack.c.bf16 %v5583_v55, %v5583_v55  ;;  %8210 = vmatmul.mubr.msk.bf16.vlgmr.msra.gmra.mrb[160].mxu1 %vm90_vm0, %v9922_v50  ;;  %v8220_v1 = vpop.f32.mrb[179].mxu0 }
0x1624   :  { %8222 = vmatpush3.bf16.msra.mxu1 %v8511_v53  ;;  %8225 = vmatprep.mubr.msk.bf16.mxu1 %vm8676_vm1, %v8675_v11 }
0x1625   :  { %v5990_v8 = vsel %vm887_vm2, %v5847_v44, 0  ;;  %8262 = vmatmul.mubr.msk.bf16.vlgmr.msra.gmra.mrb[188].mxu0 %vm887_vm2, %v5841_v54  ;;  %8223 = vmatprep.subr.bf16.mxu1 %v8675_v11 }
0x1626   :  { %8272 = vmatpush3.bf16.xpose.msra.mxu0 %v5990_v8  ;;  %8273 = vmatprep.mubr.msk.bf16.mxu0 %vm8676_vm1, %v8675_v11 }
0x1627   :  { %8283 = vmatprep.subr.bf16.mxu0 %v8675_v11 }
0x1628   :  { %8224 = vmatpush3.bf16.msra.mxu1 %v8512_v4  ;;  %v5730_v10 = vpop.f32.mrb[180].mxu0 }
0x1629   :  { %8237 = vmatprep.subr.bf16.mxu1 %v8675_v11  ;;  %v5731_v19 = vadd.f32 %v7220_v37, %v5730_v10  ;;  %v8235_v22 = vpop.f32.mrb[181].mxu0  ;;  %v5842_v37 = vpack.c.bf16 %v5279_v9, %v5279_v9 }
0x162a   :  { %v5733_v24 = vpop.f32.mrb[182].mxu0 }
0x162b   :  { %8226 = vmatmul.mubr.msk.bf16.vlgmr.msra.gmra.mrb[164].mxu1 %vm90_vm0, %v9922_v50  ;;  %v6089_v18 = vpack.c.bf16 %v5731_v19, %v5731_v19  ;;  %v8236_v0 = vpop.f32.mrb[183].mxu0 }
0x162c   :  { %8238 = vmatpush3.bf16.msra.mxu1 %v8513_v15  ;;  %8241 = vmatprep.mubr.msk.bf16.mxu1 %vm8676_vm1, %v8675_v11 }
0x162d   :  { %v6142_v26 = vsel %vm1135_vm3, %v6089_v18, 0  ;;  %8274 = vmatmul.mubr.msk.bf16.vlgmr.msra.gmra.mrb[192].mxu0 %vm887_vm2, %v5843_v43  ;;  %8239 = vmatprep.subr.bf16.mxu1 %v8675_v11 }
0x162e   :  { %8284 = vmatpush3.bf16.msra.mxu0 %v6142_v26  ;;  %8285 = vmatprep.mubr.msk.bf16.mxu0 %vm8676_vm1, %v8675_v11 }
0x162f   :  { %8295 = vmatprep.subr.bf16.mxu0 %v8675_v11 }
0x1630   :  { %8240 = vmatpush3.bf16.msra.mxu1 %v8514_v20  ;;  %v10127_v27 = vpop.f32.mrb[184].mxu0 }
0x1631   :  { %v8251_v60 = vpop.f32.mrb[185].mxu0  ;;  %8253 = vmatprep.subr.bf16.mxu1 %v8675_v11 }
0x1632   :  { %v5837_v42 = vpop.f32.mrb[186].mxu0 }
0x1633   :  { %8242 = vmatmul.mubr.msk.bf16.vlgmr.msra.gmra.mrb[168].mxu1 %vm90_vm0, %v9922_v50  ;;  %v8252_v28 = vpop.f32.mrb[187].mxu0  ;;  %v7187_v50 = vld [vmem:[%s10411_s4] ss:$0 sm:$0xff] }
0x1634   :  { %8255 = vmatprep.mubr.msk.bf16.mxu1 %vm8676_vm1, %v8675_v11  ;;  %v5175_v13 = vadd.f32 %v7187_v50, %v10051_v25 }
0x1636   :  { %v5840_v17 = vpack.c.bf16 %v5175_v13, %v5175_v13 }
0x16e6   :  { %v10134_v30 = vpop.f32.mrb[152].mxu1 }
0x16e7   :  { %v8155_v32 = vpop.f32.mrb[153].mxu1 }
0x16e8   :  { %v5044_v12 = vpop.f32.mrb[154].mxu1 }
0x16e9   :  { %v8156_v57 = vpop.f32.mrb[155].mxu1 }
0x16ee   :  { %v5426_v41 = vpop.f32.mrb[156].mxu1 }
0x16ef   :  { %v5427_v33 = vadd.f32 %v7203_v16, %v5426_v41  ;;  %v8195_v61 = vpop.f32.mrb[157].mxu1 }
0x16f0   :  { %v5429_v34 = vpop.f32.mrb[158].mxu1 }
0x16f1   :  { %v5844_v35 = vpack.c.bf16 %v5427_v33, %v5427_v33  ;;  %v8196_v38 = vpop.f32.mrb[159].mxu1 }
0x16f3   :  { %v5852_v39 = vsel %vm887_vm2, %v5844_v35, 0 }
0x16f4   :  { %8254 = vmatpush3.bf16.xpose.msra.mxu1 %v5852_v39 }
0x16f5   :  { %8265 = vmatprep.subr.bf16.mxu1 %v8675_v11 }
0x16f6   :  { %v5530_v63 = vpop.f32.mrb[160].mxu1 }
0x16f7   :  { %v5531_v45 = vadd.f32 %v7205_v40, %v5530_v63  ;;  %v8211_v46 = vpop.f32.mrb[161].mxu1 }
0x16f8   :  { %v5533_v47 = vpop.f32.mrb[162].mxu1  ;;  %v5934_v2 = vpop.f32.mrb[188].mxu0 }
0x16f9   :  { %v5846_v48 = vpack.c.bf16 %v5531_v45, %v5531_v45  ;;  %v6033_v36 = vmul.f32 0.35355338, %v5934_v2  ;;  %v8212_v7 = vpop.f32.mrb[163].mxu1  ;;  %v8263_v51 = vpop.f32.mrb[189].mxu0 }
0x16fa   :  { %v5937_v53 = vpop.f32.mrb[190].mxu0 }
0x16fb   :  { %v5944_v54 = vsel %vm887_vm2, %v5846_v48, 0  ;;  %8256 = vmatmul.mubr.msk.bf16.vlgmr.msra.gmra.mrb[172].mxu1 %vm887_vm2, %v5840_v17  ;;  %v6037_v25 = vadd.f32 %v6033_v36, %v9061_v14  ;;  %v8264_v55 = vpop.f32.mrb[191].mxu0  ;;  %v5835_v53 = vadd.f32 %v7222_v52, %v10127_v27 }
0x16fc   :  { %8266 = vmatpush3.bf16.xpose.msra.mxu1 %v5944_v54  ;;  %8267 = vmatprep.mubr.msk.bf16.mxu1 %vm8676_vm1, %v8675_v11 }
0x16fd   :  { %v6043_v58 = vsel %vm887_vm2, %v6037_v25, -inf  ;;  %8277 = vmatprep.subr.bf16.mxu1 %v8675_v11  ;;  %v6091_v55 = vpack.c.bf16 %v5835_v53, %v5835_v53 }
0x16fe   :  { %v5678_v44 = vpop.f32.mrb[164].mxu1  ;;  %6044 = vmax.xlane.f32.xlu1 %v6043_v58 }
0x16ff   :  { %v5679_v1 = vadd.f32 %v7219_v56, %v5678_v44  ;;  %v8227_v4 = vpop.f32.mrb[165].mxu1  ;;  %v6234_v58 = vsel %vm1135_vm3, %v6091_v55, 0 }
0x1700   :  { %v5681_v6 = vpop.f32.mrb[166].mxu1  ;;  %v6026_v8 = vpop.f32.mrb[192].mxu0 }
0x1701   :  { %v6088_v10 = vpack.c.bf16 %v5679_v1, %v5679_v1  ;;  %v6035_v15 = vmul.f32 0.35355338, %v6026_v8  ;;  %v8228_v43 = vpop.f32.mrb[167].mxu1  ;;  %v8275_v19 = vpop.f32.mrb[193].mxu0 }
0x1702   :  { %v6029_v22 = vpop.f32.mrb[194].mxu0 }
0x1703   :  { %v6096_v24 = vsel %vm1135_vm3, %v6088_v10, 0  ;;  %8268 = vmatmul.mubr.msk.bf16.vlgmr.msra.gmra.mrb[176].mxu1 %vm887_vm2, %v5842_v37  ;;  %v6039_v49 = vadd.f32 %v6035_v15, %v9061_v14  ;;  %v8276_v18 = vpop.f32.mrb[195].mxu0 }
0x1704   :  { %8278 = vmatpush3.bf16.msra.mxu1 %v6096_v24  ;;  %8279 = vmatprep.mubr.msk.bf16.mxu1 %vm8676_vm1, %v8675_v11  ;;  %v6281_v24 = vld [vmem:[%s10369_s11 + $0x4] sm:$0xf] }
0x1705   :  { %v6049_v0 = vsel %vm887_vm2, %v6039_v49, -inf  ;;  %8289 = vmatprep.subr.bf16.mxu1 %v8675_v11 }
0x1706   :  { %v10169_v20 = vpop.f32.mrb[168].mxu1  ;;  %6050 = vmax.xlane.f32.xlu1 %v6049_v0  ;;  %v7221_v0 = vld [vmem:[%s10368_s10 + $0x2] ss:$0 sm:$0xff] }
0x1707   :  { %v8243_v26 = vpop.f32.mrb[169].mxu1 }
0x1708   :  { %v5785_v60 = vpop.f32.mrb[170].mxu1  ;;  %v5783_v26 = vadd.f32 %v7221_v0, %v10169_v20 }
0x1709   :  { %v8244_v42 = vpop.f32.mrb[171].mxu1 }
0x178b   :  { %v6045_v28 = vpop.xlane.xlu1 %6044 }
0x178c   :  { %v6053_v32 = vsub.f32 %v6037_v25, %v6045_v28  ;;  %v6283_v28 = vld [vmem:[%s10369_s11 + $0xc] sm:$0xf] }
0x178e   :  { %v6058_v12 = vmul.f32 1.442695, %v6053_v32  ;;  %v6090_v32 = vpack.c.bf16 %v5783_v26, %v5783_v26 }
0x1790   :  { %8601 = vpow2.f32 %v6058_v12 }
0x1793   :  { %v6051_v57 = vpop.xlane.xlu1 %6050 }
0x1794   :  { %v6055_v16 = vsub.f32 %v6039_v49, %v6051_v57  ;;  %v6334_v49 = vsel %vm1135_vm3, %v6281_v24, 0 }
0x1796   :  { %v6062_v41 = vmul.f32 1.442695, %v6055_v16 }
0x1798   :  { %8603 = vpow2.f32 %v6062_v41 }
0x179a   :  { %v8602_v33 = vpop.eup %8601 }
0x179b   :  { %v6067_v61 = vsel %vm887_vm2, %v8602_v33, 0.0 }
0x179c   :  { %6068 = vadd.xlane.f32.xlu1 %v6067_v61  ;;  %v6426_v61 = vsel %vm1135_vm3, %v6283_v28, 0 }
0x17a2   :  { %v8604_v34 = vpop.eup %8603 }
0x17a3   :  { %v6073_v35 = vsel %vm887_vm2, %v8604_v34, 0.0 }
0x17a4   :  { %6074 = vadd.xlane.f32.xlu1 %v6073_v35  ;;  %v6188_v35 = vsel %vm1135_vm3, %v6090_v32, 0 }
0x17ce   :  { %v5888_v38 = vpop.f32.mrb[172].mxu1 }
0x17cf   :  { %v6032_v50 = vmul.f32 0.35355338, %v5888_v38  ;;  %v8257_v39 = vpop.f32.mrb[173].mxu1 }
0x17d0   :  { %v5891_v40 = vpop.f32.mrb[174].mxu1 }
0x17d1   :  { %v8258_v13 = vpop.f32.mrb[175].mxu1  ;;  %v6036_v63 = vadd.f32 %v6032_v50, %v9061_v14  ;;  %v6280_v50 = vld [vmem:[%s10369_s11] sm:$0xf] }
0x17d3   :  { %v6040_v45 = vsel %vm887_vm2, %v6036_v63, -inf }
0x17d4   :  { %6041 = vmax.xlane.f32.xlu0 %v6040_v45 }
0x17d6   :  { %v5980_v46 = vpop.f32.mrb[176].mxu1 }
0x17d7   :  { %v6034_v47 = vmul.f32 0.35355338, %v5980_v46  ;;  %v8269_v2 = vpop.f32.mrb[177].mxu1  ;;  %v6288_v46 = vsel %vm1135_vm3, %v6280_v50, 0  ;;  %v8677_v50 = vmov 0.0|0.0  }
0x17d8   :  { %v5983_v17 = vpop.f32.mrb[178].mxu1 }
0x17d9   :  { %v8270_v48 = vpop.f32.mrb[179].mxu1  ;;  %v6038_v36 = vadd.f32 %v6034_v47, %v9061_v14  ;;  %v6282_v17 = vld [vmem:[%s10369_s11 + $0x8] sm:$0xf]  ;;  %s10412_s11 = sld [smem:[#allocation10_spill]] }
0x17da   :  { %v6380_v53 = vsel %vm1135_vm3, %v6282_v17, 0  ;;  %v8517_v17 = vld [vmem:[%s10375_s17] sm:$0xff]  }
0x17db   :  { %v6046_v7 = vsel %vm887_vm2, %v6038_v36, -inf }
0x17dc   :  { %6047 = vmax.xlane.f32.xlu0 %v6046_v7 }
0x1829   :  { %v6069_v51 = vpop.xlane.xlu1 %6068 }
0x182a   :  { %8605 = vrcp.f32 %v6069_v51 }
0x1831   :  { %v6075_v54 = vpop.xlane.xlu1 %6074 }
0x1832   :  { %8607 = vrcp.f32 %v6075_v54 }
0x1834   :  { %v8606_v25 = vpop.eup %8605 }
0x1835   :  { %v6081_v56 = vmul.f32 %v8606_v25, %v8602_v33 }
0x1837   :  { %v6085_v9 = vpack.c.bf16 %v6081_v56, %v6081_v56 }
0x1839   :  { %8286 = vmatmul.mubr.msk.bf16.vlgmr.msra.gmra.mrb[196].mxu0 %vm887_vm2, %v6085_v9 }
0x183a   :  { %8296 = vmatpush3.bf16.msra.mxu0 %v6234_v58  ;;  %8297 = vmatprep.mubr.msk.bf16.mxu0 %vm8676_vm1, %v8675_v11 }
0x183b   :  { %8307 = vmatprep.subr.bf16.mxu0 %v8675_v11 }
0x183c   :  { %v8608_v14 = vpop.eup %8607 }
0x183d   :  { %v6083_v44 = vmul.f32 %v8608_v14, %v8604_v34 }
0x183f   :  { %v6087_v1 = vpack.c.bf16 %v6083_v44, %v6083_v44 }
0x1841   :  { %8298 = vmatmul.mubr.msk.bf16.vlgmr.msra.gmra.mrb[200].mxu0 %vm887_vm2, %v6087_v1 }
0x1842   :  { %8309 = vmatprep.mubr.msk.bf16.mxu0 %vm8676_vm1, %v8675_v11  ;;  %8308 = vmatpush3.bf16.msra.mxu0 %v6334_v49 }
0x1843   :  { %8319 = vmatprep.subr.bf16.mxu0 %v8675_v11 }
0x1861   :  { %v6042_v27 = vpop.xlane.xlu0 %6041 }
0x1862   :  { %v6052_v4 = vsub.f32 %v6036_v63, %v6042_v27 }
0x1864   :  { %v6056_v6 = vmul.f32 1.442695, %v6052_v4 }
0x1866   :  { %8609 = vpow2.f32 %v6056_v6 }
0x1869   :  { %v6048_v8 = vpop.xlane.xlu0 %6047 }
0x186a   :  { %v6054_v37 = vsub.f32 %v6038_v36, %v6048_v8 }
0x186c   :  { %v6060_v10 = vmul.f32 1.442695, %v6054_v37 }
0x186e   :  { %8611 = vpow2.f32 %v6060_v10 }
0x1870   :  { %v8610_v15 = vpop.eup %8609 }
0x1871   :  { %v6064_v43 = vsel %vm887_vm2, %v8610_v15, 0.0 }
0x1872   :  { %6065 = vadd.xlane.f32.xlu0 %v6064_v43 }
0x1878   :  { %v8612_v19 = vpop.eup %8611 }
0x1879   :  { %v6070_v22 = vsel %vm887_vm2, %v8612_v19, 0.0 }
0x187a   :  { %6071 = vadd.xlane.f32.xlu0 %v6070_v22 }
0x18ff   :  { %v6066_v18 = vpop.xlane.xlu0 %6065 }
0x1900   :  { %8613 = vrcp.f32 %v6066_v18 }
0x1907   :  { %v6072_v60 = vpop.xlane.xlu0 %6071 }
0x1908   :  { %8615 = vrcp.f32 %v6072_v60 }
0x190a   :  { %v8614_v42 = vpop.eup %8613 }
0x190b   :  { %v6080_v12 = vmul.f32 %v8614_v42, %v8610_v15 }
0x190c   :  { %v6178_v57 = vpop.f32.mrb[196].mxu0 }
0x190d   :  { %v6277_v16 = vpack.c.bf16 %v6178_v57, %v6178_v57  ;;  %v8287_v41 = vpop.f32.mrb[197].mxu0  ;;  %v6084_v33 = vpack.c.bf16 %v6080_v12, %v6080_v12  ;;  %v7247_v12 = vld [vmem:[%s10370_s12] ss:$0 sm:$0xff] }
0x190e   :  { %v6181_v34 = vpop.f32.mrb[198].mxu0 }
0x190f   :  { %8280 = vmatmul.mubr.msk.bf16.vlgmr.msra.gmra.mrb[180].mxu1 %vm887_vm2, %v6084_v33  ;;  %v8288_v20 = vpop.f32.mrb[199].mxu0  ;;  %8310 = vmatmul.mubr.msk.bf16.vlgmr.msra.gmra.mrb[204].mxu0 %vm887_vm2, %v6277_v16 }
0x1910   :  { %8290 = vmatpush3.bf16.msra.mxu1 %v6188_v35  ;;  %8320 = vmatpush3.bf16.msra.mxu0 %v6426_v61 }
0x1911   :  { %8291 = vmatprep.mubr.msk.bf16.mxu1 %vm8676_vm1, %v8675_v11  ;;  %8321 = vmatprep.mubr.msk.bf16.mxu0 %vm8676_vm1, %v8675_v11 }
0x1912   :  { %v8616_v38 = vpop.eup %8615  ;;  %8301 = vmatprep.subr.bf16.mxu1 %v8675_v11  ;;  %8333 = vmatprep.subr.bf16.mxu0 %v8675_v11 }
0x1913   :  { %v6082_v39 = vmul.f32 %v8616_v38, %v8612_v19  ;;  %v8515_v38 = vld [vmem:[%s10373_s15] sm:$0xff]  }
0x1914   :  { %v6270_v40 = vpop.f32.mrb[200].mxu0 }
0x1915   :  { %v6279_v13 = vpack.c.bf16 %v6270_v40, %v6270_v40  ;;  %v8299_v63 = vpop.f32.mrb[201].mxu0  ;;  %v6086_v45 = vpack.c.bf16 %v6082_v39, %v6082_v39 }
0x1916   :  { %v6273_v47 = vpop.f32.mrb[202].mxu0 }
0x1917   :  { %8292 = vmatmul.mubr.msk.bf16.vlgmr.msra.gmra.mrb[184].mxu1 %vm887_vm2, %v6086_v45  ;;  %v8300_v2 = vpop.f32.mrb[203].mxu0  ;;  %8322 = vmatmul.mubr.msk.bf16.vlgmr.msra.gmra.mrb[208].mxu0 %vm887_vm2, %v6279_v13 }
0x1918   :  { %8302 = vmatpush3.bf16.msra.mxu1 %v6288_v46  ;;  %8303 = vmatprep.mubr.msk.bf16.mxu1 %vm8676_vm1, %v8675_v11 }
0x1919   :  { %8313 = vmatprep.subr.bf16.mxu1 %v8675_v11  ;;  %8349 = vmatprep.mubr.msk.bf16.mxu0 %vm8676_vm1, %v8675_v11 }
0x191a   :  { %8334 = vmatpush3.bf16.msra.mxu0 %v8517_v17 }
0x191b   :  { %8335 = vmatprep.subr.bf16.mxu0 %v8675_v11 }
0x19e2   :  { %v6132_v48 = vpop.f32.mrb[180].mxu1  ;;  %v6370_v36 = vpop.f32.mrb[204].mxu0 }
0x19e3   :  { %v6276_v7 = vpack.c.bf16 %v6132_v48, %v6132_v48  ;;  %v8281_v51 = vpop.f32.mrb[181].mxu1  ;;  %v8311_v52 = vpop.f32.mrb[205].mxu0  ;;  %v6469_v10 = vsel %vm90_vm0, %v6370_v36, 0.0  ;;  %v8523_v48 = vld [vmem:[%s10375_s17 + $0x30] sm:$0xff]   ;;  %v8524_v36 = vld [vmem:[%s10375_s17 + $0x38] sm:$0xff]  }
0x19e4   :  { %v6135_v54 = vpop.f32.mrb[182].mxu1  ;;  %v6373_v25 = vpop.f32.mrb[206].mxu0 }
0x19e5   :  { %v8282_v55 = vpop.f32.mrb[183].mxu1  ;;  %8304 = vmatmul.mubr.msk.bf16.vlgmr.msra.gmra.mrb[188].mxu1 %vm887_vm2, %v6276_v7  ;;  %v8312_v56 = vpop.f32.mrb[207].mxu0 }
0x19e6   :  { %8314 = vmatpush3.bf16.msra.mxu1 %v6380_v53  ;;  %8315 = vmatprep.mubr.msk.bf16.mxu1 %vm8676_vm1, %v8675_v11 }
0x19e7   :  { %8325 = vmatprep.subr.bf16.mxu1 %v8675_v11 }
0x19ea   :  { %v6224_v9 = vpop.f32.mrb[184].mxu1  ;;  %v6462_v58 = vpop.f32.mrb[208].mxu0 }
0x19eb   :  { %v6278_v14 = vpack.c.bf16 %v6224_v9, %v6224_v9  ;;  %v8293_v44 = vpop.f32.mrb[185].mxu1  ;;  %v8323_v1 = vpop.f32.mrb[209].mxu0  ;;  %v6473_v42 = vsel %vm90_vm0, %v6462_v58, 0.0 }
0x19ec   :  { %v6227_v27 = vpop.f32.mrb[186].mxu1  ;;  %v6465_v4 = vpop.f32.mrb[210].mxu0  ;;  %v7175_v1 = vld [vmem:[%s10376_s18] ss:$0 sm:$0xff] }
0x19ed   :  { %v8294_v6 = vpop.f32.mrb[187].mxu1  ;;  %8316 = vmatmul.mubr.msk.bf16.vlgmr.msra.gmra.mrb[192].mxu1 %vm887_vm2, %v6278_v14  ;;  %v8324_v8 = vpop.f32.mrb[211].mxu0  ;;  %v5042_v27 = vadd.f32 %v7175_v1, %v10134_v30 }
0x19ee   :  { %8329 = vmatprep.mubr.msk.bf16.mxu1 %vm8676_vm1, %v8675_v11  ;;  %8326 = vmatpush3.bf16.msra.mxu1 %v8515_v38 }
0x19ef   :  { %8327 = vmatprep.subr.bf16.mxu1 %v8675_v11 }
0x1ab8   :  { %v6324_v37 = vpop.f32.mrb[188].mxu1 }
0x1ab9   :  { %v6468_v15 = vsel %vm90_vm0, %v6324_v37, 0.0  ;;  %v8305_v43 = vpop.f32.mrb[189].mxu1  ;;  %v5047_v37 = vadd.f32 %v5042_v27, %v9871_v59 }
0x1aba   :  { %v6470_v19 = vadd.f32 %v6469_v10, %v6468_v15  ;;  %v6327_v22 = vpop.f32.mrb[190].mxu1 }
0x1abb   :  { %v8306_v24 = vpop.f32.mrb[191].mxu1 }
0x1ac0   :  { %v6416_v49 = vpop.f32.mrb[192].mxu1 }
0x1ac1   :  { %v6471_v18 = vsel %vm90_vm0, %v6416_v49, 0.0  ;;  %v8317_v0 = vpop.f32.mrb[193].mxu1 }
0x1ac2   :  { %v6472_v26 = vadd.f32 %v6471_v18, %v6470_v19  ;;  %v6419_v60 = vpop.f32.mrb[194].mxu1  ;;  %v6701_v19 = vld [vmem:[%s10412_s11] sm:$0xf] }
0x1ac3   :  { %v8318_v28 = vpop.f32.mrb[195].mxu1  ;;  %v8525_v60 = vld [vmem:[%s10379_s21] sm:$0xff]  }
0x1ac4   :  { %v6474_v32 = vadd.f32 %v6473_v42, %v6472_v26  ;;  %v8526_v42 = vld [vmem:[%s10379_s21 + $0x8] sm:$0xff]   ;;  %s8678_s21 = smov [#allocation2]  }
0x1ac5   :  { %s6923_s8 = sshll.u32 %s8678_s21, 4  ;;  %s6924_s8 = int_to_ptr.vmem [resolvable:$true] %s6923_s8 }
0x1ac6   :  { %v6475_v57 = vadd.f32 %v6474_v32, %v9876_v3  ;;  %v8516_v3 = vld [vmem:[%s10373_s15 + $0x8] sm:$0xff]   ;;  %s8627_s27 = scalar_lea.vmem %s6924_s8, 64  ;;  %p8632_p1 = scmp.lt.s32.totalorder %s6924_s8, %s6924_s8 }
0x1ac7   :  { %8328 = vmatpush3.bf16.msra.mxu1 %v8516_v3  ;;  %p8628_p0 = scmp.ne.s32.totalorder %s6924_s8, %s8627_s27  ;;  %p8633_p2 = scmp.lt.s32.totalorder %s8627_s27, %s8627_s27 }
0x1ac8   :  { %v10243_v16 = vadd.f32 %v7247_v12, %v6475_v57  ;;  %8378 = vmatprep.subr.bf16.mxu1 %v8677_v50 }
0x1ac9   :  { %p8634_p3 = por %p8633_p2, %p8632_p1 }
0x1aca   :  { %v6486_v41 = vsel %vm90_vm0, %v10243_v16, 0.0 }
0x1acb   :  { %6487 = vadd.xlane.f32.xlu0 %v6486_v41  ;;  %p8635_p4 = pnand %p8634_p3, %p8628_p0 }
0x1b58   :  { %v6488_v33 = vpop.xlane.xlu0 %6487 }
0x1b59   :  { %v6489_v61 = vmul.f32 0.03125, %v6488_v33  ;;  %v7266_v33 = vld [vmem:[%s10378_s20] ss:$0 sm:$0xff] }
0x1b5b   :  { %v6490_v34 = vsub.f32 %v10243_v16, %v6489_v61 }
0x1b5d   :  { %v6491_v35 = vmul.f32 %v6490_v34, %v6490_v34 }
0x1b5f   :  { %v6492_v20 = vsel %vm90_vm0, %v6491_v35, 0.0 }
0x1b60   :  { %6493 = vadd.xlane.f32.xlu1 %v6492_v20 }
0x1bed   :  { %v6494_v39 = vpop.xlane.xlu1 %6493 }
0x1bee   :  { %v6495_v40 = vmul.f32 0.03125, %v6494_v39 }
0x1bf0   :  { %v6496_v13 = vadd.f32 1e-05, %v6495_v40 }
0x1bf2   :  { %8617 = vrsqrt.f32 %v6496_v13  ;;  %v6866_v13 = vld [vmem:[%s10380_s22] sm:$0x3] }
0x1bfc   :  { %v8618_v63 = vpop.eup %8617 }
0x1bfd   :  { %v6498_v45 = vmul.f32 %v8618_v63, %v6490_v34  ;;  %v6867_v63 = vpack.c.bf16 %v6866_v13, %v6866_v13 }
0x1bff   :  { %v6505_v46 = vmul.f32 %v9897_v29, %v6498_v45  ;;  %v8518_v29 = vld [vmem:[%s10375_s17 + $0x8] sm:$0xff]  }
0x1c00   :  { %8336 = vmatpush3.bf16.msra.mxu0 %v8518_v29 }
0x1c01   :  { %v6512_v47 = vadd.f32 %v9902_v62, %v6505_v46  ;;  %8337 = vmatprep.subr.bf16.mxu0 %v8675_v11  ;;  %v8522_v62 = vld [vmem:[%s10375_s17 + $0x28] sm:$0xff]  }
0x1c03   :  { %v6513_v2 = vpack.c.bf16 %v6512_v47, %v6512_v47 }
0x1c04   :  { %8338 = vmatpush3.bf16.msra.mxu0 %v8519_v31 }
0x1c05   :  { %8330 = vmatmul.mubr.msk.bf16.vlgmr.msra.gmra.mrb[196].mxu1 %vm90_vm0, %v6513_v2  ;;  %8339 = vmatprep.subr.bf16.mxu0 %v8675_v11 }
0x1c06   :  { %8380 = vmatpush3.bf16.msra.mxu1 %v8379_v23  ;;  %8361 = vmatprep.mubr.msk.f32.mxu1 %vm8676_vm1, %v8675_v11  ;;  %v8521_v23 = vld [vmem:[%s10375_s17 + $0x20] sm:$0xff]  }
0x1c07   :  { %8381 = vmatprep.subr.bf16.mxu1 %v8677_v50 }
0x1c08   :  { %8340 = vmatpush3.bf16.msra.mxu0 %v8520_v21 }
0x1c09   :  { %8341 = vmatprep.subr.bf16.mxu0 %v8675_v11 }
0x1c0c   :  { %8342 = vmatpush3.bf16.msra.mxu0 %v8521_v23 }
0x1c0d   :  { %8343 = vmatprep.subr.bf16.mxu0 %v8675_v11 }
0x1c10   :  { %8344 = vmatpush3.bf16.msra.mxu0 %v8522_v62 }
0x1c11   :  { %8345 = vmatprep.subr.bf16.mxu0 %v8675_v11 }
0x1c14   :  { %8346 = vmatpush3.bf16.msra.mxu0 %v8523_v48 }
0x1c15   :  { %8347 = vmatprep.subr.bf16.mxu0 %v8675_v11 }
0x1c18   :  { %8348 = vmatpush3.bf16.msra.mxu0 %v8524_v36 }
0x1cd8   :  { %v6574_v7 = vpop.f32.mrb[196].mxu1 }
0x1cd9   :  { %v6575_v51 = vadd.f32 %v10048_v5, %v6574_v7  ;;  %v8331_v52 = vpop.f32.mrb[197].mxu1 }
0x1cda   :  { %v6577_v53 = vpop.f32.mrb[198].mxu1 }
0x1cdb   :  { %v7254_v54 = vmul.f32 -1.702, %v6575_v51  ;;  %v8332_v25 = vpop.f32.mrb[199].mxu1 }
0x1cdd   :  { %v6582_v55 = vmul.f32 1.442695, %v7254_v54 }
0x1cdf   :  { %8619 = vpow2.f32 %v6582_v55 }
0x1ce9   :  { %v8620_v56 = vpop.eup %8619 }
0x1cea   :  { %v6584_v9 = vadd.f32 1.0, %v8620_v56 }
0x1cec   :  { %8621 = vrcp.f32 %v6584_v9 }
0x1cf6   :  { %v8622_v58 = vpop.eup %8621 }
0x1cf7   :  { %v6587_v14 = vmul.f32 %v8622_v58, %v6575_v51 }
0x1cf9   :  { %v6588_v44 = vpack.c.bf16 %v6587_v14, %v6587_v14 }
0x1cfb   :  { %8350 = vmatmul.mubr.bf16.vlgmr.msra.gmra.mrb[212].mxu0 %v6588_v44 }
0x1dce   :  { %v6694_v5 = vpop.f32.mrb[212].mxu0 }
0x1dcf   :  { %v6695_v4 = vadd.f32 %v7175_v1, %v6694_v5  ;;  %v8351_v6 = vpop.f32.mrb[213].mxu0 }
0x1dd0   :  { %v6697_v8 = vpop.f32.mrb[214].mxu0 }
0x1dd1   :  { %v6700_v10 = vadd.f32 %v6695_v4, %v10243_v16  ;;  %v8352_v15 = vpop.f32.mrb[215].mxu0  ;;  %v7265_v16 = vld [vmem:[%s10377_s19] ss:$0 sm:$0xff] }
0x1dd3   :  { %v8382_v43 = vpack.c.bf16 %v6700_v10, %v5047_v37 }
0x1dd5   :  { %8383 = vmatpush3.bf16.msra.mxu1 %v8382_v43 }
0x1dd6   :  { %8364 = vmatprep.subr.bf16.mxu1 %v8675_v11 }
0x1dd8   :  { %8362 = vmatmul.mubr.msk.f32.vlgmr.msra.gmra.mrb[200].mxu1 %vm90_vm0, %v6701_v19 }
0x1dd9   :  { %8368 = vmatprep.mubr.msk.bf16.mxu1 %vm8676_vm1, %v8675_v11  ;;  %8365 = vmatpush3.bf16.msra.mxu1 %v8525_v60 }
0x1dda   :  { %8366 = vmatprep.subr.bf16.mxu1 %v8675_v11 }
0x1ddd   :  { %8367 = vmatpush3.bf16.msra.mxu1 %v8526_v42 }
0x1dde   :  { %8372 = vmatprep.subr.bf16.mxu1 %v8675_v11 }
0x1eab   :  { %v6771_v30 = vpop.f32.mrb[200].mxu1 }
0x1eac   :  { %v8363_v22 = vpop.f32.mrb[201].mxu1  ;;  %v6778_v59 = vsel %vm6777_vm5, %v6771_v30, 0.0 }
0x1ead   :  { %6779 = vadd.xlane.f32.xlu0 %v6778_v59 }
0x1f3a   :  { %v6780_v24 = vpop.xlane.xlu0 %6779 }
0x1f3b   :  { %v6781_v49 = vmul.f32 0.03125, %v6780_v24 }
0x1f3d   :  { %v6782_v18 = vsub.f32 %v6771_v30, %v6781_v49 }
0x1f3f   :  { %v6783_v0 = vmul.f32 %v6782_v18, %v6782_v18 }
0x1f41   :  { %v6784_v26 = vsel %vm6777_vm5, %v6783_v0, 0.0 }
0x1f42   :  { %6785 = vadd.xlane.f32.xlu1 %v6784_v26 }
0x1fcf   :  { %v6786_v28 = vpop.xlane.xlu1 %6785 }
0x1fd0   :  { %v6787_v32 = vmul.f32 0.03125, %v6786_v28 }
0x1fd2   :  { %v6788_v12 = vadd.f32 1e-05, %v6787_v32 }
0x1fd4   :  { %8623 = vrsqrt.f32 %v6788_v12 }
0x1fde   :  { %v8624_v57 = vpop.eup %8623 }
0x1fdf   :  { %v6790_v41 = vmul.f32 %v8624_v57, %v6782_v18 }
0x1fe1   :  { %v6797_v61 = vmul.f32 %v7265_v16, %v6790_v41 }
0x1fe3   :  { %v6804_v34 = vadd.f32 %v7266_v33, %v6797_v61 }
0x1fe5   :  { %v6805_v35 = vpack.c.bf16 %v6804_v34, %v6804_v34 }
0x1fe7   :  { %8369 = vmatmul.mubr.msk.bf16.vlgmr.msra.gmra.mrb[204].mxu1 %vm90_vm0, %v6805_v35 }
0x1fe8   :  { %8374 = vmatprep.mubr.msk.bf16.mxu1 %vm8676_vm1, %v8675_v11 }
0x20ba   :  { %v6859_v20 = vpop.f32.mrb[204].mxu1 }
0x20bb   :  { %v6868_v38 = vpack.c.bf16 %v6859_v20, %v6859_v20  ;;  %6865 = vst.msk [vmem:[#allocation2] sm:$0xf] %vm6777_vm5, %v6859_v20  ;;  %v8370_v3 = vpop.f32.mrb[205].mxu1 }
0x20bc   :  { %v6862_v50 = vpop.f32.mrb[206].mxu1 }
0x20bd   :  { %v8371_v39 = vpop.f32.mrb[207].mxu1  ;;  %v6873_v40 = vsel %vm90_vm0, %v6868_v38, 0 }
0x20be   :  { %8373 = vmatpush3.bf16.xpose.msra.mxu1 %v6873_v40 }
0x20c5   :  { %8375 = vmatmul.mubr.msk.bf16.vlgmr.msra.gmra.mrb[208].mxu1 %vm90_vm0, %v6867_v63 }
0x20c6   :  { %8638 = shalt.err (!%p8635_p4)
}
0x20c7   :  { %s10413_s2 = sld [smem:[#allocation17_spill]] }
0x20cd   :  { %s8639_s4 = scalar_lea.hbm %s10413_s2, 64 }
0x20ce   :  { %p8640_p5 = scmp.ne.s32.totalorder %s10413_s2, %s8639_s4  ;;  %p8643_p6 = scmp.lt.u32.totalorder %s8639_s4, %s10413_s2 }
0x20d0   :  { %p8645_p7 = pnand %p8643_p6, %p8640_p5 }
0x20d2   :  { %8648 = shalt.err (!%p8645_p7)
}
0x20d3   :  { %6926 = dma.vmem_to_hbm [thread:$0]  %s6924_s8, 64, %s10413_s2, [#allocation3]   ;;  %vm6915_vm6 = vcmask 25600  }
0x20d4   :  { %s8679_s7 = smov [#allocation4]  }
0x20d5   :  { %s6933_s0 = sshll.u32 %s8679_s7, 4  ;;  %s6934_s0 = int_to_ptr.vmem [resolvable:$true] %s6933_s0 }
0x20d6   :  { %s8649_s10 = scalar_lea.vmem %s6934_s0, 32  ;;  %p8654_p9 = scmp.lt.s32.totalorder %s6934_s0, %s6934_s0 }
0x20d7   :  { %p8650_p8 = scmp.ne.s32.totalorder %s6934_s0, %s8649_s10  ;;  %p8655_p10 = scmp.lt.s32.totalorder %s8649_s10, %s8649_s10 }
0x20d9   :  { %p8656_p11 = por %p8655_p10, %p8654_p9 }
0x20db   :  { %p8657_p12 = pnand %p8656_p11, %p8650_p8 }
0x2198   :  { %v6909_v11 = vpop.f32.mrb[208].mxu1 }
0x2199   :  { %6916 = vst.msk [vmem:[#allocation4] sm:$0x3] %vm6915_vm6, %v6909_v11  ;;  %v8376_v45 = vpop.f32.mrb[209].mxu1 }
0x219a   :  { %v6912_v46 = vpop.f32.mrb[210].mxu1 }
0x219b   :  { %8660 = shalt.err (!%p8657_p12)
}
0x219c   :  { %s10414_s17 = sld [smem:[#allocation18_spill]] }
0x21a2   :  { %s8661_s29 = scalar_lea.hbm %s10414_s17, 32 }
0x21a3   :  { %p8662_p13 = scmp.ne.s32.totalorder %s10414_s17, %s8661_s29  ;;  %p8665_p0 = scmp.lt.u32.totalorder %s8661_s29, %s10414_s17 }
0x21a5   :  { %p8667_p1 = pnand %p8665_p0, %p8662_p13 }
0x21a7   :  { %8670 = shalt.err (!%p8667_p1)
}
0x21a8   :  { %6936 = dma.vmem_to_hbm [thread:$0]  %s6934_s0, 32, %s10414_s17, [#allocation5]   ;;  %v8377_v47 = vpop.f32.mrb[211].mxu1 }
0x21a9   :  { %8671 = dma.done.wait [#allocation3], 64  }
0x21aa   :  { %8672 = vsyncadd [#allocation3], 4294967232 }
0x21ab   :  { %8673 = dma.done.wait [#allocation5], 32  }
0x21ac   :  { %8674 = vsyncadd [#allocation5], 4294967264 }
0x21ad   :  { %6943 = vsyncpa [#allocation3], 1 }
0x21ae   :  { %6944 = vsyncpa [#allocation5], 1 }

</bundles_post_ra>
